<compile_context>
chip_gen: v6e
topology: v6e:2x2x1
jax: 0.10.0
libtpu: 0.0.40
codegen_flags: <defaults>
</compile_context>

<pallas_src>
import jax
import jax.numpy as jnp
from jax import lax
from jax.experimental import pallas as pl
from jax.experimental.pallas import tpu as pltpu


# ----------------------------------------------------------------------------
# helpers
# ----------------------------------------------------------------------------
def _round_up(n, m):
    return ((n + m - 1) // m) * m


def _pad_rows(x, n_rows):
    pad = n_rows - x.shape[0]
    if pad == 0:
        return x
    return jnp.pad(x, [(0, pad)] + [(0, 0)] * (x.ndim - 1))


def _pick_block(n, max_block):
    """Row block: multiple of 8, <= max_block, and (if possible) >= 2 grid steps so
    both v7x TensorCores get work on the 'parallel' axis."""
    n8 = _round_up(max(n, 1), 8)
    b = min(max_block, n8)
    if n8 // b < 2 and n8 >= 16:
        b = _round_up((n8 + 1) // 2, 8)
    return b


def _fuse_gate_cols(we, wa, H):
    """Interleave two (D, 4H) torch-gate-order (i,f,g,o) matrices into (D, 8H) with
    column blocks [i_e, i_a, f_e, f_a, g_e, g_a, o_e, o_a] (each width H)."""
    cols = []
    for g in range(4):
        cols.append(we[:, g * H:(g + 1) * H])
        cols.append(wa[:, g * H:(g + 1) * H])
    return jnp.concatenate(cols, axis=1)


def _fuse_gate_cols_blockdiag(we, wa, H):
    """Block-diagonal fuse for per-LSTM inputs: rows = [edge-input ; attn-input],
    result (De + Da, 8H). Edge rows feed only edge gate columns, attn rows only attn."""
    ze = jnp.zeros((we.shape[0], H), we.dtype)
    za = jnp.zeros((wa.shape[0], H), wa.dtype)
    top, bot = [], []
    for g in range(4):
        top += [we[:, g * H:(g + 1) * H], ze]
        bot += [za, wa[:, g * H:(g + 1) * H]]
    return jnp.concatenate([jnp.concatenate(top, axis=1),
                            jnp.concatenate(bot, axis=1)], axis=0)


# ----------------------------------------------------------------------------
# Kernel 1: Time2Vec + fused dual (edge + attn) multi-layer masked LSTM + attn logit.
# Output slab per edge: [e_out (H) | leaky_relu(a_h @ attn_w) (1) | zeros] -> width 128k.
# ----------------------------------------------------------------------------
def _make_lstm_t2v_kernel(num_layers, seq_len, hidden, out_width):
    H = hidden
    H2 = 2 * H
    G = 8 * H

    def kernel(*refs):
        (ef_ref, tau_ref, len_ref,
         t2v_w_ref, t2v_b_ref, t2v_w0_ref, t2v_b0_ref,
         wih0_ref, whh0_ref, b0_ref) = refs[:10]
        n_extra = 2 * (num_layers - 1)
        layer_refs = refs[10:10 + n_extra]
        attn_w_ref = refs[10 + n_extra]
        out_ref = refs[11 + n_extra]
        xg_ref = refs[12 + n_extra]

        be = out_ref.shape[0]

        # ---- Time2Vec + fused layer-0 input projection, hoisted out of the
        # recurrence: ONE (be*T, D) x (D, 8H) MXU call, bias folded in. ----
        tau = tau_ref[...]                                        # (be*T, 1)
        v_sin = jnp.sin(tau * t2v_w_ref[...] + t2v_b_ref[...])    # (be*T, TH-1)
        v_lin = tau * t2v_w0_ref[...] + t2v_b0_ref[...]           # (be*T, 1)
        x = jnp.concatenate([ef_ref[...], v_sin, v_lin], axis=-1)  # (be*T, D)
        xg = (jnp.dot(x, wih0_ref[...], preferred_element_type=jnp.float32)
              + b0_ref[...])                                      # (be*T, 8H)
        xg_ref[...] = xg.reshape(be, seq_len, G)                  # bound live range

        lens = len_ref[...]                                       # (be, 1) int32

        # fused states: [edge | attn] along lanes
        h = [jnp.zeros((be, H2), jnp.float32) for _ in range(num_layers)]
        c = [jnp.zeros((be, H2), jnp.float32) for _ in range(num_layers)]

        for t in range(seq_len):                                  # small static T
            valid = jnp.broadcast_to(lens > t, (be, H2))          # hoisted per t
            # layer 0: hoisted input projection + one recurrent matmul
            gates = xg_ref[:, t, :] + jnp.dot(
                h[0], whh0_ref[...], preferred_element_type=jnp.float32)
            for l in range(num_layers):
                if l > 0:
                    wcat = layer_refs[2 * (l - 1)][...]           # (4H, 8H)
                    bl = layer_refs[2 * (l - 1) + 1][...]         # (1, 8H)
                    gates = jnp.dot(
                        jnp.concatenate([h[l - 1], h[l]], axis=-1), wcat,
                        preferred_element_type=jnp.float32) + bl
                i_g = jax.nn.sigmoid(gates[:, 0:H2])
                f_g = jax.nn.sigmoid(gates[:, H2:2 * H2])
                g_g = jnp.tanh(gates[:, 2 * H2:3 * H2])
                o_g = jax.nn.sigmoid(gates[:, 3 * H2:4 * H2])
                c_new = f_g * c[l] + i_g * g_g
                h_new = o_g * jnp.tanh(c_new)
                # freeze for t >= edge_len  -> packed-sequence final hidden
                h[l] = jnp.where(valid, h_new, h[l])
                c[l] = jnp.where(valid, c_new, c[l])

        h_top = h[num_layers - 1]                                 # (be, 2H)
        e_out = h_top[:, :H]
        a_h = h_top[:, H:]
        score = jnp.dot(a_h, attn_w_ref[...], preferred_element_type=jnp.float32)
        score = jnp.where(score >= 0.0, score, 0.01 * score)      # leaky_relu
        parts = [e_out, score]
        pad_w = out_width - (H + 1)
        if pad_w > 0:
            parts.append(jnp.zeros((be, pad_w), jnp.float32))
        out_ref[...] = jnp.concatenate(parts, axis=-1)            # lane-dense store

    return kernel


def dual_lstm_t2v(layer_params, edge_features, seq_times, edge_len, *, block_edges=128):
    """Returns (e_out (E, H), score (E, 1))."""
    E, T, De = edge_features.shape
    edge_p, attn_p = layer_params['edge_lstm'], layer_params['attn_lstm']
    H = edge_p[0]['whh'].shape[0]
    L = len(edge_p)
    G = 8 * H
    OW = _round_up(H + 1, 128)

    be = _pick_block(E, block_edges)
    E_pad = _round_up(E, be)

    ef2 = _pad_rows(edge_features.reshape(E * T, De), E_pad * T)
    tau2 = _pad_rows(seq_times.reshape(E * T, 1), E_pad * T)
    lens = _pad_rows(edge_len.reshape(E, 1).astype(jnp.int32), E_pad)  # pad len=0 -> h stays 0

    # fused weights (built once in XLA)
    wih0 = _fuse_gate_cols(edge_p[0]['wih'], attn_p[0]['wih'], H)            # (D, 8H)
    whh0 = _fuse_gate_cols_blockdiag(edge_p[0]['whh'], attn_p[0]['whh'], H)  # (2H, 8H)
    b0 = _fuse_gate_cols(edge_p[0]['b'], attn_p[0]['b'], H)                  # (1, 8H)
    extra = []
    for l in range(1, L):
        wih_l = _fuse_gate_cols_blockdiag(edge_p[l]['wih'], attn_p[l]['wih'], H)
        whh_l = _fuse_gate_cols_blockdiag(edge_p[l]['whh'], attn_p[l]['whh'], H)
        extra.append(jnp.concatenate([wih_l, whh_l], axis=0))                # (4H, 8H)
        extra.append(_fuse_gate_cols(edge_p[l]['b'], attn_p[l]['b'], H))     # (1, 8H)

    attn_w = layer_params['attn_w'].reshape(H, 1)

    args = [ef2, tau2, lens,
            layer_params['t2v_w'], layer_params['t2v_b'],
            layer_params['t2v_w0'], layer_params['t2v_b0'],
            wih0, whh0, b0] + extra + [attn_w]

    row_specs = [pl.BlockSpec((be * T, De), lambda i: (i, 0)),
                 pl.BlockSpec((be * T, 1), lambda i: (i, 0)),
                 pl.BlockSpec((be, 1), lambda i: (i, 0))]
    const_specs = [pl.BlockSpec(a.shape, lambda i: (0, 0)) for a in args[3:]]

    slab = pl.pallas_call(
        _make_lstm_t2v_kernel(L, T, H, OW),
        out_shape=jax.ShapeDtypeStruct((E_pad, OW), jnp.float32),
        grid=(E_pad // be,),
        in_specs=row_specs + const_specs,
        out_specs=pl.BlockSpec((be, OW), lambda i: (i, 0)),
        scratch_shapes=[pltpu.VMEM((be, T, G), jnp.float32)],
        compiler_params=pltpu.CompilerParams(dimension_semantics=("parallel",)),
    )(*args)
    return slab[:E, :H], slab[:E, H:H + 1]


# ----------------------------------------------------------------------------
# Kernel 2: fused message Linear+ReLU, sparsemax over K neighbours,
#           MXU-matmul neighbour reduction, and node Linear+ReLU.
# ----------------------------------------------------------------------------
def _make_msg_attn_node_kernel(K):
    def kernel(eo_ref, sc_ref, hsrc_ref, hdst_ref,
               weo_ref, eob_ref, wnode_ref, nodeb_ref, o_ref):
        tn = o_ref.shape[0]
        R = tn * K

        # message: relu(edge_out_layer(cat(h_src, e_out)))  -- one fused matmul
        msg_in = jnp.concatenate([hsrc_ref[...], eo_ref[...]], axis=-1)
        m = (jnp.dot(msg_in, weo_ref[...], preferred_element_type=jnp.float32)
             + eob_ref[...])
        m = jnp.maximum(m, 0.0)                                   # (R, H)

        # sparsemax over the K neighbours (scores already leaky-relu'd in kernel 1)
        a = sc_ref[...]                                           # (tn, K)
        z = a - jnp.max(a, axis=-1, keepdims=True)
        zi = z[:, :, None]
        zj = z[:, None, :]
        ii = lax.broadcasted_iota(jnp.int32, (K, K), 0)
        jj = lax.broadcasted_iota(jnp.int32, (K, K), 1)
        ge = jnp.logical_or(zj > zi, jnp.logical_and(zj == zi, jj <= ii))
        gef = ge.astype(jnp.float32)                              # (tn, K, K)
        rank1 = jnp.sum(gef, axis=-1)                             # 1-indexed descending rank
        csum = jnp.sum(zj * gef, axis=-1)                         # sorted cumsum at that rank
        supp = (1.0 + rank1 * z > csum).astype(jnp.float32)
        k_sup = jnp.max(rank1 * supp, axis=-1, keepdims=True)
        s_sparse = jnp.sum(z * supp, axis=-1, keepdims=True)
        tau = (s_sparse - 1.0) / k_sup
        alpha = jnp.maximum(z - tau, 0.0)                         # (tn, K)

        # attention-weighted neighbour sum as ONE MXU matmul:
        #   h_neigh = P_alpha @ m  with  P_alpha[n, n*K + k] = alpha[n, k]
        col = lax.broadcasted_iota(jnp.int32, (tn, R), 1)
        rowi = lax.broadcasted_iota(jnp.int32, (tn, R), 0)
        same = (col // K) == rowi
        p_alpha = jnp.zeros((tn, R), jnp.float32)
        for k in range(K):                                        # small static K
            sel = jnp.logical_and(same, (col % K) == k)
            p_alpha = p_alpha + jnp.where(sel, alpha[:, k:k + 1], 0.0)
        h_neigh = jnp.dot(p_alpha, m, preferred_element_type=jnp.float32)  # (tn, H)

        # node layer: relu(node_layer(cat(h_dst, h_neigh)))
        node_in = jnp.concatenate([hdst_ref[...], h_neigh], axis=-1)
        o = (jnp.dot(node_in, wnode_ref[...], preferred_element_type=jnp.float32)
             + nodeb_ref[...])
        o_ref[...] = jnp.maximum(o, 0.0)

    return kernel


def message_attn_node(layer_params, h_src_e, e_out, scores, h_dst, K, *, block_nodes=64):
    num_dst, node_dim = h_dst.shape
    H = e_out.shape[1]
    tn = _pick_block(num_dst, block_nodes)
    N_pad = _round_up(num_dst, tn)

    eo_p = _pad_rows(e_out, N_pad * K)
    sc_p = _pad_rows(scores, N_pad)
    hs_p = _pad_rows(h_src_e, N_pad * K)
    hd_p = _pad_rows(h_dst, N_pad)

    w_eo = jnp.concatenate([layer_params['eo_w1'], layer_params['eo_w2']], axis=0)
    w_node = jnp.concatenate([layer_params['node_w1'], layer_params['node_w2']], axis=0)

    out = pl.pallas_call(
        _make_msg_attn_node_kernel(K),
        out_shape=jax.ShapeDtypeStruct((N_pad, H), jnp.float32),
        grid=(N_pad // tn,),
        in_specs=[pl.BlockSpec((tn * K, H), lambda i: (i, 0)),
                  pl.BlockSpec((tn, K), lambda i: (i, 0)),
                  pl.BlockSpec((tn * K, node_dim), lambda i: (i, 0)),
                  pl.BlockSpec((tn, node_dim), lambda i: (i, 0)),
                  pl.BlockSpec(w_eo.shape, lambda i: (0, 0)),
                  pl.BlockSpec(layer_params['eo_b'].shape, lambda i: (0, 0)),
                  pl.BlockSpec(w_node.shape, lambda i: (0, 0)),
                  pl.BlockSpec(layer_params['node_b'].shape, lambda i: (0, 0))],
        out_specs=pl.BlockSpec((tn, H), lambda i: (i, 0)),
        compiler_params=pltpu.CompilerParams(dimension_semantics=("parallel",)),
    )(eo_p, sc_p, hs_p, hd_p, w_eo, layer_params['eo_b'],
      w_node, layer_params['node_b'])
    return out[:num_dst]


# ----------------------------------------------------------------------------
# Parameter init (deterministic, synthetic). LSTM gates fused along 4H in torch
# order (i, f, g, o); Linear weights stored as (in, out).
# ----------------------------------------------------------------------------
def init_lstm_params(key, in_dim, hidden, num_layers):
    params, d = [], in_dim
    for _ in range(num_layers):
        k1, k2, k3, key = jax.random.split(key, 4)
        params.append({
            'wih': 0.2 * jax.random.normal(k1, (d, 4 * hidden), jnp.float32),
            'whh': 0.2 * jax.random.normal(k2, (hidden, 4 * hidden), jnp.float32),
            'b':   0.1 * jax.random.normal(k3, (1, 4 * hidden), jnp.float32),
        })
        d = hidden
    return params


def init_layer_params(key, node_in, hidden, edge_in, time_hidden, num_time_layers):
    ks = jax.random.split(key, 12)
    lstm_in = edge_in + time_hidden
    return {
        't2v_w':  0.5 * jax.random.normal(ks[0], (1, time_hidden - 1), jnp.float32),
        't2v_b':  0.5 * jax.random.normal(ks[1], (1, time_hidden - 1), jnp.float32),
        't2v_w0': 0.5 * jax.random.normal(ks[2], (1, 1), jnp.float32),
        't2v_b0': 0.5 * jax.random.normal(ks[3], (1, 1), jnp.float32),
        'edge_lstm': init_lstm_params(ks[4], lstm_in, hidden, num_time_layers),
        'attn_lstm': init_lstm_params(ks[5], lstm_in, hidden, num_time_layers),
        'attn_w':  0.2 * jax.random.normal(ks[6], (hidden,), jnp.float32),
        'eo_w1':   0.2 * jax.random.normal(ks[7], (node_in, hidden), jnp.float32),
        'eo_w2':   0.2 * jax.random.normal(ks[8], (hidden, hidden), jnp.float32),
        'eo_b':    0.1 * jax.random.normal(ks[9], (1, hidden), jnp.float32),
        'node_w1': 0.2 * jax.random.normal(ks[10], (node_in, hidden), jnp.float32),
        'node_w2': 0.2 * jax.random.normal(ks[11], (hidden, hidden), jnp.float32),
        'node_b':  jnp.zeros((1, hidden), jnp.float32),
    }


# ----------------------------------------------------------------------------
# GTEALSTMT2VLayer / GTEALSTMT2V forward
# ----------------------------------------------------------------------------
def gtea_layer_forward(params, block, node_features):
    num_dst, K = block['num_dst'], block['K']
    h_src = node_features
    h_dst = node_features[:num_dst]

    # fused Time2Vec + dual (edge / attn) LSTM + attention logit
    e_out, score = dual_lstm_t2v(params, block['edge_features'],
                                 block['seq_times'], block['edge_len'])
    scores = score.reshape(num_dst, K)

    # TODO(synk): source-node gather kept in plain JAX glue (could be scalar-prefetch
    # row gather inside kernel 2).
    h_src_e = h_src[block['src_ids']]                           # (E, node_in)

    return message_attn_node(params, h_src_e, e_out, scores, h_dst, K)


def gtea_forward(embedding, layer_params_list, input_nodes, blocks):
    x = embedding[input_nodes]
    for p, blk in zip(layer_params_list, blocks):
        x = gtea_layer_forward(p, blk, x)
    return x


# ----------------------------------------------------------------------------
if __name__ == "__main__":
    key = jax.random.PRNGKey(0)
    num_nodes = 32
    node_in_dim = 8
    node_hidden_dim = 16
    edge_in_dim = 5
    time_hidden_dim = 8
    num_time_layers = 2
    T = 8

    k_emb, k_p0, k_p1, k_g0, k_g1 = jax.random.split(key, 5)
    embedding = 0.5 * jax.random.normal(k_emb, (num_nodes, node_in_dim), jnp.float32)
    layer_params = [
        init_layer_params(k_p0, node_in_dim, node_hidden_dim, edge_in_dim,
                          time_hidden_dim, num_time_layers),
        init_layer_params(k_p1, node_hidden_dim, node_hidden_dim, edge_in_dim,
                          time_hidden_dim, num_time_layers),
    ]

    def make_block(k, num_src, num_dst, K):
        k1, k2, k3, k4 = jax.random.split(k, 4)
        E = num_dst * K
        return {
            'num_dst': num_dst,
            'K': K,
            'src_ids': jax.random.randint(k1, (E,), 0, num_src),
            'edge_features': jax.random.normal(k2, (E, T, edge_in_dim), jnp.float32),
            'edge_len': jax.random.randint(k3, (E,), 1, T + 1),
            'seq_times': 10.0 * jax.random.uniform(k4, (E, T), jnp.float32),
        }

    num_input_nodes = 16
    input_nodes = jnp.arange(num_input_nodes, dtype=jnp.int32) % num_nodes
    blocks = [
        make_block(k_g0, num_input_nodes, 8, 4),   # layer 0: 32 edges, 8 dst nodes
        make_block(k_g1, 8, 4, 4),                 # layer 1: 16 edges, 4 dst nodes
    ]

    out = gtea_forward(embedding, layer_params, input_nodes, blocks)
    out = jax.block_until_ready(out)
    assert out.shape == (4, node_hidden_dim) and out.dtype == jnp.float32
    print("KERNEL_OK")
</pallas_src>

<mosaic_0001>
module attributes {stable_mosaic.version = 11 : i64} {
  func.func @kernel(%arg0: i32, %arg1: memref<128x5xf32, #tpu.memory_space<vmem>>, %arg2: memref<128x1xf32, #tpu.memory_space<vmem>>, %arg3: memref<16x1xi32, #tpu.memory_space<vmem>>, %arg4: memref<1x7xf32, #tpu.memory_space<vmem>>, %arg5: memref<1x7xf32, #tpu.memory_space<vmem>>, %arg6: memref<1x1xf32, #tpu.memory_space<vmem>>, %arg7: memref<1x1xf32, #tpu.memory_space<vmem>>, %arg8: memref<13x128xf32, #tpu.memory_space<vmem>>, %arg9: memref<32x128xf32, #tpu.memory_space<vmem>>, %arg10: memref<1x128xf32, #tpu.memory_space<vmem>>, %arg11: memref<64x128xf32, #tpu.memory_space<vmem>>, %arg12: memref<1x128xf32, #tpu.memory_space<vmem>>, %arg13: memref<16x1xf32, #tpu.memory_space<vmem>>, %arg14: memref<16x128xf32, #tpu.memory_space<vmem>>, %arg15: memref<16x8x128xf32, #tpu.memory_space<vmem>>) attributes {dimension_semantics = [#tpu.dimension_semantics<parallel>], iteration_bounds = array<i64: 2>, scalar_prefetch = 0 : i64, scratch_operands = 1 : i64, tpu.core_type = #tpu.core_type<tc>, window_params = [{transform_indices = @transform_0, window_bounds = array<i64: 128, 5>}, {transform_indices = @transform_1, window_bounds = array<i64: 128, 1>}, {transform_indices = @transform_2, window_bounds = array<i64: 16, 1>}, {pipeline_mode = #tpu.pipeline_mode<synchronous>, transform_indices = @transform_3, window_bounds = array<i64: 1, 7>}, {pipeline_mode = #tpu.pipeline_mode<synchronous>, transform_indices = @transform_4, window_bounds = array<i64: 1, 7>}, {pipeline_mode = #tpu.pipeline_mode<synchronous>, transform_indices = @transform_5, window_bounds = array<i64: 1, 1>}, {pipeline_mode = #tpu.pipeline_mode<synchronous>, transform_indices = @transform_6, window_bounds = array<i64: 1, 1>}, {pipeline_mode = #tpu.pipeline_mode<synchronous>, transform_indices = @transform_7, window_bounds = array<i64: 13, 128>}, {pipeline_mode = #tpu.pipeline_mode<synchronous>, transform_indices = @transform_8, window_bounds = array<i64: 32, 128>}, {pipeline_mode = #tpu.pipeline_mode<synchronous>, transform_indices = @transform_9, window_bounds = array<i64: 1, 128>}, {pipeline_mode = #tpu.pipeline_mode<synchronous>, transform_indices = @transform_10, window_bounds = array<i64: 64, 128>}, {pipeline_mode = #tpu.pipeline_mode<synchronous>, transform_indices = @transform_11, window_bounds = array<i64: 1, 128>}, {pipeline_mode = #tpu.pipeline_mode<synchronous>, transform_indices = @transform_12, window_bounds = array<i64: 16, 1>}, {transform_indices = @transform_13, window_bounds = array<i64: 16, 128>}]} {
    %c0 = arith.constant 0 : index
    %c0_0 = arith.constant 0 : index
    %0 = vector.load %arg2[%c0, %c0_0] : memref<128x1xf32, #tpu.memory_space<vmem>>, vector<128x1xf32>
    %c0_1 = arith.constant 0 : index
    %c0_2 = arith.constant 0 : index
    %1 = vector.load %arg4[%c0_1, %c0_2] : memref<1x7xf32, #tpu.memory_space<vmem>>, vector<1x7xf32>
    %2 = vector.broadcast %0 : vector<128x1xf32> to vector<128x7xf32>
    %3 = vector.broadcast %1 : vector<1x7xf32> to vector<128x7xf32>
    %4 = arith.mulf %2, %3 : vector<128x7xf32>
    %c0_3 = arith.constant 0 : index
    %c0_4 = arith.constant 0 : index
    %5 = vector.load %arg5[%c0_3, %c0_4] : memref<1x7xf32, #tpu.memory_space<vmem>>, vector<1x7xf32>
    %6 = vector.broadcast %5 : vector<1x7xf32> to vector<128x7xf32>
    %7 = arith.addf %4, %6 : vector<128x7xf32>
    %8 = math.sin %7 : vector<128x7xf32>
    %c0_5 = arith.constant 0 : index
    %c0_6 = arith.constant 0 : index
    %9 = vector.load %arg6[%c0_5, %c0_6] : memref<1x1xf32, #tpu.memory_space<vmem>>, vector<1x1xf32>
    %10 = vector.broadcast %9 : vector<1x1xf32> to vector<128x1xf32>
    %11 = arith.mulf %0, %10 : vector<128x1xf32>
    %c0_7 = arith.constant 0 : index
    %c0_8 = arith.constant 0 : index
    %12 = vector.load %arg7[%c0_7, %c0_8] : memref<1x1xf32, #tpu.memory_space<vmem>>, vector<1x1xf32>
    %13 = vector.broadcast %12 : vector<1x1xf32> to vector<128x1xf32>
    %14 = arith.addf %11, %13 : vector<128x1xf32>
    %c0_9 = arith.constant 0 : index
    %c0_10 = arith.constant 0 : index
    %15 = vector.load %arg1[%c0_9, %c0_10] : memref<128x5xf32, #tpu.memory_space<vmem>>, vector<128x5xf32>
    %16 = tpu.concatenate %15, %8, %14 in 1 : vector<128x5xf32>, vector<128x7xf32>, vector<128x1xf32> -> vector<128x13xf32>
    %c0_11 = arith.constant 0 : index
    %c0_12 = arith.constant 0 : index
    %17 = vector.load %arg8[%c0_11, %c0_12] : memref<13x128xf32, #tpu.memory_space<vmem>>, vector<13x128xf32>
    %cst = arith.constant dense<0.000000e+00> : vector<128x128xf32>
    %18 = tpu.matmul %16, %17, %cst {dimension_numbers = #tpu.dot_dimension_numbers<[1], [0], [0], [1], [0, 0, 1, 1], [], []>} : vector<128x13xf32>, vector<13x128xf32>, vector<128x128xf32> -> vector<128x128xf32>
    %c0_13 = arith.constant 0 : index
    %c0_14 = arith.constant 0 : index
    %19 = vector.load %arg10[%c0_13, %c0_14] : memref<1x128xf32, #tpu.memory_space<vmem>>, vector<1x128xf32>
    %20 = vector.broadcast %19 : vector<1x128xf32> to vector<128x128xf32>
    %21 = arith.addf %18, %20 : vector<128x128xf32>
    %22 = vector.shape_cast %21 : vector<128x128xf32> to vector<16x8x128xf32>
    %c0_15 = arith.constant 0 : index
    %c0_16 = arith.constant 0 : index
    %c0_17 = arith.constant 0 : index
    %23 = vector.load %arg15[%c0_15, %c0_16, %c0_17] : memref<16x8x128xf32, #tpu.memory_space<vmem>>, vector<16x8x128xf32>
    tpu.vector_store %arg15[%c0_15, %c0_16, %c0_17], %22 {strides = array<i32>} : memref<16x8x128xf32, #tpu.memory_space<vmem>>, vector<16x8x128xf32>,
    %c0_18 = arith.constant 0 : index
    %c0_19 = arith.constant 0 : index
    %24 = vector.load %arg3[%c0_18, %c0_19] : memref<16x1xi32, #tpu.memory_space<vmem>>, vector<16x1xi32>
    %cst_20 = arith.constant 0.000000e+00 : f32
    %25 = vector.broadcast %cst_20 : f32 to vector<16x32xf32>
    %cst_21 = arith.constant 0.000000e+00 : f32
    %26 = vector.broadcast %cst_21 : f32 to vector<16x32xf32>
    %cst_22 = arith.constant 0.000000e+00 : f32
    %27 = vector.broadcast %cst_22 : f32 to vector<16x32xf32>
    %cst_23 = arith.constant 0.000000e+00 : f32
    %28 = vector.broadcast %cst_23 : f32 to vector<16x32xf32>
    %c0_i32 = arith.constant 0 : i32
    %29 = vector.broadcast %c0_i32 : i32 to vector<16x1xi32>
    %30 = arith.cmpi sgt, %24, %29 : vector<16x1xi32>
    %31 = vector.shape_cast %30 : vector<16x1xi1> to vector<16x1xi1>
    %32 = vector.broadcast %31 : vector<16x1xi1> to vector<16x32xi1>
    %c0_24 = arith.constant 0 : index
    %c0_25 = arith.constant 0 : index
    %c0_26 = arith.constant 0 : index
    %33 = vector.load %arg15[%c0_24, %c0_25, %c0_26] : memref<16x8x128xf32, #tpu.memory_space<vmem>>, vector<16x1x128xf32>
    %34 = vector.shape_cast %33 : vector<16x1x128xf32> to vector<16x128xf32>
    %c0_27 = arith.constant 0 : index
    %c0_28 = arith.constant 0 : index
    %35 = vector.load %arg9[%c0_27, %c0_28] : memref<32x128xf32, #tpu.memory_space<vmem>>, vector<32x128xf32>
    %cst_29 = arith.constant dense<0.000000e+00> : vector<16x128xf32>
    %36 = tpu.matmul %25, %35, %cst_29 {dimension_numbers = #tpu.dot_dimension_numbers<[1], [0], [0], [1], [0, 0, 1, 1], [], []>} : vector<16x32xf32>, vector<32x128xf32>, vector<16x128xf32> -> vector<16x128xf32>
    %37 = arith.addf %34, %36 : vector<16x128xf32>
    %38 = vector.extract_strided_slice %37 {offsets = [0, 0], sizes = [16, 32], strides = [1, 1]} : vector<16x128xf32> to vector<16x32xf32>
    %39 = arith.negf %38 : vector<16x32xf32>
    %40 = math.exp %39 : vector<16x32xf32>
    %cst_30 = arith.constant 1.000000e+00 : f32
    %41 = vector.broadcast %cst_30 : f32 to vector<16x32xf32>
    %42 = arith.addf %41, %40 : vector<16x32xf32>
    %43 = arith.divf %41, %42 : vector<16x32xf32>
    %44 = vector.extract_strided_slice %37 {offsets = [0, 32], sizes = [16, 32], strides = [1, 1]} : vector<16x128xf32> to vector<16x32xf32>
    %45 = arith.negf %44 : vector<16x32xf32>
    %46 = math.exp %45 : vector<16x32xf32>
    %cst_31 = arith.constant 1.000000e+00 : f32
    %47 = vector.broadcast %cst_31 : f32 to vector<16x32xf32>
    %48 = arith.addf %47, %46 : vector<16x32xf32>
    %49 = arith.divf %47, %48 : vector<16x32xf32>
    %50 = vector.extract_strided_slice %37 {offsets = [0, 64], sizes = [16, 32], strides = [1, 1]} : vector<16x128xf32> to vector<16x32xf32>
    %51 = math.tanh %50 : vector<16x32xf32>
    %52 = vector.extract_strided_slice %37 {offsets = [0, 96], sizes = [16, 32], strides = [1, 1]} : vector<16x128xf32> to vector<16x32xf32>
    %53 = arith.negf %52 : vector<16x32xf32>
    %54 = math.exp %53 : vector<16x32xf32>
    %cst_32 = arith.constant 1.000000e+00 : f32
    %55 = vector.broadcast %cst_32 : f32 to vector<16x32xf32>
    %56 = arith.addf %55, %54 : vector<16x32xf32>
    %57 = arith.divf %55, %56 : vector<16x32xf32>
    %58 = arith.mulf %49, %27 : vector<16x32xf32>
    %59 = arith.mulf %43, %51 : vector<16x32xf32>
    %60 = arith.addf %58, %59 : vector<16x32xf32>
    %61 = math.tanh %60 : vector<16x32xf32>
    %62 = arith.mulf %57, %61 : vector<16x32xf32>
    %63 = arith.select %32, %62, %25 : vector<16x32xi1>, vector<16x32xf32>
    %64 = arith.select %32, %60, %27 : vector<16x32xi1>, vector<16x32xf32>
    %c0_33 = arith.constant 0 : index
    %c0_34 = arith.constant 0 : index
    %65 = vector.load %arg11[%c0_33, %c0_34] : memref<64x128xf32, #tpu.memory_space<vmem>>, vector<64x128xf32>
    %c0_35 = arith.constant 0 : index
    %c0_36 = arith.constant 0 : index
    %66 = vector.load %arg12[%c0_35, %c0_36] : memref<1x128xf32, #tpu.memory_space<vmem>>, vector<1x128xf32>
    %67 = tpu.concatenate %63, %26 in 1 : vector<16x32xf32>, vector<16x32xf32> -> vector<16x64xf32>
    %cst_37 = arith.constant dense<0.000000e+00> : vector<16x128xf32>
    %68 = tpu.matmul %67, %65, %cst_37 {dimension_numbers = #tpu.dot_dimension_numbers<[1], [0], [0], [1], [0, 0, 1, 1], [], []>} : vector<16x64xf32>, vector<64x128xf32>, vector<16x128xf32> -> vector<16x128xf32>
    %69 = vector.broadcast %66 : vector<1x128xf32> to vector<16x128xf32>
    %70 = arith.addf %68, %69 : vector<16x128xf32>
    %71 = vector.extract_strided_slice %70 {offsets = [0, 0], sizes = [16, 32], strides = [1, 1]} : vector<16x128xf32> to vector<16x32xf32>
    %72 = arith.negf %71 : vector<16x32xf32>
    %73 = math.exp %72 : vector<16x32xf32>
    %cst_38 = arith.constant 1.000000e+00 : f32
    %74 = vector.broadcast %cst_38 : f32 to vector<16x32xf32>
    %75 = arith.addf %74, %73 : vector<16x32xf32>
    %76 = arith.divf %74, %75 : vector<16x32xf32>
    %77 = vector.extract_strided_slice %70 {offsets = [0, 32], sizes = [16, 32], strides = [1, 1]} : vector<16x128xf32> to vector<16x32xf32>
    %78 = arith.negf %77 : vector<16x32xf32>
    %79 = math.exp %78 : vector<16x32xf32>
    %cst_39 = arith.constant 1.000000e+00 : f32
    %80 = vector.broadcast %cst_39 : f32 to vector<16x32xf32>
    %81 = arith.addf %80, %79 : vector<16x32xf32>
    %82 = arith.divf %80, %81 : vector<16x32xf32>
    %83 = vector.extract_strided_slice %70 {offsets = [0, 64], sizes = [16, 32], strides = [1, 1]} : vector<16x128xf32> to vector<16x32xf32>
    %84 = math.tanh %83 : vector<16x32xf32>
    %85 = vector.extract_strided_slice %70 {offsets = [0, 96], sizes = [16, 32], strides = [1, 1]} : vector<16x128xf32> to vector<16x32xf32>
    %86 = arith.negf %85 : vector<16x32xf32>
    %87 = math.exp %86 : vector<16x32xf32>
    %cst_40 = arith.constant 1.000000e+00 : f32
    %88 = vector.broadcast %cst_40 : f32 to vector<16x32xf32>
    %89 = arith.addf %88, %87 : vector<16x32xf32>
    %90 = arith.divf %88, %89 : vector<16x32xf32>
    %91 = arith.mulf %82, %28 : vector<16x32xf32>
    %92 = arith.mulf %76, %84 : vector<16x32xf32>
    %93 = arith.addf %91, %92 : vector<16x32xf32>
    %94 = math.tanh %93 : vector<16x32xf32>
    %95 = arith.mulf %90, %94 : vector<16x32xf32>
    %96 = arith.select %32, %95, %26 : vector<16x32xi1>, vector<16x32xf32>
    %97 = arith.select %32, %93, %28 : vector<16x32xi1>, vector<16x32xf32>
    %c1_i32 = arith.constant 1 : i32
    %98 = vector.broadcast %c1_i32 : i32 to vector<16x1xi32>
    %99 = arith.cmpi sgt, %24, %98 : vector<16x1xi32>
    %100 = vector.shape_cast %99 : vector<16x1xi1> to vector<16x1xi1>
    %101 = vector.broadcast %100 : vector<16x1xi1> to vector<16x32xi1>
    %c0_41 = arith.constant 0 : index
    %c1 = arith.constant 1 : index
    %c0_42 = arith.constant 0 : index
    %102 = vector.load %arg15[%c0_41, %c1, %c0_42] : memref<16x8x128xf32, #tpu.memory_space<vmem>>, vector<16x1x128xf32>
    %103 = vector.shape_cast %102 : vector<16x1x128xf32> to vector<16x128xf32>
    %c0_43 = arith.constant 0 : index
    %c0_44 = arith.constant 0 : index
    %104 = vector.load %arg9[%c0_43, %c0_44] : memref<32x128xf32, #tpu.memory_space<vmem>>, vector<32x128xf32>
    %cst_45 = arith.constant dense<0.000000e+00> : vector<16x128xf32>
    %105 = tpu.matmul %63, %104, %cst_45 {dimension_numbers = #tpu.dot_dimension_numbers<[1], [0], [0], [1], [0, 0, 1, 1], [], []>} : vector<16x32xf32>, vector<32x128xf32>, vector<16x128xf32> -> vector<16x128xf32>
    %106 = arith.addf %103, %105 : vector<16x128xf32>
    %107 = vector.extract_strided_slice %106 {offsets = [0, 0], sizes = [16, 32], strides = [1, 1]} : vector<16x128xf32> to vector<16x32xf32>
    %108 = arith.negf %107 : vector<16x32xf32>
    %109 = math.exp %108 : vector<16x32xf32>
    %cst_46 = arith.constant 1.000000e+00 : f32
    %110 = vector.broadcast %cst_46 : f32 to vector<16x32xf32>
    %111 = arith.addf %110, %109 : vector<16x32xf32>
    %112 = arith.divf %110, %111 : vector<16x32xf32>
    %113 = vector.extract_strided_slice %106 {offsets = [0, 32], sizes = [16, 32], strides = [1, 1]} : vector<16x128xf32> to vector<16x32xf32>
    %114 = arith.negf %113 : vector<16x32xf32>
    %115 = math.exp %114 : vector<16x32xf32>
    %cst_47 = arith.constant 1.000000e+00 : f32
    %116 = vector.broadcast %cst_47 : f32 to vector<16x32xf32>
    %117 = arith.addf %116, %115 : vector<16x32xf32>
    %118 = arith.divf %116, %117 : vector<16x32xf32>
    %119 = vector.extract_strided_slice %106 {offsets = [0, 64], sizes = [16, 32], strides = [1, 1]} : vector<16x128xf32> to vector<16x32xf32>
    %120 = math.tanh %119 : vector<16x32xf32>
    %121 = vector.extract_strided_slice %106 {offsets = [0, 96], sizes = [16, 32], strides = [1, 1]} : vector<16x128xf32> to vector<16x32xf32>
    %122 = arith.negf %121 : vector<16x32xf32>
    %123 = math.exp %122 : vector<16x32xf32>
    %cst_48 = arith.constant 1.000000e+00 : f32
    %124 = vector.broadcast %cst_48 : f32 to vector<16x32xf32>
    %125 = arith.addf %124, %123 : vector<16x32xf32>
    %126 = arith.divf %124, %125 : vector<16x32xf32>
    %127 = arith.mulf %118, %64 : vector<16x32xf32>
    %128 = arith.mulf %112, %120 : vector<16x32xf32>
    %129 = arith.addf %127, %128 : vector<16x32xf32>
    %130 = math.tanh %129 : vector<16x32xf32>
    %131 = arith.mulf %126, %130 : vector<16x32xf32>
    %132 = arith.select %101, %131, %63 : vector<16x32xi1>, vector<16x32xf32>
    %133 = arith.select %101, %129, %64 : vector<16x32xi1>, vector<16x32xf32>
    %c0_49 = arith.constant 0 : index
    %c0_50 = arith.constant 0 : index
    %134 = vector.load %arg11[%c0_49, %c0_50] : memref<64x128xf32, #tpu.memory_space<vmem>>, vector<64x128xf32>
    %c0_51 = arith.constant 0 : index
    %c0_52 = arith.constant 0 : index
    %135 = vector.load %arg12[%c0_51, %c0_52] : memref<1x128xf32, #tpu.memory_space<vmem>>, vector<1x128xf32>
    %136 = tpu.concatenate %132, %96 in 1 : vector<16x32xf32>, vector<16x32xf32> -> vector<16x64xf32>
    %cst_53 = arith.constant dense<0.000000e+00> : vector<16x128xf32>
    %137 = tpu.matmul %136, %134, %cst_53 {dimension_numbers = #tpu.dot_dimension_numbers<[1], [0], [0], [1], [0, 0, 1, 1], [], []>} : vector<16x64xf32>, vector<64x128xf32>, vector<16x128xf32> -> vector<16x128xf32>
    %138 = vector.broadcast %135 : vector<1x128xf32> to vector<16x128xf32>
    %139 = arith.addf %137, %138 : vector<16x128xf32>
    %140 = vector.extract_strided_slice %139 {offsets = [0, 0], sizes = [16, 32], strides = [1, 1]} : vector<16x128xf32> to vector<16x32xf32>
    %141 = arith.negf %140 : vector<16x32xf32>
    %142 = math.exp %141 : vector<16x32xf32>
    %cst_54 = arith.constant 1.000000e+00 : f32
    %143 = vector.broadcast %cst_54 : f32 to vector<16x32xf32>
    %144 = arith.addf %143, %142 : vector<16x32xf32>
    %145 = arith.divf %143, %144 : vector<16x32xf32>
    %146 = vector.extract_strided_slice %139 {offsets = [0, 32], sizes = [16, 32], strides = [1, 1]} : vector<16x128xf32> to vector<16x32xf32>
    %147 = arith.negf %146 : vector<16x32xf32>
    %148 = math.exp %147 : vector<16x32xf32>
    %cst_55 = arith.constant 1.000000e+00 : f32
    %149 = vector.broadcast %cst_55 : f32 to vector<16x32xf32>
    %150 = arith.addf %149, %148 : vector<16x32xf32>
    %151 = arith.divf %149, %150 : vector<16x32xf32>
    %152 = vector.extract_strided_slice %139 {offsets = [0, 64], sizes = [16, 32], strides = [1, 1]} : vector<16x128xf32> to vector<16x32xf32>
    %153 = math.tanh %152 : vector<16x32xf32>
    %154 = vector.extract_strided_slice %139 {offsets = [0, 96], sizes = [16, 32], strides = [1, 1]} : vector<16x128xf32> to vector<16x32xf32>
    %155 = arith.negf %154 : vector<16x32xf32>
    %156 = math.exp %155 : vector<16x32xf32>
    %cst_56 = arith.constant 1.000000e+00 : f32
    %157 = vector.broadcast %cst_56 : f32 to vector<16x32xf32>
    %158 = arith.addf %157, %156 : vector<16x32xf32>
    %159 = arith.divf %157, %158 : vector<16x32xf32>
    %160 = arith.mulf %151, %97 : vector<16x32xf32>
    %161 = arith.mulf %145, %153 : vector<16x32xf32>
    %162 = arith.addf %160, %161 : vector<16x32xf32>
    %163 = math.tanh %162 : vector<16x32xf32>
    %164 = arith.mulf %159, %163 : vector<16x32xf32>
    %165 = arith.select %101, %164, %96 : vector<16x32xi1>, vector<16x32xf32>
    %166 = arith.select %101, %162, %97 : vector<16x32xi1>, vector<16x32xf32>
    %c2_i32 = arith.constant 2 : i32
    %167 = vector.broadcast %c2_i32 : i32 to vector<16x1xi32>
    %168 = arith.cmpi sgt, %24, %167 : vector<16x1xi32>
    %169 = vector.shape_cast %168 : vector<16x1xi1> to vector<16x1xi1>
    %170 = vector.broadcast %169 : vector<16x1xi1> to vector<16x32xi1>
    %c0_57 = arith.constant 0 : index
    %c2 = arith.constant 2 : index
    %c0_58 = arith.constant 0 : index
    %171 = vector.load %arg15[%c0_57, %c2, %c0_58] : memref<16x8x128xf32, #tpu.memory_space<vmem>>, vector<16x1x128xf32>
    %172 = vector.shape_cast %171 : vector<16x1x128xf32> to vector<16x128xf32>
    %c0_59 = arith.constant 0 : index
    %c0_60 = arith.constant 0 : index
    %173 = vector.load %arg9[%c0_59, %c0_60] : memref<32x128xf32, #tpu.memory_space<vmem>>, vector<32x128xf32>
    %cst_61 = arith.constant dense<0.000000e+00> : vector<16x128xf32>
    %174 = tpu.matmul %132, %173, %cst_61 {dimension_numbers = #tpu.dot_dimension_numbers<[1], [0], [0], [1], [0, 0, 1, 1], [], []>} : vector<16x32xf32>, vector<32x128xf32>, vector<16x128xf32> -> vector<16x128xf32>
    %175 = arith.addf %172, %174 : vector<16x128xf32>
    %176 = vector.extract_strided_slice %175 {offsets = [0, 0], sizes = [16, 32], strides = [1, 1]} : vector<16x128xf32> to vector<16x32xf32>
    %177 = arith.negf %176 : vector<16x32xf32>
    %178 = math.exp %177 : vector<16x32xf32>
    %cst_62 = arith.constant 1.000000e+00 : f32
    %179 = vector.broadcast %cst_62 : f32 to vector<16x32xf32>
    %180 = arith.addf %179, %178 : vector<16x32xf32>
    %181 = arith.divf %179, %180 : vector<16x32xf32>
    %182 = vector.extract_strided_slice %175 {offsets = [0, 32], sizes = [16, 32], strides = [1, 1]} : vector<16x128xf32> to vector<16x32xf32>
    %183 = arith.negf %182 : vector<16x32xf32>
    %184 = math.exp %183 : vector<16x32xf32>
    %cst_63 = arith.constant 1.000000e+00 : f32
    %185 = vector.broadcast %cst_63 : f32 to vector<16x32xf32>
    %186 = arith.addf %185, %184 : vector<16x32xf32>
    %187 = arith.divf %185, %186 : vector<16x32xf32>
    %188 = vector.extract_strided_slice %175 {offsets = [0, 64], sizes = [16, 32], strides = [1, 1]} : vector<16x128xf32> to vector<16x32xf32>
    %189 = math.tanh %188 : vector<16x32xf32>
    %190 = vector.extract_strided_slice %175 {offsets = [0, 96], sizes = [16, 32], strides = [1, 1]} : vector<16x128xf32> to vector<16x32xf32>
    %191 = arith.negf %190 : vector<16x32xf32>
    %192 = math.exp %191 : vector<16x32xf32>
    %cst_64 = arith.constant 1.000000e+00 : f32
    %193 = vector.broadcast %cst_64 : f32 to vector<16x32xf32>
    %194 = arith.addf %193, %192 : vector<16x32xf32>
    %195 = arith.divf %193, %194 : vector<16x32xf32>
    %196 = arith.mulf %187, %133 : vector<16x32xf32>
    %197 = arith.mulf %181, %189 : vector<16x32xf32>
    %198 = arith.addf %196, %197 : vector<16x32xf32>
    %199 = math.tanh %198 : vector<16x32xf32>
    %200 = arith.mulf %195, %199 : vector<16x32xf32>
    %201 = arith.select %170, %200, %132 : vector<16x32xi1>, vector<16x32xf32>
    %202 = arith.select %170, %198, %133 : vector<16x32xi1>, vector<16x32xf32>
    %c0_65 = arith.constant 0 : index
    %c0_66 = arith.constant 0 : index
    %203 = vector.load %arg11[%c0_65, %c0_66] : memref<64x128xf32, #tpu.memory_space<vmem>>, vector<64x128xf32>
    %c0_67 = arith.constant 0 : index
    %c0_68 = arith.constant 0 : index
    %204 = vector.load %arg12[%c0_67, %c0_68] : memref<1x128xf32, #tpu.memory_space<vmem>>, vector<1x128xf32>
    %205 = tpu.concatenate %201, %165 in 1 : vector<16x32xf32>, vector<16x32xf32> -> vector<16x64xf32>
    %cst_69 = arith.constant dense<0.000000e+00> : vector<16x128xf32>
    %206 = tpu.matmul %205, %203, %cst_69 {dimension_numbers = #tpu.dot_dimension_numbers<[1], [0], [0], [1], [0, 0, 1, 1], [], []>} : vector<16x64xf32>, vector<64x128xf32>, vector<16x128xf32> -> vector<16x128xf32>
    %207 = vector.broadcast %204 : vector<1x128xf32> to vector<16x128xf32>
    %208 = arith.addf %206, %207 : vector<16x128xf32>
    %209 = vector.extract_strided_slice %208 {offsets = [0, 0], sizes = [16, 32], strides = [1, 1]} : vector<16x128xf32> to vector<16x32xf32>
    %210 = arith.negf %209 : vector<16x32xf32>
    %211 = math.exp %210 : vector<16x32xf32>
    %cst_70 = arith.constant 1.000000e+00 : f32
    %212 = vector.broadcast %cst_70 : f32 to vector<16x32xf32>
    %213 = arith.addf %212, %211 : vector<16x32xf32>
    %214 = arith.divf %212, %213 : vector<16x32xf32>
    %215 = vector.extract_strided_slice %208 {offsets = [0, 32], sizes = [16, 32], strides = [1, 1]} : vector<16x128xf32> to vector<16x32xf32>
    %216 = arith.negf %215 : vector<16x32xf32>
    %217 = math.exp %216 : vector<16x32xf32>
    %cst_71 = arith.constant 1.000000e+00 : f32
    %218 = vector.broadcast %cst_71 : f32 to vector<16x32xf32>
    %219 = arith.addf %218, %217 : vector<16x32xf32>
    %220 = arith.divf %218, %219 : vector<16x32xf32>
    %221 = vector.extract_strided_slice %208 {offsets = [0, 64], sizes = [16, 32], strides = [1, 1]} : vector<16x128xf32> to vector<16x32xf32>
    %222 = math.tanh %221 : vector<16x32xf32>
    %223 = vector.extract_strided_slice %208 {offsets = [0, 96], sizes = [16, 32], strides = [1, 1]} : vector<16x128xf32> to vector<16x32xf32>
    %224 = arith.negf %223 : vector<16x32xf32>
    %225 = math.exp %224 : vector<16x32xf32>
    %cst_72 = arith.constant 1.000000e+00 : f32
    %226 = vector.broadcast %cst_72 : f32 to vector<16x32xf32>
    %227 = arith.addf %226, %225 : vector<16x32xf32>
    %228 = arith.divf %226, %227 : vector<16x32xf32>
    %229 = arith.mulf %220, %166 : vector<16x32xf32>
    %230 = arith.mulf %214, %222 : vector<16x32xf32>
    %231 = arith.addf %229, %230 : vector<16x32xf32>
    %232 = math.tanh %231 : vector<16x32xf32>
    %233 = arith.mulf %228, %232 : vector<16x32xf32>
    %234 = arith.select %170, %233, %165 : vector<16x32xi1>, vector<16x32xf32>
    %235 = arith.select %170, %231, %166 : vector<16x32xi1>, vector<16x32xf32>
    %c3_i32 = arith.constant 3 : i32
    %236 = vector.broadcast %c3_i32 : i32 to vector<16x1xi32>
    %237 = arith.cmpi sgt, %24, %236 : vector<16x1xi32>
    %238 = vector.shape_cast %237 : vector<16x1xi1> to vector<16x1xi1>
    %239 = vector.broadcast %238 : vector<16x1xi1> to vector<16x32xi1>
    %c0_73 = arith.constant 0 : index
    %c3 = arith.constant 3 : index
    %c0_74 = arith.constant 0 : index
    %240 = vector.load %arg15[%c0_73, %c3, %c0_74] : memref<16x8x128xf32, #tpu.memory_space<vmem>>, vector<16x1x128xf32>
    %241 = vector.shape_cast %240 : vector<16x1x128xf32> to vector<16x128xf32>
    %c0_75 = arith.constant 0 : index
    %c0_76 = arith.constant 0 : index
    %242 = vector.load %arg9[%c0_75, %c0_76] : memref<32x128xf32, #tpu.memory_space<vmem>>, vector<32x128xf32>
    %cst_77 = arith.constant dense<0.000000e+00> : vector<16x128xf32>
    %243 = tpu.matmul %201, %242, %cst_77 {dimension_numbers = #tpu.dot_dimension_numbers<[1], [0], [0], [1], [0, 0, 1, 1], [], []>} : vector<16x32xf32>, vector<32x128xf32>, vector<16x128xf32> -> vector<16x128xf32>
    %244 = arith.addf %241, %243 : vector<16x128xf32>
    %245 = vector.extract_strided_slice %244 {offsets = [0, 0], sizes = [16, 32], strides = [1, 1]} : vector<16x128xf32> to vector<16x32xf32>
    %246 = arith.negf %245 : vector<16x32xf32>
    %247 = math.exp %246 : vector<16x32xf32>
    %cst_78 = arith.constant 1.000000e+00 : f32
    %248 = vector.broadcast %cst_78 : f32 to vector<16x32xf32>
    %249 = arith.addf %248, %247 : vector<16x32xf32>
    %250 = arith.divf %248, %249 : vector<16x32xf32>
    %251 = vector.extract_strided_slice %244 {offsets = [0, 32], sizes = [16, 32], strides = [1, 1]} : vector<16x128xf32> to vector<16x32xf32>
    %252 = arith.negf %251 : vector<16x32xf32>
    %253 = math.exp %252 : vector<16x32xf32>
    %cst_79 = arith.constant 1.000000e+00 : f32
    %254 = vector.broadcast %cst_79 : f32 to vector<16x32xf32>
    %255 = arith.addf %254, %253 : vector<16x32xf32>
    %256 = arith.divf %254, %255 : vector<16x32xf32>
    %257 = vector.extract_strided_slice %244 {offsets = [0, 64], sizes = [16, 32], strides = [1, 1]} : vector<16x128xf32> to vector<16x32xf32>
    %258 = math.tanh %257 : vector<16x32xf32>
    %259 = vector.extract_strided_slice %244 {offsets = [0, 96], sizes = [16, 32], strides = [1, 1]} : vector<16x128xf32> to vector<16x32xf32>
    %260 = arith.negf %259 : vector<16x32xf32>
    %261 = math.exp %260 : vector<16x32xf32>
    %cst_80 = arith.constant 1.000000e+00 : f32
    %262 = vector.broadcast %cst_80 : f32 to vector<16x32xf32>
    %263 = arith.addf %262, %261 : vector<16x32xf32>
    %264 = arith.divf %262, %263 : vector<16x32xf32>
    %265 = arith.mulf %256, %202 : vector<16x32xf32>
    %266 = arith.mulf %250, %258 : vector<16x32xf32>
    %267 = arith.addf %265, %266 : vector<16x32xf32>
    %268 = math.tanh %267 : vector<16x32xf32>
    %269 = arith.mulf %264, %268 : vector<16x32xf32>
    %270 = arith.select %239, %269, %201 : vector<16x32xi1>, vector<16x32xf32>
    %271 = arith.select %239, %267, %202 : vector<16x32xi1>, vector<16x32xf32>
    %c0_81 = arith.constant 0 : index
    %c0_82 = arith.constant 0 : index
    %272 = vector.load %arg11[%c0_81, %c0_82] : memref<64x128xf32, #tpu.memory_space<vmem>>, vector<64x128xf32>
    %c0_83 = arith.constant 0 : index
    %c0_84 = arith.constant 0 : index
    %273 = vector.load %arg12[%c0_83, %c0_84] : memref<1x128xf32, #tpu.memory_space<vmem>>, vector<1x128xf32>
    %274 = tpu.concatenate %270, %234 in 1 : vector<16x32xf32>, vector<16x32xf32> -> vector<16x64xf32>
    %cst_85 = arith.constant dense<0.000000e+00> : vector<16x128xf32>
    %275 = tpu.matmul %274, %272, %cst_85 {dimension_numbers = #tpu.dot_dimension_numbers<[1], [0], [0], [1], [0, 0, 1, 1], [], []>} : vector<16x64xf32>, vector<64x128xf32>, vector<16x128xf32> -> vector<16x128xf32>
    %276 = vector.broadcast %273 : vector<1x128xf32> to vector<16x128xf32>
    %277 = arith.addf %275, %276 : vector<16x128xf32>
    %278 = vector.extract_strided_slice %277 {offsets = [0, 0], sizes = [16, 32], strides = [1, 1]} : vector<16x128xf32> to vector<16x32xf32>
    %279 = arith.negf %278 : vector<16x32xf32>
    %280 = math.exp %279 : vector<16x32xf32>
    %cst_86 = arith.constant 1.000000e+00 : f32
    %281 = vector.broadcast %cst_86 : f32 to vector<16x32xf32>
    %282 = arith.addf %281, %280 : vector<16x32xf32>
    %283 = arith.divf %281, %282 : vector<16x32xf32>
    %284 = vector.extract_strided_slice %277 {offsets = [0, 32], sizes = [16, 32], strides = [1, 1]} : vector<16x128xf32> to vector<16x32xf32>
    %285 = arith.negf %284 : vector<16x32xf32>
    %286 = math.exp %285 : vector<16x32xf32>
    %cst_87 = arith.constant 1.000000e+00 : f32
    %287 = vector.broadcast %cst_87 : f32 to vector<16x32xf32>
    %288 = arith.addf %287, %286 : vector<16x32xf32>
    %289 = arith.divf %287, %288 : vector<16x32xf32>
    %290 = vector.extract_strided_slice %277 {offsets = [0, 64], sizes = [16, 32], strides = [1, 1]} : vector<16x128xf32> to vector<16x32xf32>
    %291 = math.tanh %290 : vector<16x32xf32>
    %292 = vector.extract_strided_slice %277 {offsets = [0, 96], sizes = [16, 32], strides = [1, 1]} : vector<16x128xf32> to vector<16x32xf32>
    %293 = arith.negf %292 : vector<16x32xf32>
    %294 = math.exp %293 : vector<16x32xf32>
    %cst_88 = arith.constant 1.000000e+00 : f32
    %295 = vector.broadcast %cst_88 : f32 to vector<16x32xf32>
    %296 = arith.addf %295, %294 : vector<16x32xf32>
    %297 = arith.divf %295, %296 : vector<16x32xf32>
    %298 = arith.mulf %289, %235 : vector<16x32xf32>
    %299 = arith.mulf %283, %291 : vector<16x32xf32>
    %300 = arith.addf %298, %299 : vector<16x32xf32>
    %301 = math.tanh %300 : vector<16x32xf32>
    %302 = arith.mulf %297, %301 : vector<16x32xf32>
    %303 = arith.select %239, %302, %234 : vector<16x32xi1>, vector<16x32xf32>
    %304 = arith.select %239, %300, %235 : vector<16x32xi1>, vector<16x32xf32>
    %c4_i32 = arith.constant 4 : i32
    %305 = vector.broadcast %c4_i32 : i32 to vector<16x1xi32>
    %306 = arith.cmpi sgt, %24, %305 : vector<16x1xi32>
    %307 = vector.shape_cast %306 : vector<16x1xi1> to vector<16x1xi1>
    %308 = vector.broadcast %307 : vector<16x1xi1> to vector<16x32xi1>
    %c0_89 = arith.constant 0 : index
    %c4 = arith.constant 4 : index
    %c0_90 = arith.constant 0 : index
    %309 = vector.load %arg15[%c0_89, %c4, %c0_90] : memref<16x8x128xf32, #tpu.memory_space<vmem>>, vector<16x1x128xf32>
    %310 = vector.shape_cast %309 : vector<16x1x128xf32> to vector<16x128xf32>
    %c0_91 = arith.constant 0 : index
    %c0_92 = arith.constant 0 : index
    %311 = vector.load %arg9[%c0_91, %c0_92] : memref<32x128xf32, #tpu.memory_space<vmem>>, vector<32x128xf32>
    %cst_93 = arith.constant dense<0.000000e+00> : vector<16x128xf32>
    %312 = tpu.matmul %270, %311, %cst_93 {dimension_numbers = #tpu.dot_dimension_numbers<[1], [0], [0], [1], [0, 0, 1, 1], [], []>} : vector<16x32xf32>, vector<32x128xf32>, vector<16x128xf32> -> vector<16x128xf32>
    %313 = arith.addf %310, %312 : vector<16x128xf32>
    %314 = vector.extract_strided_slice %313 {offsets = [0, 0], sizes = [16, 32], strides = [1, 1]} : vector<16x128xf32> to vector<16x32xf32>
    %315 = arith.negf %314 : vector<16x32xf32>
    %316 = math.exp %315 : vector<16x32xf32>
    %cst_94 = arith.constant 1.000000e+00 : f32
    %317 = vector.broadcast %cst_94 : f32 to vector<16x32xf32>
    %318 = arith.addf %317, %316 : vector<16x32xf32>
    %319 = arith.divf %317, %318 : vector<16x32xf32>
    %320 = vector.extract_strided_slice %313 {offsets = [0, 32], sizes = [16, 32], strides = [1, 1]} : vector<16x128xf32> to vector<16x32xf32>
    %321 = arith.negf %320 : vector<16x32xf32>
    %322 = math.exp %321 : vector<16x32xf32>
    %cst_95 = arith.constant 1.000000e+00 : f32
    %323 = vector.broadcast %cst_95 : f32 to vector<16x32xf32>
    %324 = arith.addf %323, %322 : vector<16x32xf32>
    %325 = arith.divf %323, %324 : vector<16x32xf32>
    %326 = vector.extract_strided_slice %313 {offsets = [0, 64], sizes = [16, 32], strides = [1, 1]} : vector<16x128xf32> to vector<16x32xf32>
    %327 = math.tanh %326 : vector<16x32xf32>
    %328 = vector.extract_strided_slice %313 {offsets = [0, 96], sizes = [16, 32], strides = [1, 1]} : vector<16x128xf32> to vector<16x32xf32>
    %329 = arith.negf %328 : vector<16x32xf32>
    %330 = math.exp %329 : vector<16x32xf32>
    %cst_96 = arith.constant 1.000000e+00 : f32
    %331 = vector.broadcast %cst_96 : f32 to vector<16x32xf32>
    %332 = arith.addf %331, %330 : vector<16x32xf32>
    %333 = arith.divf %331, %332 : vector<16x32xf32>
    %334 = arith.mulf %325, %271 : vector<16x32xf32>
    %335 = arith.mulf %319, %327 : vector<16x32xf32>
    %336 = arith.addf %334, %335 : vector<16x32xf32>
    %337 = math.tanh %336 : vector<16x32xf32>
    %338 = arith.mulf %333, %337 : vector<16x32xf32>
    %339 = arith.select %308, %338, %270 : vector<16x32xi1>, vector<16x32xf32>
    %340 = arith.select %308, %336, %271 : vector<16x32xi1>, vector<16x32xf32>
    %c0_97 = arith.constant 0 : index
    %c0_98 = arith.constant 0 : index
    %341 = vector.load %arg11[%c0_97, %c0_98] : memref<64x128xf32, #tpu.memory_space<vmem>>, vector<64x128xf32>
    %c0_99 = arith.constant 0 : index
    %c0_100 = arith.constant 0 : index
    %342 = vector.load %arg12[%c0_99, %c0_100] : memref<1x128xf32, #tpu.memory_space<vmem>>, vector<1x128xf32>
    %343 = tpu.concatenate %339, %303 in 1 : vector<16x32xf32>, vector<16x32xf32> -> vector<16x64xf32>
    %cst_101 = arith.constant dense<0.000000e+00> : vector<16x128xf32>
    %344 = tpu.matmul %343, %341, %cst_101 {dimension_numbers = #tpu.dot_dimension_numbers<[1], [0], [0], [1], [0, 0, 1, 1], [], []>} : vector<16x64xf32>, vector<64x128xf32>, vector<16x128xf32> -> vector<16x128xf32>
    %345 = vector.broadcast %342 : vector<1x128xf32> to vector<16x128xf32>
    %346 = arith.addf %344, %345 : vector<16x128xf32>
    %347 = vector.extract_strided_slice %346 {offsets = [0, 0], sizes = [16, 32], strides = [1, 1]} : vector<16x128xf32> to vector<16x32xf32>
    %348 = arith.negf %347 : vector<16x32xf32>
    %349 = math.exp %348 : vector<16x32xf32>
    %cst_102 = arith.constant 1.000000e+00 : f32
    %350 = vector.broadcast %cst_102 : f32 to vector<16x32xf32>
    %351 = arith.addf %350, %349 : vector<16x32xf32>
    %352 = arith.divf %350, %351 : vector<16x32xf32>
    %353 = vector.extract_strided_slice %346 {offsets = [0, 32], sizes = [16, 32], strides = [1, 1]} : vector<16x128xf32> to vector<16x32xf32>
    %354 = arith.negf %353 : vector<16x32xf32>
    %355 = math.exp %354 : vector<16x32xf32>
    %cst_103 = arith.constant 1.000000e+00 : f32
    %356 = vector.broadcast %cst_103 : f32 to vector<16x32xf32>
    %357 = arith.addf %356, %355 : vector<16x32xf32>
    %358 = arith.divf %356, %357 : vector<16x32xf32>
    %359 = vector.extract_strided_slice %346 {offsets = [0, 64], sizes = [16, 32], strides = [1, 1]} : vector<16x128xf32> to vector<16x32xf32>
    %360 = math.tanh %359 : vector<16x32xf32>
    %361 = vector.extract_strided_slice %346 {offsets = [0, 96], sizes = [16, 32], strides = [1, 1]} : vector<16x128xf32> to vector<16x32xf32>
    %362 = arith.negf %361 : vector<16x32xf32>
    %363 = math.exp %362 : vector<16x32xf32>
    %cst_104 = arith.constant 1.000000e+00 : f32
    %364 = vector.broadcast %cst_104 : f32 to vector<16x32xf32>
    %365 = arith.addf %364, %363 : vector<16x32xf32>
    %366 = arith.divf %364, %365 : vector<16x32xf32>
    %367 = arith.mulf %358, %304 : vector<16x32xf32>
    %368 = arith.mulf %352, %360 : vector<16x32xf32>
    %369 = arith.addf %367, %368 : vector<16x32xf32>
    %370 = math.tanh %369 : vector<16x32xf32>
    %371 = arith.mulf %366, %370 : vector<16x32xf32>
    %372 = arith.select %308, %371, %303 : vector<16x32xi1>, vector<16x32xf32>
    %373 = arith.select %308, %369, %304 : vector<16x32xi1>, vector<16x32xf32>
    %c5_i32 = arith.constant 5 : i32
    %374 = vector.broadcast %c5_i32 : i32 to vector<16x1xi32>
    %375 = arith.cmpi sgt, %24, %374 : vector<16x1xi32>
    %376 = vector.shape_cast %375 : vector<16x1xi1> to vector<16x1xi1>
    %377 = vector.broadcast %376 : vector<16x1xi1> to vector<16x32xi1>
    %c0_105 = arith.constant 0 : index
    %c5 = arith.constant 5 : index
    %c0_106 = arith.constant 0 : index
    %378 = vector.load %arg15[%c0_105, %c5, %c0_106] : memref<16x8x128xf32, #tpu.memory_space<vmem>>, vector<16x1x128xf32>
    %379 = vector.shape_cast %378 : vector<16x1x128xf32> to vector<16x128xf32>
    %c0_107 = arith.constant 0 : index
    %c0_108 = arith.constant 0 : index
    %380 = vector.load %arg9[%c0_107, %c0_108] : memref<32x128xf32, #tpu.memory_space<vmem>>, vector<32x128xf32>
    %cst_109 = arith.constant dense<0.000000e+00> : vector<16x128xf32>
    %381 = tpu.matmul %339, %380, %cst_109 {dimension_numbers = #tpu.dot_dimension_numbers<[1], [0], [0], [1], [0, 0, 1, 1], [], []>} : vector<16x32xf32>, vector<32x128xf32>, vector<16x128xf32> -> vector<16x128xf32>
    %382 = arith.addf %379, %381 : vector<16x128xf32>
    %383 = vector.extract_strided_slice %382 {offsets = [0, 0], sizes = [16, 32], strides = [1, 1]} : vector<16x128xf32> to vector<16x32xf32>
    %384 = arith.negf %383 : vector<16x32xf32>
    %385 = math.exp %384 : vector<16x32xf32>
    %cst_110 = arith.constant 1.000000e+00 : f32
    %386 = vector.broadcast %cst_110 : f32 to vector<16x32xf32>
    %387 = arith.addf %386, %385 : vector<16x32xf32>
    %388 = arith.divf %386, %387 : vector<16x32xf32>
    %389 = vector.extract_strided_slice %382 {offsets = [0, 32], sizes = [16, 32], strides = [1, 1]} : vector<16x128xf32> to vector<16x32xf32>
    %390 = arith.negf %389 : vector<16x32xf32>
    %391 = math.exp %390 : vector<16x32xf32>
    %cst_111 = arith.constant 1.000000e+00 : f32
    %392 = vector.broadcast %cst_111 : f32 to vector<16x32xf32>
    %393 = arith.addf %392, %391 : vector<16x32xf32>
    %394 = arith.divf %392, %393 : vector<16x32xf32>
    %395 = vector.extract_strided_slice %382 {offsets = [0, 64], sizes = [16, 32], strides = [1, 1]} : vector<16x128xf32> to vector<16x32xf32>
    %396 = math.tanh %395 : vector<16x32xf32>
    %397 = vector.extract_strided_slice %382 {offsets = [0, 96], sizes = [16, 32], strides = [1, 1]} : vector<16x128xf32> to vector<16x32xf32>
    %398 = arith.negf %397 : vector<16x32xf32>
    %399 = math.exp %398 : vector<16x32xf32>
    %cst_112 = arith.constant 1.000000e+00 : f32
    %400 = vector.broadcast %cst_112 : f32 to vector<16x32xf32>
    %401 = arith.addf %400, %399 : vector<16x32xf32>
    %402 = arith.divf %400, %401 : vector<16x32xf32>
    %403 = arith.mulf %394, %340 : vector<16x32xf32>
    %404 = arith.mulf %388, %396 : vector<16x32xf32>
    %405 = arith.addf %403, %404 : vector<16x32xf32>
    %406 = math.tanh %405 : vector<16x32xf32>
    %407 = arith.mulf %402, %406 : vector<16x32xf32>
    %408 = arith.select %377, %407, %339 : vector<16x32xi1>, vector<16x32xf32>
    %409 = arith.select %377, %405, %340 : vector<16x32xi1>, vector<16x32xf32>
    %c0_113 = arith.constant 0 : index
    %c0_114 = arith.constant 0 : index
    %410 = vector.load %arg11[%c0_113, %c0_114] : memref<64x128xf32, #tpu.memory_space<vmem>>, vector<64x128xf32>
    %c0_115 = arith.constant 0 : index
    %c0_116 = arith.constant 0 : index
    %411 = vector.load %arg12[%c0_115, %c0_116] : memref<1x128xf32, #tpu.memory_space<vmem>>, vector<1x128xf32>
    %412 = tpu.concatenate %408, %372 in 1 : vector<16x32xf32>, vector<16x32xf32> -> vector<16x64xf32>
    %cst_117 = arith.constant dense<0.000000e+00> : vector<16x128xf32>
    %413 = tpu.matmul %412, %410, %cst_117 {dimension_numbers = #tpu.dot_dimension_numbers<[1], [0], [0], [1], [0, 0, 1, 1], [], []>} : vector<16x64xf32>, vector<64x128xf32>, vector<16x128xf32> -> vector<16x128xf32>
    %414 = vector.broadcast %411 : vector<1x128xf32> to vector<16x128xf32>
    %415 = arith.addf %413, %414 : vector<16x128xf32>
    %416 = vector.extract_strided_slice %415 {offsets = [0, 0], sizes = [16, 32], strides = [1, 1]} : vector<16x128xf32> to vector<16x32xf32>
    %417 = arith.negf %416 : vector<16x32xf32>
    %418 = math.exp %417 : vector<16x32xf32>
    %cst_118 = arith.constant 1.000000e+00 : f32
    %419 = vector.broadcast %cst_118 : f32 to vector<16x32xf32>
    %420 = arith.addf %419, %418 : vector<16x32xf32>
    %421 = arith.divf %419, %420 : vector<16x32xf32>
    %422 = vector.extract_strided_slice %415 {offsets = [0, 32], sizes = [16, 32], strides = [1, 1]} : vector<16x128xf32> to vector<16x32xf32>
    %423 = arith.negf %422 : vector<16x32xf32>
    %424 = math.exp %423 : vector<16x32xf32>
    %cst_119 = arith.constant 1.000000e+00 : f32
    %425 = vector.broadcast %cst_119 : f32 to vector<16x32xf32>
    %426 = arith.addf %425, %424 : vector<16x32xf32>
    %427 = arith.divf %425, %426 : vector<16x32xf32>
    %428 = vector.extract_strided_slice %415 {offsets = [0, 64], sizes = [16, 32], strides = [1, 1]} : vector<16x128xf32> to vector<16x32xf32>
    %429 = math.tanh %428 : vector<16x32xf32>
    %430 = vector.extract_strided_slice %415 {offsets = [0, 96], sizes = [16, 32], strides = [1, 1]} : vector<16x128xf32> to vector<16x32xf32>
    %431 = arith.negf %430 : vector<16x32xf32>
    %432 = math.exp %431 : vector<16x32xf32>
    %cst_120 = arith.constant 1.000000e+00 : f32
    %433 = vector.broadcast %cst_120 : f32 to vector<16x32xf32>
    %434 = arith.addf %433, %432 : vector<16x32xf32>
    %435 = arith.divf %433, %434 : vector<16x32xf32>
    %436 = arith.mulf %427, %373 : vector<16x32xf32>
    %437 = arith.mulf %421, %429 : vector<16x32xf32>
    %438 = arith.addf %436, %437 : vector<16x32xf32>
    %439 = math.tanh %438 : vector<16x32xf32>
    %440 = arith.mulf %435, %439 : vector<16x32xf32>
    %441 = arith.select %377, %440, %372 : vector<16x32xi1>, vector<16x32xf32>
    %442 = arith.select %377, %438, %373 : vector<16x32xi1>, vector<16x32xf32>
    %c6_i32 = arith.constant 6 : i32
    %443 = vector.broadcast %c6_i32 : i32 to vector<16x1xi32>
    %444 = arith.cmpi sgt, %24, %443 : vector<16x1xi32>
    %445 = vector.shape_cast %444 : vector<16x1xi1> to vector<16x1xi1>
    %446 = vector.broadcast %445 : vector<16x1xi1> to vector<16x32xi1>
    %c0_121 = arith.constant 0 : index
    %c6 = arith.constant 6 : index
    %c0_122 = arith.constant 0 : index
    %447 = vector.load %arg15[%c0_121, %c6, %c0_122] : memref<16x8x128xf32, #tpu.memory_space<vmem>>, vector<16x1x128xf32>
    %448 = vector.shape_cast %447 : vector<16x1x128xf32> to vector<16x128xf32>
    %c0_123 = arith.constant 0 : index
    %c0_124 = arith.constant 0 : index
    %449 = vector.load %arg9[%c0_123, %c0_124] : memref<32x128xf32, #tpu.memory_space<vmem>>, vector<32x128xf32>
    %cst_125 = arith.constant dense<0.000000e+00> : vector<16x128xf32>
    %450 = tpu.matmul %408, %449, %cst_125 {dimension_numbers = #tpu.dot_dimension_numbers<[1], [0], [0], [1], [0, 0, 1, 1], [], []>} : vector<16x32xf32>, vector<32x128xf32>, vector<16x128xf32> -> vector<16x128xf32>
    %451 = arith.addf %448, %450 : vector<16x128xf32>
    %452 = vector.extract_strided_slice %451 {offsets = [0, 0], sizes = [16, 32], strides = [1, 1]} : vector<16x128xf32> to vector<16x32xf32>
    %453 = arith.negf %452 : vector<16x32xf32>
    %454 = math.exp %453 : vector<16x32xf32>
    %cst_126 = arith.constant 1.000000e+00 : f32
    %455 = vector.broadcast %cst_126 : f32 to vector<16x32xf32>
    %456 = arith.addf %455, %454 : vector<16x32xf32>
    %457 = arith.divf %455, %456 : vector<16x32xf32>
    %458 = vector.extract_strided_slice %451 {offsets = [0, 32], sizes = [16, 32], strides = [1, 1]} : vector<16x128xf32> to vector<16x32xf32>
    %459 = arith.negf %458 : vector<16x32xf32>
    %460 = math.exp %459 : vector<16x32xf32>
    %cst_127 = arith.constant 1.000000e+00 : f32
    %461 = vector.broadcast %cst_127 : f32 to vector<16x32xf32>
    %462 = arith.addf %461, %460 : vector<16x32xf32>
    %463 = arith.divf %461, %462 : vector<16x32xf32>
    %464 = vector.extract_strided_slice %451 {offsets = [0, 64], sizes = [16, 32], strides = [1, 1]} : vector<16x128xf32> to vector<16x32xf32>
    %465 = math.tanh %464 : vector<16x32xf32>
    %466 = vector.extract_strided_slice %451 {offsets = [0, 96], sizes = [16, 32], strides = [1, 1]} : vector<16x128xf32> to vector<16x32xf32>
    %467 = arith.negf %466 : vector<16x32xf32>
    %468 = math.exp %467 : vector<16x32xf32>
    %cst_128 = arith.constant 1.000000e+00 : f32
    %469 = vector.broadcast %cst_128 : f32 to vector<16x32xf32>
    %470 = arith.addf %469, %468 : vector<16x32xf32>
    %471 = arith.divf %469, %470 : vector<16x32xf32>
    %472 = arith.mulf %463, %409 : vector<16x32xf32>
    %473 = arith.mulf %457, %465 : vector<16x32xf32>
    %474 = arith.addf %472, %473 : vector<16x32xf32>
    %475 = math.tanh %474 : vector<16x32xf32>
    %476 = arith.mulf %471, %475 : vector<16x32xf32>
    %477 = arith.select %446, %476, %408 : vector<16x32xi1>, vector<16x32xf32>
    %478 = arith.select %446, %474, %409 : vector<16x32xi1>, vector<16x32xf32>
    %c0_129 = arith.constant 0 : index
    %c0_130 = arith.constant 0 : index
    %479 = vector.load %arg11[%c0_129, %c0_130] : memref<64x128xf32, #tpu.memory_space<vmem>>, vector<64x128xf32>
    %c0_131 = arith.constant 0 : index
    %c0_132 = arith.constant 0 : index
    %480 = vector.load %arg12[%c0_131, %c0_132] : memref<1x128xf32, #tpu.memory_space<vmem>>, vector<1x128xf32>
    %481 = tpu.concatenate %477, %441 in 1 : vector<16x32xf32>, vector<16x32xf32> -> vector<16x64xf32>
    %cst_133 = arith.constant dense<0.000000e+00> : vector<16x128xf32>
    %482 = tpu.matmul %481, %479, %cst_133 {dimension_numbers = #tpu.dot_dimension_numbers<[1], [0], [0], [1], [0, 0, 1, 1], [], []>} : vector<16x64xf32>, vector<64x128xf32>, vector<16x128xf32> -> vector<16x128xf32>
    %483 = vector.broadcast %480 : vector<1x128xf32> to vector<16x128xf32>
    %484 = arith.addf %482, %483 : vector<16x128xf32>
    %485 = vector.extract_strided_slice %484 {offsets = [0, 0], sizes = [16, 32], strides = [1, 1]} : vector<16x128xf32> to vector<16x32xf32>
    %486 = arith.negf %485 : vector<16x32xf32>
    %487 = math.exp %486 : vector<16x32xf32>
    %cst_134 = arith.constant 1.000000e+00 : f32
    %488 = vector.broadcast %cst_134 : f32 to vector<16x32xf32>
    %489 = arith.addf %488, %487 : vector<16x32xf32>
    %490 = arith.divf %488, %489 : vector<16x32xf32>
    %491 = vector.extract_strided_slice %484 {offsets = [0, 32], sizes = [16, 32], strides = [1, 1]} : vector<16x128xf32> to vector<16x32xf32>
    %492 = arith.negf %491 : vector<16x32xf32>
    %493 = math.exp %492 : vector<16x32xf32>
    %cst_135 = arith.constant 1.000000e+00 : f32
    %494 = vector.broadcast %cst_135 : f32 to vector<16x32xf32>
    %495 = arith.addf %494, %493 : vector<16x32xf32>
    %496 = arith.divf %494, %495 : vector<16x32xf32>
    %497 = vector.extract_strided_slice %484 {offsets = [0, 64], sizes = [16, 32], strides = [1, 1]} : vector<16x128xf32> to vector<16x32xf32>
    %498 = math.tanh %497 : vector<16x32xf32>
    %499 = vector.extract_strided_slice %484 {offsets = [0, 96], sizes = [16, 32], strides = [1, 1]} : vector<16x128xf32> to vector<16x32xf32>
    %500 = arith.negf %499 : vector<16x32xf32>
    %501 = math.exp %500 : vector<16x32xf32>
    %cst_136 = arith.constant 1.000000e+00 : f32
    %502 = vector.broadcast %cst_136 : f32 to vector<16x32xf32>
    %503 = arith.addf %502, %501 : vector<16x32xf32>
    %504 = arith.divf %502, %503 : vector<16x32xf32>
    %505 = arith.mulf %496, %442 : vector<16x32xf32>
    %506 = arith.mulf %490, %498 : vector<16x32xf32>
    %507 = arith.addf %505, %506 : vector<16x32xf32>
    %508 = math.tanh %507 : vector<16x32xf32>
    %509 = arith.mulf %504, %508 : vector<16x32xf32>
    %510 = arith.select %446, %509, %441 : vector<16x32xi1>, vector<16x32xf32>
    %511 = arith.select %446, %507, %442 : vector<16x32xi1>, vector<16x32xf32>
    %c7_i32 = arith.constant 7 : i32
    %512 = vector.broadcast %c7_i32 : i32 to vector<16x1xi32>
    %513 = arith.cmpi sgt, %24, %512 : vector<16x1xi32>
    %514 = vector.shape_cast %513 : vector<16x1xi1> to vector<16x1xi1>
    %515 = vector.broadcast %514 : vector<16x1xi1> to vector<16x32xi1>
    %c0_137 = arith.constant 0 : index
    %c7 = arith.constant 7 : index
    %c0_138 = arith.constant 0 : index
    %516 = vector.load %arg15[%c0_137, %c7, %c0_138] : memref<16x8x128xf32, #tpu.memory_space<vmem>>, vector<16x1x128xf32>
    %517 = vector.shape_cast %516 : vector<16x1x128xf32> to vector<16x128xf32>
    %c0_139 = arith.constant 0 : index
    %c0_140 = arith.constant 0 : index
    %518 = vector.load %arg9[%c0_139, %c0_140] : memref<32x128xf32, #tpu.memory_space<vmem>>, vector<32x128xf32>
    %cst_141 = arith.constant dense<0.000000e+00> : vector<16x128xf32>
    %519 = tpu.matmul %477, %518, %cst_141 {dimension_numbers = #tpu.dot_dimension_numbers<[1], [0], [0], [1], [0, 0, 1, 1], [], []>} : vector<16x32xf32>, vector<32x128xf32>, vector<16x128xf32> -> vector<16x128xf32>
    %520 = arith.addf %517, %519 : vector<16x128xf32>
    %521 = vector.extract_strided_slice %520 {offsets = [0, 0], sizes = [16, 32], strides = [1, 1]} : vector<16x128xf32> to vector<16x32xf32>
    %522 = arith.negf %521 : vector<16x32xf32>
    %523 = math.exp %522 : vector<16x32xf32>
    %cst_142 = arith.constant 1.000000e+00 : f32
    %524 = vector.broadcast %cst_142 : f32 to vector<16x32xf32>
    %525 = arith.addf %524, %523 : vector<16x32xf32>
    %526 = arith.divf %524, %525 : vector<16x32xf32>
    %527 = vector.extract_strided_slice %520 {offsets = [0, 32], sizes = [16, 32], strides = [1, 1]} : vector<16x128xf32> to vector<16x32xf32>
    %528 = arith.negf %527 : vector<16x32xf32>
    %529 = math.exp %528 : vector<16x32xf32>
    %cst_143 = arith.constant 1.000000e+00 : f32
    %530 = vector.broadcast %cst_143 : f32 to vector<16x32xf32>
    %531 = arith.addf %530, %529 : vector<16x32xf32>
    %532 = arith.divf %530, %531 : vector<16x32xf32>
    %533 = vector.extract_strided_slice %520 {offsets = [0, 64], sizes = [16, 32], strides = [1, 1]} : vector<16x128xf32> to vector<16x32xf32>
    %534 = math.tanh %533 : vector<16x32xf32>
    %535 = vector.extract_strided_slice %520 {offsets = [0, 96], sizes = [16, 32], strides = [1, 1]} : vector<16x128xf32> to vector<16x32xf32>
    %536 = arith.negf %535 : vector<16x32xf32>
    %537 = math.exp %536 : vector<16x32xf32>
    %cst_144 = arith.constant 1.000000e+00 : f32
    %538 = vector.broadcast %cst_144 : f32 to vector<16x32xf32>
    %539 = arith.addf %538, %537 : vector<16x32xf32>
    %540 = arith.divf %538, %539 : vector<16x32xf32>
    %541 = arith.mulf %532, %478 : vector<16x32xf32>
    %542 = arith.mulf %526, %534 : vector<16x32xf32>
    %543 = arith.addf %541, %542 : vector<16x32xf32>
    %544 = math.tanh %543 : vector<16x32xf32>
    %545 = arith.mulf %540, %544 : vector<16x32xf32>
    %546 = arith.select %515, %545, %477 : vector<16x32xi1>, vector<16x32xf32>
    %c0_145 = arith.constant 0 : index
    %c0_146 = arith.constant 0 : index
    %547 = vector.load %arg11[%c0_145, %c0_146] : memref<64x128xf32, #tpu.memory_space<vmem>>, vector<64x128xf32>
    %c0_147 = arith.constant 0 : index
    %c0_148 = arith.constant 0 : index
    %548 = vector.load %arg12[%c0_147, %c0_148] : memref<1x128xf32, #tpu.memory_space<vmem>>, vector<1x128xf32>
    %549 = tpu.concatenate %546, %510 in 1 : vector<16x32xf32>, vector<16x32xf32> -> vector<16x64xf32>
    %cst_149 = arith.constant dense<0.000000e+00> : vector<16x128xf32>
    %550 = tpu.matmul %549, %547, %cst_149 {dimension_numbers = #tpu.dot_dimension_numbers<[1], [0], [0], [1], [0, 0, 1, 1], [], []>} : vector<16x64xf32>, vector<64x128xf32>, vector<16x128xf32> -> vector<16x128xf32>
    %551 = vector.broadcast %548 : vector<1x128xf32> to vector<16x128xf32>
    %552 = arith.addf %550, %551 : vector<16x128xf32>
    %553 = vector.extract_strided_slice %552 {offsets = [0, 0], sizes = [16, 32], strides = [1, 1]} : vector<16x128xf32> to vector<16x32xf32>
    %554 = arith.negf %553 : vector<16x32xf32>
    %555 = math.exp %554 : vector<16x32xf32>
    %cst_150 = arith.constant 1.000000e+00 : f32
    %556 = vector.broadcast %cst_150 : f32 to vector<16x32xf32>
    %557 = arith.addf %556, %555 : vector<16x32xf32>
    %558 = arith.divf %556, %557 : vector<16x32xf32>
    %559 = vector.extract_strided_slice %552 {offsets = [0, 32], sizes = [16, 32], strides = [1, 1]} : vector<16x128xf32> to vector<16x32xf32>
    %560 = arith.negf %559 : vector<16x32xf32>
    %561 = math.exp %560 : vector<16x32xf32>
    %cst_151 = arith.constant 1.000000e+00 : f32
    %562 = vector.broadcast %cst_151 : f32 to vector<16x32xf32>
    %563 = arith.addf %562, %561 : vector<16x32xf32>
    %564 = arith.divf %562, %563 : vector<16x32xf32>
    %565 = vector.extract_strided_slice %552 {offsets = [0, 64], sizes = [16, 32], strides = [1, 1]} : vector<16x128xf32> to vector<16x32xf32>
    %566 = math.tanh %565 : vector<16x32xf32>
    %567 = vector.extract_strided_slice %552 {offsets = [0, 96], sizes = [16, 32], strides = [1, 1]} : vector<16x128xf32> to vector<16x32xf32>
    %568 = arith.negf %567 : vector<16x32xf32>
    %569 = math.exp %568 : vector<16x32xf32>
    %cst_152 = arith.constant 1.000000e+00 : f32
    %570 = vector.broadcast %cst_152 : f32 to vector<16x32xf32>
    %571 = arith.addf %570, %569 : vector<16x32xf32>
    %572 = arith.divf %570, %571 : vector<16x32xf32>
    %573 = arith.mulf %564, %511 : vector<16x32xf32>
    %574 = arith.mulf %558, %566 : vector<16x32xf32>
    %575 = arith.addf %573, %574 : vector<16x32xf32>
    %576 = math.tanh %575 : vector<16x32xf32>
    %577 = arith.mulf %572, %576 : vector<16x32xf32>
    %578 = arith.select %515, %577, %510 : vector<16x32xi1>, vector<16x32xf32>
    %579 = vector.extract_strided_slice %578 {offsets = [0, 0], sizes = [16, 16], strides = [1, 1]} : vector<16x32xf32> to vector<16x16xf32>
    %580 = vector.extract_strided_slice %578 {offsets = [0, 16], sizes = [16, 16], strides = [1, 1]} : vector<16x32xf32> to vector<16x16xf32>
    %c0_153 = arith.constant 0 : index
    %c0_154 = arith.constant 0 : index
    %581 = vector.load %arg13[%c0_153, %c0_154] : memref<16x1xf32, #tpu.memory_space<vmem>>, vector<16x1xf32>
    %cst_155 = arith.constant dense<0.000000e+00> : vector<16x1xf32>
    %582 = tpu.matmul %580, %581, %cst_155 {dimension_numbers = #tpu.dot_dimension_numbers<[1], [0], [0], [1], [0, 0, 1, 1], [], []>} : vector<16x16xf32>, vector<16x1xf32>, vector<16x1xf32> -> vector<16x1xf32>
    %cst_156 = arith.constant 0.000000e+00 : f32
    %583 = vector.broadcast %cst_156 : f32 to vector<16x1xf32>
    %584 = arith.cmpf oge, %582, %583 : vector<16x1xf32>
    %cst_157 = arith.constant 0.00999999977 : f32
    %585 = vector.broadcast %cst_157 : f32 to vector<16x1xf32>
    %586 = arith.mulf %585, %582 : vector<16x1xf32>
    %587 = arith.select %584, %582, %586 : vector<16x1xi1>, vector<16x1xf32>
    %cst_158 = arith.constant 0.000000e+00 : f32
    %588 = vector.broadcast %cst_158 : f32 to vector<16x111xf32>
    %589 = tpu.concatenate %579, %587, %588 in 1 : vector<16x16xf32>, vector<16x1xf32>, vector<16x111xf32> -> vector<16x128xf32>
    %c0_159 = arith.constant 0 : index
    %c0_160 = arith.constant 0 : index
    %590 = vector.load %arg14[%c0_159, %c0_160] : memref<16x128xf32, #tpu.memory_space<vmem>>, vector<16x128xf32>
    tpu.vector_store %arg14[%c0_159, %c0_160], %589 {strides = array<i32>} : memref<16x128xf32, #tpu.memory_space<vmem>>, vector<16x128xf32>,
    return
  }
  func.func @transform_0(%arg0: i32) -> (i32, i32) {
    %c0_i32 = arith.constant 0 : i32
    %c0_i32_0 = arith.constant 0 : i32
    return %arg0, %c0_i32 : i32, i32
  }
  func.func @transform_1(%arg0: i32) -> (i32, i32) {
    %c0_i32 = arith.constant 0 : i32
    %c0_i32_0 = arith.constant 0 : i32
    return %arg0, %c0_i32 : i32, i32
  }
  func.func @transform_2(%arg0: i32) -> (i32, i32) {
    %c0_i32 = arith.constant 0 : i32
    %c0_i32_0 = arith.constant 0 : i32
    return %arg0, %c0_i32 : i32, i32
  }
  func.func @transform_3(%arg0: i32) -> (i32, i32) {
    %c0_i32 = arith.constant 0 : i32
    %c0_i32_0 = arith.constant 0 : i32
    %c0_i32_1 = arith.constant 0 : i32
    return %c0_i32, %c0_i32_0 : i32, i32
  }
  func.func @transform_4(%arg0: i32) -> (i32, i32) {
    %c0_i32 = arith.constant 0 : i32
    %c0_i32_0 = arith.constant 0 : i32
    %c0_i32_1 = arith.constant 0 : i32
    return %c0_i32, %c0_i32_0 : i32, i32
  }
  func.func @transform_5(%arg0: i32) -> (i32, i32) {
    %c0_i32 = arith.constant 0 : i32
    %c0_i32_0 = arith.constant 0 : i32
    %c0_i32_1 = arith.constant 0 : i32
    return %c0_i32, %c0_i32_0 : i32, i32
  }
  func.func @transform_6(%arg0: i32) -> (i32, i32) {
    %c0_i32 = arith.constant 0 : i32
    %c0_i32_0 = arith.constant 0 : i32
    %c0_i32_1 = arith.constant 0 : i32
    return %c0_i32, %c0_i32_0 : i32, i32
  }
  func.func @transform_7(%arg0: i32) -> (i32, i32) {
    %c0_i32 = arith.constant 0 : i32
    %c0_i32_0 = arith.constant 0 : i32
    %c0_i32_1 = arith.constant 0 : i32
    return %c0_i32, %c0_i32_0 : i32, i32
  }
  func.func @transform_8(%arg0: i32) -> (i32, i32) {
    %c0_i32 = arith.constant 0 : i32
    %c0_i32_0 = arith.constant 0 : i32
    %c0_i32_1 = arith.constant 0 : i32
    return %c0_i32, %c0_i32_0 : i32, i32
  }
  func.func @transform_9(%arg0: i32) -> (i32, i32) {
    %c0_i32 = arith.constant 0 : i32
    %c0_i32_0 = arith.constant 0 : i32
    %c0_i32_1 = arith.constant 0 : i32
    return %c0_i32, %c0_i32_0 : i32, i32
  }
  func.func @transform_10(%arg0: i32) -> (i32, i32) {
    %c0_i32 = arith.constant 0 : i32
    %c0_i32_0 = arith.constant 0 : i32
    %c0_i32_1 = arith.constant 0 : i32
    return %c0_i32, %c0_i32_0 : i32, i32
  }
  func.func @transform_11(%arg0: i32) -> (i32, i32) {
    %c0_i32 = arith.constant 0 : i32
    %c0_i32_0 = arith.constant 0 : i32
    %c0_i32_1 = arith.constant 0 : i32
    return %c0_i32, %c0_i32_0 : i32, i32
  }
  func.func @transform_12(%arg0: i32) -> (i32, i32) {
    %c0_i32 = arith.constant 0 : i32
    %c0_i32_0 = arith.constant 0 : i32
    %c0_i32_1 = arith.constant 0 : i32
    return %c0_i32, %c0_i32_0 : i32, i32
  }
  func.func @transform_13(%arg0: i32) -> (i32, i32) {
    %c0_i32 = arith.constant 0 : i32
    %c0_i32_0 = arith.constant 0 : i32
    return %arg0, %c0_i32 : i32, i32
  }
}

</mosaic_0001>

<bundles_post_ra>
// kernel: tpu_custom_call.1
= control target key start
LH: loop header
LB: loop body
LE: loop exit
PB: predicated region body
PF: predicated region fallthrough
CT: control target
= control target key end

     0   :  { %s17446_s0 = inlined_call_operand.vmem [shape: f32[256,5], index: 0, kind: input, shape index: {}]   ;;  %s17447_s1 = inlined_call_operand.vmem [shape: f32[256,1], index: 1, kind: input, shape index: {}]   ;;  %s17448_s2 = inlined_call_operand.vmem [shape: s32[32,1], index: 2, kind: input, shape index: {}]   ;;  %s17449_s3 = inlined_call_operand.vmem [shape: f32[1,7], index: 3, kind: input, shape index: {}]   ;;  %s17450_s4 = inlined_call_operand.vmem [shape: f32[1,7], index: 4, kind: input, shape index: {}]   ;;  %s17451_s5 = inlined_call_operand.<no memory space> [shape: f32[1,1], index: 5, kind: input, shape index: {}]   ;;  %s17452_s7 = inlined_call_operand.vmem [shape: f32[13,128], index: 7, kind: input, shape index: {}]   ;;  %s17453_s8 = inlined_call_operand.vmem [shape: f32[32,128], index: 8, kind: input, shape index: {}]   ;;  %s17454_s9 = inlined_call_operand.vmem [shape: f32[1,128], index: 9, kind: input, shape index: {}]   ;;  %s17455_s10 = inlined_call_operand.vmem [shape: f32[64,128], index: 10, kind: input, shape index: {}]   ;;  %s17456_s11 = inlined_call_operand.vmem [shape: f32[1,128], index: 11, kind: input, shape index: {}]   ;;  %s17457_s12 = inlined_call_operand.vmem [shape: f32[16,1], index: 12, kind: input, shape index: {}]   ;;  %s17458_s13 = inlined_call_operand.hbm [shape: f32[32,128], index: 13, kind: output, shape index: {}]   ;;  %s17459_s6 = inlined_call_operand.<no memory space> [shape: f32[1,1], index: 6, kind: input, shape index: {}]  }
   0x1   :  { %17499 = sst [smem:[#allocation20_spill]] %s17446_s0  ;;  %v18_v0 = vstv %s17451_s5  ;;  %v20_v1 = vstv %s17459_s6 }
   0x2   :  { %17500 = sst [smem:[#allocation21_spill]] %s17447_s1  ;;  %19 = vst [vmem:[#allocation3] sm:$0x1] %v18_v0  ;;  %21 = vst [vmem:[#allocation4] sm:$0x1] %v20_v1 }
   0x3   :  { %22 = vsyncpa [#allocation6], 0 }
   0x4   :  { %24 = vsyncpa [#allocation6 + $0x1], 0  ;;  %s11964_s29 = smov 0   ;;  %s11966_s30 = smov 0  }
   0x5   :  { %s11968_s14 = smov 0   ;;  %s11970_s15 = smov 0  }
   0x6 LB: > { %s11985_s5 = sadd.s32 4294967295, %s11869_s15   ;;  %s9675_s6 = sadd.s32 4294967294, %s11869_s15   ;;  %s11869_s15 = sphi %s11970_s15, %s17578_s15   ;;  %s11865_s14 = sphi %s11968_s14, %s17577_s14   ;;  %s11861_s30 = sphi %s11966_s30, %s17576_s30   ;;  %s11857_s29 = sphi %s11964_s29, %s17575_s29  }
   0x7   : > { %s11989_s16 = sadd.s32 1, %s11869_s15   ;;  %s325_s17 = sadd.s32 1, %s11865_s14 }
   0x8   : > { %s322_s18 = ssub.s32 %s11869_s15, %s11989_s16  ;;  %p335_p0 = scmp.ne.s32.totalorder %s11865_s14, %s11861_s30 }
   0x9   : > { %p323_p1 = scmp.eq.s32.totalorder %s322_s18, 0  ;;  %p336_p2 = scmp.eq.s32.totalorder %s11985_s5, 1 }
   0xa   : > { %p341_p3 = scmp.ne.s32.totalorder %s11861_s30, %s11857_s29  ;;  %p342_p4 = scmp.eq.s32.totalorder %s9675_s6, 1 }
   0xb   : > { %s12000_s19 = scalar_select %p323_p1, %s11865_s14, %s325_s17  }
   0xc   : > { %p12002_p5 = por %p336_p2, %p335_p0  ;;  %p12006_p6 = por %p342_p4, %p341_p3 }
   0xd   : > { %p9678_p7 = scmp.ge.s32.totalorder %s11869_s15, 1  ;;  %p417_p8 = scmp.lt.s32.totalorder %s11869_s15, 3 }
   0xf   : > { %p418_p9 = pnand %p9678_p7, %p417_p8 }
  0x11   : > { %421 = sbr.rel (%p418_p9) target bundleno = 7736 (0x1e38), region = 72 }
  0x16   : > { %s9680_s22 = sshll.u32 %s11985_s5, 4  ;;  %v17460_v2 = vmov 0   ;;  %s17503_s1 = sld [smem:[#allocation21_spill]]  ;;  %v12029_v7 = vld [vmem:[#allocation3] ss:$0 sm:$0xff] }
  0x17   : > { %10500 = vset.pattern.permute.xlu1 %v17460_v2  ;;  %10499 = vset.pattern.permute.xlu0 %v17460_v2  ;;  %p472_p10 = scmp.lt.s32.totalorder %s9680_s22, 31  ;;  %v9753_v23 = vld [vmem:[#allocation4] ss:$0 sm:$0xff]  ;;  %s11872_s27 = smov 12   ;;  %v12080_v55 = vld [vmem:[%s17449_s3] ss:$0 sm:$0xff] }
  0x18   : > { %v12086_v59 = vld [vmem:[%s17450_s4] ss:$0 sm:$0xff]  ;;  %s11879_s24 = smov 5   ;;  %s17566_s0 = sld [smem:[#allocation20_spill]] }
  0x19   : > { %s17580_s22 = smov (!%p472_p10, %s9680_s22), 31  ;;  %s17497_s28 = smov 32  }
  0x1a   : > { %s9681_s23 = sshll.u32 %s17580_s22, 3  ;;  %s9684_s6 = sshll.u32 %s11985_s5, 1 }
  0x1b   : > { %p484_p11 = scmp.lt.s32.totalorder %s9684_s6, 3  ;;  %s17572_s25 = smov 64  }
  0x1c   : > { %s12023_s26 = scalar_lea.vmem %s17503_s1, %s9681_s23  ;;  %s11884_s22 = smov 16  }
  0x1d   : > { %v492_v3 = vld [vmem:[%s12023_s26 + $0x10] sm:$0xff]  ;;  %v490_v4 = vld [vmem:[%s12023_s26] sm:$0xff]  ;;  %v493_v5 = vld [vmem:[%s12023_s26 + $0x18] sm:$0xff]  ;;  %s17582_s6 = smov (!%p484_p11, %s9684_s6), 3 }
  0x1e   : > { %519 = vperm.xlu1 %10500, %v492_v3   ;;  %509 = vperm.xlu0 %10499, %v490_v4   ;;  %v491_v6 = vld [vmem:[%s12023_s26 + $0x8] sm:$0xff]  ;;  %v505_v8 = vld [vmem:[%s12023_s26 + $0x78] sm:$0xff]  ;;  %v504_v10 = vld [vmem:[%s12023_s26 + $0x70] sm:$0xff]  ;;  %v2303_v22 = vmul.f32 %v12029_v7, %v490_v4  ;;  %v2305_v25 = vmul.f32 %v12029_v7, %v492_v3  ;;  %v2306_v27 = vmul.f32 %v12029_v7, %v493_v5  ;;  %s13921_s17 = scalar_lea.vmem %s17566_s0, %s9681_s23  ;;  %s17574_s0 = smov 32  }
  0x1f   : > { %v12033_v9 = vmul.f32 %v12029_v7, %v505_v8  ;;  %v495_v11 = vld [vmem:[%s12023_s26 + $0x28] sm:$0xff]  ;;  %v494_v12 = vld [vmem:[%s12023_s26 + $0x20] sm:$0xff]  ;;  %v12039_v13 = vmul.f32 %v12029_v7, %v504_v10  ;;  %v497_v14 = vld [vmem:[%s12023_s26 + $0x38] sm:$0xff]  ;;  %v2304_v24 = vmul.f32 %v12029_v7, %v491_v6 }
  0x20   : > { %v496_v15 = vld [vmem:[%s12023_s26 + $0x30] sm:$0xff]  ;;  %v499_v16 = vld [vmem:[%s12023_s26 + $0x48] sm:$0xff]  ;;  %v498_v17 = vld [vmem:[%s12023_s26 + $0x40] sm:$0xff]  ;;  %v2326_v26 = vadd.f32 %v9753_v23, %v2303_v22  ;;  %v2328_v29 = vadd.f32 %v9753_v23, %v2305_v25  ;;  %v2307_v30 = vmul.f32 %v12029_v7, %v494_v12  ;;  %v2308_v31 = vmul.f32 %v12029_v7, %v495_v11 }
  0x21   : > { %17504 = vst [vmem:[#allocation8_spill] sm:$0xff] %v12033_v9  ;;  %17505 = vst [vmem:[#allocation9_spill] sm:$0xff] %v12039_v13  ;;  %v501_v18 = vld [vmem:[%s12023_s26 + $0x58] sm:$0xff]  ;;  %v500_v19 = vld [vmem:[%s12023_s26 + $0x50] sm:$0xff]  ;;  %v2327_v28 = vadd.f32 %v9753_v23, %v2304_v24  ;;  %v2329_v32 = vadd.f32 %v9753_v23, %v2306_v27  ;;  %v2309_v33 = vmul.f32 %v12029_v7, %v496_v15 }
  0x22   : > { %524 = vperm.xlu1 %10500, %v493_v5   ;;  %514 = vperm.xlu0 %10499, %v491_v6   ;;  %v503_v20 = vld [vmem:[%s12023_s26 + $0x68] sm:$0xff]  ;;  %v502_v21 = vld [vmem:[%s12023_s26 + $0x60] sm:$0xff]  ;;  %v2330_v34 = vadd.f32 %v9753_v23, %v2307_v30  ;;  %v2310_v35 = vmul.f32 %v12029_v7, %v497_v14  ;;  %v2331_v36 = vadd.f32 %v9753_v23, %v2308_v31  ;;  %s17495_s26 = smov 64  }
  0x23   : > { %v2311_v37 = vmul.f32 %v12029_v7, %v498_v17  ;;  %v2332_v38 = vadd.f32 %v9753_v23, %v2309_v33  ;;  %v2312_v39 = vmul.f32 %v12029_v7, %v499_v16  ;;  %v2313_v41 = vmul.f32 %v12029_v7, %v500_v19 }
  0x24   : > { %v2333_v40 = vadd.f32 %v9753_v23, %v2310_v35  ;;  %v2314_v43 = vmul.f32 %v12029_v7, %v501_v18  ;;  %v2315_v45 = vmul.f32 %v12029_v7, %v502_v21  ;;  %v2316_v47 = vmul.f32 %v12029_v7, %v503_v20 }
  0x25   : > { %v2334_v42 = vadd.f32 %v9753_v23, %v2311_v37  ;;  %v2335_v44 = vadd.f32 %v9753_v23, %v2312_v39  ;;  %v2336_v46 = vadd.f32 %v9753_v23, %v2313_v41 }
  0x26   : > { %534 = vperm.xlu1 %10500, %v495_v11   ;;  %529 = vperm.xlu0 %10499, %v494_v12   ;;  %v2337_v48 = vadd.f32 %v9753_v23, %v2314_v43  ;;  %v2338_v49 = vadd.f32 %v9753_v23, %v2315_v45  ;;  %v2339_v50 = vadd.f32 %v9753_v23, %v2316_v47 }
  0x2a   : > { %544 = vperm.xlu1 %10500, %v497_v14   ;;  %539 = vperm.xlu0 %10499, %v496_v15  }
  0x2e   : > { %554 = vperm.xlu1 %10500, %v499_v16   ;;  %549 = vperm.xlu0 %10499, %v498_v17  }
  0x32   : > { %564 = vperm.xlu1 %10500, %v501_v18   ;;  %559 = vperm.xlu0 %10499, %v500_v19  }
  0x36   : > { %574 = vperm.xlu1 %10500, %v503_v20   ;;  %569 = vperm.xlu0 %10499, %v502_v21  }
  0x3a   : > { %584 = vperm.xlu1 %10500, %v505_v8   ;;  %579 = vperm.xlu0 %10499, %v504_v10  }
  0x3e   : > { %2438 = vrot.lane.b32.xlu0 %v2326_v26, %s11872_s27  ;;  %2440 = vrot.lane.b32.xlu1 %v2327_v28, %s11872_s27 }
  0x42   : > { %2442 = vrot.lane.b32.xlu0 %v2328_v29, %s11872_s27  ;;  %2444 = vrot.lane.b32.xlu1 %v2329_v32, %s11872_s27 }
  0x46   : > { %2446 = vrot.lane.b32.xlu0 %v2330_v34, %s11872_s27  ;;  %2448 = vrot.lane.b32.xlu1 %v2331_v36, %s11872_s27 }
  0x4a   : > { %2450 = vrot.lane.b32.xlu0 %v2332_v38, %s11872_s27  ;;  %2452 = vrot.lane.b32.xlu1 %v2333_v40, %s11872_s27 }
  0x4e   : > { %2454 = vrot.lane.b32.xlu0 %v2334_v42, %s11872_s27  ;;  %2456 = vrot.lane.b32.xlu1 %v2335_v44, %s11872_s27 }
  0x52   : > { %2458 = vrot.lane.b32.xlu0 %v2336_v46, %s11872_s27  ;;  %2460 = vrot.lane.b32.xlu1 %v2337_v48, %s11872_s27 }
  0x56   : > { %2462 = vrot.lane.b32.xlu0 %v2338_v49, %s11872_s27  ;;  %2464 = vrot.lane.b32.xlu1 %v2339_v50, %s11872_s27 }
  0x99   : > { %v520_v51 = vpop.permute.xlu1 %519  ;;  %v510_v52 = vpop.permute.xlu0 %509 }
  0x9a   : > { %v593_v56 = vmul.f32 %v12080_v55, %v510_v52  ;;  %v595_v62 = vmul.f32 %v12080_v55, %v520_v51 }
  0x9c   : > { %v12092_v63 = vadd.f32 %v12086_v59, %v593_v56  ;;  %v12103_v7 = vadd.f32 %v12086_v59, %v595_v62 }
  0x9d   : > { %v525_v53 = vpop.permute.xlu1 %524  ;;  %v515_v54 = vpop.permute.xlu0 %514 }
  0x9e   : > { %v596_v5 = vmul.f32 %v12080_v55, %v525_v53  ;;  %v594_v6 = vmul.f32 %v12080_v55, %v515_v54  ;;  %v635_v8 = vand.u32 2139095040, %v12092_v63  ;;  %v843_v19 = vand.u32 2139095040, %v12103_v7 }
  0x9f   : > { %v17462_v49 = vand.u32 2147483647, %v12092_v63 }
  0xa0   : > { %v12107_v12 = vadd.f32 %v12086_v59, %v596_v5  ;;  %v12110_v14 = vadd.f32 %v12086_v59, %v594_v6  ;;  %v636_v20 = vshrl.u32 %v635_v8, 23  ;;  %v844_v27 = vshrl.u32 %v843_v19, 23 }
  0xa1   : > { %v535_v57 = vpop.permute.xlu1 %534  ;;  %v530_v58 = vpop.permute.xlu0 %529 }
  0xa2   : > { %v598_v60 = vmul.f32 %v12080_v55, %v535_v57  ;;  %v597_v61 = vmul.f32 %v12080_v55, %v530_v58  ;;  %v947_v21 = vand.u32 2139095040, %v12107_v12  ;;  %v739_v22 = vand.u32 2139095040, %v12110_v14 }
  0xa3   : > { %v9688_v28 = vadd.s32 4294967169, %v636_v20  ;;  %v9696_v37 = vadd.s32 4294967169, %v844_v27  ;;  %v17465_v27 = vand.u32 2147483647, %v12110_v14 }
  0xa4   : > { %v12095_v0 = vadd.f32 %v12086_v59, %v598_v60  ;;  %v12098_v1 = vadd.f32 %v12086_v59, %v597_v61  ;;  %v948_v31 = vshrl.u32 %v947_v21, 23  ;;  %v740_v32 = vshrl.u32 %v739_v22, 23 }
  0xa5   : > { %v545_v3 = vpop.permute.xlu1 %544  ;;  %v540_v4 = vpop.permute.xlu0 %539  ;;  %v642_v38 = vadd.s32 1, %v9688_v28  ;;  %v850_v47 = vadd.s32 1, %v9696_v37  ;;  %v639_v61 = vand.u32 8388607, %v17462_v49 }
  0xa6   : > { %v600_v15 = vmul.f32 %v12080_v55, %v545_v3  ;;  %v599_v16 = vmul.f32 %v12080_v55, %v540_v4  ;;  %v1155_v39 = vand.u32 2139095040, %v12095_v0  ;;  %v9700_v40 = vadd.s32 4294967169, %v948_v31 }
  0xa7   : > { %v9692_v41 = vadd.s32 4294967169, %v740_v32  ;;  %v1051_v44 = vand.u32 2139095040, %v12098_v1  ;;  %vm643_vm0 = vcmp.gt.s32.totalorder %v642_v38, 0  ;;  %vm851_vm1 = vcmp.gt.s32.totalorder %v850_v47, 0 }
  0xa8   : > { %v12115_v17 = vadd.f32 %v12086_v59, %v600_v15  ;;  %v12118_v18 = vadd.f32 %v12086_v59, %v599_v16  ;;  %v1156_v48 = vshrl.u32 %v1155_v39, 23  ;;  %v954_v50 = vadd.s32 1, %v9700_v40 }
  0xa9   : > { %v555_v10 = vpop.permute.xlu1 %554  ;;  %v550_v11 = vpop.permute.xlu0 %549  ;;  %v746_v51 = vadd.s32 1, %v9692_v41  ;;  %v1052_v52 = vshrl.u32 %v1051_v44, 23  ;;  %v644_v56 = vsel %vm643_vm0, %v642_v38, 0  ;;  %v852_v4 = vsel %vm851_vm1, %v850_v47, 0 }
  0xaa   : > { %17506 = vst [vmem:[#allocation10_spill] sm:$0xff] %v12115_v17  ;;  %v602_v25 = vmul.f32 %v12080_v55, %v555_v10  ;;  %v601_v26 = vmul.f32 %v12080_v55, %v550_v11  ;;  %v9708_v57 = vadd.s32 4294967169, %v1156_v48  ;;  %vm955_vm2 = vcmp.gt.s32.totalorder %v954_v50, 0 }
  0xab   : > { %vm747_vm3 = vcmp.gt.s32.totalorder %v746_v51, 0  ;;  %v646_v62 = vand.u32 31, %v644_v56  ;;  %v9704_v3 = vadd.s32 4294967169, %v1052_v52  ;;  %v956_v8 = vsel %vm955_vm2, %v954_v50, 0 }
  0xac   : > { %v12126_v29 = vadd.f32 %v12086_v59, %v602_v25  ;;  %v12129_v30 = vadd.f32 %v12086_v59, %v601_v26  ;;  %v748_v10 = vsel %vm747_vm3, %v746_v51, 0  ;;  %v1162_v11 = vadd.s32 1, %v9708_v57 }
  0xad   : > { %v565_v23 = vpop.permute.xlu1 %564  ;;  %v560_v24 = vpop.permute.xlu0 %559  ;;  %v640_v15 = vor.u32 8388608, %v639_v61  ;;  %v1363_v16 = vand.u32 2139095040, %v12115_v17  ;;  %v1259_v19 = vand.u32 2139095040, %v12118_v18  ;;  %v12162_v22 = vand.u32 31, %v852_v4 }
  0xae   : > { %17507 = vst [vmem:[#allocation11_spill] sm:$0xff] %v12126_v29  ;;  %17508 = vst [vmem:[#allocation12_spill] sm:$0xff] %v12129_v30  ;;  %v604_v33 = vmul.f32 %v12080_v55, %v565_v23  ;;  %v603_v34 = vmul.f32 %v12080_v55, %v560_v24  ;;  %v647_v23 = vsub.s32 32, %v646_v62  ;;  %v1058_v24 = vadd.s32 1, %v9704_v3 }
  0xaf   : > { %v12164_v25 = vand.u32 31, %v956_v8  ;;  %v12168_v26 = vshll.u32 %v640_v15, 8  ;;  %v12172_v31 = vshrl.u32 %v852_v4, 5  ;;  %vm1163_vm4 = vcmp.gt.s32.totalorder %v1162_v11, 0 }
  0xb0   : > { %v12135_v42 = vadd.f32 %v12086_v59, %v604_v33  ;;  %v12138_v43 = vadd.f32 %v12086_v59, %v603_v34  ;;  %v1364_v32 = vshrl.u32 %v1363_v16, 23  ;;  %v12175_v33 = vsub.s32 32, %v12162_v22 }
  0xb1   : > { %v575_v35 = vpop.permute.xlu1 %574  ;;  %v570_v36 = vpop.permute.xlu0 %569  ;;  %v645_v34 = vshrl.u32 %v644_v56, 5  ;;  %vm1059_vm5 = vcmp.gt.s32.totalorder %v1058_v24, 0  ;;  %v12178_v37 = vshrl.u32 %v956_v8, 5  ;;  %v12181_v38 = vsub.s32 32, %v12164_v25 }
  0xb2   : > { %17509 = vst [vmem:[#allocation13_spill] sm:$0xff] %v12135_v42  ;;  %17510 = vst [vmem:[#allocation14_spill] sm:$0xff] %v12138_v43  ;;  %v606_v45 = vmul.f32 %v12080_v55, %v575_v35  ;;  %v605_v46 = vmul.f32 %v12080_v55, %v570_v36  ;;  %v17468_v35 = vmov 2475754826   ;;  %v12183_v39 = vshrl.u32 %v748_v10, 5 }
  0xb3   : > { %v650_v36 = vshrl.u32 %v17468_v35, %v647_v23  ;;  %v1164_v41 = vsel %vm1163_vm4, %v1162_v11, 0  ;;  %v17470_v44 = vmov 683565275   ;;  %v17472_v47 = vmov 2131351028  }
  0xb4   : > { %v12145_v53 = vadd.f32 %v12086_v59, %v606_v45  ;;  %v12148_v54 = vadd.f32 %v12086_v59, %v605_v46  ;;  %v649_v45 = vshll.u32 %v17470_v44, %v646_v62  ;;  %v652_v46 = vshll.u32 %v17468_v35, %v646_v62 }
  0xb5   : > { %v585_v58 = vpop.permute.xlu1 %584  ;;  %v580_v60 = vpop.permute.xlu0 %579  ;;  %v653_v48 = vshrl.u32 %v17472_v47, %v647_v23  ;;  %v1060_v50 = vsel %vm1059_vm5, %v1058_v24, 0  ;;  %v9716_v51 = vadd.s32 4294967169, %v1364_v32  ;;  %v17474_v56 = vmov 2102212464  }
  0xb6   : > { %v608_v5 = vmul.f32 %v12080_v55, %v585_v58  ;;  %v607_v6 = vmul.f32 %v12080_v55, %v580_v60  ;;  %v12166_v55 = vand.u32 31, %v748_v10  ;;  %v656_v57 = vshrl.u32 %v17474_v56, %v647_v23 }
  0xb7   : > { %v1571_v58 = vand.u32 2139095040, %v12126_v29  ;;  %v651_v60 = vor.u32 %v650_v36, %v649_v45  ;;  %v654_v61 = vor.u32 %v653_v48, %v652_v46  ;;  %v655_v3 = vshll.u32 %v17472_v47, %v646_v62 }
  0xb8   : > { %v12157_v20 = vadd.f32 %v12086_v59, %v608_v5  ;;  %v12160_v21 = vadd.f32 %v12086_v59, %v607_v6  ;;  %v1260_v59 = vshrl.u32 %v1259_v19, 23  ;;  %v12186_v40 = vsub.s32 32, %v12166_v55 }
  0xb9   : > { %v658_v4 = vshll.u32 %v17474_v56, %v646_v62  ;;  %v17466_v5 = vmov 920167782   ;;  %v17463_v10 = vmov 1326507024   ;;  %v12198_v15 = vshrl.u32 %v1164_v41, 5 }
  0xba   : > { %17511 = vst [vmem:[#allocation15_spill] sm:$0xff] %v12157_v20  ;;  %17512 = vst [vmem:[#allocation16_spill] sm:$0xff] %v12160_v21  ;;  %v9712_v52 = vadd.s32 4294967169, %v1260_v59  ;;  %v659_v6 = vshrl.u32 %v17466_v5, %v647_v23  ;;  %v661_v8 = vshll.u32 %v17466_v5, %v646_v62  ;;  %v662_v11 = vshrl.u32 %v17463_v10, %v647_v23 }
  0xbb   : > { %v12200_v16 = vand.u32 31, %v1164_v41  ;;  %v12202_v19 = vshrl.u32 %v1060_v50, 5  ;;  %v657_v24 = vor.u32 %v656_v57, %v655_v3  ;;  %v12204_v32 = vand.u32 31, %v1060_v50 }
  0xbc   : > { %v1467_v59 = vand.u32 2139095040, %v12129_v30  ;;  %v660_v36 = vor.u32 %v659_v6, %v658_v4  ;;  %v663_v45 = vor.u32 %v662_v11, %v661_v8  ;;  %v12207_v46 = vadd.s32 1, %v9716_v51 }
  0xbd   : > { %v12209_v48 = vadd.s32 1, %v9712_v52  ;;  %v648_v62 = vshrl.u32 %v17470_v44, %v647_v23  ;;  %vm664_vm6 = vcmp.lt.s32.totalorder %v645_v34, 1  ;;  %v1572_v2 = vshrl.u32 %v1571_v58, 23 }
  0xbe   : > { %vm665_vm7 = vcmp.lt.s32.totalorder %v645_v34, 2  ;;  %vm667_vm8 = vcmp.lt.s32.totalorder %v645_v34, 4  ;;  %v672_v41 = vsel %vm664_vm6, %v651_v60, %v654_v61  ;;  %vm666_vm9 = vcmp.lt.s32.totalorder %v645_v34, 3 }
  0xbf   : > { %v668_v28 = vsel %vm664_vm6, %v648_v62, %v651_v60  ;;  %v669_v57 = vsel %vm667_vm8, %v657_v24, 2102212464  ;;  %v673_v50 = vsel %vm667_vm8, %v660_v36, 920167782  ;;  %v676_v10 = vsel %vm664_vm6, %v654_v61, %v657_v24 }
  0xc0   : > { %v670_v3 = vsel %vm666_vm9, %v654_v61, %v669_v57  ;;  %v674_v49 = vsel %vm666_vm9, %v657_v24, %v673_v50  ;;  %v677_v4 = vsel %vm667_vm8, %v663_v45, 1326507024  ;;  %v12213_v51 = vsub.s32 32, %v12200_v16 }
  0xc1   : > { %v1468_v52 = vshrl.u32 %v1467_v59, 23  ;;  %v675_v6 = vsel %vm665_vm7, %v672_v41, %v674_v49  ;;  %v678_v23 = vsel %vm666_vm9, %v660_v36, %v677_v4  ;;  %vm1371_vm10 = vcmp.gt.s32.totalorder %v12207_v46, 0 }
  0xc2   : > { %v671_v58 = vsel %vm665_vm7, %v668_v28, %v670_v3  ;;  %v679_v8 = vsel %vm665_vm7, %v676_v10, %v678_v23  ;;  %v12220_v60 = vmul.u32.u64.low %v12168_v26, %v675_v6  ;;  %v12221_v11 = vmul.u32.u64.high %v12168_v26, %v675_v6, %v12220_v60 }
  0xc3   : > { %vm1267_vm11 = vcmp.gt.s32.totalorder %v12209_v48, 0  ;;  %v12225_v61 = vadd.s32 4294967169, %v1572_v2  ;;  %v12228_v24 = vmul.u32.u64.low %v12168_v26, %v679_v8  ;;  %v12229_v59 = vmul.u32.u64.high %v12168_v26, %v679_v8, %v12228_v24 }
  0xc4   : > { %v743_v49 = vand.u32 8388607, %v17465_v27  ;;  %v753_v28 = vshll.u32 %v17470_v44, %v12166_v55  ;;  %v754_v34 = vshrl.u32 %v17468_v35, %v12186_v40  ;;  %v756_v10 = vshll.u32 %v17468_v35, %v12166_v55 }
  0xc5   : > { %v757_v2 = vshrl.u32 %v17472_v47, %v12186_v40  ;;  %v687_v36 = vmul.u32 %v12168_v26, %v671_v58  ;;  %v759_v45 = vshll.u32 %v17472_v47, %v12166_v55  ;;  %v760_v62 = vshrl.u32 %v17474_v56, %v12186_v40 }
  0xc6   : > { %v762_v41 = vshll.u32 %v17474_v56, %v12166_v55  ;;  %v690_v57 = vadd.s32 1, %v12221_v11  ;;  %v755_v50 = vor.u32 %v754_v34, %v753_v28  ;;  %v763_v4 = vshrl.u32 %v17466_v5, %v12186_v40 }
  0xc7   : > { %v758_v3 = vor.u32 %v757_v2, %v756_v10  ;;  %vm689_vm12 = vc.u32 %v12229_v59, %v12220_v60  ;;  %v744_v26 = vor.u32 8388608, %v743_v49  ;;  %v752_v6 = vshrl.u32 %v17470_v44, %v12186_v40 }
  0xc8   : > { %v761_v23 = vor.u32 %v760_v62, %v759_v45  ;;  %v691_v58 = vsel %vm689_vm12, %v690_v57, %v12221_v11  ;;  %v764_v8 = vor.u32 %v763_v4, %v762_v41  ;;  %v765_v24 = vshll.u32 %v17466_v5, %v12166_v55 }
  0xc9   : > { %v17513_v28 = vmov 1326507024   ;;  %v692_v10 = vadd.s32 %v691_v58, %v687_v36  ;;  %vm768_vm13 = vcmp.lt.s32.totalorder %v12183_v39, 1  ;;  %vm769_vm14 = vcmp.lt.s32.totalorder %v12183_v39, 2 }
  0xca   : > { %v766_v34 = vshrl.u32 %v17513_v28, %v12186_v40  ;;  %vm771_vm15 = vcmp.lt.s32.totalorder %v12183_v39, 4  ;;  %vm770_vm0 = vcmp.lt.s32.totalorder %v12183_v39, 3  ;;  %v776_v45 = vsel %vm768_vm13, %v755_v50, %v758_v3 }
  0xcb   : > { %v773_v2 = vsel %vm771_vm15, %v761_v23, 2102212464  ;;  %v693_v11 = vadd.s32 536870912, %v692_v10  ;;  %v772_v62 = vsel %vm768_vm13, %v752_v6, %v755_v50  ;;  %v777_v41 = vsel %vm771_vm15, %v764_v8, 920167782 }
  0xcc   : > { %v767_v49 = vor.u32 %v766_v34, %v765_v24  ;;  %v780_v57 = vsel %vm768_vm13, %v758_v3, %v761_v23  ;;  %v774_v55 = vsel %vm770_vm0, %v758_v3, %v773_v2  ;;  %v778_v4 = vsel %vm770_vm0, %v761_v23, %v777_v41 }
  0xcd   : > { %v784_v40 = vshll.u32 %v744_v26, 8  ;;  %v1372_v36 = vsel %vm1371_vm10, %v12207_v46, 0  ;;  %v694_v58 = vshrl.u32 %v693_v11, 30  ;;  %v779_v24 = vsel %vm769_vm14, %v776_v45, %v778_v4 }
  0xce   : > { %v781_v27 = vsel %vm771_vm15, %v767_v49, 1326507024  ;;  %v1268_v5 = vsel %vm1267_vm11, %v12209_v48, 0  ;;  %vm634_vm1 = vcmp.lt.s32.totalorder %v12092_v63, 0  ;;  %v775_v46 = vsel %vm769_vm14, %v772_v62, %v774_v55 }
  0xcf   : > { %v782_v34 = vsel %vm770_vm0, %v764_v8, %v781_v27  ;;  %v12274_v3 = vmul.u32.u64.low %v784_v40, %v779_v24  ;;  %v12275_v6 = vmul.u32.u64.high %v784_v40, %v779_v24, %v12274_v3  ;;  %v695_v26 = vshll.u32 %v694_v58, 30 }
  0xd0   : > { %v783_v50 = vsel %vm769_vm14, %v780_v57, %v782_v34  ;;  %v12285_v27 = vsub.s32 32, %v12204_v32  ;;  %v9720_v48 = vadd.s32 4294967169, %v1468_v52  ;;  %v1779_v8 = vand.u32 2139095040, %v12135_v42 }
  0xd1   : > { %v12281_v23 = vmul.u32.u64.low %v784_v40, %v783_v50  ;;  %v12282_v49 = vmul.u32.u64.high %v784_v40, %v783_v50, %v12281_v23  ;;  %v12289_v45 = vshrl.u32 %v1372_v36, 5  ;;  %v12291_v11 = vand.u32 31, %v1372_v36 }
  0xd2   : > { %v12293_v41 = vshrl.u32 %v1268_v5, 5  ;;  %v12295_v57 = vsub.s32 %v692_v10, %v695_v26  ;;  %v12297_v39 = vand.u32 31, %v1268_v5  ;;  %v12300_v62 = vadd.s32 1, %v12225_v61 }
  0xd3   : > { %17514 = vst [vmem:[#allocation17_spill] sm:$0xff] %v12289_v45  ;;  %17515 = vst [vmem:[#allocation18_spill] sm:$0xff] %v12291_v11  ;;  %v17516_v55 = vand.u32 2147483647, %v12092_v63  ;;  %v791_v4 = vmul.u32 %v784_v40, %v775_v46  ;;  %v794_v24 = vadd.s32 1, %v12275_v6  ;;  %v718_v34 = vsub.s32 4, %v694_v58 }
  0xd4   : > { %v698_v36 = vsub.s32 0, %v12295_v57  ;;  %vm793_vm3 = vc.u32 %v12282_v49, %v12274_v3  ;;  %v857_v5 = vshll.u32 %v17470_v44, %v12162_v22  ;;  %v858_v10 = vshrl.u32 %v17468_v35, %v12175_v33 }
  0xd5   : > { %vm12304_vm2 = vcmp.le.f32.partialorder %v17516_v55, 0.7853982  ;;  %v795_v61 = vsel %vm793_vm3, %v794_v24, %v12275_v6  ;;  %v860_v50 = vshll.u32 %v17468_v35, %v12162_v22  ;;  %v861_v40 = vshrl.u32 %v17472_v47, %v12175_v33 }
  0xd6   : > { %v9689_v26 = vmin.u32 %v698_v36, %v12295_v57  ;;  %v796_v46 = vadd.s32 %v795_v61, %v791_v4  ;;  %v863_v23 = vshll.u32 %v17472_v47, %v12162_v22  ;;  %v864_v55 = vshrl.u32 %v17474_v56, %v12175_v33 }
  0xd7   : > { %v866_v6 = vshll.u32 %v17474_v56, %v12162_v22  ;;  %v17519_v24 = vmov 920167782   ;;  %v870_v44 = vshrl.u32 %v17513_v28, %v12175_v33  ;;  %v12334_v36 = vadd.s32 1, %v9720_v48 }
  0xd8   : > { %v867_v2 = vshrl.u32 %v17519_v24, %v12175_v33  ;;  %v869_v35 = vshll.u32 %v17519_v24, %v12162_v22  ;;  %v1780_v4 = vshrl.u32 %v1779_v8, 23  ;;  %v700_v61 = vclz %v9689_v26 }
  0xd9   : > { %v17520_v47 = vand.u32 2147483647, %v12103_v7  ;;  %v688_v13 = vadd.s32 %v12220_v60, %v12229_v59  ;;  %v719_v56 = vsel %vm634_vm1, %v718_v34, %v694_v58  ;;  %v797_v42 = vadd.s32 536870912, %v796_v46 }
  0xda   : > { %v868_v21 = vor.u32 %v867_v2, %v866_v6  ;;  %v9690_v20 = vadd.s32 4294967294, %v700_v61  ;;  %v17521_v22 = vmov 683565275   ;;  %v859_v30 = vor.u32 %v858_v10, %v857_v5 }
  0xdb   : > { %v847_v9 = vand.u32 8388607, %v17520_v47  ;;  %v856_v29 = vshrl.u32 %v17521_v22, %v12175_v33  ;;  %v862_v48 = vor.u32 %v861_v40, %v860_v50  ;;  %v798_v45 = vshrl.u32 %v797_v42, 30 }
  0xdc   : > { %v865_v8 = vor.u32 %v864_v55, %v863_v23  ;;  %v871_v26 = vor.u32 %v870_v44, %v869_v35  ;;  %vm875_vm4 = vcmp.lt.s32.totalorder %v12172_v31, 4  ;;  %vm9691_vm5 = vcmp.lt.s32.totalorder %v9690_v20, 0 }
  0xdd   : > { %v721_v47 = vsel %vm12304_vm2, 0, %v719_v56  ;;  %v848_v60 = vor.u32 8388608, %v847_v9  ;;  %v881_v59 = vsel %vm875_vm4, %v868_v21, 920167782  ;;  %v703_v58 = vsel %vm9691_vm5, 0, %v9690_v20 }
  0xde   : > { %v799_v2 = vshll.u32 %v798_v45, 30  ;;  %vm872_vm6 = vcmp.lt.s32.totalorder %v12172_v31, 1  ;;  %vm873_vm7 = vcmp.lt.s32.totalorder %v12172_v31, 2  ;;  %v704_v33 = vsub.s32 32, %v703_v58 }
  0xdf   : > { %v708_v42 = vsub.s32 4294967266, %v703_v58  ;;  %vm874_vm8 = vcmp.lt.s32.totalorder %v12172_v31, 3  ;;  %v880_v35 = vsel %vm872_vm6, %v859_v30, %v862_v48  ;;  %v884_v20 = vsel %vm872_vm6, %v862_v48, %v865_v8 }
  0xe0   : > { %v12354_v44 = vsub.s32 %v796_v46, %v799_v2  ;;  %v882_v9 = vsel %vm874_vm8, %v865_v8, %v881_v59  ;;  %v885_v56 = vsel %vm875_vm4, %v871_v26, 1326507024  ;;  %v705_v34 = vshll.u32 %v12295_v57, %v703_v58 }
  0xe1   : > { %v706_v5 = vshrl.u32 %v688_v13, %v704_v33  ;;  %v709_v10 = vadd.s32 127, %v708_v42  ;;  %v877_v50 = vsel %vm875_vm4, %v865_v8, 2102212464  ;;  %v883_v46 = vsel %vm873_vm7, %v880_v35, %v882_v9 }
  0xe2   : > { %v802_v40 = vsub.s32 0, %v12354_v44  ;;  %v886_v23 = vsel %vm874_vm8, %v868_v21, %v885_v56  ;;  %v888_v55 = vshll.u32 %v848_v60, 8  ;;  %v876_v26 = vsel %vm872_vm6, %v856_v29, %v859_v30 }
  0xe3   : > { %v707_v6 = vor.u32 %v706_v5, %v705_v34  ;;  %v710_v61 = vshll.u32 %v709_v10, 23  ;;  %v887_v13 = vsel %vm873_vm7, %v884_v20, %v886_v23  ;;  %v878_v8 = vsel %vm874_vm8, %v862_v48, %v877_v50 }
  0xe4   : > { %v9693_v57 = vmin.u32 %v802_v40, %v12354_v44  ;;  %v12377_v59 = vmul.u32.u64.low %v888_v55, %v887_v13  ;;  %v12378_v58 = vmul.u32.u64.high %v888_v55, %v887_v13, %v12377_v59  ;;  %v17522_v2 = vand.u32 2139095040, %v12138_v43 }
  0xe5   : > { %v711_v60 = vor.u32 4788187, %v710_v61  ;;  %v12384_v33 = vmul.u32.u64.low %v888_v55, %v883_v46  ;;  %v12385_v42 = vmul.u32.u64.high %v888_v55, %v883_v46, %v12384_v33  ;;  %v12389_v29 = vsub.s32 32, %v12291_v11 }
  0xe6   : > { %v12382_v21 = vshrl.u32 %v17522_v2, 23  ;;  %v725_v30 = vadd.s32 3, %v721_v47  ;;  %v804_v35 = vclz %v9693_v57  ;;  %v822_v9 = vsub.s32 4, %v798_v45 }
  0xe7   : > { %17523 = vst [vmem:[#allocation19_spill] sm:$0xff] %v12389_v29  ;;  %v712_v20 = vand.u32 2147483647, %v711_v60  ;;  %v714_v48 = vcvt.s32.f32 %v707_v6  ;;  %v879_v56 = vsel %vm873_vm7, %v876_v26, %v878_v8  ;;  %v17485_v34 = vand.u32 2147483647, %v12107_v12 }
  0xe8   : > { %v12395_v5 = vsub.s32 32, %v12297_v39  ;;  %v12397_v10 = vadd.s32 4294967169, %v1780_v4  ;;  %v9694_v50 = vadd.s32 4294967294, %v804_v35  ;;  %vm897_vm9 = vc.u32 %v12378_v58, %v12384_v33 }
  0xe9   : > { %v715_v40 = vmul.f32 %v714_v48, %v712_v20  ;;  %v17524_v47 = vand.u32 2147483647, %v12110_v14  ;;  %vm738_vm11 = vcmp.lt.s32.totalorder %v12110_v14, 0  ;;  %v792_v31 = vadd.s32 %v12274_v3, %v12282_v49 }
  0xea   : > { %v898_v23 = vadd.s32 1, %v12385_v42  ;;  %v12411_v4 = vand.u32 3, %v725_v30  ;;  %vm9695_vm12 = vcmp.lt.s32.totalorder %v9694_v50, 0  ;;  %v823_v6 = vsel %vm738_vm11, %v822_v9, %v798_v45 }
  0xeb   : > { %vm12403_vm10 = vcmp.le.f32.partialorder %v17524_v47, 0.7853982  ;;  %v895_v61 = vmul.u32 %v888_v55, %v879_v56  ;;  %v716_v26 = vxor.u32 2147483648, %v715_v40  ;;  %v807_v13 = vsel %vm9695_vm12, 0, %v9694_v50 }
  0xec   : > { %v899_v57 = vsel %vm897_vm9, %v898_v23, %v12385_v42  ;;  %v12418_v8 = vand.u32 8388607, %v17485_v34  ;;  %v808_v59 = vsub.s32 32, %v807_v13  ;;  %v812_v2 = vsub.s32 4294967266, %v807_v13 }
  0xed   : > { %v900_v3 = vadd.s32 %v899_v57, %v895_v61  ;;  %v961_v49 = vshll.u32 %v17521_v22, %v12164_v25  ;;  %v717_v60 = vsel %vm634_vm1, %v716_v26, %v715_v40  ;;  %v809_v45 = vshll.u32 %v12354_v44, %v807_v13 }
  0xee   : > { %v17527_v55 = vmov 2475754826   ;;  %v720_v35 = vsel %vm12304_vm2, %v12092_v63, %v717_v60  ;;  %v810_v9 = vshrl.u32 %v792_v31, %v808_v59  ;;  %v813_v20 = vadd.s32 127, %v812_v2 }
  0xef   : > { %v962_v30 = vshrl.u32 %v17527_v55, %v12181_v38  ;;  %v964_v42 = vshll.u32 %v17527_v55, %v12164_v25  ;;  %v901_v48 = vadd.s32 536870912, %v900_v3  ;;  %10501 = vcosq.f32 %v720_v35 }
  0xf0   : > { %v17528_v56 = vmov 2131351028   ;;  %v17529_v40 = vmov 2102212464   ;;  %v971_v47 = vshrl.u32 %v17519_v24, %v12181_v38  ;;  %10503 = vsinq.f32 %v720_v35 }
  0xf1   : > { %v965_v50 = vshrl.u32 %v17528_v56, %v12181_v38  ;;  %v968_v44 = vshrl.u32 %v17529_v40, %v12181_v38  ;;  %v811_v23 = vor.u32 %v810_v9, %v809_v45  ;;  %v814_v61 = vshll.u32 %v813_v20, 23 }
  0xf2   : > { %v902_v26 = vshrl.u32 %v901_v48, 30  ;;  %v967_v52 = vshll.u32 %v17528_v56, %v12164_v25  ;;  %v970_v31 = vshll.u32 %v17529_v40, %v12164_v25  ;;  %v973_v13 = vshll.u32 %v17519_v24, %v12164_v25 }
  0xf3   : > { %v974_v57 = vshrl.u32 %v17513_v28, %v12181_v38  ;;  %v815_v59 = vor.u32 4788187, %v814_v61  ;;  %v825_v2 = vsel %vm12403_vm10, 0, %v823_v6  ;;  %v963_v45 = vor.u32 %v962_v30, %v961_v49 }
  0xf4   : > { %v903_v60 = vshll.u32 %v902_v26, 30  ;;  %v966_v35 = vor.u32 %v965_v50, %v964_v42  ;;  %v969_v9 = vor.u32 %v968_v44, %v967_v52  ;;  %v972_v20 = vor.u32 %v971_v47, %v970_v31 }
  0xf5   : > { %v975_v48 = vor.u32 %v974_v57, %v973_v13  ;;  %v816_v34 = vand.u32 2147483647, %v815_v59  ;;  %v818_v43 = vcvt.s32.f32 %v811_v23  ;;  %vm842_vm13 = vcmp.lt.s32.totalorder %v12103_v7, 0 }
  0xf6   : > { %v12449_v29 = vsub.s32 %v900_v3, %v903_v60  ;;  %v829_v25 = vadd.s32 3, %v825_v2  ;;  %v926_v11 = vsub.s32 4, %v902_v26  ;;  %v952_v17 = vor.u32 8388608, %v12418_v8 }
  0xf7   : > { %vm976_vm14 = vcmp.lt.s32.totalorder %v12178_v37, 1  ;;  %vm731_vm15 = vcmp.eq.s32.totalorder %v12411_v4, 2  ;;  %v819_v6 = vmul.f32 %v818_v43, %v816_v34  ;;  %vm978_vm0 = vcmp.lt.s32.totalorder %v12178_v37, 3 }
  0xf8   : > { %v906_v49 = vsub.s32 0, %v12449_v29  ;;  %vm979_vm1 = vcmp.lt.s32.totalorder %v12178_v37, 4  ;;  %vm728_vm2 = vcmp.eq.s32.totalorder %v12411_v4, 0  ;;  %v17530_v3 = vand.u32 2147483647, %v12103_v7 }
  0xf9   : > { %v981_v8 = vsel %vm979_vm1, %v969_v9, 2102212464  ;;  %v984_v42 = vsel %vm976_vm14, %v963_v45, %v966_v35  ;;  %v985_v50 = vsel %vm979_vm1, %v972_v20, 920167782  ;;  %v989_v43 = vsel %vm979_vm1, %v975_v48, 1326507024 }
  0xfa   : > { %vm12460_vm3 = vcmp.le.f32.partialorder %v17530_v3, 0.7853982  ;;  %vm1579_vm4 = vcmp.gt.s32.totalorder %v12300_v62, 0  ;;  %vm727_vm5 = vcmp.lt.s32.totalorder %v12411_v4, 2  ;;  %v820_v34 = vxor.u32 2147483648, %v819_v6 }
  0xfb   : > { %v9697_v44 = vmin.u32 %v906_v49, %v12449_v29  ;;  %v986_v47 = vsel %vm978_vm0, %v969_v9, %v985_v50  ;;  %v988_v23 = vsel %vm976_vm14, %v966_v35, %v969_v9  ;;  %vm724_vm6 = vweird.f32 %v12092_v63 }
  0xfc   : > { %v927_v61 = vsel %vm842_vm13, %v926_v11, %v902_v26  ;;  %v960_v52 = vshrl.u32 %v17521_v22, %v12181_v38  ;;  %vm977_vm7 = vcmp.lt.s32.totalorder %v12178_v37, 2  ;;  %v990_v31 = vsel %vm978_vm0, %v972_v20, %v989_v43  ;;  %v10502_v9 = vpop.eup %10501 }
  0xfd   : > { %v821_v13 = vsel %vm738_vm11, %v820_v34, %v819_v6  ;;  %v908_v57 = vclz %v9697_v44  ;;  %v987_v59 = vsel %vm977_vm7, %v984_v42, %v986_v47  ;;  %v992_v2 = vshll.u32 %v952_v17, 8  ;;  %v10504_v17 = vpop.eup %10503 }
  0xfe   : > { %v824_v11 = vsel %vm12403_vm10, %v12110_v14, %v821_v13  ;;  %v980_v38 = vsel %vm976_vm14, %v960_v52, %v963_v45  ;;  %v982_v26 = vsel %vm978_vm0, %v966_v35, %v981_v8  ;;  %v991_v60 = vsel %vm977_vm7, %v988_v23, %v990_v31 }
  0xff   : > { %10505 = vcosq.f32 %v824_v11  ;;  %v9698_v20 = vadd.s32 4294967294, %v908_v57  ;;  %v12494_v48 = vmul.u32.u64.low %v992_v2, %v991_v60  ;;  %v12495_v6 = vmul.u32.u64.high %v992_v2, %v991_v60, %v12494_v48 }
 0x100   : > { %v732_v49 = vxor.u32 2147483648, %v10502_v9  ;;  %10507 = vsinq.f32 %v824_v11  ;;  %v12497_v46 = vmul.u32.u64.low %v992_v2, %v987_v59  ;;  %v12498_v3 = vmul.u32.u64.high %v992_v2, %v987_v59, %v12497_v46 }
 0x101   : > { %v729_v45 = vxor.u32 2147483648, %v10504_v17  ;;  %v12501_v42 = vand.u32 3, %v829_v25  ;;  %vm9699_vm8 = vcmp.lt.s32.totalorder %v9698_v20, 0  ;;  %v983_v35 = vsel %vm977_vm7, %v980_v38, %v982_v26 }
 0x102   : > { %v733_v8 = vsel %vm731_vm15, %v732_v49, %v10504_v17  ;;  %v896_v50 = vadd.s32 %v12384_v33, %v12378_v58  ;;  %v911_v43 = vsel %vm9699_vm8, 0, %v9698_v20  ;;  %v1048_v34 = vand.u32 2147483647, %v12098_v1 }
 0x103   : > { %v730_v44 = vsel %vm728_vm2, %v10502_v9, %v729_v45  ;;  %v912_v47 = vsub.s32 32, %v911_v43  ;;  %v916_v23 = vsub.s32 4294967266, %v911_v43  ;;  %v929_v25 = vsel %vm12460_vm3, 0, %v927_v61 }
 0x104   : > { %v734_v37 = vsel %vm727_vm5, %v730_v44, %v733_v8  ;;  %v999_v52 = vmul.u32 %v992_v2, %v983_v35  ;;  %vm1001_vm9 = vc.u32 %v12495_v6, %v12497_v46  ;;  %v1002_v58 = vadd.s32 1, %v12498_v3 }
 0x105   : > { %v735_v33 = vsel %vm724_vm6, nan, %v734_v37  ;;  %v913_v31 = vshll.u32 %v12449_v29, %v911_v43  ;;  %v914_v13 = vshrl.u32 %v896_v50, %v912_v47  ;;  %v917_v57 = vadd.s32 127, %v916_v23 }
 0x106   : > { %v12525_v61 = vsel %vm1579_vm4, %v12300_v62, 0  ;;  %v12528_v4 = vadd.s32 4294967169, %v12382_v21  ;;  %2374 = vrot.lane.b32.xlu0 %v735_v33, %s11879_s24  ;;  %v1003_v59 = vsel %vm1001_vm9, %v1002_v58, %v12498_v3  ;;  %v12534_v63 = vand.u32 8388607, %v1048_v34 }
 0x107   : > { %vm832_vm10 = vcmp.eq.s32.totalorder %v12501_v42, 0  ;;  %v915_v29 = vor.u32 %v914_v13, %v913_v31  ;;  %v918_v2 = vshll.u32 %v917_v57, 23  ;;  %v1004_v11 = vadd.s32 %v1003_v59, %v999_v52 }
 0x108   : > { %vm831_vm11 = vcmp.lt.s32.totalorder %v12501_v42, 2  ;;  %vm835_vm12 = vcmp.eq.s32.totalorder %v12501_v42, 2  ;;  %v933_v62 = vadd.s32 3, %v929_v25  ;;  %v1066_v21 = vshrl.u32 %v17527_v55, %v12285_v27 }
 0x109   : > { %v1069_v38 = vshrl.u32 %v17528_v56, %v12285_v27  ;;  %vm828_vm14 = vweird.f32 %v12110_v14  ;;  %v919_v26 = vor.u32 4788187, %v918_v2  ;;  %v1005_v60 = vadd.s32 536870912, %v1004_v11 }
 0x10a   : > { %v1064_v9 = vshrl.u32 %v17521_v22, %v12285_v27  ;;  %v1072_v20 = vshrl.u32 %v17529_v40, %v12285_v27  ;;  %v1056_v48 = vor.u32 8388608, %v12534_v63  ;;  %v1065_v17 = vshll.u32 %v17521_v22, %v12204_v32 }
 0x10b   : > { %v1068_v49 = vshll.u32 %v17527_v55, %v12204_v32  ;;  %v1075_v3 = vshrl.u32 %v17519_v24, %v12285_v27  ;;  %v920_v45 = vand.u32 2147483647, %v919_v26  ;;  %v922_v35 = vcvt.s32.f32 %v915_v29 }
 0x10c   : > { %vm946_vm15 = vcmp.lt.s32.totalorder %v12107_v12, 0  ;;  %v1006_v8 = vshrl.u32 %v1005_v60, 30  ;;  %v1071_v50 = vshll.u32 %v17528_v56, %v12204_v32  ;;  %v10506_v43 = vpop.eup %10505  ;;  %v1067_v44 = vor.u32 %v1066_v21, %v1065_v17 }
 0x10d   : > { %v1070_v47 = vor.u32 %v1069_v38, %v1068_v49  ;;  %v1074_v23 = vshll.u32 %v17529_v40, %v12204_v32  ;;  %v1078_v25 = vshrl.u32 %v17513_v28, %v12285_v27  ;;  %v10508_v37 = vpop.eup %10507  ;;  %v836_v52 = vxor.u32 2147483648, %v10506_v43 }
 0x10e   : > { %v923_v58 = vmul.f32 %v922_v35, %v920_v45  ;;  %v1007_v33 = vshll.u32 %v1006_v8, 30  ;;  %v1073_v31 = vor.u32 %v1072_v20, %v1071_v50  ;;  %vm1475_vm0 = vcmp.gt.s32.totalorder %v12334_v36, 0 }
 0x10f   : > { %v833_v13 = vxor.u32 2147483648, %v10508_v37  ;;  %v1076_v57 = vor.u32 %v1075_v3, %v1074_v23  ;;  %v1077_v59 = vshll.u32 %v17519_v24, %v12204_v32  ;;  %vm1080_vm1 = vcmp.lt.s32.totalorder %v12202_v19, 1 }
 0x110   : > { %v837_v63 = vsel %vm835_vm12, %v836_v52, %v10508_v37  ;;  %v924_v29 = vxor.u32 2147483648, %v923_v58  ;;  %v12568_v2 = vsub.s32 %v1004_v11, %v1007_v33  ;;  %vm1081_vm2 = vcmp.lt.s32.totalorder %v12202_v19, 2 }
 0x111   : > { %v834_v27 = vsel %vm832_vm10, %v10506_v43, %v833_v13  ;;  %v1030_v21 = vsub.s32 4, %v1006_v8  ;;  %v1079_v38 = vor.u32 %v1078_v25, %v1077_v59  ;;  %vm1082_vm4 = vcmp.lt.s32.totalorder %v12202_v19, 3 }
 0x112   : > { %v838_v32 = vsel %vm831_vm11, %v834_v27, %v837_v63  ;;  %v925_v26 = vsel %vm842_vm13, %v924_v29, %v923_v58  ;;  %v1010_v60 = vsub.s32 0, %v12568_v2  ;;  %vm1083_vm5 = vcmp.lt.s32.totalorder %v12202_v19, 4 }
 0x113   : > { %v839_v11 = vsel %vm828_vm14, nan, %v838_v32  ;;  %v928_v20 = vsel %vm12460_vm3, %v12103_v7, %v925_v26  ;;  %v1088_v17 = vsel %vm1080_vm1, %v1067_v44, %v1070_v47  ;;  %v1089_v49 = vsel %vm1083_vm5, %v1076_v57, 920167782 }
 0x114   : > { %2376 = vrot.lane.b32.xlu1 %v839_v11, %s11879_s24  ;;  %10509 = vcosq.f32 %v928_v20  ;;  %v9701_v42 = vmin.u32 %v1010_v60, %v12568_v2  ;;  %v1085_v3 = vsel %vm1083_vm5, %v1073_v31, 2102212464  ;;  %v1090_v45 = vsel %vm1082_vm4, %v1073_v31, %v1089_v49 }
 0x115   : > { %10511 = vsinq.f32 %v928_v20  ;;  %v1031_v14 = vsel %vm946_vm15, %v1030_v21, %v1006_v8  ;;  %v1092_v30 = vsel %vm1080_vm1, %v1070_v47, %v1073_v31  ;;  %v1093_v35 = vsel %vm1083_vm5, %v1079_v38, 1326507024 }
 0x116   : > { %v12595_v50 = vand.u32 3, %v933_v62  ;;  %v17533_v43 = vand.u32 2147483647, %v12107_v12  ;;  %v1012_v25 = vclz %v9701_v42  ;;  %v1091_v37 = vsel %vm1081_vm2, %v1088_v17, %v1090_v45 }
 0x117   : > { %v1084_v52 = vsel %vm1080_vm1, %v1064_v9, %v1067_v44  ;;  %v1086_v8 = vsel %vm1082_vm4, %v1070_v47, %v1085_v3  ;;  %v1094_v62 = vsel %vm1082_vm4, %v1076_v57, %v1093_v35  ;;  %v1096_v58 = vshll.u32 %v1056_v48, 8 }
 0x118   : > { %vm12599_vm13 = vcmp.le.f32.partialorder %v17533_v43, 0.7853982  ;;  %v9702_v33 = vadd.s32 4294967294, %v1012_v25  ;;  %v1095_v13 = vsel %vm1081_vm2, %v1092_v30, %v1094_v62  ;;  %v1152_v59 = vand.u32 2147483647, %v12095_v0 }
 0x119   : > { %v1033_v31 = vsel %vm12599_vm13, 0, %v1031_v14  ;;  %v12616_v63 = vmul.u32.u64.low %v1096_v58, %v1095_v13  ;;  %v12617_v29 = vmul.u32.u64.high %v1096_v58, %v1095_v13, %v12616_v63  ;;  %v12626_v48 = vsel %vm1475_vm0, %v12334_v36, 0 }
 0x11a   : > { %v12619_v9 = vmul.u32.u64.low %v1096_v58, %v1091_v37  ;;  %v12620_v44 = vmul.u32.u64.high %v1096_v58, %v1091_v37, %v12619_v9  ;;  %v1987_v47 = vand.u32 2139095040, %v12145_v53  ;;  %vm9703_vm3 = vcmp.lt.s32.totalorder %v9702_v33, 0 }
 0x11b   : > { %v1087_v57 = vsel %vm1081_vm2, %v1084_v52, %v1086_v8  ;;  %v1883_v27 = vand.u32 2139095040, %v12148_v54  ;;  %vm939_vm6 = vcmp.eq.s32.totalorder %v12595_v50, 2  ;;  %v1000_v21 = vadd.s32 %v12497_v46, %v12495_v6 }
 0x11c   : > { %v1015_v38 = vsel %vm9703_vm3, 0, %v9702_v33  ;;  %vm936_vm7 = vcmp.eq.s32.totalorder %v12595_v50, 0  ;;  %v12636_v36 = vadd.s32 3, %v1033_v31  ;;  %v1168_v60 = vshrl.u32 %v17521_v22, %v12213_v51 }
 0x11d   : > { %v1016_v32 = vsub.s32 32, %v1015_v38  ;;  %v1020_v26 = vsub.s32 4294967266, %v1015_v38  ;;  %vm935_vm8 = vcmp.lt.s32.totalorder %v12595_v50, 2  ;;  %v1103_v19 = vmul.u32 %v1096_v58, %v1087_v57 }
 0x11e   : > { %vm1105_vm9 = vc.u32 %v12617_v29, %v12619_v9  ;;  %v1106_v11 = vadd.s32 1, %v12620_v44  ;;  %v1159_v6 = vand.u32 8388607, %v1152_v59  ;;  %vm932_vm10 = vweird.f32 %v12103_v7 }
 0x11f   : > { %v1017_v46 = vshll.u32 %v12568_v2, %v1015_v38  ;;  %v1018_v20 = vshrl.u32 %v1000_v21, %v1016_v32  ;;  %v1021_v17 = vadd.s32 127, %v1020_v26  ;;  %v1169_v49 = vshll.u32 %v17521_v22, %v12200_v16 }
 0x120   : > { %v1107_v42 = vsel %vm1105_vm9, %v1106_v11, %v12620_v44  ;;  %v1170_v3 = vshrl.u32 %v17527_v55, %v12213_v51  ;;  %v1176_v45 = vshrl.u32 %v17529_v40, %v12213_v51  ;;  %v1179_v14 = vshrl.u32 %v17519_v24, %v12213_v51 }
 0x121   : > { %v1019_v30 = vor.u32 %v1018_v20, %v1017_v46  ;;  %v1022_v35 = vshll.u32 %v1021_v17, 23  ;;  %v1108_v43 = vadd.s32 %v1107_v42, %v1103_v19  ;;  %v1172_v2 = vshll.u32 %v17527_v55, %v12200_v16  ;;  %v10510_v25 = vpop.eup %10509 }
 0x122   : > { %v1173_v37 = vshrl.u32 %v17528_v56, %v12213_v51  ;;  %v1175_v52 = vshll.u32 %v17528_v56, %v12200_v16  ;;  %v1178_v8 = vshll.u32 %v17529_v40, %v12200_v16  ;;  %v1182_v62 = vshrl.u32 %v17513_v28, %v12213_v51  ;;  %v10512_v58 = vpop.eup %10511 }
 0x123   : > { %v940_v33 = vxor.u32 2147483648, %v10510_v25  ;;  %v1023_v31 = vor.u32 4788187, %v1022_v35  ;;  %v1109_v13 = vadd.s32 536870912, %v1108_v43  ;;  %v1160_v63 = vor.u32 8388608, %v1159_v6 }
 0x124   : > { %v937_v44 = vxor.u32 2147483648, %v10512_v58  ;;  %v1177_v57 = vor.u32 %v1176_v45, %v1175_v52  ;;  %v1180_v21 = vor.u32 %v1179_v14, %v1178_v8  ;;  %v1181_v38 = vshll.u32 %v17519_v24, %v12200_v16 }
 0x125   : > { %v941_v32 = vsel %vm939_vm6, %v940_v33, %v10512_v58  ;;  %v1024_v26 = vand.u32 2147483647, %v1023_v31  ;;  %v1026_v19 = vcvt.s32.f32 %v1019_v30  ;;  %v1110_v11 = vshrl.u32 %v1109_v13, 30 }
 0x126   : > { %v938_v51 = vsel %vm936_vm7, %v10510_v25, %v937_v44  ;;  %v1171_v46 = vor.u32 %v1170_v3, %v1169_v49  ;;  %v1174_v20 = vor.u32 %v1173_v37, %v1172_v2  ;;  %v1183_v17 = vor.u32 %v1182_v62, %v1181_v38 }
 0x127   : > { %v942_v6 = vsel %vm935_vm8, %v938_v51, %v941_v32  ;;  %v1027_v42 = vmul.f32 %v1026_v19, %v1024_v26  ;;  %v1111_v45 = vshll.u32 %v1110_v11, 30  ;;  %vm1187_vm11 = vcmp.lt.s32.totalorder %v12198_v15, 4 }
 0x128   : > { %v943_v16 = vsel %vm932_vm10, nan, %v942_v6  ;;  %vm1184_vm12 = vcmp.lt.s32.totalorder %v12198_v15, 1  ;;  %vm1185_vm14 = vcmp.lt.s32.totalorder %v12198_v15, 2  ;;  %v1193_v14 = vsel %vm1187_vm11, %v1180_v21, 920167782 }
 0x129   : > { %2378 = vrot.lane.b32.xlu0 %v943_v16, %s11879_s24  ;;  %v1028_v49 = vxor.u32 2147483648, %v1027_v42  ;;  %v12681_v3 = vsub.s32 %v1108_v43, %v1111_v45  ;;  %vm1186_vm0 = vcmp.lt.s32.totalorder %v12198_v15, 3  ;;  %v1189_v50 = vsel %vm1187_vm11, %v1177_v57, 2102212464 }
 0x12a   : > { %v1192_v30 = vsel %vm1184_vm12, %v1171_v46, %v1174_v20  ;;  %v1194_v35 = vsel %vm1186_vm0, %v1177_v57, %v1193_v14  ;;  %v1196_v2 = vsel %vm1184_vm12, %v1174_v20, %v1177_v57  ;;  %v1197_v25 = vsel %vm1187_vm11, %v1183_v17, 1326507024 }
 0x12b   : > { %v1029_v7 = vsel %vm946_vm15, %v1028_v49, %v1027_v42  ;;  %v1114_v37 = vsub.s32 0, %v12681_v3  ;;  %v1134_v52 = vsub.s32 4, %v1110_v11  ;;  %v1188_v8 = vsel %vm1184_vm12, %v1168_v60, %v1171_v46 }
 0x12c   : > { %v1032_v62 = vsel %vm12599_vm13, %v12107_v12, %v1029_v7  ;;  %v1190_v43 = vsel %vm1186_vm0, %v1174_v20, %v1189_v50  ;;  %v1198_v58 = vsel %vm1186_vm0, %v1180_v21, %v1197_v25  ;;  %v1200_v33 = vshll.u32 %v1160_v63, 8 }
 0x12d   : > { %10513 = vcosq.f32 %v1032_v62  ;;  %v9705_v31 = vmin.u32 %v1114_v37, %v12681_v3  ;;  %v1195_v13 = vsel %vm1185_vm14, %v1192_v30, %v1194_v35  ;;  %v1199_v44 = vsel %vm1185_vm14, %v1196_v2, %v1198_v58 }
 0x12e   : > { %10515 = vsinq.f32 %v1032_v62  ;;  %vm1050_vm15 = vcmp.lt.s32.totalorder %v12098_v1, 0  ;;  %v12696_v60 = vmul.u32.u64.low %v1200_v33, %v1199_v44  ;;  %v12697_v57 = vmul.u32.u64.high %v1200_v33, %v1199_v44, %v12696_v60 }
 0x12f   : > { %v12700_v23 = vshrl.u32 %v12525_v61, 5  ;;  %v12703_v63 = vand.u32 31, %v12525_v61  ;;  %v1116_v21 = vclz %v9705_v31  ;;  %v12707_v38 = vsel %vm1050_vm15, %v1134_v52, %v1110_v11  ;;  %v17540_v61 = vld [vmem:[#allocation10_spill] sm:$0xff] }
 0x130   : > { %v12710_v32 = vand.u32 3, %v12636_v36  ;;  %v1191_v26 = vsel %vm1185_vm14, %v1188_v8, %v1190_v43  ;;  %v12714_v19 = vmul.u32.u64.low %v1200_v33, %v1195_v13  ;;  %v12715_v51 = vmul.u32.u64.high %v1200_v33, %v1195_v13, %v12714_v19 }
 0x131   : > { %v12719_v46 = vshrl.u32 %v12626_v48, 5  ;;  %vm12723_vm1 = vcmp.le.f32.partialorder %v1048_v34, 0.7853982  ;;  %v9706_v11 = vadd.s32 4294967294, %v1116_v21  ;;  %v1256_v36 = vand.u32 2147483647, %v12118_v18 }
 0x132   : > { %v12729_v20 = vand.u32 31, %v12626_v48  ;;  %v12732_v15 = vadd.s32 1, %v12397_v10  ;;  %v1104_v17 = vadd.s32 %v12619_v9, %v12617_v29  ;;  %v1137_v6 = vsel %vm12723_vm1, 0, %v12707_v38 }
 0x133   : > { %vm9707_vm2 = vcmp.lt.s32.totalorder %v9706_v11, 0  ;;  %v1207_v34 = vmul.u32 %v1200_v33, %v1191_v26  ;;  %vm1209_vm4 = vc.u32 %v12697_v57, %v12714_v19  ;;  %v12743_v42 = vshrl.u32 %v17521_v22, %v12395_v5 }
 0x134   : > { %vm1043_vm5 = vcmp.eq.s32.totalorder %v12710_v32, 2  ;;  %v1119_v10 = vsel %vm9707_vm2, 0, %v9706_v11  ;;  %v1210_v48 = vadd.s32 1, %v12715_v51  ;;  %v1273_v29 = vshll.u32 %v17521_v22, %v12297_v39 }
 0x135   : > { %v1274_v9 = vshrl.u32 %v17527_v55, %v12395_v5  ;;  %vm1040_vm13 = vcmp.eq.s32.totalorder %v12710_v32, 0  ;;  %v1120_v45 = vsub.s32 32, %v1119_v10  ;;  %v1124_v16 = vsub.s32 4294967266, %v1119_v10 }
 0x136   : > { %v1263_v14 = vand.u32 8388607, %v1256_v36  ;;  %v1277_v49 = vshrl.u32 %v17528_v56, %v12395_v5  ;;  %vm1039_vm3 = vcmp.lt.s32.totalorder %v12710_v32, 2  ;;  %v1121_v50 = vshll.u32 %v12681_v3, %v1119_v10 }
 0x137   : > { %v1211_v30 = vsel %vm1209_vm4, %v1210_v48, %v12715_v51  ;;  %v1280_v35 = vshrl.u32 %v17529_v40, %v12395_v5  ;;  %v1283_v2 = vshrl.u32 %v17519_v24, %v12395_v5  ;;  %vm1036_vm6 = vweird.f32 %v12107_v12 }
 0x138   : > { %v1122_v25 = vshrl.u32 %v1104_v17, %v1120_v45  ;;  %v1125_v7 = vadd.s32 127, %v1124_v16  ;;  %v1212_v37 = vadd.s32 %v1211_v30, %v1207_v34  ;;  %v1282_v52 = vshll.u32 %v17529_v40, %v12297_v39 }
 0x139   : > { %v1275_v8 = vor.u32 %v1274_v9, %v1273_v29  ;;  %v1276_v3 = vshll.u32 %v17527_v55, %v12297_v39  ;;  %v1279_v62 = vshll.u32 %v17528_v56, %v12297_v39  ;;  %v1286_v43 = vshrl.u32 %v17513_v28, %v12395_v5 }
 0x13a   : > { %v1123_v58 = vor.u32 %v1122_v25, %v1121_v50  ;;  %v1126_v33 = vshll.u32 %v1125_v7, 23  ;;  %vm1154_vm7 = vcmp.lt.s32.totalorder %v12095_v0, 0  ;;  %v1213_v31 = vadd.s32 536870912, %v1212_v37  ;;  %v10514_v44 = vpop.eup %10513 }
 0x13b   : > { %v1284_v13 = vor.u32 %v1283_v2, %v1282_v52  ;;  %v1264_v60 = vor.u32 8388608, %v1263_v14  ;;  %v1278_v21 = vor.u32 %v1277_v49, %v1276_v3  ;;  %v1281_v26 = vor.u32 %v1280_v35, %v1279_v62  ;;  %v10516_v11 = vpop.eup %10515 }
 0x13c   : > { %v1285_v51 = vshll.u32 %v17519_v24, %v12297_v39  ;;  %v1044_v17 = vxor.u32 2147483648, %v10514_v44  ;;  %v1127_v34 = vor.u32 4788187, %v1126_v33  ;;  %v1214_v10 = vshrl.u32 %v1213_v31, 30 }
 0x13d   : > { %vm1288_vm8 = vcmp.lt.s32.totalorder %v12293_v41, 1  ;;  %v1041_v5 = vxor.u32 2147483648, %v10516_v11  ;;  %v1130_v48 = vcvt.s32.f32 %v1123_v58  ;;  %vm12778_vm9 = vcmp.le.f32.partialorder %v1152_v59, 0.7853982 }
 0x13e   : > { %v1287_v9 = vor.u32 %v1286_v43, %v1285_v51  ;;  %vm1291_vm10 = vcmp.lt.s32.totalorder %v12293_v41, 4  ;;  %v1045_v39 = vsel %vm1043_vm5, %v1044_v17, %v10516_v11  ;;  %v1128_v45 = vand.u32 2147483647, %v1127_v34 }
 0x13f   : > { %v1215_v16 = vshll.u32 %v1214_v10, 30  ;;  %v1297_v14 = vsel %vm1291_vm10, %v1284_v13, 920167782  ;;  %v1042_v49 = vsel %vm1040_vm13, %v10514_v44, %v1041_v5  ;;  %v1238_v50 = vsub.s32 4, %v1214_v10 }
 0x140   : > { %vm1289_vm11 = vcmp.lt.s32.totalorder %v12293_v41, 2  ;;  %vm1290_vm12 = vcmp.lt.s32.totalorder %v12293_v41, 3  ;;  %v1046_v59 = vsel %vm1039_vm3, %v1042_v49, %v1045_v39  ;;  %v1131_v30 = vmul.f32 %v1130_v48, %v1128_v45 }
 0x141   : > { %v12793_v35 = vsub.s32 %v1212_v37, %v1215_v16  ;;  %v1293_v2 = vsel %vm1291_vm10, %v1281_v26, 2102212464  ;;  %v1047_v25 = vsel %vm1036_vm6, nan, %v1046_v59  ;;  %v1296_v7 = vsel %vm1288_vm8, %v1275_v8, %v1278_v21  ;;  %v17541_v59 = vld [vmem:[#allocation18_spill] sm:$0xff] }
 0x142   : > { %v1298_v52 = vsel %vm1290_vm12, %v1281_v26, %v1297_v14  ;;  %v1300_v3 = vsel %vm1288_vm8, %v1278_v21, %v1281_v26  ;;  %2380 = vrot.lane.b32.xlu1 %v1047_v25, %s11879_s24  ;;  %v1132_v32 = vxor.u32 2147483648, %v1131_v30  ;;  %v1292_v62 = vsel %vm1288_vm8, %v12743_v42, %v1275_v8 }
 0x143   : > { %v1218_v37 = vsub.s32 0, %v12793_v35  ;;  %v1301_v12 = vsel %vm1291_vm10, %v1287_v9, 1326507024  ;;  %v1239_v43 = vsel %vm1154_vm7, %v1238_v50, %v1214_v10  ;;  %v1294_v58 = vsel %vm1290_vm12, %v1278_v21, %v1293_v2 }
 0x144   : > { %v1302_v33 = vsel %vm1290_vm12, %v1284_v13, %v1301_v12  ;;  %v1304_v31 = vshll.u32 %v1264_v60, 8  ;;  %v1133_v44 = vsel %vm1050_vm15, %v1132_v32, %v1131_v30  ;;  %v1299_v42 = vsel %vm1289_vm11, %v1296_v7, %v1298_v52 }
 0x145   : > { %v9709_v26 = vmin.u32 %v1218_v37, %v12793_v35  ;;  %v1303_v8 = vsel %vm1289_vm11, %v1300_v3, %v1302_v33  ;;  %v1136_v51 = vsel %vm12723_vm1, %v12098_v1, %v1133_v44  ;;  %v1141_v13 = vadd.s32 3, %v1137_v6 }
 0x146   : > { %v12832_v60 = vmul.u32.u64.low %v1304_v31, %v1303_v8  ;;  %v12833_v21 = vmul.u32.u64.high %v1304_v31, %v1303_v8, %v12832_v60  ;;  %10517 = vcosq.f32 %v1136_v51  ;;  %v1241_v17 = vsel %vm12778_vm9, 0, %v1239_v43 }
 0x147   : > { %v1220_v11 = vclz %v9709_v26  ;;  %v1295_v34 = vsel %vm1289_vm11, %v1292_v62, %v1294_v58  ;;  %10519 = vsinq.f32 %v1136_v51  ;;  %v1360_v48 = vand.u32 2147483647, %v17540_v61 }
 0x148   : > { %v12839_v10 = vmul.u32.u64.low %v1304_v31, %v1299_v42  ;;  %v12840_v5 = vmul.u32.u64.high %v1304_v31, %v1299_v42, %v12839_v10  ;;  %v12845_v38 = vadd.s32 1, %v12528_v4  ;;  %v12849_v6 = vshrl.u32 %v1987_v47, 23 }
 0x149   : > { %v12853_v9 = vshrl.u32 %v1883_v27, 23  ;;  %v9710_v41 = vadd.s32 4294967294, %v1220_v11  ;;  %v12856_v39 = vsub.s32 32, %v12703_v63  ;;  %v12859_v45 = vsub.s32 32, %v12729_v20 }
 0x14a   : > { %v12861_v16 = vand.u32 3, %v1141_v13  ;;  %v1208_v4 = vadd.s32 %v12714_v19, %v12697_v57  ;;  %v12865_v14 = vadd.s32 3, %v1241_v17  ;;  %v1311_v47 = vmul.u32 %v1304_v31, %v1295_v34  ;;  %v17542_v57 = vld [vmem:[#allocation19_spill] sm:$0xff] }
 0x14b   : > { %vm9711_vm14 = vcmp.lt.s32.totalorder %v9710_v41, 0  ;;  %vm1313_vm0 = vc.u32 %v12833_v21, %v12839_v10  ;;  %v1314_v49 = vadd.s32 1, %v12840_v5  ;;  %v12872_v50 = vand.u32 8388607, %v1360_v48 }
 0x14c   : > { %v1223_v27 = vsel %vm9711_vm14, 0, %v9710_v41  ;;  %v1377_v30 = vshll.u32 %v17521_v22, %v17541_v59  ;;  %v1378_v19 = vshrl.u32 %v17527_v55, %v17542_v57  ;;  %v1381_v7 = vshrl.u32 %v17528_v56, %v17542_v57 }
 0x14d   : > { %v1224_v2 = vsub.s32 32, %v1223_v27  ;;  %v1228_v25 = vsub.s32 4294967266, %v1223_v27  ;;  %vm1147_vm15 = vcmp.eq.s32.totalorder %v12861_v16, 2  ;;  %v1225_v52 = vshll.u32 %v12793_v35, %v1223_v27 }
 0x14e   : > { %v1315_v3 = vsel %vm1313_vm0, %v1314_v49, %v12840_v5  ;;  %v1384_v32 = vshrl.u32 %v17529_v40, %v17542_v57  ;;  %v1386_v37 = vshll.u32 %v17529_v40, %v17541_v59  ;;  %vm1144_vm1 = vcmp.eq.s32.totalorder %v12861_v16, 0  ;;  %v17543_v49 = vld [vmem:[#allocation17_spill] sm:$0xff] }
 0x14f   : > { %v1226_v62 = vshrl.u32 %v1208_v4, %v1224_v2  ;;  %v1229_v12 = vadd.s32 127, %v1228_v25  ;;  %v1316_v43 = vadd.s32 %v1315_v3, %v1311_v47  ;;  %v1387_v58 = vshrl.u32 %v17519_v24, %v17542_v57 }
 0x150   : > { %vm1143_vm2 = vcmp.lt.s32.totalorder %v12861_v16, 2  ;;  %v1380_v35 = vshll.u32 %v17527_v55, %v17541_v59  ;;  %v1383_v33 = vshll.u32 %v17528_v56, %v17541_v59  ;;  %v1389_v31 = vshll.u32 %v17519_v24, %v17541_v59 }
 0x151   : > { %v1390_v44 = vshrl.u32 %v17513_v28, %v17542_v57  ;;  %vm1140_vm4 = vweird.f32 %v12098_v1  ;;  %v1227_v26 = vor.u32 %v1226_v62, %v1225_v52  ;;  %v1230_v42 = vshll.u32 %v1229_v12, 23 }
 0x152   : > { %vm1258_vm5 = vcmp.lt.s32.totalorder %v12118_v18, 0  ;;  %v1317_v8 = vadd.s32 536870912, %v1316_v43  ;;  %v1388_v51 = vor.u32 %v1387_v58, %v1386_v37  ;;  %vm1787_vm13 = vcmp.gt.s32.totalorder %v12732_v15, 0 }
 0x153   : > { %v1368_v13 = vor.u32 8388608, %v12872_v50  ;;  %v1376_v60 = vshrl.u32 %v17521_v22, %v17542_v57  ;;  %v1379_v11 = vor.u32 %v1378_v19, %v1377_v30  ;;  %v1382_v17 = vor.u32 %v1381_v7, %v1380_v35  ;;  %v10518_v47 = vpop.eup %10517 }
 0x154   : > { %v1231_v34 = vor.u32 4788187, %v1230_v42  ;;  %v1318_v5 = vshrl.u32 %v1317_v8, 30  ;;  %v1385_v41 = vor.u32 %v1384_v32, %v1383_v33  ;;  %v1391_v4 = vor.u32 %v1390_v44, %v1389_v31  ;;  %v10520_v59 = vpop.eup %10519 }
 0x155   : > { %v1234_v27 = vcvt.s32.f32 %v1227_v26  ;;  %vm1392_vm3 = vcmp.lt.s32.totalorder %v17543_v49, 1  ;;  %vm1393_vm6 = vcmp.lt.s32.totalorder %v17543_v49, 2  ;;  %vm1395_vm8 = vcmp.lt.s32.totalorder %v17543_v49, 4 }
 0x156   : > { %vm1683_vm10 = vcmp.gt.s32.totalorder %v12845_v38, 0  ;;  %v1148_v50 = vxor.u32 2147483648, %v10518_v47  ;;  %v1232_v2 = vand.u32 2147483647, %v1231_v34  ;;  %v1319_v25 = vshll.u32 %v1318_v5, 30 }
 0x157   : > { %v1401_v30 = vsel %vm1395_vm8, %v1388_v51, 920167782  ;;  %v1145_v57 = vxor.u32 2147483648, %v10520_v59  ;;  %v1342_v19 = vsub.s32 4, %v1318_v5  ;;  %vm1394_vm11 = vcmp.lt.s32.totalorder %v17543_v49, 3 }
 0x158   : > { %v1396_v7 = vsel %vm1392_vm3, %v1376_v60, %v1379_v11  ;;  %v1149_v52 = vsel %vm1147_vm15, %v1148_v50, %v10520_v59  ;;  %v1235_v3 = vmul.f32 %v1234_v27, %v1232_v2  ;;  %v12916_v32 = vsub.s32 %v1316_v43, %v1319_v25 }
 0x159   : > { %v1405_v37 = vsel %vm1395_vm8, %v1391_v4, 1326507024  ;;  %v1146_v62 = vsel %vm1144_vm1, %v10518_v47, %v1145_v57  ;;  %v1400_v12 = vsel %vm1392_vm3, %v1379_v11, %v1382_v17  ;;  %v1402_v58 = vsel %vm1394_vm11, %v1385_v41, %v1401_v30 }
 0x15a   : > { %v1404_v35 = vsel %vm1392_vm3, %v1382_v17, %v1385_v41  ;;  %v1150_v33 = vsel %vm1143_vm2, %v1146_v62, %v1149_v52  ;;  %v1236_v43 = vxor.u32 2147483648, %v1235_v3  ;;  %v1322_v31 = vsub.s32 0, %v12916_v32 }
 0x15b   : > { %v1397_v44 = vsel %vm1395_vm8, %v1385_v41, 2102212464  ;;  %v1151_v26 = vsel %vm1140_vm4, nan, %v1150_v33  ;;  %v1343_v42 = vsel %vm1258_vm5, %v1342_v19, %v1318_v5  ;;  %v1406_v8 = vsel %vm1394_vm11, %v1388_v51, %v1405_v37 }
 0x15c   : > { %v1408_v60 = vshll.u32 %v1368_v13, 8  ;;  %2382 = vrot.lane.b32.xlu0 %v1151_v26, %s11879_s24  ;;  %v1237_v16 = vsel %vm1154_vm7, %v1236_v43, %v1235_v3  ;;  %v9713_v11 = vmin.u32 %v1322_v31, %v12916_v32  ;;  %v1403_v34 = vsel %vm1393_vm6, %v1400_v12, %v1402_v58 }
 0x15d   : > { %v1407_v1 = vsel %vm1393_vm6, %v1404_v35, %v1406_v8  ;;  %v1240_v5 = vsel %vm12778_vm9, %v12095_v0, %v1237_v16  ;;  %v1398_v51 = vsel %vm1394_vm11, %v1382_v17, %v1397_v44  ;;  %v12958_v4 = vsel %vm1787_vm13, %v12732_v15, 0 }
 0x15e   : > { %v12952_v13 = vmul.u32.u64.low %v1408_v60, %v1407_v1  ;;  %v12953_v41 = vmul.u32.u64.high %v1408_v60, %v1407_v1, %v12952_v13  ;;  %10521 = vcosq.f32 %v1240_v5  ;;  %vm12962_vm7 = vcmp.le.f32.partialorder %v1256_v36, 0.7853982 }
 0x15f   : > { %v1324_v29 = vclz %v9713_v11  ;;  %10523 = vsinq.f32 %v1240_v5  ;;  %v1345_v17 = vsel %vm12962_vm7, 0, %v1343_v42  ;;  %v12973_v50 = vadd.s32 4294967169, %v12849_v6  ;;  %v17546_v6 = vld [vmem:[#allocation12_spill] sm:$0xff] }
 0x160   : > { %v12968_v27 = vmul.u32.u64.low %v1408_v60, %v1403_v34  ;;  %v12969_v59 = vmul.u32.u64.high %v1408_v60, %v1403_v34, %v12968_v27  ;;  %v12976_v15 = vadd.s32 4294967169, %v12853_v9  ;;  %v1399_v36 = vsel %vm1393_vm6, %v1396_v7, %v1398_v51 }
 0x161   : > { %v9714_v2 = vadd.s32 4294967294, %v1324_v29  ;;  %v12981_v25 = vand.u32 31, %v12958_v4  ;;  %v12986_v30 = vsel %vm1683_vm10, %v12845_v38, 0  ;;  %v12989_v57 = vand.u32 3, %v12865_v14 }
 0x162   : > { %v1464_v19 = vand.u32 2147483647, %v17546_v6  ;;  %v1312_v9 = vadd.s32 %v12839_v10, %v12833_v21  ;;  %v12994_v52 = vadd.s32 3, %v1345_v17  ;;  %vm1417_vm12 = vc.u32 %v12953_v41, %v12968_v27 }
 0x163   : > { %vm9715_vm9 = vcmp.lt.s32.totalorder %v9714_v2, 0  ;;  %v1415_v7 = vmul.u32 %v1408_v60, %v1399_v36  ;;  %v1418_v3 = vadd.s32 1, %v12969_v59  ;;  %v1480_v38 = vshrl.u32 %v17521_v22, %v12859_v45 }
 0x164   : > { %v1327_v49 = vsel %vm9715_vm9, 0, %v9714_v2  ;;  %v1481_v62 = vshll.u32 %v17521_v22, %v12729_v20  ;;  %v1482_v21 = vshrl.u32 %v17527_v55, %v12859_v45  ;;  %vm1251_vm14 = vcmp.eq.s32.totalorder %v12989_v57, 2 }
 0x165   : > { %v1328_v14 = vsub.s32 32, %v1327_v49  ;;  %v1332_v37 = vsub.s32 4294967266, %v1327_v49  ;;  %v1419_v10 = vsel %vm1417_vm12, %v1418_v3, %v12969_v59  ;;  %v1471_v12 = vand.u32 8388607, %v1464_v19 }
 0x166   : > { %v1485_v58 = vshrl.u32 %v17528_v56, %v12859_v45  ;;  %v1488_v35 = vshrl.u32 %v17529_v40, %v12859_v45  ;;  %vm1248_vm0 = vcmp.eq.s32.totalorder %v12989_v57, 0  ;;  %v1329_v33 = vshll.u32 %v12916_v32, %v1327_v49 }
 0x167   : > { %v1330_v43 = vshrl.u32 %v1312_v9, %v1328_v14  ;;  %v1333_v31 = vadd.s32 127, %v1332_v37  ;;  %v1420_v44 = vadd.s32 %v1419_v10, %v1415_v7  ;;  %vm1247_vm15 = vcmp.lt.s32.totalorder %v12989_v57, 2 }
 0x168   : > { %v1484_v26 = vshll.u32 %v17527_v55, %v12729_v20  ;;  %v1487_v42 = vshll.u32 %v17528_v56, %v12729_v20  ;;  %v1490_v8 = vshll.u32 %v17529_v40, %v12729_v20  ;;  %v1491_v60 = vshrl.u32 %v17519_v24, %v12859_v45 }
 0x169   : > { %vm1244_vm1 = vweird.f32 %v12095_v0  ;;  %v1331_v32 = vor.u32 %v1330_v43, %v1329_v33  ;;  %v1334_v16 = vshll.u32 %v1333_v31, 23  ;;  %v1421_v11 = vadd.s32 536870912, %v1420_v44 }
 0x16a   : > { %v1483_v34 = vor.u32 %v1482_v21, %v1481_v62  ;;  %v1486_v1 = vor.u32 %v1485_v58, %v1484_v26  ;;  %v1489_v5 = vor.u32 %v1488_v35, %v1487_v42  ;;  %v1492_v51 = vor.u32 %v1491_v60, %v1490_v8 }
 0x16b   : > { %v1494_v13 = vshrl.u32 %v17513_v28, %v12859_v45  ;;  %v1335_v29 = vor.u32 4788187, %v1334_v16  ;;  %v1422_v17 = vshrl.u32 %v1421_v11, 30  ;;  %v1472_v59 = vor.u32 8388608, %v1471_v12  ;;  %v10522_v2 = vpop.eup %10521 }
 0x16c   : > { %vm1499_vm2 = vcmp.lt.s32.totalorder %v12719_v46, 4  ;;  %vm1362_vm4 = vcmp.lt.s32.totalorder %v17540_v61, 0  ;;  %v1493_v36 = vshll.u32 %v17519_v24, %v12729_v20  ;;  %vm1496_vm13 = vcmp.lt.s32.totalorder %v12719_v46, 1  ;;  %v10524_v49 = vpop.eup %10523 }
 0x16d   : > { %vm1498_vm3 = vcmp.lt.s32.totalorder %v12719_v46, 3  ;;  %v1505_v9 = vsel %vm1499_vm2, %v1492_v51, 920167782  ;;  %v1252_v45 = vxor.u32 2147483648, %v10522_v2  ;;  %v1336_v7 = vand.u32 2147483647, %v1335_v29 }
 0x16e   : > { %v1338_v3 = vcvt.s32.f32 %v1331_v32  ;;  %v1423_v14 = vshll.u32 %v1422_v17, 30  ;;  %v1249_v37 = vxor.u32 2147483648, %v10524_v49  ;;  %v1495_v62 = vor.u32 %v1494_v13, %v1493_v36 }
 0x16f   : > { %v1504_v21 = vsel %vm1496_vm13, %v1483_v34, %v1486_v1  ;;  %v1506_v20 = vsel %vm1498_vm3, %v1489_v5, %v1505_v9  ;;  %v1253_v10 = vsel %vm1251_vm14, %v1252_v45, %v10524_v49  ;;  %vm1497_vm6 = vcmp.lt.s32.totalorder %v12719_v46, 2 }
 0x170   : > { %v1339_v12 = vmul.f32 %v1338_v3, %v1336_v7  ;;  %v13041_v58 = vsub.s32 %v1420_v44, %v1423_v14  ;;  %v1250_v35 = vsel %vm1248_vm0, %v10522_v2, %v1249_v37  ;;  %v1446_v33 = vsub.s32 4, %v1422_v17 }
 0x171   : > { %v1501_v43 = vsel %vm1499_vm2, %v1489_v5, 2102212464  ;;  %v1508_v31 = vsel %vm1496_vm13, %v1486_v1, %v1489_v5  ;;  %v1254_v26 = vsel %vm1247_vm15, %v1250_v35, %v1253_v10  ;;  %v1507_v44 = vsel %vm1497_vm6, %v1504_v21, %v1506_v20  ;;  %v17551_v20 = vld [vmem:[#allocation16_spill] sm:$0xff] }
 0x172   : > { %v1340_v42 = vxor.u32 2147483648, %v1339_v12  ;;  %v1426_v8 = vsub.s32 0, %v13041_v58  ;;  %v1255_v60 = vsel %vm1244_vm1, nan, %v1254_v26  ;;  %v1500_v32 = vsel %vm1496_vm13, %v1480_v38, %v1483_v34 }
 0x173   : > { %v1509_v16 = vsel %vm1499_vm2, %v1495_v62, 1326507024  ;;  %v1512_v11 = vshll.u32 %v1472_v59, 8  ;;  %2384 = vrot.lane.b32.xlu1 %v1255_v60, %s11879_s24  ;;  %v1502_v13 = vsel %vm1498_vm3, %v1486_v1, %v1501_v43  ;;  %v13079_v2 = vand.u32 31, %v12986_v30 }
 0x174   : > { %v1341_v57 = vsel %vm1258_vm5, %v1340_v42, %v1339_v12  ;;  %v9717_v5 = vmin.u32 %v1426_v8, %v13041_v58  ;;  %v1510_v0 = vsel %vm1498_vm3, %v1492_v51, %v1509_v16  ;;  %v1447_v1 = vsel %vm1362_vm4, %v1446_v33, %v1422_v17 }
 0x175   : > { %v1344_v38 = vsel %vm12962_vm7, %v12118_v18, %v1341_v57  ;;  %v1511_v34 = vsel %vm1497_vm6, %v1508_v31, %v1510_v0  ;;  %v13074_v29 = vmul.u32.u64.low %v1512_v11, %v1507_v44  ;;  %v13075_v59 = vmul.u32.u64.high %v1512_v11, %v1507_v44, %v13074_v29 }
 0x176   : > { %10525 = vcosq.f32 %v1344_v38  ;;  %v1428_v36 = vclz %v9717_v5  ;;  %v13084_v51 = vshrl.u32 %v12986_v30, 5  ;;  %v13090_v49 = vadd.s32 1, %v12973_v50  ;;  %v17549_v50 = vld [vmem:[#allocation11_spill] sm:$0xff] }
 0x177   : > { %10527 = vsinq.f32 %v1344_v38  ;;  %v13086_v47 = vmul.u32.u64.low %v1512_v11, %v1511_v34  ;;  %v13087_v9 = vmul.u32.u64.high %v1512_v11, %v1511_v34, %v13086_v47  ;;  %vm13094_vm5 = vcmp.le.f32.partialorder %v1360_v48, 0.7853982  ;;  %v17550_v48 = vld [vmem:[#allocation15_spill] sm:$0xff] }
 0x178   : > { %v9718_v7 = vadd.s32 4294967294, %v1428_v36  ;;  %v1503_v17 = vsel %vm1497_vm6, %v1500_v32, %v1502_v13  ;;  %v13101_v30 = vand.u32 3, %v12994_v52  ;;  %v1449_v3 = vsel %vm13094_vm5, 0, %v1447_v1 }
 0x179   : > { %v1522_v14 = vadd.s32 1, %v13075_v59  ;;  %v1568_v37 = vand.u32 2147483647, %v17549_v50  ;;  %v13108_v62 = vsub.s32 32, %v13079_v2  ;;  %v2195_v21 = vand.u32 2139095040, %v17550_v48 }
 0x17a   : > { %v2091_v10 = vand.u32 2139095040, %v17551_v20  ;;  %vm9719_vm8 = vcmp.lt.s32.totalorder %v9718_v7, 0  ;;  %v1416_v46 = vadd.s32 %v12968_v27, %v12953_v41  ;;  %v1519_v12 = vmul.u32 %v1512_v11, %v1503_v17 }
 0x17b   : > { %v1431_v52 = vsel %vm9719_vm8, 0, %v9718_v7  ;;  %vm1521_vm10 = vc.u32 %v13087_v9, %v13074_v29  ;;  %v13116_v43 = vadd.s32 3, %v1449_v3  ;;  %vm1355_vm11 = vcmp.eq.s32.totalorder %v13101_v30, 2 }
 0x17c   : > { %v1432_v35 = vsub.s32 32, %v1431_v52  ;;  %v1436_v33 = vsub.s32 4294967266, %v1431_v52  ;;  %v1523_v31 = vsel %vm1521_vm10, %v1522_v14, %v13075_v59  ;;  %v1433_v26 = vshll.u32 %v13041_v58, %v1431_v52 }
 0x17d   : > { %v1524_v42 = vadd.s32 %v1523_v31, %v1519_v12  ;;  %v13123_v8 = vand.u32 8388607, %v1568_v37  ;;  %v1586_v41 = vshrl.u32 %v17527_v55, %v12856_v39  ;;  %vm1352_vm7 = vcmp.eq.s32.totalorder %v13101_v30, 0 }
 0x17e   : > { %v1434_v27 = vshrl.u32 %v1416_v46, %v1432_v35  ;;  %v1437_v44 = vadd.s32 127, %v1436_v33  ;;  %v1589_v60 = vshrl.u32 %v17528_v56, %v12856_v39  ;;  %v1592_v32 = vshrl.u32 %v17529_v40, %v12856_v39 }
 0x17f   : > { %vm1351_vm9 = vcmp.lt.s32.totalorder %v13101_v30, 2  ;;  %vm1466_vm12 = vcmp.lt.s32.totalorder %v17546_v6, 0  ;;  %v1525_v58 = vadd.s32 536870912, %v1524_v42  ;;  %v1584_v16 = vshrl.u32 %v17521_v22, %v12856_v39 }
 0x180   : > { %v1585_v11 = vshll.u32 %v17521_v22, %v12703_v63  ;;  %v1595_v57 = vshrl.u32 %v17519_v24, %v12856_v39  ;;  %vm1348_vm14 = vweird.f32 %v12118_v18  ;;  %v1435_v5 = vor.u32 %v1434_v27, %v1433_v26 }
 0x181   : > { %v1438_v13 = vshll.u32 %v1437_v44, 23  ;;  %v1588_v0 = vshll.u32 %v17527_v55, %v12703_v63  ;;  %v1591_v38 = vshll.u32 %v17528_v56, %v12703_v63  ;;  %v1526_v34 = vshrl.u32 %v1525_v58, 30 }
 0x182   : > { %v1587_v59 = vor.u32 %v1586_v41, %v1585_v11  ;;  %v1594_v36 = vshll.u32 %v17529_v40, %v12703_v63  ;;  %v1598_v1 = vshrl.u32 %v17513_v28, %v12856_v39  ;;  %vm13151_vm0 = vcmp.le.f32.partialorder %v1464_v19, 0.7853982 }
 0x183   : > { %v1439_v47 = vor.u32 4788187, %v1438_v13  ;;  %v1576_v17 = vor.u32 8388608, %v13123_v8  ;;  %v1590_v3 = vor.u32 %v1589_v60, %v1588_v0  ;;  %v1593_v14 = vor.u32 %v1592_v32, %v1591_v38  ;;  %v10526_v46 = vpop.eup %10525 }
 0x184   : > { %v1527_v52 = vshll.u32 %v1526_v34, 30  ;;  %v1596_v12 = vor.u32 %v1595_v57, %v1594_v36  ;;  %v1597_v35 = vshll.u32 %v17519_v24, %v12703_v63  ;;  %vm1600_vm15 = vcmp.lt.s32.totalorder %v12700_v23, 1  ;;  %v10528_v39 = vpop.eup %10527 }
 0x185   : > { %v1356_v33 = vxor.u32 2147483648, %v10526_v46  ;;  %v1440_v31 = vand.u32 2147483647, %v1439_v47  ;;  %v1442_v26 = vcvt.s32.f32 %v1435_v5  ;;  %v1550_v19 = vsub.s32 4, %v1526_v34 }
 0x186   : > { %v1353_v41 = vxor.u32 2147483648, %v10528_v39  ;;  %v13159_v27 = vsub.s32 %v1524_v42, %v1527_v52  ;;  %v1599_v44 = vor.u32 %v1598_v1, %v1597_v35  ;;  %vm1603_vm1 = vcmp.lt.s32.totalorder %v12700_v23, 4 }
 0x187   : > { %v1357_v8 = vsel %vm1355_vm11, %v1356_v33, %v10528_v39  ;;  %v1443_v60 = vmul.f32 %v1442_v26, %v1440_v31  ;;  %vm1602_vm2 = vcmp.lt.s32.totalorder %v12700_v23, 3  ;;  %v1605_v63 = vsel %vm1603_vm1, %v1593_v14, 2102212464  ;;  %v17554_v31 = vld [vmem:[#allocation14_spill] sm:$0xff] }
 0x188   : > { %v1354_v32 = vsel %vm1352_vm7, %v10526_v46, %v1353_v41  ;;  %v1530_v58 = vsub.s32 0, %v13159_v27  ;;  %v1608_v42 = vsel %vm1600_vm15, %v1587_v59, %v1590_v3  ;;  %v1609_v11 = vsel %vm1603_vm1, %v1596_v12, 920167782 }
 0x189   : > { %v1358_v57 = vsel %vm1351_vm9, %v1354_v32, %v1357_v8  ;;  %v1444_v5 = vxor.u32 2147483648, %v1443_v60  ;;  %v1551_v13 = vsel %vm1466_vm12, %v1550_v19, %v1526_v34  ;;  %v1610_v0 = vsel %vm1602_vm2, %v1593_v14, %v1609_v11 }
 0x18a   : > { %v1359_v38 = vsel %vm1348_vm14, nan, %v1358_v57  ;;  %v9721_v36 = vmin.u32 %v1530_v58, %v13159_v27  ;;  %v1604_v1 = vsel %vm1600_vm15, %v1584_v16, %v1587_v59  ;;  %v1606_v47 = vsel %vm1602_vm2, %v1590_v3, %v1605_v63 }
 0x18b   : > { %2386 = vrot.lane.b32.xlu0 %v1359_v38, %s11879_s24  ;;  %v1445_v30 = vsel %vm1362_vm4, %v1444_v5, %v1443_v60  ;;  %vm1601_vm13 = vcmp.lt.s32.totalorder %v12700_v23, 2  ;;  %v1612_v34 = vsel %vm1600_vm15, %v1590_v3, %v1593_v14  ;;  %v1613_v18 = vsel %vm1603_vm1, %v1599_v44, 1326507024 }
 0x18c   : > { %v1448_v16 = vsel %vm13094_vm5, %v17540_v61, %v1445_v30  ;;  %v1532_v59 = vclz %v9721_v36  ;;  %v1553_v46 = vsel %vm13151_vm0, 0, %v1551_v13  ;;  %v1611_v52 = vsel %vm1601_vm13, %v1608_v42, %v1610_v0 }
 0x18d   : > { %10529 = vcosq.f32 %v1448_v16  ;;  %v1607_v35 = vsel %vm1601_vm13, %v1604_v1, %v1606_v47  ;;  %v1614_v39 = vsel %vm1602_vm2, %v1596_v12, %v1613_v18  ;;  %v1616_v33 = vshll.u32 %v1576_v17, 8 }
 0x18e   : > { %10531 = vsinq.f32 %v1448_v16  ;;  %v9722_v3 = vadd.s32 4294967294, %v1532_v59  ;;  %v1615_v14 = vsel %vm1601_vm13, %v1612_v34, %v1614_v39  ;;  %v1672_v26 = vand.u32 2147483647, %v17554_v31 }
 0x18f   : > { %v13203_v19 = vmul.u32.u64.low %v1616_v33, %v1615_v14  ;;  %v13204_v41 = vmul.u32.u64.high %v1616_v33, %v1615_v14, %v13203_v19  ;;  %v13206_v45 = vmul.u32.u64.low %v1616_v33, %v1611_v52  ;;  %v13207_v44 = vmul.u32.u64.high %v1616_v33, %v1611_v52, %v13206_v45 }
 0x190   : > { %v13211_v8 = vsub.s32 32, %v12981_v25  ;;  %v13214_v60 = vadd.s32 1, %v12976_v15  ;;  %v13217_v23 = vand.u32 3, %v13116_v43  ;;  %vm9723_vm4 = vcmp.lt.s32.totalorder %v9722_v3, 0 }
 0x191   : > { %v13221_v17 = vshrl.u32 %v2195_v21, 23  ;;  %v13225_v12 = vshrl.u32 %v2091_v10, 23  ;;  %v1520_v63 = vadd.s32 %v13074_v29, %v13087_v9  ;;  %v1535_v32 = vsel %vm9723_vm4, 0, %v9722_v3 }
 0x192   : > { %v1536_v58 = vsub.s32 32, %v1535_v32  ;;  %v1540_v42 = vsub.s32 4294967266, %v1535_v32  ;;  %v13229_v15 = vadd.s32 3, %v1553_v46  ;;  %v1623_v11 = vmul.u32 %v1616_v33, %v1607_v35 }
 0x193   : > { %vm1625_vm3 = vc.u32 %v13204_v41, %v13206_v45  ;;  %v1626_v43 = vadd.s32 1, %v13207_v44  ;;  %v13236_v21 = vand.u32 8388607, %v1672_v26  ;;  %v1688_v10 = vshrl.u32 %v17521_v22, %v13108_v62 }
 0x194   : > { %vm1459_vm6 = vcmp.eq.s32.totalorder %v13217_v23, 2  ;;  %v1537_v29 = vshll.u32 %v13159_v27, %v1535_v32  ;;  %v1538_v9 = vshrl.u32 %v1520_v63, %v1536_v58  ;;  %v1541_v57 = vadd.s32 127, %v1540_v42 }
 0x195   : > { %v1690_v5 = vshrl.u32 %v17527_v55, %v13108_v62  ;;  %vm1456_vm5 = vcmp.eq.s32.totalorder %v13217_v23, 0  ;;  %v1627_v13 = vsel %vm1625_vm3, %v1626_v43, %v13207_v44  ;;  %v1689_v0 = vshll.u32 %v17521_v22, %v13079_v2 }
 0x196   : > { %v1693_v38 = vshrl.u32 %v17528_v56, %v13108_v62  ;;  %v1696_v36 = vshrl.u32 %v17529_v40, %v13108_v62  ;;  %vm1455_vm8 = vcmp.lt.s32.totalorder %v13217_v23, 2  ;;  %v1539_v27 = vor.u32 %v1538_v9, %v1537_v29 }
 0x197   : > { %v1542_v1 = vshll.u32 %v1541_v57, 23  ;;  %v1628_v47 = vadd.s32 %v1627_v13, %v1623_v11  ;;  %v1692_v30 = vshll.u32 %v17527_v55, %v13079_v2  ;;  %vm1452_vm10 = vweird.f32 %v17540_v61 }
 0x198   : > { %v1695_v34 = vshll.u32 %v17528_v56, %v13079_v2  ;;  %v1698_v18 = vshll.u32 %v17529_v40, %v13079_v2  ;;  %v1699_v16 = vshrl.u32 %v17519_v24, %v13108_v62  ;;  %v1702_v59 = vshrl.u32 %v17513_v28, %v13108_v62 }
 0x199   : > { %v1543_v46 = vor.u32 4788187, %v1542_v1  ;;  %v1629_v52 = vadd.s32 536870912, %v1628_v47  ;;  %v1680_v35 = vor.u32 8388608, %v13236_v21  ;;  %v1691_v39 = vor.u32 %v1690_v5, %v1689_v0 }
 0x19a   : > { %vm1995_vm11 = vcmp.gt.s32.totalorder %v13090_v49, 0  ;;  %vm1891_vm7 = vcmp.gt.s32.totalorder %v13214_v60, 0  ;;  %vm1570_vm9 = vcmp.lt.s32.totalorder %v17549_v50, 0  ;;  %v1694_v33 = vor.u32 %v1693_v38, %v1692_v30  ;;  %v10530_v44 = vpop.eup %10529 }
 0x19b   : > { %v1697_v3 = vor.u32 %v1696_v36, %v1695_v34  ;;  %v1700_v14 = vor.u32 %v1699_v16, %v1698_v18  ;;  %v1701_v19 = vshll.u32 %v17519_v24, %v13079_v2  ;;  %v1544_v63 = vand.u32 2147483647, %v1543_v46  ;;  %v10532_v58 = vpop.eup %10531 }
 0x19c   : > { %v1546_v62 = vcvt.s32.f32 %v1539_v27  ;;  %v1630_v32 = vshrl.u32 %v1629_v52, 30  ;;  %vm1707_vm14 = vcmp.lt.s32.totalorder %v13084_v51, 4  ;;  %v1460_v42 = vxor.u32 2147483648, %v10530_v44 }
 0x19d   : > { %v1703_v11 = vor.u32 %v1702_v59, %v1701_v19  ;;  %vm1704_vm15 = vcmp.lt.s32.totalorder %v13084_v51, 1  ;;  %v1713_v43 = vsel %vm1707_vm14, %v1700_v14, 920167782  ;;  %v1457_v21 = vxor.u32 2147483648, %v10532_v58 }
 0x19e   : > { %v1547_v29 = vmul.f32 %v1546_v62, %v1544_v63  ;;  %v1631_v9 = vshll.u32 %v1630_v32, 30  ;;  %vm1706_vm1 = vcmp.lt.s32.totalorder %v13084_v51, 3  ;;  %v1461_v2 = vsel %vm1459_vm6, %v1460_v42, %v10532_v58 }
 0x19f   : > { %v1709_v57 = vsel %vm1707_vm14, %v1697_v3, 2102212464  ;;  %v1712_v5 = vsel %vm1704_vm15, %v1691_v39, %v1694_v33  ;;  %v1714_v13 = vsel %vm1706_vm1, %v1697_v3, %v1713_v43  ;;  %v1458_v0 = vsel %vm1456_vm5, %v10530_v44, %v1457_v21 }
 0x1a0   : > { %v1548_v38 = vxor.u32 2147483648, %v1547_v29  ;;  %v13285_v36 = vsub.s32 %v1628_v47, %v1631_v9  ;;  %v1654_v27 = vsub.s32 4, %v1630_v32  ;;  %v1462_v1 = vsel %vm1455_vm8, %v1458_v0, %v1461_v2 }
 0x1a1   : > { %vm1705_vm2 = vcmp.lt.s32.totalorder %v13084_v51, 2  ;;  %v1708_v30 = vsel %vm1704_vm15, %v1688_v10, %v1691_v39  ;;  %v1716_v34 = vsel %vm1704_vm15, %v1694_v33, %v1697_v3  ;;  %v1463_v18 = vsel %vm1452_vm10, nan, %v1462_v1 }
 0x1a2   : > { %v1549_v16 = vsel %vm1466_vm12, %v1548_v38, %v1547_v29  ;;  %v1634_v47 = vsub.s32 0, %v13285_v36  ;;  %v1715_v23 = vsel %vm1705_vm2, %v1712_v5, %v1714_v13  ;;  %2388 = vrot.lane.b32.xlu1 %v1463_v18, %s11879_s24  ;;  %v1710_v59 = vsel %vm1706_vm1, %v1694_v33, %v1709_v57 }
 0x1a3   : > { %v1552_v10 = vsel %vm13151_vm0, %v17546_v6, %v1549_v16  ;;  %v1717_v61 = vsel %vm1707_vm14, %v1703_v11, 1326507024  ;;  %v1720_v46 = vshll.u32 %v1680_v35, 8  ;;  %v1655_v39 = vsel %vm1570_vm9, %v1654_v27, %v1630_v32  ;;  %v17557_v11 = vld [vmem:[#allocation13_spill] sm:$0xff] }
 0x1a4   : > { %10533 = vcosq.f32 %v1552_v10  ;;  %v9725_v52 = vmin.u32 %v1634_v47, %v13285_v36  ;;  %v1718_v3 = vsel %vm1706_vm1, %v1700_v14, %v1717_v61  ;;  %v13323_v35 = vsel %vm1995_vm11, %v13090_v49, 0 }
 0x1a5   : > { %10535 = vsinq.f32 %v1552_v10  ;;  %v1719_v7 = vsel %vm1705_vm2, %v1716_v34, %v1718_v3  ;;  %v13316_v19 = vmul.u32.u64.low %v1720_v46, %v1715_v23  ;;  %v13317_v44 = vmul.u32.u64.high %v1720_v46, %v1715_v23, %v13316_v19 }
 0x1a6   : > { %v13328_v33 = vsel %vm1891_vm7, %v13214_v60, 0  ;;  %vm13332_vm12 = vcmp.le.f32.partialorder %v1568_v37, 0.7853982  ;;  %v1636_v63 = vclz %v9725_v52  ;;  %v13337_v62 = vand.u32 3, %v13229_v15 }
 0x1a7   : > { %v1657_v32 = vsel %vm13332_vm12, 0, %v1655_v39  ;;  %v13341_v49 = vmul.u32.u64.low %v1720_v46, %v1719_v7  ;;  %v13342_v58 = vmul.u32.u64.high %v1720_v46, %v1719_v7, %v13341_v49  ;;  %v13345_v42 = vshrl.u32 %v12958_v4, 5 }
 0x1a8   : > { %v9726_v60 = vadd.s32 4294967294, %v1636_v63  ;;  %v1711_v37 = vsel %vm1705_vm2, %v1708_v30, %v1710_v59  ;;  %v1776_v43 = vand.u32 2147483647, %v17557_v11  ;;  %v13351_v21 = vand.u32 31, %v13323_v35 }
 0x1a9   : > { %v13354_v15 = vand.u32 31, %v13328_v33  ;;  %v13357_v29 = vadd.s32 4294967169, %v13221_v17  ;;  %v1730_v9 = vadd.s32 1, %v13317_v44  ;;  %v13361_v4 = vadd.s32 4294967169, %v13225_v12 }
 0x1aa   : > { %v1624_v51 = vadd.s32 %v13206_v45, %v13204_v41  ;;  %vm9727_vm0 = vcmp.lt.s32.totalorder %v9726_v60, 0  ;;  %v13365_v2 = vadd.s32 3, %v1657_v32  ;;  %vm1563_vm13 = vcmp.eq.s32.totalorder %v13337_v62, 2 }
 0x1ab   : > { %v1639_v57 = vsel %vm9727_vm0, 0, %v9726_v60  ;;  %v1727_v5 = vmul.u32 %v1720_v46, %v1711_v37  ;;  %vm1729_vm4 = vc.u32 %v13342_v58, %v13316_v19  ;;  %v13372_v17 = vshrl.u32 %v17521_v22, %v13211_v8 }
 0x1ac   : > { %vm1560_vm3 = vcmp.eq.s32.totalorder %v13337_v62, 0  ;;  %v1640_v12 = vsub.s32 32, %v1639_v57  ;;  %v1644_v13 = vsub.s32 4294967266, %v1639_v57  ;;  %v1731_v41 = vsel %vm1729_vm4, %v1730_v9, %v13317_v44 }
 0x1ad   : > { %v13378_v45 = vand.u32 8388607, %v1776_v43  ;;  %vm1559_vm6 = vcmp.lt.s32.totalorder %v13337_v62, 2  ;;  %v1732_v0 = vadd.s32 %v1731_v41, %v1727_v5  ;;  %v1793_v38 = vshll.u32 %v17521_v22, %v12981_v25 }
 0x1ae   : > { %v1794_v27 = vshrl.u32 %v17527_v55, %v13211_v8  ;;  %v1797_v1 = vshrl.u32 %v17528_v56, %v13211_v8  ;;  %vm1556_vm5 = vweird.f32 %v17546_v6  ;;  %v1641_v30 = vshll.u32 %v13285_v36, %v1639_v57 }
 0x1af   : > { %v1642_v34 = vshrl.u32 %v1624_v51, %v1640_v12  ;;  %v1645_v18 = vadd.s32 127, %v1644_v13  ;;  %v1800_v16 = vshrl.u32 %v17529_v40, %v13211_v8  ;;  %v1733_v47 = vadd.s32 536870912, %v1732_v0 }
 0x1b0   : > { %v1796_v23 = vshll.u32 %v17527_v55, %v12981_v25  ;;  %v1799_v10 = vshll.u32 %v17528_v56, %v12981_v25  ;;  %v1803_v59 = vshrl.u32 %v17519_v24, %v13211_v8  ;;  %vm1674_vm8 = vcmp.lt.s32.totalorder %v17554_v31, 0 }
 0x1b1   : > { %v1643_v61 = vor.u32 %v1642_v34, %v1641_v30  ;;  %v1646_v46 = vshll.u32 %v1645_v18, 23  ;;  %v1784_v36 = vor.u32 8388608, %v13378_v45  ;;  %v1806_v52 = vshrl.u32 %v17513_v28, %v13211_v8  ;;  %v10534_v39 = vpop.eup %10533 }
 0x1b2   : > { %v1734_v3 = vshrl.u32 %v1733_v47, 30  ;;  %v1795_v7 = vor.u32 %v1794_v27, %v1793_v38  ;;  %v1798_v44 = vor.u32 %v1797_v1, %v1796_v23  ;;  %v1802_v63 = vshll.u32 %v17529_v40, %v12981_v25  ;;  %v10536_v32 = vpop.eup %10535 }
 0x1b3   : > { %v1564_v49 = vxor.u32 2147483648, %v10534_v39  ;;  %v1647_v60 = vor.u32 4788187, %v1646_v46  ;;  %v1801_v37 = vor.u32 %v1800_v16, %v1799_v10  ;;  %v1805_v9 = vshll.u32 %v17519_v24, %v12981_v25 }
 0x1b4   : > { %v1561_v51 = vxor.u32 2147483648, %v10536_v32  ;;  %vm13407_vm10 = vcmp.le.f32.partialorder %v1672_v26, 0.7853982  ;;  %v1735_v8 = vshll.u32 %v1734_v3, 30  ;;  %v1804_v5 = vor.u32 %v1803_v59, %v1802_v63 }
 0x1b5   : > { %vm1808_vm11 = vcmp.lt.s32.totalorder %v13345_v42, 1  ;;  %v1565_v12 = vsel %vm1563_vm13, %v1564_v49, %v10536_v32  ;;  %v1648_v13 = vand.u32 2147483647, %v1647_v60  ;;  %v1650_v41 = vcvt.s32.f32 %v1643_v61 }
 0x1b6   : > { %v1807_v45 = vor.u32 %v1806_v52, %v1805_v9  ;;  %v1562_v25 = vsel %vm1560_vm3, %v10534_v39, %v1561_v51  ;;  %v13416_v38 = vsub.s32 %v1732_v0, %v1735_v8  ;;  %v1758_v27 = vsub.s32 4, %v1734_v3 }
 0x1b7   : > { %vm1811_vm7 = vcmp.lt.s32.totalorder %v13345_v42, 4  ;;  %v1566_v26 = vsel %vm1559_vm6, %v1562_v25, %v1565_v12  ;;  %v1651_v1 = vmul.f32 %v1650_v41, %v1648_v13  ;;  %vm1810_vm14 = vcmp.lt.s32.totalorder %v13345_v42, 3 }
 0x1b8   : > { %v1813_v30 = vsel %vm1811_vm7, %v1801_v37, 2102212464  ;;  %v1567_v34 = vsel %vm1556_vm5, nan, %v1566_v26  ;;  %v1738_v18 = vsub.s32 0, %v13416_v38  ;;  %v1816_v16 = vsel %vm1808_vm11, %v1795_v7, %v1798_v44 }
 0x1b9   : > { %v1817_v0 = vsel %vm1811_vm7, %v1804_v5, 920167782  ;;  %2390 = vrot.lane.b32.xlu0 %v1567_v34, %s11879_s24  ;;  %v1652_v47 = vxor.u32 2147483648, %v1651_v1  ;;  %v1820_v23 = vsel %vm1808_vm11, %v1798_v44, %v1801_v37  ;;  %v1821_v10 = vsel %vm1811_vm7, %v1807_v45, 1326507024 }
 0x1ba   : > { %v1818_v62 = vsel %vm1810_vm14, %v1801_v37, %v1817_v0  ;;  %v9729_v59 = vmin.u32 %v1738_v18, %v13416_v38  ;;  %v1759_v6 = vsel %vm1674_vm8, %v1758_v27, %v1734_v3  ;;  %vm1809_vm15 = vcmp.lt.s32.totalorder %v13345_v42, 2 }
 0x1bb   : > { %v1822_v61 = vsel %vm1810_vm14, %v1804_v5, %v1821_v10  ;;  %v1653_v46 = vsel %vm1570_vm9, %v1652_v47, %v1651_v1  ;;  %v1819_v52 = vsel %vm1809_vm15, %v1816_v16, %v1818_v62  ;;  %v1824_v63 = vshll.u32 %v1784_v36, 8 }
 0x1bc   : > { %v1823_v39 = vsel %vm1809_vm15, %v1820_v23, %v1822_v61  ;;  %v1656_v32 = vsel %vm13332_vm12, %v17549_v50, %v1653_v46  ;;  %v1740_v3 = vclz %v9729_v59  ;;  %v1812_v49 = vsel %vm1808_vm11, %v13372_v17, %v1795_v7 }
 0x1bd   : > { %v1814_v60 = vsel %vm1810_vm14, %v1798_v44, %v1813_v30  ;;  %10537 = vcosq.f32 %v1656_v32  ;;  %v1761_v37 = vsel %vm13407_vm10, 0, %v1759_v6  ;;  %v13462_v5 = vshrl.u32 %v13328_v33, 5 }
 0x1be   : > { %v13454_v9 = vmul.u32.u64.low %v1824_v63, %v1823_v39  ;;  %v13455_v51 = vmul.u32.u64.high %v1824_v63, %v1823_v39, %v13454_v9  ;;  %10539 = vsinq.f32 %v1656_v32  ;;  %v9730_v36 = vadd.s32 4294967294, %v1740_v3 }
 0x1bf   : > { %v13457_v8 = vmul.u32.u64.low %v1824_v63, %v1819_v52  ;;  %v13458_v14 = vmul.u32.u64.high %v1824_v63, %v1819_v52, %v13457_v8  ;;  %v1895_v17 = vsub.s32 32, %v13354_v15  ;;  %v13466_v7 = vadd.s32 1, %v13357_v29 }
 0x1c0   : > { %v1815_v44 = vsel %vm1809_vm15, %v1812_v49, %v1814_v60  ;;  %v13471_v12 = vadd.s32 1, %v13361_v4  ;;  %v13474_v13 = vand.u32 3, %v13365_v2  ;;  %v1728_v41 = vadd.s32 %v13316_v19, %v13342_v58 }
 0x1c1   : > { %vm9731_vm9 = vcmp.lt.s32.totalorder %v9730_v36, 0  ;;  %v13478_v45 = vadd.s32 3, %v1761_v37  ;;  %vm1833_vm1 = vc.u32 %v13455_v51, %v13457_v8  ;;  %v1880_v29 = vand.u32 2147483647, %v12148_v54 }
 0x1c2   : > { %v1743_v33 = vsel %vm9731_vm9, 0, %v9730_v36  ;;  %v1831_v27 = vmul.u32 %v1824_v63, %v1815_v44  ;;  %v1834_v4 = vadd.s32 1, %v13458_v14  ;;  %v1896_v26 = vshrl.u32 %v17521_v22, %v1895_v17 }
 0x1c3   : > { %v1744_v42 = vsub.s32 32, %v1743_v33  ;;  %v1748_v25 = vsub.s32 4294967266, %v1743_v33  ;;  %v1745_v2 = vshll.u32 %v13416_v38, %v1743_v33  ;;  %v1897_v19 = vshll.u32 %v17521_v22, %v13354_v15 }
 0x1c4   : > { %v1898_v58 = vshrl.u32 %v17527_v55, %v1895_v17  ;;  %vm1667_vm2 = vcmp.eq.s32.totalorder %v13474_v13, 2  ;;  %v1835_v34 = vsel %vm1833_vm1, %v1834_v4, %v13458_v14  ;;  %v1901_v18 = vshrl.u32 %v17528_v56, %v1895_v17 }
 0x1c5   : > { %v1746_v1 = vshrl.u32 %v1728_v41, %v1744_v42  ;;  %v1749_v30 = vadd.s32 127, %v1748_v25  ;;  %vm1664_vm12 = vcmp.eq.s32.totalorder %v13474_v13, 0  ;;  %v1836_v16 = vadd.s32 %v1835_v34, %v1831_v27 }
 0x1c6   : > { %v1887_v38 = vand.u32 8388607, %v1880_v29  ;;  %v1900_v0 = vshll.u32 %v17527_v55, %v13354_v15  ;;  %v1904_v47 = vshrl.u32 %v17529_v40, %v1895_v17  ;;  %vm1663_vm0 = vcmp.lt.s32.totalorder %v13474_v13, 2 }
 0x1c7   : > { %v1747_v62 = vor.u32 %v1746_v1, %v1745_v2  ;;  %v1750_v23 = vshll.u32 %v1749_v30, 23  ;;  %v1906_v10 = vshll.u32 %v17529_v40, %v13354_v15  ;;  %v1907_v59 = vshrl.u32 %v17519_v24, %v1895_v17 }
 0x1c8   : > { %vm1660_vm13 = vweird.f32 %v17549_v50  ;;  %v1837_v6 = vadd.s32 536870912, %v1836_v16  ;;  %v1899_v61 = vor.u32 %v1898_v58, %v1897_v19  ;;  %v1903_v46 = vshll.u32 %v17528_v56, %v13354_v15 }
 0x1c9   : > { %v1910_v52 = vshrl.u32 %v17513_v28, %v1895_v17  ;;  %v1751_v39 = vor.u32 4788187, %v1750_v23  ;;  %v1902_v63 = vor.u32 %v1901_v18, %v1900_v0  ;;  %v1908_v32 = vor.u32 %v1907_v59, %v1906_v10 }
 0x1ca   : > { %v1909_v3 = vshll.u32 %v17519_v24, %v13354_v15  ;;  %v1838_v49 = vshrl.u32 %v1837_v6, 30  ;;  %v1888_v60 = vor.u32 8388608, %v1887_v38  ;;  %v1905_v37 = vor.u32 %v1904_v47, %v1903_v46  ;;  %v10538_v9 = vpop.eup %10537 }
 0x1cb   : > { %vm1912_vm4 = vcmp.lt.s32.totalorder %v13462_v5, 1  ;;  %vm2099_vm3 = vcmp.gt.s32.totalorder %v13471_v12, 0  ;;  %v1752_v36 = vand.u32 2147483647, %v1751_v39  ;;  %v1754_v14 = vcvt.s32.f32 %v1747_v62  ;;  %v10540_v17 = vpop.eup %10539 }
 0x1cc   : > { %v1911_v44 = vor.u32 %v1910_v52, %v1909_v3  ;;  %vm1913_vm6 = vcmp.lt.s32.totalorder %v13462_v5, 2  ;;  %v1668_v41 = vxor.u32 2147483648, %v10538_v9  ;;  %v1839_v33 = vshll.u32 %v1838_v49, 30 }
 0x1cd   : > { %vm1914_vm5 = vcmp.lt.s32.totalorder %v13462_v5, 3  ;;  %vm1915_vm11 = vcmp.lt.s32.totalorder %v13462_v5, 4  ;;  %v1665_v15 = vxor.u32 2147483648, %v10540_v17  ;;  %v1755_v42 = vmul.f32 %v1754_v14, %v1752_v36 }
 0x1ce   : > { %v1920_v25 = vsel %vm1912_vm4, %v1899_v61, %v1902_v63  ;;  %v1921_v27 = vsel %vm1915_vm11, %v1908_v32, 920167782  ;;  %v1669_v4 = vsel %vm1667_vm2, %v1668_v41, %v10540_v17  ;;  %v13519_v2 = vsub.s32 %v1836_v16, %v1839_v33 }
 0x1cf   : > { %v1916_v19 = vsel %vm1912_vm4, %v1896_v26, %v1899_v61  ;;  %v1922_v58 = vsel %vm1914_vm5, %v1905_v37, %v1921_v27  ;;  %v1666_v1 = vsel %vm1664_vm12, %v10538_v9, %v1665_v15  ;;  %v1756_v30 = vxor.u32 2147483648, %v1755_v42 }
 0x1d0   : > { %v1862_v34 = vsub.s32 4, %v1838_v49  ;;  %v1917_v18 = vsel %vm1915_vm11, %v1905_v37, 2102212464  ;;  %v1670_v38 = vsel %vm1663_vm0, %v1666_v1, %v1669_v4  ;;  %v1842_v16 = vsub.s32 0, %v13519_v2 }
 0x1d1   : > { %v1923_v0 = vsel %vm1913_vm6, %v1920_v25, %v1922_v58  ;;  %v1924_v26 = vsel %vm1912_vm4, %v1902_v63, %v1905_v37  ;;  %v1671_v47 = vsel %vm1660_vm13, nan, %v1670_v38  ;;  %v1757_v62 = vsel %vm1674_vm8, %v1756_v30, %v1755_v42 }
 0x1d2   : > { %v1925_v23 = vsel %vm1915_vm11, %v1911_v44, 1326507024  ;;  %v1928_v10 = vshll.u32 %v1888_v60, 8  ;;  %2392 = vrot.lane.b32.xlu1 %v1671_v47, %s11879_s24  ;;  %v1760_v13 = vsel %vm13407_vm10, %v17554_v31, %v1757_v62  ;;  %v9733_v59 = vmin.u32 %v1842_v16, %v13519_v2  ;;  %v2774_v47 = vld [vmem:[%s17453_s8 + $0x8] sm:$0xff] }
 0x1d3   : > { %v1918_v6 = vsel %vm1914_vm5, %v1902_v63, %v1917_v18  ;;  %v1926_v50 = vsel %vm1914_vm5, %v1908_v32, %v1925_v23  ;;  %10541 = vcosq.f32 %v1760_v13  ;;  %vm1778_vm8 = vcmp.lt.s32.totalorder %v17557_v11, 0 }
 0x1d4   : > { %v1927_v61 = vsel %vm1913_vm6, %v1924_v26, %v1926_v50  ;;  %v13553_v46 = vmul.u32.u64.low %v1928_v10, %v1923_v0  ;;  %v13554_v52 = vmul.u32.u64.high %v1928_v10, %v1923_v0, %v13553_v46  ;;  %10543 = vsinq.f32 %v1760_v13 }
 0x1d5   : > { %v1844_v57 = vclz %v9733_v59  ;;  %vm2203_vm10 = vcmp.gt.s32.totalorder %v13466_v7, 0  ;;  %v1863_v39 = vsel %vm1778_vm8, %v1862_v34, %v1838_v49  ;;  %v13567_v32 = vsel %vm2099_vm3, %v13471_v12, 0 }
 0x1d6   : > { %v13561_v63 = vmul.u32.u64.low %v1928_v10, %v1927_v61  ;;  %v13562_v3 = vmul.u32.u64.high %v1928_v10, %v1927_v61, %v13561_v63  ;;  %v13570_v60 = vand.u32 3, %v13478_v45  ;;  %v1919_v9 = vsel %vm1913_vm6, %v1916_v19, %v1918_v6 }
 0x1d7   : > { %v9734_v37 = vadd.s32 4294967294, %v1844_v57  ;;  %v1999_v36 = vsub.s32 32, %v13351_v21  ;;  %vm13577_vm7 = vcmp.le.f32.partialorder %v1776_v43, 0.7853982  ;;  %v1938_v14 = vadd.s32 1, %v13554_v52  ;;  %v2773_v57 = vld [vmem:[%s17453_s8] sm:$0xff] }
 0x1d8   : > { %v13583_v12 = vshrl.u32 %v13323_v35, 5  ;;  %v13586_v45 = vsel %vm2203_vm10, %v13466_v7, 0  ;;  %v1865_v5 = vsel %vm13577_vm7, 0, %v1863_v39  ;;  %v13591_v44 = vand.u32 31, %v13567_v32 }
 0x1d9   : > { %vm9735_vm14 = vcmp.lt.s32.totalorder %v9734_v37, 0  ;;  %v1935_v43 = vmul.u32 %v1928_v10, %v1919_v9  ;;  %vm1937_vm15 = vc.u32 %v13562_v3, %v13553_v46  ;;  %vm1771_vm9 = vcmp.eq.s32.totalorder %v13570_v60, 2 }
 0x1da   : > { %v1847_v17 = vsel %vm9735_vm14, 0, %v9734_v37  ;;  %v1832_v35 = vadd.s32 %v13457_v8, %v13455_v51  ;;  %v1939_v33 = vsel %vm1937_vm15, %v1938_v14, %v13554_v52  ;;  %vm1768_vm1 = vcmp.eq.s32.totalorder %v13570_v60, 0  ;;  %v2776_v8 = vld [vmem:[%s17453_s8 + $0x18] sm:$0xff] }
 0x1db   : > { %v1848_v41 = vsub.s32 32, %v1847_v17  ;;  %v1852_v7 = vsub.s32 4294967266, %v1847_v17  ;;  %v13600_v15 = vadd.s32 3, %v1865_v5  ;;  %v1940_v42 = vadd.s32 %v1939_v33, %v1935_v43  ;;  %10133 = vmatprep.subr.mxu1 %v2776_v8 }
 0x1dc   : > { %v1984_v25 = vand.u32 2147483647, %v12145_v53  ;;  %v2002_v27 = vshrl.u32 %v17527_v55, %v1999_v36  ;;  %vm1767_vm2 = vcmp.lt.s32.totalorder %v13570_v60, 2  ;;  %v1849_v4 = vshll.u32 %v13519_v2, %v1847_v17  ;;  %v2775_v2 = vld [vmem:[%s17453_s8 + $0x10] sm:$0xff]  ;;  %10134 = vmatpush3.msra.mxu1 %v2776_v8 }
 0x1dd   : > { %v1850_v19 = vshrl.u32 %v1832_v35, %v1848_v41  ;;  %v1853_v58 = vadd.s32 127, %v1852_v7  ;;  %v2005_v51 = vshrl.u32 %v17528_v56, %v1999_v36  ;;  %vm1764_vm12 = vweird.f32 %v17554_v31  ;;  %10135 = vmatprep.subr.mxu1 %v2775_v2 }
 0x1de   : > { %v1941_v1 = vadd.s32 536870912, %v1940_v42  ;;  %v13612_v30 = vshrl.u32 %v17521_v22, %v1999_v36  ;;  %v2001_v34 = vshll.u32 %v17521_v22, %v13351_v21  ;;  %v2008_v18 = vshrl.u32 %v17529_v40, %v1999_v36  ;;  %10136 = vmatpush3.msra.mxu1 %v2775_v2 }
 0x1df   : > { %v1851_v38 = vor.u32 %v1850_v19, %v1849_v4  ;;  %v1854_v16 = vshll.u32 %v1853_v58, 23  ;;  %v2004_v0 = vshll.u32 %v17527_v55, %v13351_v21  ;;  %v2011_v26 = vshrl.u32 %v17519_v24, %v1999_v36  ;;  %10137 = vmatprep.subr.mxu1 %v2774_v47 }
 0x1e0   : > { %v13626_v62 = vshrl.u32 %v1941_v1, 30  ;;  %v1991_v23 = vand.u32 8388607, %v1984_v25  ;;  %v2007_v10 = vshll.u32 %v17528_v56, %v13351_v21  ;;  %v2014_v13 = vshrl.u32 %v17513_v28, %v1999_v36  ;;  %v10542_v59 = vpop.eup %10541  ;;  %10138 = vmatpush3.msra.mxu1 %v2774_v47 }
 0x1e1   : > { %v1855_v6 = vor.u32 4788187, %v1854_v16  ;;  %v2003_v50 = vor.u32 %v2002_v27, %v2001_v34  ;;  %v2006_v61 = vor.u32 %v2005_v51, %v2004_v0  ;;  %v2010_v52 = vshll.u32 %v17529_v40, %v13351_v21  ;;  %v10544_v39 = vpop.eup %10543  ;;  %v13646_v27 = vpop.permute.xlu0 %2438  ;;  %10139 = vmatprep.subr.mxu1 %v2773_v57 }
 0x1e2   : > { %v1772_v63 = vxor.u32 2147483648, %v10542_v59  ;;  %v1943_v37 = vshll.u32 %v13626_v62, 30  ;;  %v2009_v9 = vor.u32 %v2008_v18, %v2007_v10  ;;  %v2013_v36 = vshll.u32 %v17519_v24, %v13351_v21  ;;  %10140 = vmatpush3.msra.mxu1 %v2773_v57  ;;  %v13660_v18 = vpop.permute.xlu1 %2440 }
 0x1e3   : > { %v1769_v14 = vxor.u32 2147483648, %v10544_v39  ;;  %v1856_v5 = vand.u32 2147483647, %v1855_v6  ;;  %v1858_v17 = vcvt.s32.f32 %v1851_v38  ;;  %v2012_v43 = vor.u32 %v2011_v26, %v2010_v52 }
 0x1e4   : > { %v1773_v35 = vsel %vm1771_vm9, %v1772_v63, %v10544_v39  ;;  %vm1882_vm0 = vcmp.lt.s32.totalorder %v12148_v54, 0  ;;  %v13644_v41 = vsub.s32 %v1940_v42, %v1943_v37  ;;  %v1992_v7 = vor.u32 8388608, %v1991_v23 }
 0x1e5   : > { %v2015_v33 = vor.u32 %v2014_v13, %v2013_v36  ;;  %v1770_v21 = vsel %vm1768_vm1, %v10542_v59, %v1769_v14  ;;  %v1859_v4 = vmul.f32 %v1858_v17, %v1856_v5  ;;  %vm2016_vm13 = vcmp.lt.s32.totalorder %v13583_v12, 1  ;;  %v13679_v59 = vpop.permute.xlu0 %2442 }
 0x1e6   : > { %vm2019_vm4 = vcmp.lt.s32.totalorder %v13583_v12, 4  ;;  %v1774_v19 = vsel %vm1767_vm2, %v1770_v21, %v1773_v35  ;;  %v1946_v42 = vsub.s32 0, %v13644_v41  ;;  %vm2018_vm3 = vcmp.lt.s32.totalorder %v13583_v12, 3 }
 0x1e7   : > { %v2021_v58 = vsel %vm2019_vm4, %v2009_v9, 2102212464  ;;  %v1775_v51 = vsel %vm1764_vm12, nan, %v1774_v19  ;;  %v1860_v8 = vxor.u32 2147483648, %v1859_v4  ;;  %v2024_v1 = vsel %vm2016_vm13, %v2003_v50, %v2006_v61 }
 0x1e8   : > { %v2025_v34 = vsel %vm2019_vm4, %v2012_v43, 920167782  ;;  %2394 = vrot.lane.b32.xlu0 %v1775_v51, %s11879_s24  ;;  %v9737_v60 = vmin.u32 %v1946_v42, %v13644_v41  ;;  %v2028_v38 = vsel %vm2016_vm13, %v2006_v61, %v2009_v9  ;;  %v2029_v16 = vsel %vm2019_vm4, %v2015_v33, 1326507024 }
 0x1e9   : > { %v2026_v2 = vsel %vm2018_vm3, %v2009_v9, %v2025_v34  ;;  %v1861_v31 = vsel %vm1778_vm8, %v1860_v8, %v1859_v4  ;;  %v1966_v0 = vsub.s32 4, %v13626_v62  ;;  %vm2017_vm6 = vcmp.lt.s32.totalorder %v13583_v12, 2  ;;  %v13725_v21 = vpop.permute.xlu0 %2446 }
 0x1ea   : > { %v2030_v26 = vsel %vm2018_vm3, %v2012_v43, %v2029_v16  ;;  %v1864_v47 = vsel %vm13577_vm7, %v17557_v11, %v1861_v31  ;;  %v1948_v23 = vclz %v9737_v60  ;;  %v2027_v10 = vsel %vm2017_vm6, %v2024_v1, %v2026_v2 }
 0x1eb   : > { %v2032_v13 = vshll.u32 %v1992_v7, 8  ;;  %10545 = vcosq.f32 %v1864_v47  ;;  %v2020_v6 = vsel %vm2016_vm13, %v13612_v30, %v2003_v50  ;;  %v2022_v52 = vsel %vm2018_vm3, %v2006_v61, %v2021_v58  ;;  %v13699_v50 = vpop.permute.xlu1 %2444 }
 0x1ec   : > { %v2031_v57 = vsel %vm2017_vm6, %v2028_v38, %v2030_v26  ;;  %10547 = vsinq.f32 %v1864_v47  ;;  %v9738_v49 = vadd.s32 4294967294, %v1948_v23  ;;  %v1967_v37 = vsel %vm1882_vm0, %v1966_v0, %v13626_v62 }
 0x1ed   : > { %v13688_v39 = vmul.u32.u64.low %v2032_v13, %v2031_v57  ;;  %v13689_v63 = vmul.u32.u64.high %v2032_v13, %v2031_v57, %v13688_v39  ;;  %v13694_v9 = vmul.u32.u64.low %v2032_v13, %v2027_v10  ;;  %v13695_v36 = vmul.u32.u64.high %v2032_v13, %v2027_v10, %v13694_v9 }
 0x1ee   : > { %v2088_v30 = vand.u32 2147483647, %v17551_v20  ;;  %v13702_v61 = vsub.s32 32, %v13591_v44  ;;  %v13705_v14 = vand.u32 3, %v13600_v15  ;;  %vm9739_vm5 = vcmp.lt.s32.totalorder %v9738_v49, 0 }
 0x1ef   : > { %v2023_v5 = vsel %vm2017_vm6, %v2020_v6, %v2022_v52  ;;  %v13710_v62 = vand.u32 31, %v13586_v45  ;;  %v13713_v17 = vshrl.u32 %v13567_v32, 5  ;;  %vm13717_vm11 = vcmp.le.f32.partialorder %v1880_v29, 0.7853982  ;;  %v13746_v34 = vpop.permute.xlu1 %2448  ;;  %v13761_v6 = vpop.permute.xlu0 %2450 }
 0x1f0   : > { %v1951_v35 = vsel %vm9739_vm5, 0, %v9738_v49  ;;  %v1936_v15 = vadd.s32 %v13553_v46, %v13562_v3  ;;  %v1969_v12 = vsel %vm13717_vm11, 0, %v1967_v37  ;;  %v2039_v4 = vmul.u32 %v2032_v13, %v2023_v5 }
 0x1f1   : > { %v1952_v7 = vsub.s32 32, %v1951_v35  ;;  %v1956_v33 = vsub.s32 4294967266, %v1951_v35  ;;  %vm2041_vm8 = vc.u32 %v13689_v63, %v13694_v9  ;;  %v2042_v29 = vadd.s32 1, %v13695_v36 }
 0x1f2   : > { %v13732_v32 = vand.u32 8388607, %v2088_v30  ;;  %vm1875_vm10 = vcmp.eq.s32.totalorder %v13705_v14, 2  ;;  %v1953_v46 = vshll.u32 %v13644_v41, %v1951_v35  ;;  %v2106_v42 = vshrl.u32 %v17527_v55, %v13702_v61 }
 0x1f3   : > { %v1954_v3 = vshrl.u32 %v1936_v15, %v1952_v7  ;;  %v1957_v19 = vadd.s32 127, %v1956_v33  ;;  %vm1872_vm7 = vcmp.eq.s32.totalorder %v13705_v14, 0  ;;  %v13739_v58 = vadd.s32 3, %v1969_v12 }
 0x1f4   : > { %v2043_v51 = vsel %vm2041_vm8, %v2042_v29, %v13695_v36  ;;  %v2109_v8 = vshrl.u32 %v17528_v56, %v13702_v61  ;;  %v2112_v1 = vshrl.u32 %v17529_v40, %v13702_v61  ;;  %vm1871_vm14 = vcmp.lt.s32.totalorder %v13705_v14, 2 }
 0x1f5   : > { %v1955_v41 = vor.u32 %v1954_v3, %v1953_v46  ;;  %v1958_v60 = vshll.u32 %v1957_v19, 23  ;;  %v2044_v2 = vadd.s32 %v2043_v51, %v2039_v4  ;;  %v2105_v38 = vshll.u32 %v17521_v22, %v13591_v44  ;;  %v13771_v4 = vpop.permute.xlu1 %2452 }
 0x1f6   : > { %vm1868_vm15 = vweird.f32 %v17557_v11  ;;  %v2108_v16 = vshll.u32 %v17527_v55, %v13591_v44  ;;  %v2111_v31 = vshll.u32 %v17528_v56, %v13591_v44  ;;  %v2114_v0 = vshll.u32 %v17529_v40, %v13591_v44 }
 0x1f7   : > { %v2115_v26 = vshrl.u32 %v17519_v24, %v13702_v61  ;;  %v1959_v47 = vor.u32 4788187, %v1958_v60  ;;  %v2045_v23 = vadd.s32 536870912, %v2044_v2  ;;  %v2096_v10 = vor.u32 8388608, %v13732_v32  ;;  %v13786_v60 = vpop.permute.xlu0 %2454 }
 0x1f8   : > { %v2107_v13 = vor.u32 %v2106_v42, %v2105_v38  ;;  %v2110_v52 = vor.u32 %v2109_v8, %v2108_v16  ;;  %v2113_v57 = vor.u32 %v2112_v1, %v2111_v31  ;;  %v2118_v39 = vshrl.u32 %v17513_v28, %v13702_v61  ;;  %v10546_v37 = vpop.eup %10545 }
 0x1f9   : > { %v2116_v49 = vor.u32 %v2115_v26, %v2114_v0  ;;  %v1960_v36 = vand.u32 2147483647, %v1959_v47  ;;  %v1962_v5 = vcvt.s32.f32 %v1955_v41  ;;  %v2046_v35 = vshrl.u32 %v2045_v23, 30  ;;  %v10548_v15 = vpop.eup %10547 }
 0x1fa   : > { %vm2123_vm9 = vcmp.lt.s32.totalorder %v13713_v17, 4  ;;  %v1876_v7 = vxor.u32 2147483648, %v10546_v37  ;;  %v2117_v33 = vshll.u32 %v17519_v24, %v13591_v44  ;;  %vm2120_vm1 = vcmp.lt.s32.totalorder %v13713_v17, 1 }
 0x1fb   : > { %v2129_v12 = vsel %vm2123_vm9, %v2116_v49, 920167782  ;;  %v1873_v29 = vxor.u32 2147483648, %v10548_v15  ;;  %v1963_v32 = vmul.f32 %v1962_v5, %v1960_v36  ;;  %v2047_v46 = vshll.u32 %v2046_v35, 30 }
 0x1fc   : > { %vm2122_vm2 = vcmp.lt.s32.totalorder %v13713_v17, 3  ;;  %v1877_v3 = vsel %vm1875_vm10, %v1876_v7, %v10548_v15  ;;  %v2119_v19 = vor.u32 %v2118_v39, %v2117_v33  ;;  %v2128_v42 = vsel %vm2120_vm1, %v2107_v13, %v2110_v52  ;;  %v13823_v7 = vpop.permute.xlu0 %2458 }
 0x1fd   : > { %v2130_v44 = vsel %vm2122_vm2, %v2113_v57, %v2129_v12  ;;  %v1874_v51 = vsel %vm1872_vm7, %v10546_v37, %v1873_v29  ;;  %v1964_v8 = vxor.u32 2147483648, %v1963_v32  ;;  %v13782_v1 = vsub.s32 %v2044_v2, %v2047_v46 }
 0x1fe   : > { %v2104_v41 = vshrl.u32 %v17521_v22, %v13702_v61  ;;  %v1878_v38 = vsel %vm1871_vm14, %v1874_v51, %v1877_v3  ;;  %vm2121_vm12 = vcmp.lt.s32.totalorder %v13713_v17, 2  ;;  %v2125_v16 = vsel %vm2123_vm9, %v2113_v57, 2102212464 }
 0x1ff   : > { %v2132_v31 = vsel %vm2120_vm1, %v2110_v52, %v2113_v57  ;;  %v1879_v2 = vsel %vm1868_vm15, nan, %v1878_v38  ;;  %v1965_v0 = vsel %vm1882_vm0, %v1964_v8, %v1963_v32  ;;  %v2050_v61 = vsub.s32 0, %v13782_v1  ;;  %v13810_v57 = vpop.permute.xlu1 %2456 }
 0x200   : > { %v2131_v14 = vsel %vm2121_vm12, %v2128_v42, %v2130_v44  ;;  %2396 = vrot.lane.b32.xlu1 %v1879_v2, %s11879_s24  ;;  %v1968_v26 = vsel %vm13717_vm11, %v12148_v54, %v1965_v0  ;;  %v2124_v47 = vsel %vm2120_vm1, %v2104_v41, %v2107_v13  ;;  %v2133_v11 = vsel %vm2123_vm9, %v2119_v19, 1326507024 }
 0x201   : > { %v2136_v23 = vshll.u32 %v2096_v10, 8  ;;  %10549 = vcosq.f32 %v1968_v26  ;;  %v9741_v39 = vmin.u32 %v2050_v61, %v13782_v1  ;;  %v2126_v37 = vsel %vm2122_vm2, %v2110_v52, %v2125_v16 }
 0x202   : > { %v2134_v36 = vsel %vm2122_vm2, %v2116_v49, %v2133_v11  ;;  %10551 = vsinq.f32 %v1968_v26  ;;  %v2070_v15 = vsub.s32 4, %v2046_v35  ;;  %v2207_v33 = vsub.s32 32, %v13710_v62 }
 0x203   : > { %v2135_v43 = vsel %vm2121_vm12, %v2132_v31, %v2134_v36  ;;  %v13819_v13 = vmul.u32.u64.low %v2136_v23, %v2131_v14  ;;  %v13820_v5 = vmul.u32.u64.high %v2136_v23, %v2131_v14, %v13819_v13  ;;  %v2052_v10 = vclz %v9741_v39  ;;  %v13837_v19 = vpop.permute.xlu1 %2460 }
 0x204   : > { %v13827_v12 = vand.u32 3, %v13739_v58  ;;  %v13829_v52 = vmul.u32.u64.low %v2136_v23, %v2135_v43  ;;  %v13830_v29 = vmul.u32.u64.high %v2136_v23, %v2135_v43, %v13829_v52  ;;  %v2127_v32 = vsel %vm2121_vm12, %v2124_v47, %v2126_v37 }
 0x205   : > { %v9742_v49 = vadd.s32 4294967294, %v2052_v10  ;;  %v2192_v46 = vand.u32 2147483647, %v17550_v48  ;;  %vm1986_vm0 = vcmp.lt.s32.totalorder %v12145_v53, 0  ;;  %v2146_v3 = vadd.s32 1, %v13820_v5 }
 0x206   : > { %v13840_v42 = vshrl.u32 %v13586_v45, 5  ;;  %v2040_v58 = vadd.s32 %v13694_v9, %v13689_v63  ;;  %v13846_v44 = vsel %vm1986_vm0, %v2070_v15, %v2046_v35  ;;  %vm1979_vm4 = vcmp.eq.s32.totalorder %v13827_v12, 2  ;;  %v13860_v35 = vpop.permute.xlu0 %2462 }
 0x207   : > { %vm9743_vm13 = vcmp.lt.s32.totalorder %v9742_v49, 0  ;;  %v2143_v51 = vmul.u32 %v2136_v23, %v2127_v32  ;;  %vm2145_vm3 = vc.u32 %v13830_v29, %v13819_v13  ;;  %v13852_v8 = vshrl.u32 %v17521_v22, %v2207_v33  ;;  %v13875_v39 = vpop.permute.xlu1 %2464 }
 0x208   : > { %v2055_v17 = vsel %vm9743_vm13, 0, %v9742_v49  ;;  %vm1976_vm6 = vcmp.eq.s32.totalorder %v13827_v12, 0  ;;  %v2147_v63 = vsel %vm2145_vm3, %v2146_v3, %v13820_v5  ;;  %v13858_v9 = vand.u32 8388607, %v2192_v46 }
 0x209   : > { %v2056_v45 = vsub.s32 32, %v2055_v17  ;;  %v2060_v41 = vsub.s32 4294967266, %v2055_v17  ;;  %vm1975_vm5 = vcmp.lt.s32.totalorder %v13827_v12, 2  ;;  %v2148_v38 = vadd.s32 %v2147_v63, %v2143_v51 }
 0x20a   : > { %v2209_v16 = vshll.u32 %v17521_v22, %v13710_v62  ;;  %v2210_v31 = vshrl.u32 %v17527_v55, %v2207_v33  ;;  %v2213_v2 = vshrl.u32 %v17528_v56, %v2207_v33  ;;  %vm1972_vm11 = vweird.f32 %v12148_v54 }
 0x20b   : > { %v2057_v0 = vshll.u32 %v13782_v1, %v2055_v17  ;;  %v2058_v61 = vshrl.u32 %v2040_v58, %v2056_v45  ;;  %v2061_v14 = vadd.s32 127, %v2060_v41  ;;  %v2216_v26 = vshrl.u32 %v17529_v40, %v2207_v33 }
 0x20c   : > { %v2149_v47 = vadd.s32 536870912, %v2148_v38  ;;  %v2212_v11 = vshll.u32 %v17527_v55, %v13710_v62  ;;  %v2215_v23 = vshll.u32 %v17528_v56, %v13710_v62  ;;  %v2219_v22 = vshrl.u32 %v17519_v24, %v2207_v33 }
 0x20d   : > { %v2059_v37 = vor.u32 %v2058_v61, %v2057_v0  ;;  %v2062_v36 = vshll.u32 %v2061_v14, 23  ;;  %v2200_v43 = vor.u32 8388608, %v13858_v9  ;;  %v2222_v1 = vshrl.u32 %v17513_v28, %v2207_v33  ;;  %v2375_v33 = vpop.permute.xlu0 %2374 }
 0x20e   : > { %v10550_v5 = vpop.eup %10549  ;;  %v13879_v10 = vshrl.u32 %v2149_v47, 30  ;;  %v2211_v15 = vor.u32 %v2210_v31, %v2209_v16  ;;  %v2214_v52 = vor.u32 %v2213_v2, %v2212_v11  ;;  %v2218_v55 = vshll.u32 %v17529_v40, %v13710_v62 }
 0x20f   : > { %v10552_v49 = vpop.eup %10551  ;;  %v1980_v56 = vxor.u32 2147483648, %v10550_v5  ;;  %vm13885_vm8 = vcmp.le.f32.partialorder %v1984_v25, 0.7853982  ;;  %v2063_v3 = vor.u32 4788187, %v2062_v36  ;;  %v2217_v58 = vor.u32 %v2216_v26, %v2215_v23 }
 0x210   : > { %v2221_v28 = vshll.u32 %v17519_v24, %v13710_v62  ;;  %v1977_v17 = vxor.u32 2147483648, %v10552_v49  ;;  %v2151_v51 = vshll.u32 %v13879_v10, 30  ;;  %v2220_v45 = vor.u32 %v2219_v22, %v2218_v55  ;;  %v13901_v24 = vpop.permute.xlu1 %2376 }
 0x211   : > { %vm2224_vm10 = vcmp.lt.s32.totalorder %v13840_v42, 1  ;;  %v1981_v40 = vsel %vm1979_vm4, %v1980_v56, %v10552_v49  ;;  %v2064_v41 = vand.u32 2147483647, %v2063_v3  ;;  %v2066_v25 = vcvt.s32.f32 %v2059_v37  ;;  %v2379_v23 = vpop.permute.xlu0 %2378 }
 0x212   : > { %v2223_v63 = vor.u32 %v2222_v1, %v2221_v28  ;;  %v1978_v9 = vsel %vm1976_vm6, %v10550_v5, %v1977_v17  ;;  %v13897_v16 = vsub.s32 %v2148_v38, %v2151_v51  ;;  %vm2225_vm7 = vcmp.lt.s32.totalorder %v13840_v42, 2 }
 0x213   : > { %vm2227_vm14 = vcmp.lt.s32.totalorder %v13840_v42, 4  ;;  %v1982_v62 = vsel %vm1975_vm5, %v1978_v9, %v1981_v40  ;;  %v2067_v31 = vmul.f32 %v2066_v25, %v2064_v41  ;;  %vm2226_vm15 = vcmp.lt.s32.totalorder %v13840_v42, 3  ;;  %v2343_v40 = vld [vmem:[%s13921_s17 + $0x8] sm:$0xff]  ;;  %v2520_v9 = vld [vmem:[%s17452_s7] sm:$0xff] }
 0x214   : > { %v2229_v2 = vsel %vm2227_vm14, %v2217_v58, 2102212464  ;;  %v1983_v0 = vsel %vm1972_vm11, nan, %v1982_v62  ;;  %v2154_v38 = vsub.s32 0, %v13897_v16  ;;  %v2232_v61 = vsel %vm2224_vm10, %v2211_v15, %v2214_v52  ;;  %v2381_v56 = vpop.permute.xlu1 %2380  ;;  %v2345_v62 = vld [vmem:[%s13921_s17 + $0x18] sm:$0xff] }
 0x215   : > { %v2233_v14 = vsel %vm2227_vm14, %v2220_v45, 920167782  ;;  %2398 = vrot.lane.b32.xlu0 %v1983_v0, %s11879_s24  ;;  %v2068_v26 = vxor.u32 2147483648, %v2067_v31  ;;  %v2236_v47 = vsel %vm2224_vm10, %v2214_v52, %v2217_v58  ;;  %v2237_v11 = vsel %vm2227_vm14, %v2223_v63, 1326507024  ;;  %v2383_v41 = vpop.permute.xlu0 %2382  ;;  %v2344_v63 = vld [vmem:[%s13921_s17 + $0x10] sm:$0xff] }
 0x216   : > { %v2234_v12 = vsel %vm2226_vm15, %v2217_v58, %v2233_v14  ;;  %v9745_v54 = vmin.u32 %v2154_v38, %v13897_v16  ;;  %v2228_v22 = vsel %vm2224_vm10, %v13852_v8, %v2211_v15  ;;  %v2230_v37 = vsel %vm2226_vm15, %v2214_v52, %v2229_v2 }
 0x217   : > { %v2238_v36 = vsel %vm2226_vm15, %v2220_v45, %v2237_v11  ;;  %v2069_v1 = vsel %vm1986_vm0, %v2068_v26, %v2067_v31  ;;  %v2235_v5 = vsel %vm2225_vm7, %v2232_v61, %v2234_v12  ;;  %v2240_v49 = vshll.u32 %v2200_v43, 8  ;;  %v2342_v43 = vld [vmem:[%s13921_s17] sm:$0xff] }
 0x218   : > { %v2239_v55 = vsel %vm2225_vm7, %v2236_v47, %v2238_v36  ;;  %v2072_v8 = vsel %vm13885_vm8, %v12145_v53, %v2069_v1  ;;  %v2073_v15 = vsel %vm13885_vm8, 0, %v13846_v44  ;;  %v2156_v52 = vclz %v9745_v54  ;;  %v2521_v44 = vld [vmem:[%s17452_s7 + $0x8] sm:$0x1f]  ;;  %v2346_v61 = vld [vmem:[%s13921_s17 + $0x20] sm:$0xff]  ;;  %v2385_v14 = vpop.permute.xlu1 %2384  ;;  %v2348_v1 = vld [vmem:[%s13921_s17 + $0x30] sm:$0xff] }
 0x219   : > { %10553 = vcosq.f32 %v2072_v8  ;;  %v2231_v3 = vsel %vm2225_vm7, %v2228_v22, %v2230_v37  ;;  %v13945_v58 = vmul.u32.u64.low %v2240_v49, %v2239_v55  ;;  %v13946_v28 = vmul.u32.u64.high %v2240_v49, %v2239_v55, %v13945_v58  ;;  %v2387_v36 = vpop.permute.xlu0 %2386 }
 0x21a   : > { %10555 = vsinq.f32 %v2072_v8  ;;  %v9746_v17 = vadd.s32 4294967294, %v2156_v52  ;;  %v13949_v51 = vmul.u32.u64.low %v2240_v49, %v2235_v5  ;;  %v13950_v45 = vmul.u32.u64.high %v2240_v49, %v2235_v5, %v13949_v51 }
 0x21b   : > { %v2077_v32 = vadd.s32 3, %v2073_v15  ;;  %v2144_v42 = vadd.s32 %v13819_v13, %v13830_v29  ;;  %vm2486_vm9 = vcmask 39936   ;;  %vm2578_vm2 = vcmask 1044480  }
 0x21c   : > { %vm9747_vm1 = vcmp.lt.s32.totalorder %v9746_v17, 0  ;;  %v2487_v25 = vsel %vm2486_vm9, %v2342_v43, %v2375_v33  ;;  %vm2503_vm12 = vcmask 97280   ;;  %v2247_v2 = vmul.u32 %v2240_v49, %v2231_v3  ;;  %10105 = vmatprep.subr.msk.mxu0 %vm2578_vm2, %v2521_v44  ;;  %v2389_v58 = vpop.permute.xlu1 %2388  ;;  %v2349_v43 = vld [vmem:[%s13921_s17 + $0x38] sm:$0xff] }
 0x21d   : > { %v2159_v31 = vsel %vm9747_vm1, 0, %v9746_v17  ;;  %vm2249_vm0 = vc.u32 %v13946_v28, %v13949_v51  ;;  %v2504_v13 = vsel %vm2503_vm12, %v2487_v25, %v13646_v27  ;;  %v2250_v38 = vadd.s32 1, %v13950_v45  ;;  %10106 = vmatpush3.msk.msra.mxu0 %vm2578_vm2, %v2521_v44 }
 0x21e   : > { %v2160_v29 = vsub.s32 32, %v2159_v31  ;;  %v2161_v33 = vshll.u32 %v13897_v16, %v2159_v31  ;;  %v2164_v0 = vsub.s32 4294967266, %v2159_v31  ;;  %vm2529_vm13 = vcmask 105472   ;;  %10107 = vmatprep.subr.mxu0 %v2520_v9 }
 0x21f   : > { %v2488_v26 = vsel %vm2486_vm9, %v2343_v40, %v13901_v24  ;;  %v2489_v12 = vsel %vm2486_vm9, %v2344_v63, %v2379_v23  ;;  %v2490_v27 = vsel %vm2486_vm9, %v2345_v62, %v2381_v56  ;;  %v2251_v16 = vsel %vm2249_vm0, %v2250_v38, %v13950_v45  ;;  %10109 = vmatprep.mubr.msk.f32.mxu0 %vm2529_vm13, %v2504_v13  ;;  %v2347_v24 = vld [vmem:[%s13921_s17 + $0x28] sm:$0xff] }
 0x220   : > { %v2162_v47 = vshrl.u32 %v2144_v42, %v2160_v29  ;;  %v2165_v11 = vadd.s32 127, %v2164_v0  ;;  %10108 = vmatpush3.msra.mxu0 %v2520_v9  ;;  %v2505_v54 = vsel %vm2503_vm12, %v2488_v26, %v13660_v18  ;;  %v2252_v22 = vadd.s32 %v2251_v16, %v2247_v2 }
 0x221   : > { %10110 = vmatmul.mubr.msk.f32.vlgmr.msra.gmra.mxu0 %vm2529_vm13, %v2505_v54  ;;  %v2491_v23 = vsel %vm2486_vm9, %v2346_v61, %v2383_v41  ;;  %v2506_v37 = vsel %vm2503_vm12, %v2489_v12, %v13679_v59  ;;  %v2507_v49 = vsel %vm2503_vm12, %v2490_v27, %v13699_v50  ;;  %v11880_v8 = vmov 0.0  }
 0x222   : > { %v2163_v5 = vor.u32 %v2162_v47, %v2161_v33  ;;  %v2166_v55 = vshll.u32 %v2165_v11, 23  ;;  %10112 = vmatprep.mubr.msk.f32.mxu0 %vm2529_vm13, %v2506_v37  ;;  %v2253_v18 = vadd.s32 536870912, %v2252_v22  ;;  %10141 = vmatprep.mubr.f32.mxu1 %v11880_v8  ;;  %v2492_v15 = vsel %vm2486_vm9, %v2347_v24, %v2385_v14  ;;  %v2350_v14 = vld [vmem:[%s13921_s17 + $0x40] sm:$0xff] }
 0x223   : > { %v2508_v52 = vsel %vm2503_vm12, %v2491_v23, %v13725_v21  ;;  %v2078_v56 = vand.u32 3, %v2077_v32  ;;  %v2493_v3 = vsel %vm2486_vm9, %v2348_v1, %v2387_v36  ;;  %10142 = vmatmul.mubr.f32.vlgmr.msra.gmra.mxu1 %v11880_v8  ;;  %v2509_v42 = vsel %vm2503_vm12, %v2492_v15, %v13746_v34 }
 0x224   : > { %v2167_v59 = vor.u32 4788187, %v2166_v55  ;;  %v13997_v17 = vshrl.u32 %v2253_v18, 30  ;;  %v2170_v44 = vcvt.s32.f32 %v2163_v5  ;;  %v2494_v41 = vsel %vm2486_vm9, %v2349_v43, %v2389_v58 }
 0x225   : > { %10113 = vmatmul.mubr.msk.f32.gmra.mxu0 %vm2529_vm13, %v2507_v49  ;;  %v2510_v25 = vsel %vm2503_vm12, %v2493_v3, %v13761_v6  ;;  %vm2083_vm4 = vcmp.eq.s32.totalorder %v2078_v56, 2  ;;  %vm2076_vm3 = vweird.f32 %v12145_v53  ;;  %vm2080_vm6 = vcmp.eq.s32.totalorder %v2078_v56, 0 }
 0x226   : > { %v10554_v50 = vpop.eup %10553  ;;  %v2168_v45 = vand.u32 2147483647, %v2167_v59  ;;  %10115 = vmatprep.mubr.msk.f32.mxu0 %vm2529_vm13, %v2508_v52  ;;  %v2255_v40 = vshll.u32 %v13997_v17, 30  ;;  %vm2079_vm5 = vcmp.lt.s32.totalorder %v2078_v56, 2  ;;  %v2511_v13 = vsel %vm2503_vm12, %v2494_v41, %v13771_v4  ;;  %v2351_v41 = vld [vmem:[%s13921_s17 + $0x48] sm:$0xff] }
 0x227   : > { %v10556_v21 = vpop.eup %10555  ;;  %v2084_v32 = vxor.u32 2147483648, %v10554_v50  ;;  %vm2090_vm11 = vcmp.lt.s32.totalorder %v17551_v20, 0  ;;  %v2174_v29 = vsub.s32 4, %v13879_v10  ;;  %vm14016_vm8 = vcmp.le.f32.partialorder %v2088_v30, 0.7853982 }
 0x228   : > { %v2081_v63 = vxor.u32 2147483648, %v10556_v21  ;;  %v2171_v9 = vmul.f32 %v2170_v44, %v2168_v45  ;;  %v2256_v31 = vsub.s32 %v2252_v22, %v2255_v40  ;;  %v2248_v22 = vadd.s32 %v13949_v51, %v13946_v28  ;;  %v11717_v44 = vld [vmem:[#allocation4] ss:$0 sm:$0xff] }
 0x229   : > { %v2085_v62 = vsel %vm2083_vm4, %v2084_v32, %v10556_v21  ;;  %10116 = vmatmul.mubr.msk.f32.gmra.mxu0 %vm2529_vm13, %v2509_v42  ;;  %v2175_v12 = vsel %vm2090_vm11, %v2174_v29, %v13879_v10  ;;  %vm2180_vm1 = vweird.f32 %v17551_v20  ;;  %vm2194_vm2 = vcmp.lt.s32.totalorder %v17550_v48, 0  ;;  %v17569_v42 = vld [vmem:[#allocation9_spill] sm:$0xff] }
 0x22a   : > { %v2082_v34 = vsel %vm2080_vm6, %v10554_v50, %v2081_v63  ;;  %v2172_v2 = vxor.u32 2147483648, %v2171_v9  ;;  %10118 = vmatprep.mubr.msk.f32.mxu0 %vm2529_vm13, %v2510_v25  ;;  %v2258_v53 = vsub.s32 0, %v2256_v31  ;;  %v2177_v16 = vsel %vm14016_vm8, 0, %v2175_v12 }
 0x22b   : > { %v2086_v6 = vsel %vm2079_vm5, %v2082_v34, %v2085_v62  ;;  %v2391_v26 = vpop.permute.xlu0 %2390  ;;  %v2181_v24 = vadd.s32 3, %v2177_v16  ;;  %v2278_v45 = vsub.s32 4, %v13997_v17  ;;  %v2340_v21 = vadd.f32 %v11717_v44, %v17569_v42  ;;  %v2355_v16 = vld [vmem:[%s13921_s17 + $0x68] sm:$0xff] }
 0x22c   : > { %v2087_v33 = vsel %vm2076_vm3, nan, %v2086_v6  ;;  %v2173_v38 = vsel %vm2090_vm11, %v2172_v2, %v2171_v9  ;;  %v9749_v61 = vmin.u32 %v2258_v53, %v2256_v31  ;;  %v2495_v27 = vsel %vm2486_vm9, %v2350_v14, %v2391_v26 }
 0x22d   : > { %2400 = vrot.lane.b32.xlu1 %v2087_v33, %s11879_s24  ;;  %v2176_v4 = vsel %vm14016_vm8, %v17551_v20, %v2173_v38  ;;  %10119 = vmatmul.mubr.msk.f32.gmra.mxu0 %vm2529_vm13, %v2511_v13  ;;  %v2512_v11 = vsel %vm2503_vm12, %v2495_v27, %v13786_v60  ;;  %v2182_v5 = vand.u32 3, %v2181_v24  ;;  %vm2193_vm0 = vcmp.le.f32.partialorder %v2192_v46, 0.7853982  ;;  %v17570_v33 = vld [vmem:[#allocation8_spill] sm:$0xff]  ;;  %v2352_v38 = vld [vmem:[%s13921_s17 + $0x50] sm:$0xff] }
 0x22e   : > { %10557 = vcosq.f32 %v2176_v4  ;;  %v2260_v30 = vclz %v9749_v61  ;;  %10121 = vmatprep.mubr.msk.f32.mxu0 %vm2529_vm13, %v2512_v11  ;;  %v2279_v20 = vsel %vm2194_vm2, %v2278_v45, %v13997_v17  ;;  %vm2284_vm5 = vweird.f32 %v17550_v48  ;;  %v2354_v27 = vld [vmem:[%s13921_s17 + $0x60] sm:$0xff] }
 0x22f   : > { %10559 = vsinq.f32 %v2176_v4  ;;  %vm2187_vm7 = vcmp.eq.s32.totalorder %v2182_v5, 2  ;;  %vm2184_vm14 = vcmp.eq.s32.totalorder %v2182_v5, 0  ;;  %vm2183_vm15 = vcmp.lt.s32.totalorder %v2182_v5, 2 }
 0x230   : > { %v9750_v47 = vadd.s32 4294967294, %v2260_v30  ;;  %v2281_v62 = vsel %vm2193_vm0, 0, %v2279_v20  ;;  %v2341_v0 = vadd.f32 %v11717_v44, %v17570_v33  ;;  %vm3314_vm11 = vcmask 1044484  }
 0x231   : > { %v2285_v46 = vadd.s32 3, %v2281_v62  ;;  %vm3317_vm8 = vcmask 1045509  }
 0x232   : > { %vm9751_vm10 = vcmp.lt.s32.totalorder %v9750_v47, 0 }
 0x233   : > { %v2263_v54 = vsel %vm9751_vm10, 0, %v9750_v47  ;;  %vm3320_vm10 = vcmask 1046534  }
 0x234   : > { %v2264_v10 = vsub.s32 32, %v2263_v54  ;;  %v2268_v23 = vsub.s32 4294967266, %v2263_v54  ;;  %v2265_v37 = vshll.u32 %v2256_v31, %v2263_v54  ;;  %v2286_v31 = vand.u32 3, %v2285_v46 }
 0x236   : > { %v2266_v36 = vshrl.u32 %v2248_v22, %v2264_v10  ;;  %v2269_v1 = vadd.s32 127, %v2268_v23  ;;  %vm2291_vm4 = vcmp.eq.s32.totalorder %v2286_v31, 2  ;;  %vm2288_vm3 = vcmp.eq.s32.totalorder %v2286_v31, 0  ;;  %v2356_v10 = vld [vmem:[%s13921_s17 + $0x70] sm:$0xff] }
 0x237   : > { %vm2287_vm6 = vcmp.lt.s32.totalorder %v2286_v31, 2 }
 0x238   : > { %v2267_v55 = vor.u32 %v2266_v36, %v2265_v37  ;;  %v2270_v49 = vshll.u32 %v2269_v1, 23  ;;  %v2357_v1 = vld [vmem:[%s13921_s17 + $0x78] sm:$0xff] }
 0x23a   : > { %v2271_v18 = vor.u32 4788187, %v2270_v49  ;;  %v2274_v59 = vcvt.s32.f32 %v2267_v55 }
 0x23b   : > { %v10558_v60 = vpop.eup %10557 }
 0x23c   : > { %v10560_v8 = vpop.eup %10559  ;;  %v2188_v15 = vxor.u32 2147483648, %v10558_v60  ;;  %v2272_v56 = vand.u32 2147483647, %v2271_v18 }
 0x23d   : > { %v2185_v52 = vxor.u32 2147483648, %v10560_v8 }
 0x23e   : > { %v2189_v3 = vsel %vm2187_vm7, %v2188_v15, %v10560_v8  ;;  %v2275_v51 = vmul.f32 %v2274_v59, %v2272_v56  ;;  %vm3323_vm7 = vcmask 1047559  }
 0x23f   : > { %v2186_v28 = vsel %vm2184_vm14, %v10558_v60, %v2185_v52 }
 0x240   : > { %v2190_v58 = vsel %vm2183_vm15, %v2186_v28, %v2189_v3  ;;  %v2276_v50 = vxor.u32 2147483648, %v2275_v51 }
 0x241   : > { %v2191_v43 = vsel %vm2180_vm1, nan, %v2190_v58  ;;  %vm2777_vm1 = vcmask 261120  }
 0x242   : > { %2402 = vrot.lane.b32.xlu0 %v2191_v43, %s11879_s24  ;;  %v2277_v32 = vsel %vm2194_vm2, %v2276_v50, %v2275_v51 }
 0x243   : > { %v2280_v40 = vsel %vm2193_vm0, %v17550_v48, %v2277_v32  ;;  %v2353_v48 = vld [vmem:[%s13921_s17 + $0x58] sm:$0xff]  ;;  %s9685_s17 = sshll.u32 %s17582_s6, 3  ;;  %vm3416_vm0 = vcmask 523264   ;;  %s11885_s6 = smov [#allocation5]  }
 0x244   : > { %10561 = vcosq.f32 %v2280_v40  ;;  %v2393_v25 = vpop.permute.xlu1 %2392  ;;  %s14316_s18 = scalar_lea.vmem %s17448_s2, %s9685_s17  ;;  %s17493_s17 = smov 96  }
 0x245   : > { %10563 = vsinq.f32 %v2280_v40  ;;  %v2496_v63 = vsel %vm2486_vm9, %v2351_v41, %v2393_v25 }
 0x246   : > { %2466 = vrot.lane.b32.xlu0 %v2340_v21, %s11872_s27  ;;  %v2513_v9 = vsel %vm2503_vm12, %v2496_v63, %v13810_v57 }
 0x247   : > { %10122 = vmatmul.mubr.msk.f32.gmra.mxu0 %vm2529_vm13, %v2513_v9 }
 0x251   : > { %v10562_v34 = vpop.eup %10561 }
 0x252   : > { %v10564_v2 = vpop.eup %10563  ;;  %v2292_v13 = vxor.u32 2147483648, %v10562_v34 }
 0x253   : > { %v2289_v6 = vxor.u32 2147483648, %v10564_v2 }
 0x254   : > { %v2293_v17 = vsel %vm2291_vm4, %v2292_v13, %v10564_v2 }
 0x255   : > { %v2290_v29 = vsel %vm2288_vm3, %v10562_v34, %v2289_v6 }
 0x256   : > { %v2294_v57 = vsel %vm2287_vm6, %v2290_v29, %v2293_v17 }
 0x257   : > { %v2295_v53 = vsel %vm2284_vm5, nan, %v2294_v57 }
 0x258   : > { %2404 = vrot.lane.b32.xlu1 %v2295_v53, %s11879_s24 }
 0x25a   : > { %v2395_v4 = vpop.permute.xlu0 %2394 }
 0x25b   : > { %v2497_v61 = vsel %vm2486_vm9, %v2352_v38, %v2395_v4 }
 0x25c   : > { %2468 = vrot.lane.b32.xlu1 %v2341_v0, %s11872_s27  ;;  %v2514_v14 = vsel %vm2503_vm12, %v2497_v61, %v13823_v7  ;;  %s17573_s27 = smov 96  }
 0x25d   : > { %10124 = vmatprep.mubr.msk.f32.mxu0 %vm2529_vm13, %v2514_v14 }
 0x272   : > { %v2397_v26 = vpop.permute.xlu1 %2396 }
 0x273   : > { %v2498_v12 = vsel %vm2486_vm9, %v2353_v48, %v2397_v26 }
 0x274   : > { %v2515_v30 = vsel %vm2503_vm12, %v2498_v12, %v13837_v19 }
 0x275   : > { %10125 = vmatmul.mubr.msk.f32.gmra.mxu0 %vm2529_vm13, %v2515_v30 }
 0x287   : > { %v2399_v47 = vpop.permute.xlu0 %2398 }
 0x288   : > { %v2499_v11 = vsel %vm2486_vm9, %v2354_v27, %v2399_v47 }
 0x289   : > { %v2516_v7 = vsel %vm2503_vm12, %v2499_v11, %v13860_v35 }
 0x28a   : > { %10127 = vmatprep.mubr.msk.f32.mxu0 %vm2529_vm13, %v2516_v7 }
 0x29f   : > { %v2401_v54 = vpop.permute.xlu1 %2400 }
 0x2a0   : > { %v2500_v24 = vsel %vm2486_vm9, %v2355_v16, %v2401_v54 }
 0x2a1   : > { %v2517_v22 = vsel %vm2503_vm12, %v2500_v24, %v13875_v39  ;;  %v14085_v39 = vld [vmem:[%s17454_s9] ss:$0 sm:$0xff] }
 0x2a2   : > { %10128 = vmatmul.mubr.msk.f32.gmra.mxu0 %vm2529_vm13, %v2517_v22 }
 0x2b4   : > { %v2403_v19 = vpop.permute.xlu0 %2402 }
 0x2b5   : > { %v2501_v23 = vsel %vm2486_vm9, %v2356_v10, %v2403_v19 }
 0x2b8   : > { %v2467_v37 = vpop.permute.xlu0 %2466 }
 0x2b9   : > { %v2518_v36 = vsel %vm2503_vm12, %v2501_v23, %v2467_v37 }
 0x2ba   : > { %10130 = vmatprep.mubr.msk.f32.mxu0 %vm2529_vm13, %v2518_v36 }
 0x2ca   : > { %v2405_v35 = vpop.permute.xlu1 %2404 }
 0x2cb   : > { %v2502_v5 = vsel %vm2486_vm9, %v2357_v1, %v2405_v35  ;;  %vm3305_vm9 = vcmask 1041409  }
 0x2ce   : > { %v2469_v55 = vpop.permute.xlu1 %2468 }
 0x2cf   : > { %v2519_v49 = vsel %vm2503_vm12, %v2502_v5, %v2469_v55  ;;  %vm3308_vm12 = vcmask 1042434  }
 0x2d0   : > { %10131 = vmatmul.mubr.msk.f32.gmra.mxu0 %vm2529_vm13, %v2519_v49  ;;  %vm3311_vm13 = vcmask 1043459  }
 0x2e1   : > { %v10111_v60 = vpop.f32.mrf.mxu0 }
 0x2e2   : > { %v2654_v18 = vadd.f32 %v10111_v60, %v14085_v39 }
 0x2e3   : > { %v2648_v8 = vpop.f32.mrf.mxu0  ;;  %v14089_v52 = vpop.f32.mrf.mxu1 }
 0x2e4   : > { %2728 = vst [vmem:[#allocation2 + $0x8] sm:$0xff] %v2654_v18  ;;  %v2649_v15 = vadd.f32 %v14085_v39, %v2648_v8  ;;  %v2865_v11 = vrot.slane %v14089_v52, 1  ;;  %v2867_v5 = vrot.slane %v14089_v52, 3  ;;  %v2866_v49 = vrot.slane %v14089_v52, 2 }
 0x2e5   : > { %v10114_v56 = vpop.f32.mrf.mxu0  ;;  %v14092_v3 = vpop.f32.mrf.mxu1 }
 0x2e6   : > { %2727 = vst [vmem:[#allocation2] sm:$0xff] %v2649_v15  ;;  %v2664_v59 = vadd.f32 %v10114_v56, %v14085_v39  ;;  %v2858_v58 = vrot.slane %v14092_v3, 1  ;;  %v2860_v42 = vrot.slane %v14092_v3, 3  ;;  %v2859_v62 = vrot.slane %v14092_v3, 2 }
 0x2e7   : > { %v2658_v28 = vpop.f32.mrf.mxu0  ;;  %v2862_v6 = vrot.slane %v14092_v3, 5  ;;  %v2861_v26 = vrot.slane %v14092_v3, 4  ;;  %v2863_v30 = vrot.slane %v14092_v3, 6  ;;  %v2864_v56 = vrot.slane %v14092_v3, 7 }
 0x2e8   : > { %2730 = vst [vmem:[#allocation2 + $0x18] sm:$0xff] %v2664_v59  ;;  %v2659_v51 = vadd.f32 %v14085_v39, %v2658_v28 }
 0x2e9   : > { %v10117_v43 = vpop.f32.mrf.mxu0 }
 0x2ea   : > { %2729 = vst [vmem:[#allocation2 + $0x10] sm:$0xff] %v2659_v51  ;;  %v2674_v50 = vadd.f32 %v10117_v43, %v14085_v39 }
 0x2eb   : > { %v2758_v45 = vld [vmem:[#allocation2 + $0x8] sm:$0x1]  ;;  %v2668_v44 = vpop.f32.mrf.mxu0 }
 0x2ec   : > { %2732 = vst [vmem:[#allocation2 + $0x28] sm:$0xff] %v2674_v50  ;;  %v14098_v21 = vadd.f32 %v2858_v58, %v2758_v45  ;;  %v2669_v32 = vadd.f32 %v14085_v39, %v2668_v44  ;;  %v2869_v44 = vrot.slane %v14089_v52, 5 }
 0x2ed   : > { %v2757_v40 = vld [vmem:[#allocation2] sm:$0x1]  ;;  %v10120_v41 = vpop.f32.mrf.mxu0 }
 0x2ee   : > { %v14102_v20 = vadd.f32 %v14092_v3, %v2757_v40  ;;  %10565 = vtanh.f32 %v14098_v21  ;;  %2731 = vst [vmem:[#allocation2 + $0x20] sm:$0xff] %v2669_v32  ;;  %v2684_v25 = vadd.f32 %v10120_v41, %v14085_v39  ;;  %v2868_v32 = vrot.slane %v14089_v52, 4 }
 0x2ef   : > { %v2760_v63 = vld [vmem:[#allocation2 + $0x18] sm:$0x1]  ;;  %v2678_v9 = vpop.f32.mrf.mxu0 }
 0x2f0   : > { %v14107_v46 = vadd.f32 %v2860_v42, %v2760_v63  ;;  %2734 = vst [vmem:[#allocation2 + $0x38] sm:$0xff] %v2684_v25  ;;  %v2679_v31 = vadd.f32 %v14085_v39, %v2678_v9  ;;  %10567 = vtanh.f32 %v14102_v20 }
 0x2f1   : > { %v2759_v34 = vld [vmem:[#allocation2 + $0x10] sm:$0x1] }
 0x2f2   : > { %v14111_v2 = vadd.f32 %v2859_v62, %v2759_v34  ;;  %2733 = vst [vmem:[#allocation2 + $0x30] sm:$0xff] %v2679_v31  ;;  %10569 = vtanh.f32 %v14107_v46  ;;  %v9772_v62 = vmul.f32 -1.442695, %v14102_v20  ;;  %v9773_v31 = vmul.f32 -1.442695, %v14098_v21 }
 0x2f3   : > { %v2762_v13 = vld [vmem:[#allocation2 + $0x28] sm:$0x1] }
 0x2f4   : > { %v14115_v17 = vadd.f32 %v2862_v6, %v2762_v13  ;;  %10571 = vtanh.f32 %v14111_v2  ;;  %v9774_v34 = vmul.f32 -1.442695, %v14111_v2  ;;  %v9775_v13 = vmul.f32 -1.442695, %v14107_v46 }
 0x2f5   : > { %v2761_v48 = vld [vmem:[#allocation2 + $0x20] sm:$0x1] }
 0x2f6   : > { %10573 = vtanh.f32 %v14115_v17  ;;  %v14128_v47 = vadd.f32 %v2861_v26, %v2761_v48  ;;  %v9777_v6 = vmul.f32 -1.442695, %v14115_v17  ;;  %v2870_v26 = vrot.slane %v14089_v52, 6 }
 0x2f7   : > { %v2764_v8 = vld [vmem:[#allocation2 + $0x38] sm:$0x1] }
 0x2f8   : > { %10575 = vtanh.f32 %v14128_v47  ;;  %v14157_v59 = vadd.f32 %v2864_v56, %v2764_v8 }
 0x2f9   : > { %v2763_v12 = vld [vmem:[#allocation2 + $0x30] sm:$0x1] }
 0x2fa   : > { %v14131_v7 = vadd.f32 %v2863_v30, %v2763_v12 }
 0x2fb   : > { %v10566_v29 = vpop.eup %10565 }
 0x2fc   : > { %3050 = vrot.lane.b32.xlu0 %v10566_v29, %s17495_s26  ;;  %10577 = vtanh.f32 %v14131_v7  ;;  %v9778_v20 = vmul.f32 -1.442695, %v14131_v7 }
 0x2fd   : > { %v10568_v57 = vpop.eup %10567 }
 0x2fe   : > { %3048 = vrot.lane.b32.xlu1 %v10568_v57, %s17495_s26  ;;  %v9776_v57 = vmul.f32 -1.442695, %v14128_v47 }
 0x2ff   : > { %v10570_v53 = vpop.eup %10569 }
 0x300   : > { %3054 = vrot.lane.b32.xlu0 %v10570_v53, %s17495_s26 }
 0x301   : > { %v10572_v33 = vpop.eup %10571 }
 0x302   : > { %3052 = vrot.lane.b32.xlu1 %v10572_v33, %s17495_s26 }
 0x303   : > { %v10574_v0 = vpop.eup %10573 }
 0x305   : > { %v10576_v22 = vpop.eup %10575 }
 0x306   : > { %3058 = vrot.lane.b32.xlu1 %v10574_v0, %s17495_s26  ;;  %3056 = vrot.lane.b32.xlu0 %v10576_v22, %s17495_s26 }
 0x307   : > { %v10123_v38 = vpop.f32.mrf.mxu0 }
 0x308   : > { %v2694_v4 = vadd.f32 %v10123_v38, %v14085_v39 }
 0x309   : > { %v2688_v61 = vpop.f32.mrf.mxu0  ;;  %v10578_v19 = vpop.eup %10577 }
 0x30a   : > { %2736 = vst [vmem:[#allocation2 + $0x48] sm:$0xff] %v2694_v4  ;;  %v2689_v14 = vadd.f32 %v14085_v39, %v2688_v61  ;;  %3060 = vrot.lane.b32.xlu1 %v10578_v19, %s17495_s26  ;;  %v2871_v4 = vrot.slane %v14089_v52, 7 }
 0x30c   : > { %2735 = vst [vmem:[#allocation2 + $0x40] sm:$0xff] %v2689_v14 }
 0x311   : > { %v2766_v27 = vld [vmem:[#allocation2 + $0x48] sm:$0x1] }
 0x312   : > { %v14135_v54 = vadd.f32 %v2865_v11, %v2766_v27 }
 0x313   : > { %v2765_v16 = vld [vmem:[#allocation2 + $0x40] sm:$0x1] }
 0x314   : > { %v14138_v24 = vadd.f32 %v14089_v52, %v2765_v16  ;;  %10579 = vtanh.f32 %v14135_v54  ;;  %v9781_v2 = vmul.f32 -1.442695, %v14135_v54 }
 0x316   : > { %10581 = vtanh.f32 %v14138_v24  ;;  %v9780_v17 = vmul.f32 -1.442695, %v14138_v24 }
 0x321   : > { %v10580_v10 = vpop.eup %10579 }
 0x322   : > { %3066 = vrot.lane.b32.xlu0 %v10580_v10, %s17495_s26  ;;  %v9779_v10 = vmul.f32 -1.442695, %v14157_v59 }
 0x323   : > { %v10582_v23 = vpop.eup %10581 }
 0x324   : > { %3064 = vrot.lane.b32.xlu1 %v10582_v23, %s17495_s26 }
 0x335   : > { %v10126_v37 = vpop.f32.mrf.mxu0 }
 0x336   : > { %v2704_v36 = vadd.f32 %v10126_v37, %v14085_v39 }
 0x337   : > { %v2698_v35 = vpop.f32.mrf.mxu0 }
 0x338   : > { %2738 = vst [vmem:[#allocation2 + $0x58] sm:$0xff] %v2704_v36  ;;  %v2699_v1 = vadd.f32 %v14085_v39, %v2698_v35 }
 0x33a   : > { %2737 = vst [vmem:[#allocation2 + $0x50] sm:$0xff] %v2699_v1 }
 0x33f   : > { %v2768_v55 = vld [vmem:[#allocation2 + $0x58] sm:$0x1] }
 0x340   : > { %v14150_v60 = vadd.f32 %v2867_v5, %v2768_v55 }
 0x341   : > { %v2767_v18 = vld [vmem:[#allocation2 + $0x50] sm:$0x1] }
 0x342   : > { %10583 = vtanh.f32 %v14150_v60  ;;  %v14153_v15 = vadd.f32 %v2866_v49, %v2767_v18 }
 0x344   : > { %10585 = vtanh.f32 %v14153_v15  ;;  %v9782_v16 = vmul.f32 -1.442695, %v14153_v15 }
 0x345   : > { %10587 = vtanh.f32 %v14157_v59 }
 0x34f   : > { %v10584_v28 = vpop.eup %10583 }
 0x350   : > { %3070 = vrot.lane.b32.xlu0 %v10584_v28, %s17495_s26 }
 0x351   : > { %v10586_v51 = vpop.eup %10585 }
 0x352   : > { %3068 = vrot.lane.b32.xlu1 %v10586_v51, %s17495_s26  ;;  %v10588_v58 = vpop.eup %10587 }
 0x356   : > { %3062 = vrot.lane.b32.xlu1 %v10588_v58, %s17495_s26 }
 0x362   : > { %v10129_v43 = vpop.f32.mrf.mxu0 }
 0x363   : > { %v2714_v50 = vadd.f32 %v10129_v43, %v14085_v39 }
 0x364   : > { %v2708_v45 = vpop.f32.mrf.mxu0 }
 0x365   : > { %2740 = vst [vmem:[#allocation2 + $0x68] sm:$0xff] %v2714_v50  ;;  %v2709_v3 = vadd.f32 %v14085_v39, %v2708_v45 }
 0x367   : > { %2739 = vst [vmem:[#allocation2 + $0x60] sm:$0xff] %v2709_v3 }
 0x36c   : > { %v2770_v42 = vld [vmem:[#allocation2 + $0x68] sm:$0x1] }
 0x36d   : > { %v14167_v40 = vadd.f32 %v2869_v44, %v2770_v42 }
 0x36e   : > { %v2769_v41 = vld [vmem:[#allocation2 + $0x60] sm:$0x1]  ;;  %v3051_v49 = vpop.permute.xlu0 %3050 }
 0x36f   : > { %10589 = vtanh.f32 %v14167_v40  ;;  %v14170_v25 = vadd.f32 %v2868_v32, %v2769_v41 }
 0x370   : > { %v3049_v52 = vpop.permute.xlu1 %3048 }
 0x371   : > { %10591 = vtanh.f32 %v14170_v25 }
 0x372   : > { %10593 = vpow2.f32 %v9772_v62  ;;  %v3055_v43 = vpop.permute.xlu0 %3054 }
 0x373   : > { %10595 = vpow2.f32 %v9773_v31 }
 0x374   : > { %10597 = vpow2.f32 %v9774_v34  ;;  %v3053_v1 = vpop.permute.xlu1 %3052 }
 0x375   : > { %10599 = vpow2.f32 %v9775_v13 }
 0x376   : > { %10601 = vpow2.f32 %v9777_v6 }
 0x377   : > { %10603 = vpow2.f32 %v9776_v57 }
 0x378   : > { %10605 = vpow2.f32 %v9778_v20  ;;  %v3059_v59 = vpop.permute.xlu1 %3058 }
 0x379   : > { %10607 = vpow2.f32 %v9781_v2 }
 0x37a   : > { %10609 = vpow2.f32 %v9780_v17 }
 0x37c   : > { %v10590_v63 = vpop.eup %10589  ;;  %v3061_v41 = vpop.permute.xlu1 %3060 }
 0x37d   : > { %3074 = vrot.lane.b32.xlu0 %v10590_v63, %s17495_s26  ;;  %v3057_v63 = vpop.permute.xlu0 %3056 }
 0x37e   : > { %v10592_v9 = vpop.eup %10591 }
 0x37f   : > { %v10594_v46 = vpop.eup %10593 }
 0x380   : > { %v10596_v0 = vpop.eup %10595  ;;  %v2952_v38 = vadd.f32 1.0, %v10594_v46 }
 0x381   : > { %3072 = vrot.lane.b32.xlu0 %v10592_v9, %s17495_s26  ;;  %v10598_v61 = vpop.eup %10597  ;;  %v2953_v14 = vadd.f32 1.0, %v10596_v0 }
 0x382   : > { %10611 = vrcp.f32 %v2952_v38  ;;  %v10600_v27 = vpop.eup %10599  ;;  %v2954_v47 = vadd.f32 1.0, %v10598_v61 }
 0x383   : > { %v10602_v7 = vpop.eup %10601  ;;  %v2955_v54 = vadd.f32 1.0, %v10600_v27  ;;  %v9784_v27 = vmul.f32 -1.442695, %v14170_v25 }
 0x384   : > { %v10604_v24 = vpop.eup %10603  ;;  %v2957_v22 = vadd.f32 1.0, %v10602_v7 }
 0x385   : > { %v10606_v19 = vpop.eup %10605  ;;  %v2956_v23 = vadd.f32 1.0, %v10604_v24 }
 0x386   : > { %v10608_v37 = vpop.eup %10607  ;;  %v2958_v36 = vadd.f32 1.0, %v10606_v19 }
 0x387   : > { %v10610_v35 = vpop.eup %10609  ;;  %v2961_v5 = vadd.f32 1.0, %v10608_v37 }
 0x38f   : > { %v14197_v55 = vpop.eup %10611 }
 0x390   : > { %v10132_v29 = vpop.f32.mrf.mxu0  ;;  %v3096_v15 = vmul.f32 %v14197_v55, %v3049_v52 }
 0x391   : > { %v2724_v53 = vadd.f32 %v10132_v29, %v14085_v39 }
 0x392   : > { %v2718_v33 = vpop.f32.mrf.mxu0 }
 0x393   : > { %2742 = vst [vmem:[#allocation2 + $0x78] sm:$0xff] %v2724_v53  ;;  %v2719_v21 = vadd.f32 %v14085_v39, %v2718_v33  ;;  %v9783_v39 = vmul.f32 -1.442695, %v14150_v60  ;;  %v2960_v60 = vadd.f32 1.0, %v10610_v35 }
 0x394   : > { %v3067_v57 = vpop.permute.xlu0 %3066 }
 0x395   : > { %2741 = vst [vmem:[#allocation2 + $0x70] sm:$0xff] %v2719_v21 }
 0x396   : > { %v3065_v20 = vpop.permute.xlu1 %3064 }
 0x39a   : > { %v2772_v48 = vld [vmem:[#allocation2 + $0x78] sm:$0x1] }
 0x39b   : > { %v14189_v12 = vadd.f32 %v2871_v4, %v2772_v48 }
 0x39c   : > { %v2771_v30 = vld [vmem:[#allocation2 + $0x70] sm:$0x1] }
 0x39d   : > { %10613 = vtanh.f32 %v14189_v12  ;;  %v14192_v11 = vadd.f32 %v2870_v26, %v2771_v30  ;;  %v9787_v25 = vmul.f32 -1.442695, %v14189_v12  ;;  %v3016_v12 = vmul.f32 0.0, %v14197_v55 }
 0x39e   : > { %10615 = vrcp.f32 %v2953_v14 }
 0x39f   : > { %10617 = vpow2.f32 %v9783_v39  ;;  %v9785_v39 = vmul.f32 -1.442695, %v14167_v40 }
 0x3a0   : > { %10619 = vtanh.f32 %v14192_v11 }
 0x3a1   : > { %10621 = vrcp.f32 %v2954_v47 }
 0x3a2   : > { %10623 = vpow2.f32 %v9782_v16 }
 0x3a3   : > { %10625 = vrcp.f32 %v2955_v54 }
 0x3a4   : > { %10627 = vrcp.f32 %v2957_v22 }
 0x3a5   : > { %10629 = vpow2.f32 %v9779_v10 }
 0x3a6   : > { %10631 = vrcp.f32 %v2956_v23  ;;  %v9786_v23 = vmul.f32 -1.442695, %v14192_v11 }
 0x3a7   : > { %10633 = vrcp.f32 %v2958_v36 }
 0x3a8   : > { %10635 = vrcp.f32 %v2961_v5 }
 0x3a9   : > { %10637 = vrcp.f32 %v2960_v60 }
 0x3aa   : > { %v10614_v18 = vpop.eup %10613 }
 0x3ab   : > { %v14199_v8 = vpop.eup %10615  ;;  %3078 = vrot.lane.b32.xlu1 %v10614_v18, %s17495_s26 }
 0x3ac   : > { %v10618_v56 = vpop.eup %10617  ;;  %v3097_v58 = vmul.f32 %v14199_v8, %v3051_v49 }
 0x3ad   : > { %v10620_v28 = vpop.eup %10619  ;;  %v2963_v3 = vadd.f32 1.0, %v10618_v56 }
 0x3ae   : > { %v14203_v51 = vpop.eup %10621  ;;  %3076 = vrot.lane.b32.xlu0 %v10620_v28, %s17495_s26  ;;  %v3017_v28 = vmul.f32 0.0, %v14199_v8 }
 0x3af   : > { %3128 = vrot.lane.b32.xlu1 %v3096_v15, %s17497_s28  ;;  %v3098_v50 = vmul.f32 %v14203_v51, %v3053_v1  ;;  %v10624_v45 = vpop.eup %10623  ;;  %10639 = vrcp.f32 %v2963_v3 }
 0x3b0   : > { %v14209_v44 = vpop.eup %10625  ;;  %v2962_v62 = vadd.f32 1.0, %v10624_v45 }
 0x3b1   : > { %v14211_v42 = vpop.eup %10627  ;;  %v3099_v32 = vmul.f32 %v14209_v44, %v3055_v43  ;;  %v3018_v43 = vmul.f32 0.0, %v14203_v51 }
 0x3b2   : > { %3130 = vrot.lane.b32.xlu0 %v3097_v58, %s17497_s28  ;;  %v3101_v9 = vmul.f32 %v14211_v42, %v3059_v59  ;;  %v10630_v31 = vpop.eup %10629  ;;  %10641 = vrcp.f32 %v2962_v62  ;;  %v3021_v62 = vmul.f32 0.0, %v14211_v42 }
 0x3b3   : > { %3132 = vrot.lane.b32.xlu1 %v3098_v50, %s17497_s28  ;;  %v14217_v34 = vpop.eup %10631  ;;  %v2959_v53 = vadd.f32 1.0, %v10630_v31 }
 0x3b4   : > { %v14219_v13 = vpop.eup %10633  ;;  %v3100_v6 = vmul.f32 %v14217_v34, %v3057_v63 }
 0x3b5   : > { %v3102_v29 = vmul.f32 %v14219_v13, %v3061_v41  ;;  %v14225_v33 = vpop.eup %10635  ;;  %10643 = vrcp.f32 %v2959_v53  ;;  %v3019_v41 = vmul.f32 0.0, %v14209_v44 }
 0x3b6   : > { %3134 = vrot.lane.b32.xlu0 %v3099_v32, %s17497_s28  ;;  %v14227_v21 = vpop.eup %10637  ;;  %v3105_v2 = vmul.f32 %v14225_v33, %v3067_v57  ;;  %10645 = vpow2.f32 %v9785_v39 }
 0x3b7   : > { %3138 = vrot.lane.b32.xlu1 %v3101_v9, %s17497_s28  ;;  %v3104_v46 = vmul.f32 %v14227_v21, %v3065_v20  ;;  %10647 = vpow2.f32 %v9784_v27  ;;  %v3025_v27 = vmul.f32 0.0, %v14225_v33 }
 0x3ba   : > { %3136 = vrot.lane.b32.xlu0 %v3100_v6, %s17497_s28 }
 0x3bb   : > { %3140 = vrot.lane.b32.xlu1 %v3102_v29, %s17497_s28 }
 0x3bc   : > { %v14235_v17 = vpop.eup %10639 }
 0x3be   : > { %3146 = vrot.lane.b32.xlu0 %v3105_v2, %s17497_s28  ;;  %v3020_v2 = vmul.f32 0.0, %v14217_v34 }
 0x3bf   : > { %3144 = vrot.lane.b32.xlu1 %v3104_v46, %s17497_s28  ;;  %v14238_v4 = vpop.eup %10641 }
 0x3c2   : > { %v3071_v0 = vpop.permute.xlu0 %3070  ;;  %v14243_v48 = vpop.eup %10643 }
 0x3c3   : > { %v3107_v38 = vmul.f32 %v14235_v17, %v3071_v0  ;;  %v10646_v47 = vpop.eup %10645  ;;  %v3022_v0 = vmul.f32 0.0, %v14219_v13 }
 0x3c4   : > { %v3069_v61 = vpop.permute.xlu1 %3068  ;;  %v2965_v7 = vadd.f32 1.0, %v10646_v47  ;;  %v10648_v16 = vpop.eup %10647 }
 0x3c5   : > { %3150 = vrot.lane.b32.xlu0 %v3107_v38, %s17497_s28  ;;  %v3106_v14 = vmul.f32 %v14238_v4, %v3069_v61  ;;  %v2964_v54 = vadd.f32 1.0, %v10648_v16  ;;  %v3024_v16 = vmul.f32 0.0, %v14227_v21 }
 0x3c6   : > { %10649 = vrcp.f32 %v2965_v7 }
 0x3c7   : > { %3148 = vrot.lane.b32.xlu1 %v3106_v14, %s17497_s28  ;;  %10651 = vrcp.f32 %v2964_v54 }
 0x3c8   : > { %v3063_v26 = vpop.permute.xlu1 %3062  ;;  %10653 = vpow2.f32 %v9787_v25 }
 0x3c9   : > { %v3103_v30 = vmul.f32 %v14243_v48, %v3063_v26  ;;  %10655 = vpow2.f32 %v9786_v23 }
 0x3cb   : > { %3142 = vrot.lane.b32.xlu1 %v3103_v30, %s17497_s28 }
 0x3d3   : > { %v14249_v52 = vpop.eup %10649 }
 0x3d4   : > { %v14253_v40 = vpop.eup %10651 }
 0x3d5   : > { %v10654_v37 = vpop.eup %10653 }
 0x3d6   : > { %v10656_v36 = vpop.eup %10655  ;;  %v2967_v35 = vadd.f32 1.0, %v10654_v37 }
 0x3d7   : > { %v2966_v1 = vadd.f32 1.0, %v10656_v36 }
 0x3d8   : > { %10657 = vrcp.f32 %v2967_v35 }
 0x3d9   : > { %10659 = vrcp.f32 %v2966_v1 }
 0x3e5   : > { %v14259_v5 = vpop.eup %10657 }
 0x3e6   : > { %v14262_v18 = vpop.eup %10659 }
 0x3ef   : > { %v3075_v24 = vpop.permute.xlu0 %3074 }
 0x3f0   : > { %v3109_v22 = vmul.f32 %v14249_v52, %v3075_v24 }
 0x3f2   : > { %3154 = vrot.lane.b32.xlu0 %v3109_v22, %s17497_s28 }
 0x3f3   : > { %v3073_v19 = vpop.permute.xlu0 %3072 }
 0x3f4   : > { %v3108_v10 = vmul.f32 %v14253_v40, %v3073_v19 }
 0x3f6   : > { %3152 = vrot.lane.b32.xlu0 %v3108_v10, %s17497_s28 }
 0x41d   : > { %v3079_v49 = vpop.permute.xlu1 %3078 }
 0x41e   : > { %v3111_v60 = vmul.f32 %v14259_v5, %v3079_v49  ;;  %v3027_v49 = vmul.f32 0.0, %v14235_v17 }
 0x420   : > { %v3077_v15 = vpop.permute.xlu0 %3076  ;;  %3158 = vrot.lane.b32.xlu1 %v3111_v60, %s17497_s28 }
 0x421   : > { %v3110_v11 = vmul.f32 %v14262_v18, %v3077_v15  ;;  %v3129_v56 = vpop.permute.xlu1 %3128 }
 0x422   : > { %v3176_v59 = vadd.f32 %v3129_v56, %v3016_v12 }
 0x423   : > { %3156 = vrot.lane.b32.xlu0 %v3110_v11, %s17497_s28  ;;  %v3026_v11 = vmul.f32 0.0, %v14238_v4 }
 0x424   : > { %v3131_v58 = vpop.permute.xlu0 %3130  ;;  %10661 = vtanh.f32 %v3176_v59 }
 0x425   : > { %v3177_v50 = vadd.f32 %v3131_v58, %v3017_v28  ;;  %v3133_v45 = vpop.permute.xlu1 %3132 }
 0x426   : > { %v3178_v3 = vadd.f32 %v3133_v45, %v3018_v43 }
 0x427   : > { %10663 = vtanh.f32 %v3177_v50  ;;  %v3363_v32 = vrot.slane %v3177_v50, 7  ;;  %v3023_v50 = vmul.f32 0.0, %v14243_v48 }
 0x428   : > { %v3135_v63 = vpop.permute.xlu0 %3134  ;;  %10665 = vtanh.f32 %v3178_v3  ;;  %v3365_v9 = vrot.slane %v3178_v3, 6 }
 0x429   : > { %v3364_v31 = vsel %vm3305_vm9, %v3363_v32, %v3176_v59  ;;  %v3179_v6 = vadd.f32 %v3135_v63, %v3019_v41  ;;  %v3139_v29 = vpop.permute.xlu1 %3138 }
 0x42a   : > { %v3366_v57 = vsel %vm3308_vm12, %v3365_v9, %v3364_v31  ;;  %v3181_v53 = vadd.f32 %v3139_v29, %v3021_v62 }
 0x42b   : > { %10667 = vtanh.f32 %v3179_v6  ;;  %v3367_v20 = vrot.slane %v3179_v6, 5 }
 0x42c   : > { %v3137_v46 = vpop.permute.xlu0 %3136  ;;  %10669 = vtanh.f32 %v3181_v53  ;;  %v3371_v26 = vrot.slane %v3181_v53, 3 }
 0x42d   : > { %v3180_v38 = vadd.f32 %v3137_v46, %v3020_v2  ;;  %v3368_v61 = vsel %vm3311_vm13, %v3367_v20, %v3366_v57  ;;  %v3141_v14 = vpop.permute.xlu1 %3140  ;;  %v3029_v2 = vmul.f32 0.0, %v14249_v52 }
 0x42e   : > { %v3182_v39 = vadd.f32 %v3141_v14, %v3022_v0 }
 0x42f   : > { %10671 = vtanh.f32 %v3180_v38  ;;  %v3369_v30 = vrot.slane %v3180_v38, 4  ;;  %v3028_v38 = vmul.f32 0.0, %v14253_v40 }
 0x430   : > { %10673 = vtanh.f32 %v3182_v39  ;;  %v3373_v47 = vrot.slane %v3182_v39, 2  ;;  %v3147_v7 = vpop.permute.xlu0 %3146 }
 0x431   : > { %v10662_v54 = vpop.eup %10661  ;;  %v3370_v24 = vsel %vm3314_vm11, %v3369_v30, %v3368_v61  ;;  %v3185_v22 = vadd.f32 %v3147_v7, %v3025_v27  ;;  %v3145_v19 = vpop.permute.xlu1 %3144 }
 0x432   : > { %v3184_v10 = vadd.f32 %v3145_v19, %v3024_v16  ;;  %3224 = vrot.lane.b32.xlu1 %v10662_v54, %s17495_s26  ;;  %v3372_v25 = vsel %vm3317_vm8, %v3371_v26, %v3370_v24  ;;  %v3031_v16 = vmul.f32 0.0, %v14259_v5 }
 0x433   : > { %10675 = vtanh.f32 %v3185_v22  ;;  %v3377_v23 = vrot.slane %v3185_v22, 7  ;;  %v3374_v37 = vsel %vm3320_vm10, %v3373_v47, %v3372_v25  ;;  %v3030_v22 = vmul.f32 0.0, %v14262_v18 }
 0x434   : > { %v10664_v36 = vpop.eup %10663  ;;  %10677 = vtanh.f32 %v3184_v10 }
 0x435   : > { %v10666_v35 = vpop.eup %10665  ;;  %3226 = vrot.lane.b32.xlu0 %v10664_v36, %s17495_s26  ;;  %v3378_v1 = vsel %vm3305_vm9, %v3377_v23, %v3184_v10 }
 0x436   : > { %3228 = vrot.lane.b32.xlu1 %v10666_v35, %s17495_s26  ;;  %v2744_v35 = vld [vmem:[%s14316_s18 + $0x8] sm:$0xff] }
 0x437   : > { %v3151_v60 = vpop.permute.xlu0 %3150  ;;  %vm2746_vm14 = vcmp.gt.s32.totalorder %v2744_v35, 0 }
 0x438   : > { %v3187_v15 = vadd.f32 %v3151_v60, %v3027_v49  ;;  %v10668_v12 = vpop.eup %10667  ;;  %v17571_v60 = vmov 0  }
 0x439   : > { %v10670_v56 = vpop.eup %10669  ;;  %3230 = vrot.lane.b32.xlu0 %v10668_v12, %s17495_s26  ;;  %v3149_v59 = vpop.permute.xlu1 %3148 }
 0x43a   : > { %10679 = vtanh.f32 %v3187_v15  ;;  %v3186_v28 = vadd.f32 %v3149_v59, %v3026_v11  ;;  %3234 = vrot.lane.b32.xlu1 %v10670_v56, %s17495_s26  ;;  %v3381_v3 = vrot.slane %v3187_v15, 5  ;;  %v2748_v15 = vsel %vm2746_vm14, 1, %v17571_v60  ;;  %v14329_v56 = vld [vmem:[%s17455_s10 + $0x38] sm:$0xff]  ;;  %v3405_v59 = vld [vmem:[%s17455_s10 + $0x30] sm:$0xff] }
 0x43b   : > { %10144 = vmatprep.subr.mxu1 %v14329_v56  ;;  %10174 = vmatprep.subr.mxu0 %v14329_v56 }
 0x43c   : > { %v10672_v58 = vpop.eup %10671  ;;  %10681 = vtanh.f32 %v3186_v28  ;;  %v3379_v43 = vrot.slane %v3186_v28, 6  ;;  %10145 = vmatpush3.msra.mxu1 %v14329_v56  ;;  %10175 = vmatpush3.msra.mxu0 %v14329_v56 }
 0x43d   : > { %v10674_v45 = vpop.eup %10673  ;;  %v3143_v32 = vpop.permute.xlu1 %3142  ;;  %3232 = vrot.lane.b32.xlu0 %v10672_v58, %s17495_s26  ;;  %10146 = vmatprep.subr.mxu1 %v3405_v59 }
 0x43e   : > { %v3380_v41 = vsel %vm3308_vm12, %v3379_v43, %v3378_v1  ;;  %v3183_v63 = vadd.f32 %v3143_v32, %v3023_v50  ;;  %3236 = vrot.lane.b32.xlu1 %v10674_v45, %s17495_s26  ;;  %v2743_v1 = vld [vmem:[%s14316_s18] sm:$0xff]  ;;  %v3404_v43 = vld [vmem:[%s17455_s10 + $0x28] sm:$0xff]  ;;  %10147 = vmatpush3.msra.mxu1 %v3405_v59 }
 0x43f   : > { %v3382_v9 = vsel %vm3311_vm13, %v3381_v3, %v3380_v41  ;;  %vm2745_vm15 = vcmp.gt.s32.totalorder %v2743_v1, 0  ;;  %v3403_v50 = vld [vmem:[%s17455_s10 + $0x20] sm:$0xff]  ;;  %10148 = vmatprep.subr.mxu1 %v3404_v43  ;;  %10176 = vmatprep.subr.mxu0 %v3405_v59 }
 0x440   : > { %v10676_v62 = vpop.eup %10675  ;;  %10683 = vtanh.f32 %v3183_v63  ;;  %v3375_v31 = vrot.slane %v3183_v63, 1  ;;  %v2747_v28 = vsel %vm2745_vm15, 1, %v17571_v60  ;;  %10149 = vmatpush3.msra.mxu1 %v3404_v43  ;;  %10177 = vmatpush3.msra.mxu0 %v3405_v59 }
 0x441   : > { %v10678_v6 = vpop.eup %10677  ;;  %3242 = vrot.lane.b32.xlu0 %v10676_v62, %s17495_s26  ;;  %10150 = vmatprep.subr.mxu1 %v3403_v50 }
 0x442   : > { %3240 = vrot.lane.b32.xlu1 %v10678_v6, %s17495_s26  ;;  %v14298_v29 = vsel %vm3323_vm7, %v3375_v31, %v3374_v37  ;;  %10178 = vmatprep.subr.mxu0 %v3404_v43 }
 0x443   : > { %10151 = vmatpush3.msra.mxu1 %v3403_v50  ;;  %10179 = vmatpush3.msra.mxu0 %v3404_v43 }
 0x444   : > { %10180 = vmatprep.subr.mxu0 %v3403_v50 }
 0x445   : > { %10181 = vmatpush3.msra.mxu0 %v3403_v50 }
 0x447   : > { %v10680_v57 = vpop.eup %10679 }
 0x448   : > { %3246 = vrot.lane.b32.xlu0 %v10680_v57, %s17495_s26 }
 0x449   : > { %v10682_v53 = vpop.eup %10681 }
 0x44a   : > { %3244 = vrot.lane.b32.xlu1 %v10682_v53, %s17495_s26 }
 0x44d   : > { %v10684_v20 = vpop.eup %10683 }
 0x44e   : > { %3238 = vrot.lane.b32.xlu1 %v10684_v20, %s17495_s26 }
 0x464   : > { %v3155_v46 = vpop.permute.xlu0 %3154 }
 0x465   : > { %v3189_v0 = vadd.f32 %v3155_v46, %v3029_v2  ;;  %v3402_v46 = vld [vmem:[%s17455_s10 + $0x18] sm:$0xff] }
 0x466   : > { %10152 = vmatprep.subr.mxu1 %v3402_v46  ;;  %10182 = vmatprep.subr.mxu0 %v3402_v46 }
 0x467   : > { %10685 = vtanh.f32 %v3189_v0  ;;  %v3385_v39 = vrot.slane %v3189_v0, 3  ;;  %10153 = vmatpush3.msra.mxu1 %v3402_v46  ;;  %10183 = vmatpush3.msra.mxu0 %v3402_v46 }
 0x468   : > { %v3153_v61 = vpop.permute.xlu0 %3152 }
 0x469   : > { %v3188_v14 = vadd.f32 %v3153_v61, %v3028_v38 }
 0x46b   : > { %10687 = vtanh.f32 %v3188_v14  ;;  %v3383_v26 = vrot.slane %v3188_v14, 4  ;;  %v3399_v14 = vld [vmem:[%s17455_s10] sm:$0xff] }
 0x46d   : > { %v3384_v30 = vsel %vm3314_vm11, %v3383_v26, %v3382_v9 }
 0x46e   : > { %v3386_v27 = vsel %vm3317_vm8, %v3385_v39, %v3384_v30 }
 0x474   : > { %v10686_v47 = vpop.eup %10685 }
 0x475   : > { %3250 = vrot.lane.b32.xlu0 %v10686_v47, %s17495_s26 }
 0x478   : > { %v10688_v7 = vpop.eup %10687 }
 0x479   : > { %3248 = vrot.lane.b32.xlu0 %v10688_v7, %s17495_s26  ;;  %v14372_v7 = vld [vmem:[%s17453_s8 + $0x18] sm:$0xff] }
 0x492   : > { %v3159_v54 = vpop.permute.xlu1 %3158 }
 0x493   : > { %v3191_v24 = vadd.f32 %v3159_v54, %v3031_v16 }
 0x495   : > { %10689 = vtanh.f32 %v3191_v24  ;;  %v3157_v19 = vpop.permute.xlu0 %3156  ;;  %v3389_v23 = vrot.slane %v3191_v24, 1 }
 0x496   : > { %v3190_v10 = vadd.f32 %v3157_v19, %v3030_v22 }
 0x498   : > { %10691 = vtanh.f32 %v3190_v10  ;;  %v3387_v25 = vrot.slane %v3190_v10, 2 }
 0x49a   : > { %v3388_v37 = vsel %vm3320_vm10, %v3387_v25, %v3386_v27 }
 0x49b   : > { %v14319_v36 = vsel %vm3323_vm7, %v3389_v23, %v3388_v37 }
 0x4a2   : > { %v10690_v49 = vpop.eup %10689 }
 0x4a3   : > { %3254 = vrot.lane.b32.xlu1 %v10690_v49, %s17495_s26 }
 0x4a4   : > { %v3225_v12 = vpop.permute.xlu1 %3224 }
 0x4a5   : > { %v10692_v11 = vpop.eup %10691  ;;  %v3272_v57 = vmul.f32 %v14197_v55, %v3225_v12  ;;  %v3401_v55 = vld [vmem:[%s17455_s10 + $0x10] sm:$0xff] }
 0x4a6   : > { %3252 = vrot.lane.b32.xlu0 %v10692_v11, %s17495_s26  ;;  %10154 = vmatprep.subr.mxu1 %v3401_v55 }
 0x4a7   : > { %2753 = vperm.xlu1 %10500, %v2748_v15   ;;  %v3227_v45 = vpop.permute.xlu0 %3226  ;;  %10184 = vmatprep.subr.mxu0 %v3401_v55 }
 0x4a8   : > { %v3229_v58 = vpop.permute.xlu1 %3228  ;;  %v3273_v63 = vmul.f32 %v14199_v8, %v3227_v45  ;;  %10155 = vmatpush3.msra.mxu1 %v3401_v55  ;;  %10185 = vmatpush3.msra.mxu0 %v3401_v55 }
 0x4a9   : > { %v3274_v9 = vmul.f32 %v14203_v51, %v3229_v58 }
 0x4aa   : > { %2750 = vperm.xlu0 %10499, %v2747_v28   ;;  %v3304_v6 = vrot.slane %v3273_v63, 7 }
 0x4ab   : > { %v3231_v41 = vpop.permute.xlu0 %3230  ;;  %v3307_v53 = vrot.slane %v3274_v9, 6 }
 0x4ac   : > { %v3235_v3 = vpop.permute.xlu1 %3234  ;;  %v3275_v2 = vmul.f32 %v14209_v44, %v3231_v41  ;;  %v3306_v8 = vsel %vm3305_vm9, %v3304_v6, %v3272_v57  ;;  %v11719_v6 = vld [vmem:[%s17453_s8 + $0x10] sm:$0xff]  ;;  %v11720_v57 = vld [vmem:[%s17453_s8 + $0x8] sm:$0xff] }
 0x4ad   : > { %v3277_v51 = vmul.f32 %v14211_v42, %v3235_v3  ;;  %v3400_v42 = vld [vmem:[%s17455_s10 + $0x8] sm:$0xff] }
 0x4ae   : > { %v3310_v61 = vrot.slane %v3275_v2, 5  ;;  %10156 = vmatprep.subr.mxu1 %v3400_v42  ;;  %10186 = vmatprep.subr.mxu0 %v3400_v42 }
 0x4af   : > { %v3233_v62 = vpop.permute.xlu0 %3232  ;;  %v3316_v39 = vrot.slane %v3277_v51, 3  ;;  %10157 = vmatpush3.msra.mxu1 %v3400_v42  ;;  %10187 = vmatpush3.msra.mxu0 %v3400_v42 }
 0x4b0   : > { %v3237_v32 = vpop.permute.xlu1 %3236  ;;  %v3276_v20 = vmul.f32 %v14217_v34, %v3233_v62  ;;  %v3309_v34 = vsel %vm3308_vm12, %v3307_v53, %v3306_v8  ;;  %10158 = vmatprep.subr.mxu1 %v3399_v14  ;;  %10188 = vmatprep.subr.mxu0 %v3399_v14  ;;  %v11721_v53 = vld [vmem:[%s17453_s8] sm:$0xff] }
 0x4b1   : > { %v3278_v44 = vmul.f32 %v14219_v13, %v3237_v32  ;;  %v3312_v26 = vsel %vm3311_vm13, %v3310_v61, %v3309_v34  ;;  %10159 = vmatpush3.msra.mxu1 %v3399_v14  ;;  %10189 = vmatpush3.msra.mxu0 %v3399_v14  ;;  %v3570_v8 = vld [vmem:[#allocation2 + $0x41] sm:$0x1]  ;;  %v3571_v34 = vld [vmem:[#allocation2 + $0x49] sm:$0x1] }
 0x4b2   : > { %v3313_v0 = vrot.slane %v3276_v20, 4  ;;  %10163 = vmatprep.subr.mxu1 %v14372_v7  ;;  %10204 = vmatprep.subr.mxu0 %v14329_v56 }
 0x4b3   : > { %v3319_v30 = vrot.slane %v3278_v44, 2 }
 0x4b4   : > { %v3241_v31 = vpop.permute.xlu1 %3240  ;;  %v3315_v13 = vsel %vm3314_vm11, %v3313_v0, %v3312_v26  ;;  %v3574_v26 = vld [vmem:[#allocation2 + $0x61] sm:$0x1] }
 0x4b5   : > { %v3318_v16 = vsel %vm3317_vm8, %v3316_v39, %v3315_v13  ;;  %v3280_v1 = vmul.f32 %v14227_v21, %v3241_v31 }
 0x4b6   : > { %v3321_v24 = vsel %vm3320_vm10, %v3319_v30, %v3318_v16  ;;  %v3575_v30 = vld [vmem:[#allocation2 + $0x69] sm:$0x1] }
 0x4bc   : > { %v3245_v38 = vpop.permute.xlu1 %3244 }
 0x4bd   : > { %v3282_v23 = vmul.f32 %v14238_v4, %v3245_v38  ;;  %v3573_v38 = vld [vmem:[#allocation2 + $0x59] sm:$0x1] }
 0x4bf   : > { %v3327_v49 = vrot.slane %v3282_v23, 6 }
 0x4c0   : > { %v3239_v27 = vpop.permute.xlu1 %3238 }
 0x4c1   : > { %v3279_v47 = vmul.f32 %v14243_v48, %v3239_v27  ;;  %v3243_v48 = vpop.permute.xlu0 %3242 }
 0x4c2   : > { %v3281_v25 = vmul.f32 %v14225_v33, %v3243_v48 }
 0x4c3   : > { %v3322_v54 = vrot.slane %v3279_v47, 1 }
 0x4c4   : > { %v3325_v35 = vrot.slane %v3281_v25, 7  ;;  %v3563_v25 = vld [vmem:[#allocation2 + $0x9] sm:$0x1] }
 0x4c5   : > { %v3324_v22 = vsel %vm3323_vm7, %v3322_v54, %v3321_v24  ;;  %v3247_v19 = vpop.permute.xlu0 %3246 }
 0x4c6   : > { %3339 = vrot.lane.b32.xlu0 %v3324_v22, %s17497_s28  ;;  %v3283_v12 = vmul.f32 %v14235_v17, %v3247_v19  ;;  %v3326_v11 = vsel %vm3305_vm9, %v3325_v35, %v3280_v1  ;;  %v3562_v19 = vld [vmem:[#allocation2 + $0x1] sm:$0x1] }
 0x4c8   : > { %v3329_v28 = vrot.slane %v3283_v12, 5 }
 0x4ca   : > { %3391 = vrot.lane.b32.xlu0 %v14298_v29, %s17493_s17  ;;  %v3328_v29 = vsel %vm3308_vm12, %v3327_v49, %v3326_v11  ;;  %v3572_v49 = vld [vmem:[#allocation2 + $0x51] sm:$0x1]  ;;  %v3565_v11 = vld [vmem:[#allocation2 + $0x19] sm:$0x1] }
 0x4cb   : > { %v3330_v4 = vsel %vm3311_vm13, %v3329_v28, %v3328_v29  ;;  %v3577_v28 = vld [vmem:[#allocation2 + $0x79] sm:$0x1] }
 0x4e7   : > { %v3251_v10 = vpop.permute.xlu0 %3250 }
 0x4e8   : > { %v3285_v33 = vmul.f32 %v14249_v52, %v3251_v10 }
 0x4ea   : > { %v3333_v50 = vrot.slane %v3285_v33, 3 }
 0x4eb   : > { %v3249_v37 = vpop.permute.xlu0 %3248 }
 0x4ec   : > { %v3284_v15 = vmul.f32 %v14253_v40, %v3249_v37 }
 0x4ee   : > { %v3331_v56 = vrot.slane %v3284_v15, 4 }
 0x4f0   : > { %v3332_v21 = vsel %vm3314_vm11, %v3331_v56, %v3330_v4  ;;  %v3566_v4 = vld [vmem:[#allocation2 + $0x21] sm:$0x1] }
 0x4f1   : > { %v3334_v3 = vsel %vm3317_vm8, %v3333_v50, %v3332_v21 }
 0x515   : > { %v3255_v59 = vpop.permute.xlu1 %3254 }
 0x516   : > { %v3287_v58 = vmul.f32 %v14259_v5, %v3255_v59 }
 0x518   : > { %v3253_v43 = vpop.permute.xlu0 %3252  ;;  %v3337_v45 = vrot.slane %v3287_v58, 1 }
 0x519   : > { %v3286_v40 = vmul.f32 %v14262_v18, %v3253_v43 }
 0x51b   : > { %v3335_v17 = vrot.slane %v3286_v40, 2  ;;  %v3564_v40 = vld [vmem:[#allocation2 + $0x11] sm:$0x1] }
 0x51d   : > { %v3336_v32 = vsel %vm3320_vm10, %v3335_v17, %v3334_v3 }
 0x51e   : > { %v3338_v41 = vsel %vm3323_vm7, %v3337_v45, %v3336_v32  ;;  %v3567_v32 = vld [vmem:[#allocation2 + $0x29] sm:$0x1] }
 0x51f   : > { %3341 = vrot.lane.b32.xlu1 %v3338_v41, %s17497_s28 }
 0x522   : > { %v14410_v9 = vpop.permute.xlu1 %2753 }
 0x523   : > { %3393 = vrot.lane.b32.xlu1 %v14319_v36, %s17493_s17  ;;  %vm2756_vm4 = vcmp.eq.s32.totalorder %v14410_v9, 1 }
 0x525   : > { %v14400_v52 = vpop.permute.xlu0 %2750 }
 0x526   : > { %vm2755_vm2 = vcmp.eq.s32.totalorder %v14400_v52, 1 }
 0x538   : > { %v3340_v5 = vpop.permute.xlu0 %3339 }
 0x539   : > { %v14405_v18 = vsel %vm2755_vm2, %v3340_v5, 0.0 }
 0x53a   : > { %v3408_v63 = vsel %vm2777_vm1, %v14405_v18, 0.0 }
 0x53b   : > { %10160 = vmatprep.mubr.msk.f32.mxu1 %vm3416_vm0, %v3408_v63 }
 0x591   : > { %v3342_v36 = vpop.permute.xlu1 %3341 }
 0x592   : > { %v14415_v62 = vsel %vm2756_vm4, %v3342_v36, 0.0 }
 0x593   : > { %v3409_v31 = vsel %vm2777_vm1, %v14415_v62, 0.0 }
 0x594   : > { %10161 = vmatmul.mubr.msk.f32.vlgmr.msra.gmra.mxu1 %vm3416_vm0, %v3409_v31  ;;  %v3392_v31 = vpop.permute.xlu0 %3391 }
 0x595   : > { %10164 = vmatpush3.msra.mxu1 %v14372_v7  ;;  %10171 = vmatprep.mubr.msk.f32.mxu1 %vm2777_vm1, %v14405_v18 }
 0x596   : > { %10165 = vmatprep.subr.mxu1 %v11719_v6 }
 0x597   : > { %10166 = vmatpush3.msra.mxu1 %v11719_v6 }
 0x598   : > { %10167 = vmatprep.subr.mxu1 %v11720_v57 }
 0x599   : > { %10168 = vmatpush3.msra.mxu1 %v11720_v57 }
 0x59a   : > { %10169 = vmatprep.subr.mxu1 %v11721_v53 }
 0x59b   : > { %10170 = vmatpush3.msra.mxu1 %v11721_v53 }
 0x59c   : > { %10172 = vmatmul.mubr.msk.f32.vlgmr.msra.gmra.mxu1 %vm2777_vm1, %v14415_v62  ;;  %10193 = vmatprep.subr.mxu1 %v14372_v7 }
 0x59d   : > { %10194 = vmatpush3.msra.mxu1 %v14372_v7 }
 0x59e   : > { %10195 = vmatprep.subr.mxu1 %v11719_v6 }
 0x59f   : > { %10196 = vmatpush3.msra.mxu1 %v11719_v6  ;;  %v3568_v6 = vld [vmem:[#allocation2 + $0x31] sm:$0x1] }
 0x5a0   : > { %10197 = vmatprep.subr.mxu1 %v11720_v57 }
 0x5a1   : > { %10198 = vmatpush3.msra.mxu1 %v11720_v57 }
 0x5a2   : > { %10199 = vmatprep.subr.mxu1 %v11721_v53 }
 0x5a3   : > { %10200 = vmatpush3.msra.mxu1 %v11721_v53 }
 0x5a4   : > { %10223 = vmatprep.subr.mxu1 %v14372_v7  ;;  %v3576_v7 = vld [vmem:[#allocation2 + $0x71] sm:$0x1] }
 0x654   : > { %v14437_v20 = vpop.f32.mrf.mxu1 }
 0x656   : > { %v14439_v2 = vpop.f32.mrf.mxu1 }
 0x65c   : > { %v10173_v46 = vpop.f32.mrf.mxu1 }
 0x65d   : > { %v14441_v51 = vadd.f32 %v10173_v46, %v3570_v8  ;;  %v3668_v55 = vrot.slane %v10173_v46, 1  ;;  %v3670_v0 = vrot.slane %v10173_v46, 3  ;;  %v3671_v61 = vrot.slane %v10173_v46, 4 }
 0x65e   : > { %v3672_v39 = vrot.slane %v10173_v46, 5  ;;  %v3673_v27 = vrot.slane %v10173_v46, 6  ;;  %v14459_v24 = vpop.f32.mrf.mxu1  ;;  %v3669_v10 = vrot.slane %v10173_v46, 2  ;;  %v3674_v15 = vrot.slane %v10173_v46, 7 }
 0x65f   : > { %10693 = vtanh.f32 %v14441_v51  ;;  %v14444_v44 = vadd.f32 %v3668_v55, %v3571_v34  ;;  %v14446_v42 = vadd.f32 %v3670_v0, %v3573_v38  ;;  %v14450_v13 = vadd.f32 %v3671_v61, %v3574_v26  ;;  %v3394_v34 = vpop.permute.xlu1 %3393  ;;  %v3569_v0 = vld [vmem:[#allocation2 + $0x39] sm:$0x1] }
 0x660   : > { %v14453_v47 = vadd.f32 %v3672_v39, %v3575_v30  ;;  %v14456_v16 = vadd.f32 %v3673_v27, %v3576_v7  ;;  %v3661_v22 = vrot.slane %v14459_v24, 1  ;;  %v14466_v23 = vadd.f32 %v14459_v24, %v3562_v19 }
 0x661   : > { %10695 = vtanh.f32 %v14444_v44  ;;  %v3663_v37 = vrot.slane %v14459_v24, 3  ;;  %v14472_v12 = vadd.f32 %v3669_v10, %v3572_v49  ;;  %v3664_v29 = vrot.slane %v14459_v24, 4 }
 0x662   : > { %10697 = vtanh.f32 %v14446_v42  ;;  %v14469_v35 = vadd.f32 %v3661_v22, %v3563_v25  ;;  %v14480_v33 = vadd.f32 %v3674_v15, %v3577_v28  ;;  %v3662_v58 = vrot.slane %v14459_v24, 2 }
 0x663   : > { %10699 = vtanh.f32 %v14450_v13  ;;  %v14476_v56 = vadd.f32 %v3663_v37, %v3565_v11  ;;  %v14484_v43 = vadd.f32 %v3664_v29, %v3566_v4  ;;  %v3665_v17 = vrot.slane %v14459_v24, 5 }
 0x664   : > { %10701 = vtanh.f32 %v14453_v47  ;;  %v14489_v50 = vadd.f32 %v3662_v58, %v3564_v40  ;;  %v3666_v41 = vrot.slane %v14459_v24, 6  ;;  %v3667_v57 = vrot.slane %v14459_v24, 7 }
 0x665   : > { %10703 = vtanh.f32 %v14456_v16  ;;  %v14497_v5 = vadd.f32 %v3665_v17, %v3567_v32  ;;  %v14507_v55 = vsel %vm2755_vm2, %v3392_v31, 0.0  ;;  %v14517_v26 = vsel %vm2756_vm4, %v3394_v34, 0.0 }
 0x666   : > { %10705 = vtanh.f32 %v14466_v23  ;;  %v14502_v53 = vadd.f32 %v3666_v41, %v3568_v6  ;;  %v14511_v38 = vadd.f32 %v3667_v57, %v3569_v0  ;;  %v3822_v39 = vrot.slane %v14507_v55, 2 }
 0x667   : > { %10707 = vtanh.f32 %v14469_v35  ;;  %v3828_v30 = vrot.slane %v14517_v26, 1  ;;  %v3823_v7 = vrot.slane %v14507_v55, 3  ;;  %v3825_v22 = vrot.slane %v14507_v55, 5 }
 0x668   : > { %10709 = vtanh.f32 %v14472_v12  ;;  %v3829_v19 = vrot.slane %v14517_v26, 2  ;;  %v3827_v10 = vrot.slane %v14507_v55, 7  ;;  %v3824_v25 = vrot.slane %v14507_v55, 4 }
 0x669   : > { %10711 = vtanh.f32 %v14476_v56  ;;  %v3834_v37 = vrot.slane %v14517_v26, 7  ;;  %v9803_v49 = vmul.f32 -1.442695, %v14441_v51  ;;  %v3831_v15 = vrot.slane %v14517_v26, 4 }
 0x66a   : > { %10713 = vtanh.f32 %v14480_v33  ;;  %v3826_v11 = vrot.slane %v14507_v55, 6  ;;  %v9804_v29 = vmul.f32 -1.442695, %v14444_v44  ;;  %v9806_v51 = vmul.f32 -1.442695, %v14446_v42 }
 0x66b   : > { %10715 = vtanh.f32 %v14484_v43  ;;  %v9807_v4 = vmul.f32 -1.442695, %v14450_v13  ;;  %v9805_v41 = vmul.f32 -1.442695, %v14472_v12  ;;  %v9808_v31 = vmul.f32 -1.442695, %v14453_v47 }
 0x66c   : > { %v10694_v14 = vpop.eup %10693  ;;  %10717 = vtanh.f32 %v14489_v50  ;;  %v9796_v12 = vmul.f32 -1.442695, %v14469_v35  ;;  %v9810_v6 = vmul.f32 -1.442695, %v14480_v33  ;;  %v9797_v47 = vmul.f32 -1.442695, %v14489_v50 }
 0x66d   : > { %3931 = vrot.lane.b32.xlu1 %v10694_v14, %s17495_s26  ;;  %10719 = vtanh.f32 %v14497_v5  ;;  %v3821_v14 = vrot.slane %v14507_v55, 1  ;;  %v9800_v35 = vmul.f32 -1.442695, %v14497_v5  ;;  %v9809_v50 = vmul.f32 -1.442695, %v14456_v16 }
 0x66e   : > { %v10696_v54 = vpop.eup %10695  ;;  %10721 = vtanh.f32 %v14502_v53  ;;  %v9801_v5 = vmul.f32 -1.442695, %v14502_v53  ;;  %v9802_v16 = vmul.f32 -1.442695, %v14511_v38 }
 0x66f   : > { %3933 = vrot.lane.b32.xlu0 %v10696_v54, %s17495_s26  ;;  %v10698_v48 = vpop.eup %10697  ;;  %10723 = vtanh.f32 %v14511_v38 }
 0x670   : > { %v10700_v1 = vpop.eup %10699  ;;  %10725 = vpow2.f32 %v9803_v49 }
 0x671   : > { %v10702_v59 = vpop.eup %10701  ;;  %10727 = vpow2.f32 %v9804_v29 }
 0x672   : > { %v10704_v21 = vpop.eup %10703  ;;  %10729 = vpow2.f32 %v9806_v51 }
 0x673   : > { %3937 = vrot.lane.b32.xlu0 %v10698_v48, %s17495_s26  ;;  %v10706_v45 = vpop.eup %10705  ;;  %v3832_v48 = vrot.slane %v14517_v26, 5  ;;  %10731 = vpow2.f32 %v9807_v4 }
 0x674   : > { %v10708_v3 = vpop.eup %10707  ;;  %3915 = vrot.lane.b32.xlu1 %v10706_v45, %s17495_s26  ;;  %v9795_v45 = vmul.f32 -1.442695, %v14466_v23  ;;  %v9799_v23 = vmul.f32 -1.442695, %v14484_v43 }
 0x675   : > { %v10710_v63 = vpop.eup %10709 }
 0x676   : > { %v10712_v36 = vpop.eup %10711 }
 0x677   : > { %3939 = vrot.lane.b32.xlu0 %v10700_v1, %s17495_s26  ;;  %v10714_v46 = vpop.eup %10713  ;;  %v3830_v1 = vrot.slane %v14517_v26, 3 }
 0x678   : > { %3935 = vrot.lane.b32.xlu1 %v10710_v63, %s17495_s26  ;;  %v10716_v8 = vpop.eup %10715 }
 0x679   : > { %v10718_v61 = vpop.eup %10717 }
 0x67a   : > { %v10720_v27 = vpop.eup %10719 }
 0x67b   : > { %3941 = vrot.lane.b32.xlu0 %v10702_v59, %s17495_s26  ;;  %v10722_v54 = vpop.eup %10721  ;;  %v3833_v59 = vrot.slane %v14517_v26, 6 }
 0x67c   : > { %3945 = vrot.lane.b32.xlu1 %v10714_v46, %s17495_s26  ;;  %v10724_v24 = vpop.eup %10723 }
 0x67d   : > { %v10726_v28 = vpop.eup %10725 }
 0x67e   : > { %v3763_v58 = vadd.f32 1.0, %v10726_v28 }
 0x67f   : > { %3943 = vrot.lane.b32.xlu0 %v10704_v21, %s17495_s26  ;;  %v10728_v21 = vpop.eup %10727 }
 0x680   : > { %3919 = vrot.lane.b32.xlu1 %v10718_v61, %s17495_s26  ;;  %10733 = vrcp.f32 %v3763_v58  ;;  %v3764_v40 = vadd.f32 1.0, %v10728_v21  ;;  %v10730_v17 = vpop.eup %10729 }
 0x681   : > { %v10732_v44 = vpop.eup %10731 }
 0x682   : > { %10735 = vrcp.f32 %v3764_v40  ;;  %v3767_v63 = vadd.f32 1.0, %v10732_v44 }
 0x683   : > { %3917 = vrot.lane.b32.xlu0 %v10708_v3, %s17495_s26  ;;  %v3766_v3 = vadd.f32 1.0, %v10730_v17  ;;  %10737 = vpow2.f32 %v9795_v45 }
 0x684   : > { %3839 = vrot.lane.b32.xlu1 %v3822_v39, %s17497_s28 }
 0x685   : > { %10739 = vrcp.f32 %v3766_v3 }
 0x686   : > { %10741 = vpow2.f32 %v9805_v41 }
 0x687   : > { %3921 = vrot.lane.b32.xlu0 %v10712_v36, %s17495_s26  ;;  %v9798_v36 = vmul.f32 -1.442695, %v14476_v56  ;;  %10743 = vrcp.f32 %v3767_v63 }
 0x688   : > { %3925 = vrot.lane.b32.xlu1 %v10720_v27, %s17495_s26 }
 0x689   : > { %10745 = vpow2.f32 %v9798_v36 }
 0x68a   : > { %10747 = vpow2.f32 %v9808_v31 }
 0x68b   : > { %3923 = vrot.lane.b32.xlu0 %v10716_v8, %s17495_s26  ;;  %10749 = vpow2.f32 %v9799_v23 }
 0x68c   : > { %3927 = vrot.lane.b32.xlu1 %v10722_v54, %s17495_s26  ;;  %10751 = vpow2.f32 %v9796_v12 }
 0x68d   : > { %v14560_v32 = vpop.eup %10733  ;;  %10753 = vpow2.f32 %v9810_v6 }
 0x68e   : > { %10755 = vpow2.f32 %v9797_v47 }
 0x68f   : > { %3837 = vrot.lane.b32.xlu0 %v3821_v14, %s17497_s28  ;;  %v14570_v57 = vpop.eup %10735  ;;  %10757 = vpow2.f32 %v9800_v35 }
 0x690   : > { %3929 = vrot.lane.b32.xlu1 %v10724_v24, %s17495_s26  ;;  %v10738_v8 = vpop.eup %10737 }
 0x691   : > { %v3755_v61 = vadd.f32 1.0, %v10738_v8 }
 0x692   : > { %v14575_v34 = vpop.eup %10739 }
 0x693   : > { %3853 = vrot.lane.b32.xlu0 %v3828_v30, %s17497_s28  ;;  %v10742_v0 = vpop.eup %10741  ;;  %10759 = vrcp.f32 %v3755_v61 }
 0x694   : > { %3835 = vrot.lane.b32.xlu1 %v14507_v55, %s17497_s28  ;;  %v14579_v14 = vpop.eup %10743  ;;  %10761 = vpow2.f32 %v9809_v50 }
 0x696   : > { %v10746_v39 = vpop.eup %10745 }
 0x697   : > { %3841 = vrot.lane.b32.xlu0 %v3823_v7, %s17497_s28  ;;  %v10748_v27 = vpop.eup %10747  ;;  %v3765_v7 = vadd.f32 1.0, %v10742_v0  ;;  %v3758_v24 = vadd.f32 1.0, %v10746_v39 }
 0x698   : > { %3855 = vrot.lane.b32.xlu1 %v3829_v19, %s17497_s28 }
 0x699   : > { %10763 = vrcp.f32 %v3765_v7 }
 0x69a   : > { %10765 = vpow2.f32 %v9801_v5 }
 0x69b   : > { %3851 = vrot.lane.b32.xlu0 %v14517_v26, %s17497_s28  ;;  %10767 = vrcp.f32 %v3758_v24 }
 0x69c   : > { %3843 = vrot.lane.b32.xlu1 %v3824_v25, %s17497_s28 }
 0x69f   : > { %3845 = vrot.lane.b32.xlu0 %v3825_v22, %s17497_s28  ;;  %v10750_v22 = vpop.eup %10749 }
 0x6a0   : > { %3857 = vrot.lane.b32.xlu1 %v3830_v1, %s17497_s28  ;;  %v3759_v25 = vadd.f32 1.0, %v10750_v22 }
 0x6a3   : > { %3861 = vrot.lane.b32.xlu0 %v3832_v48, %s17497_s28  ;;  %v3768_v48 = vadd.f32 1.0, %v10748_v27 }
 0x6a4   : > { %3859 = vrot.lane.b32.xlu1 %v3831_v15, %s17497_s28 }
 0x6a5   : > { %10769 = vrcp.f32 %v3768_v48 }
 0x6a6   : > { %10771 = vpow2.f32 %v9802_v16 }
 0x6a7   : > { %3849 = vrot.lane.b32.xlu0 %v3827_v10, %s17497_s28  ;;  %v10752_v10 = vpop.eup %10751  ;;  %10773 = vrcp.f32 %v3759_v25 }
 0x6a8   : > { %3847 = vrot.lane.b32.xlu1 %v3826_v11, %s17497_s28  ;;  %v3756_v1 = vadd.f32 1.0, %v10752_v10 }
 0x6aa   : > { %10775 = vrcp.f32 %v3756_v1 }
 0x6ab   : > { %3865 = vrot.lane.b32.xlu0 %v3834_v37, %s17497_s28  ;;  %v10754_v37 = vpop.eup %10753 }
 0x6ac   : > { %3863 = vrot.lane.b32.xlu1 %v3833_v59, %s17497_s28  ;;  %v10756_v49 = vpop.eup %10755  ;;  %v3770_v15 = vadd.f32 1.0, %v10754_v37 }
 0x6ad   : > { %v10758_v11 = vpop.eup %10757  ;;  %v3757_v29 = vadd.f32 1.0, %v10756_v49 }
 0x6ae   : > { %v14589_v59 = vpop.eup %10759  ;;  %10777 = vrcp.f32 %v3770_v15  ;;  %v3760_v21 = vadd.f32 1.0, %v10758_v11 }
 0x6af   : > { %v10762_v4 = vpop.eup %10761  ;;  %10779 = vrcp.f32 %v3757_v29 }
 0x6b0   : > { %v14592_v58 = vpop.eup %10763  ;;  %10781 = vrcp.f32 %v3760_v21 }
 0x6b1   : > { %v10766_v40 = vpop.eup %10765 }
 0x6b2   : > { %v14595_v45 = vpop.eup %10767 }
 0x6b3   : > { %v14598_v41 = vpop.eup %10769 }
 0x6b4   : > { %v10772_v31 = vpop.eup %10771 }
 0x6b5   : > { %v14604_v12 = vpop.eup %10773  ;;  %v3762_v47 = vadd.f32 1.0, %v10772_v31 }
 0x6df   : > { %v3932_v42 = vpop.permute.xlu1 %3931 }
 0x6e0   : > { %v3971_v13 = vmul.f32 %v14560_v32, %v3932_v42  ;;  %v3769_v42 = vadd.f32 1.0, %v10762_v4 }
 0x6e1   : > { %v3934_v46 = vpop.permute.xlu0 %3933 }
 0x6e2   : > { %4011 = vrot.lane.b32.xlu0 %v3971_v13, %s17497_s28  ;;  %v3972_v56 = vmul.f32 %v14570_v57, %v3934_v46  ;;  %v3761_v13 = vadd.f32 1.0, %v10766_v40  ;;  %v14606_v46 = vpop.eup %10775  ;;  %10783 = vrcp.f32 %v3769_v42 }
 0x6e4   : > { %4013 = vrot.lane.b32.xlu1 %v3972_v56, %s17497_s28  ;;  %10785 = vrcp.f32 %v3761_v13 }
 0x6e5   : > { %v3938_v43 = vpop.permute.xlu0 %3937  ;;  %10787 = vrcp.f32 %v3762_v47 }
 0x6e6   : > { %v3974_v33 = vmul.f32 %v14575_v34, %v3938_v43  ;;  %v3916_v51 = vpop.permute.xlu1 %3915  ;;  %v14614_v43 = vld [vmem:[%s17456_s11] ss:$0 sm:$0xff] }
 0x6e7   : > { %v3963_v38 = vmul.f32 %v14589_v59, %v3916_v51  ;;  %v3490_v0 = vadd.f32 %v14614_v43, %v14439_v2 }
 0x6e8   : > { %4017 = vrot.lane.b32.xlu1 %v3974_v33, %s17497_s28  ;;  %v14617_v33 = vpop.eup %10777 }
 0x6e9   : > { %v3940_v30 = vpop.permute.xlu0 %3939  ;;  %3995 = vrot.lane.b32.xlu0 %v3963_v38, %s17497_s28  ;;  %v14623_v39 = vpop.eup %10779  ;;  %10789 = vtanh.f32 %v3490_v0  ;;  %v9791_v47 = vmul.f32 -1.442695, %v3490_v0 }
 0x6ea   : > { %v3975_v54 = vmul.f32 %v14579_v14, %v3940_v30  ;;  %v3936_v17 = vpop.permute.xlu1 %3935  ;;  %v3495_v30 = vadd.f32 %v14437_v20, %v14614_v43  ;;  %v14632_v2 = vpop.eup %10781 }
 0x6eb   : > { %v3973_v44 = vmul.f32 %v14592_v58, %v3936_v17 }
 0x6ec   : > { %4019 = vrot.lane.b32.xlu1 %v3975_v54, %s17497_s28  ;;  %10791 = vtanh.f32 %v3495_v30 }
 0x6ed   : > { %v3942_v19 = vpop.permute.xlu0 %3941  ;;  %4015 = vrot.lane.b32.xlu0 %v3973_v44, %s17497_s28  ;;  %10793 = vpow2.f32 %v9791_v47 }
 0x6ee   : > { %v3976_v36 = vmul.f32 %v14598_v41, %v3942_v19  ;;  %v3946_v23 = vpop.permute.xlu1 %3945 }
 0x6ef   : > { %v3978_v61 = vmul.f32 %v14617_v33, %v3946_v23  ;;  %v14635_v5 = vpop.eup %10783 }
 0x6f1   : > { %v14587_v53 = vpop.permute.xlu0 %3943  ;;  %4021 = vrot.lane.b32.xlu0 %v3976_v36, %s17497_s28  ;;  %v14638_v24 = vpop.eup %10785 }
 0x6f2   : > { %v3920_v35 = vpop.permute.xlu1 %3919  ;;  %v3977_v20 = vmul.f32 %v14635_v5, %v14587_v53  ;;  %v14645_v19 = vpop.eup %10787 }
 0x6f3   : > { %v3965_v27 = vmul.f32 %v14623_v39, %v3920_v35 }
 0x6f5   : > { %v3918_v28 = vpop.permute.xlu0 %3917 }
 0x6f6   : > { %v3964_v8 = vmul.f32 %v14606_v46, %v3918_v28  ;;  %v14625_v50 = vpop.permute.xlu1 %3839  ;;  %v10790_v25 = vpop.eup %10789 }
 0x6f8   : > { %3997 = vrot.lane.b32.xlu0 %v3964_v8, %s17497_s28  ;;  %v9792_v8 = vmul.f32 -1.442695, %v3495_v30 }
 0x6f9   : > { %v3922_v3 = vpop.permute.xlu0 %3921  ;;  %v10792_v37 = vpop.eup %10791 }
 0x6fa   : > { %v3966_v63 = vmul.f32 %v14595_v45, %v3922_v3  ;;  %v3926_v7 = vpop.permute.xlu1 %3925  ;;  %10795 = vpow2.f32 %v9792_v8  ;;  %v10794_v0 = vpop.eup %10793 }
 0x6fb   : > { %v3968_v54 = vmul.f32 %v14632_v2, %v3926_v7 }
 0x6fc   : > { %4001 = vrot.lane.b32.xlu1 %v3966_v63, %s17497_s28  ;;  %3999 = vrot.lane.b32.xlu0 %v3965_v27, %s17497_s28 }
 0x6fd   : > { %v3924_v6 = vpop.permute.xlu0 %3923 }
 0x6fe   : > { %v3967_v56 = vmul.f32 %v14604_v12, %v3924_v6  ;;  %v3928_v22 = vpop.permute.xlu1 %3927 }
 0x6ff   : > { %v3969_v48 = vmul.f32 %v14638_v24, %v3928_v22 }
 0x700   : > { %4003 = vrot.lane.b32.xlu1 %v3967_v56, %s17497_s28  ;;  %4005 = vrot.lane.b32.xlu0 %v3968_v54, %s17497_s28 }
 0x701   : > { %v3838_v1 = vpop.permute.xlu0 %3837 }
 0x702   : > { %v3930_v10 = vpop.permute.xlu1 %3929 }
 0x703   : > { %v3970_v16 = vmul.f32 %v14645_v19, %v3930_v10 }
 0x704   : > { %4025 = vrot.lane.b32.xlu1 %v3978_v61, %s17497_s28  ;;  %4023 = vrot.lane.b32.xlu0 %v3977_v20, %s17497_s28 }
 0x705   : > { %v3854_v49 = vpop.permute.xlu0 %3853 }
 0x706   : > { %v3836_v53 = vpop.permute.xlu1 %3835  ;;  %v3892_v42 = vmul.f32 %v14570_v57, %v3854_v49 }
 0x708   : > { %4007 = vrot.lane.b32.xlu1 %v3969_v48, %s17497_s28  ;;  %3516 = vrot.lane.b32.xlu0 %v10790_v25, %s17495_s26 }
 0x709   : > { %v3842_v11 = vpop.permute.xlu0 %3841 }
 0x70a   : > { %v3856_v15 = vpop.permute.xlu1 %3855  ;;  %v3886_v47 = vmul.f32 %v14595_v45, %v3842_v11 }
 0x70b   : > { %v3893_v22 = vmul.f32 %v14592_v58, %v3856_v15  ;;  %v3504_v15 = vadd.f32 1.0, %v10794_v0 }
 0x70c   : > { %4009 = vrot.lane.b32.xlu1 %v3970_v16, %s17497_s28 }
 0x70d   : > { %v3852_v51 = vpop.permute.xlu0 %3851  ;;  %10797 = vrcp.f32 %v3504_v15 }
 0x70e   : > { %v3844_v29 = vpop.permute.xlu1 %3843  ;;  %v3891_v36 = vmul.f32 %v14560_v32, %v3852_v51 }
 0x710   : > { %3518 = vrot.lane.b32.xlu1 %v10792_v37, %s17495_s26 }
 0x711   : > { %v14651_v28 = vpop.permute.xlu0 %3845 }
 0x712   : > { %v3858_v38 = vpop.permute.xlu1 %3857 }
 0x713   : > { %v3894_v54 = vmul.f32 %v14575_v34, %v3858_v38 }
 0x715   : > { %v3862_v21 = vpop.permute.xlu0 %3861 }
 0x716   : > { %v3860_v4 = vpop.permute.xlu1 %3859  ;;  %v3896_v30 = vmul.f32 %v14598_v41, %v3862_v21 }
 0x717   : > { %v3895_v7 = vmul.f32 %v14579_v14, %v3860_v4 }
 0x719   : > { %v14655_v17 = vpop.permute.xlu0 %3849 }
 0x71a   : > { %v14653_v40 = vpop.permute.xlu1 %3847 }
 0x71d   : > { %v3866_v3 = vpop.permute.xlu0 %3865 }
 0x71e   : > { %v14657_v44 = vpop.permute.xlu1 %3863 }
 0x754   : > { %v4012_v63 = vpop.permute.xlu0 %4011 }
 0x755   : > { %v14661_v23 = vadd.f32 %v4012_v63, %v3891_v36  ;;  %v3884_v36 = vmul.f32 %v14606_v46, %v3838_v1  ;;  %v3885_v1 = vmul.f32 %v14623_v39, %v14625_v50  ;;  %v3898_v50 = vmul.f32 %v14617_v33, %v3866_v3 }
 0x756   : > { %v4014_v13 = vpop.permute.xlu1 %4013 }
 0x757   : > { %v4052_v31 = vadd.f32 %v4014_v13, %v3892_v42  ;;  %v10796_v13 = vpop.eup %10795 }
 0x759   : > { %v4237_v6 = vrot.slane %v4052_v31, 7 }
 0x75a   : > { %v4018_v35 = vpop.permute.xlu1 %4017 }
 0x75b   : > { %v4238_v56 = vsel %vm3305_vm9, %v4237_v6, %v14661_v23  ;;  %v3996_v61 = vpop.permute.xlu0 %3995  ;;  %v4054_v48 = vadd.f32 %v4018_v35, %v3894_v54 }
 0x75d   : > { %v4241_v51 = vrot.slane %v4054_v48, 5 }
 0x75e   : > { %v4020_v27 = vpop.permute.xlu1 %4019 }
 0x75f   : > { %v14668_v20 = vadd.f32 %v4020_v27, %v3895_v7  ;;  %v4016_v10 = vpop.permute.xlu0 %4015  ;;  %v3883_v27 = vmul.f32 %v14589_v59, %v3836_v53 }
 0x760   : > { %v14670_v16 = vadd.f32 %v4016_v10, %v3893_v22  ;;  %v3505_v22 = vadd.f32 1.0, %v10796_v13 }
 0x761   : > { %v4243_v49 = vrot.slane %v14668_v20, 4  ;;  %v4043_v0 = vadd.f32 %v3996_v61, %v3883_v27 }
 0x762   : > { %v4239_v37 = vrot.slane %v14670_v16, 6  ;;  %10799 = vrcp.f32 %v3505_v22  ;;  %v14707_v22 = vpop.eup %10797 }
 0x763   : > { %v4022_v4 = vpop.permute.xlu0 %4021  ;;  %10801 = vtanh.f32 %v4052_v31 }
 0x764   : > { %v4240_v38 = vsel %vm3308_vm12, %v4239_v37, %v4238_v56  ;;  %v14676_v42 = vadd.f32 %v4022_v4, %v3896_v30  ;;  %v3887_v56 = vmul.f32 %v14604_v12, %v3844_v29  ;;  %v3888_v4 = vmul.f32 %v14632_v2, %v14651_v28 }
 0x765   : > { %v4242_v63 = vsel %vm3311_vm13, %v4241_v51, %v4240_v38  ;;  %10803 = vtanh.f32 %v14661_v23 }
 0x766   : > { %v4244_v6 = vsel %vm3314_vm11, %v4243_v49, %v4242_v63  ;;  %v4245_v21 = vrot.slane %v14676_v42, 3  ;;  %10805 = vtanh.f32 %v4054_v48 }
 0x767   : > { %10807 = vtanh.f32 %v14668_v20 }
 0x768   : > { %v4246_v54 = vsel %vm3317_vm8, %v4245_v21, %v4244_v6  ;;  %v3889_v6 = vmul.f32 %v14638_v24, %v14653_v40  ;;  %v3897_v21 = vmul.f32 %v14635_v5, %v14657_v44  ;;  %v3890_v40 = vmul.f32 %v14645_v19, %v14655_v17 }
 0x769   : > { %10809 = vtanh.f32 %v4043_v0 }
 0x76a   : > { %v3998_v8 = vpop.permute.xlu0 %3997  ;;  %10811 = vtanh.f32 %v14670_v16 }
 0x76b   : > { %v4044_v7 = vadd.f32 %v3998_v8, %v3884_v36  ;;  %10813 = vtanh.f32 %v14676_v42 }
 0x76d   : > { %v4223_v30 = vrot.slane %v4044_v7, 7  ;;  %10815 = vtanh.f32 %v4044_v7 }
 0x76e   : > { %v4002_v25 = vpop.permute.xlu1 %4001  ;;  %v4000_v11 = vpop.permute.xlu0 %3999 }
 0x76f   : > { %v14686_v10 = vadd.f32 %v4002_v25, %v3886_v47  ;;  %v4224_v49 = vsel %vm3305_vm9, %v4223_v30, %v4043_v0  ;;  %v4045_v53 = vadd.f32 %v4000_v11, %v3885_v1 }
 0x771   : > { %v4227_v29 = vrot.slane %v14686_v10, 5  ;;  %v4225_v25 = vrot.slane %v4045_v53, 6  ;;  %10817 = vtanh.f32 %v4045_v53 }
 0x772   : > { %v4004_v35 = vpop.permute.xlu1 %4003  ;;  %v4006_v61 = vpop.permute.xlu0 %4005  ;;  %10819 = vtanh.f32 %v14686_v10 }
 0x773   : > { %v14690_v37 = vadd.f32 %v4004_v35, %v3887_v56  ;;  %v4226_v15 = vsel %vm3308_vm12, %v4225_v25, %v4224_v49  ;;  %v4048_v63 = vadd.f32 %v4006_v61, %v3888_v4  ;;  %v14719_v4 = vpop.eup %10799 }
 0x774   : > { %v4228_v13 = vsel %vm3311_vm13, %v4227_v29, %v4226_v15 }
 0x775   : > { %v4229_v38 = vrot.slane %v14690_v37, 4  ;;  %v4231_v28 = vrot.slane %v4048_v63, 3  ;;  %10821 = vtanh.f32 %v4048_v63 }
 0x776   : > { %v4026_v51 = vpop.permute.xlu1 %4025  ;;  %v4024_v3 = vpop.permute.xlu0 %4023  ;;  %10823 = vtanh.f32 %v14690_v37 }
 0x777   : > { %v4058_v36 = vadd.f32 %v4026_v51, %v3898_v50  ;;  %v4230_v47 = vsel %vm3314_vm11, %v4229_v38, %v4228_v13  ;;  %v4057_v31 = vadd.f32 %v4024_v3, %v3897_v21  ;;  %v10802_v38 = vpop.eup %10801  ;;  %v11722_v21 = vld [vmem:[%s14316_s18] sm:$0xff] }
 0x778   : > { %v4232_v27 = vsel %vm3317_vm8, %v4231_v28, %v4230_v47  ;;  %vm3550_vm3 = vcmp.gt.s32.totalorder %v11722_v21, 1  ;;  %v11723_v47 = vld [vmem:[%s14316_s18 + $0x8] sm:$0xff] }
 0x779   : > { %v4249_v56 = vrot.slane %v4058_v36, 1  ;;  %v4247_v44 = vrot.slane %v4057_v31, 2  ;;  %vm3551_vm6 = vcmp.gt.s32.totalorder %v11723_v47, 1 }
 0x77a   : > { %v4008_v8 = vpop.permute.xlu1 %4007  ;;  %v3517_v30 = vpop.permute.xlu0 %3516 }
 0x77b   : > { %v4049_v35 = vadd.f32 %v4008_v8, %v3889_v6  ;;  %v3522_v11 = vmul.f32 %v14707_v22, %v3517_v30  ;;  %v4248_v29 = vsel %vm3320_vm10, %v4247_v44, %v4246_v54  ;;  %v10804_v54 = vpop.eup %10803  ;;  %v3553_v8 = vsel %vm3551_vm6, 1, %v17571_v60 }
 0x77c   : > { %v14716_v51 = vsel %vm3323_vm7, %v4249_v56, %v4248_v29  ;;  %v10806_v50 = vpop.eup %10805  ;;  %v3513_v56 = vmul.f32 0.0, %v14719_v4 }
 0x77d   : > { %v4233_v1 = vrot.slane %v4049_v35, 2  ;;  %3526 = vrot.lane.b32.xlu0 %v3522_v11, %s17497_s28  ;;  %v10808_v16 = vpop.eup %10807  ;;  %10825 = vtanh.f32 %v4049_v35 }
 0x77e   : > { %v4010_v23 = vpop.permute.xlu1 %4009  ;;  %v10810_v42 = vpop.eup %10809  ;;  %10827 = vtanh.f32 %v4057_v31  ;;  %v3512_v31 = vmul.f32 0.0, %v14707_v22 }
 0x77f   : > { %v4050_v48 = vadd.f32 %v4010_v23, %v3890_v40  ;;  %v4234_v49 = vsel %vm3320_vm10, %v4233_v1, %v4232_v27  ;;  %v10812_v61 = vpop.eup %10811 }
 0x780   : > { %v10814_v7 = vpop.eup %10813 }
 0x781   : > { %v4235_v17 = vrot.slane %v4050_v48, 1  ;;  %4109 = vrot.lane.b32.xlu0 %v10802_v38, %s17495_s26  ;;  %v10816_v53 = vpop.eup %10815  ;;  %10829 = vtanh.f32 %v4050_v48 }
 0x782   : > { %v3519_v20 = vpop.permute.xlu1 %3518  ;;  %v10818_v10 = vpop.eup %10817  ;;  %10831 = vtanh.f32 %v4058_v36  ;;  %v3552_v36 = vsel %vm3550_vm3, 1, %v17571_v60 }
 0x783   : > { %v3523_v0 = vmul.f32 %v14719_v4, %v3519_v20  ;;  %v14725_v25 = vsel %vm3323_vm7, %v4235_v17, %v4234_v49  ;;  %v10820_v15 = vpop.eup %10819 }
 0x784   : > { %v10822_v37 = vpop.eup %10821 }
 0x785   : > { %3528 = vrot.lane.b32.xlu1 %v3523_v0, %s17497_s28  ;;  %4113 = vrot.lane.b32.xlu0 %v10806_v50, %s17495_s26  ;;  %v10824_v63 = vpop.eup %10823 }
 0x789   : > { %4107 = vrot.lane.b32.xlu1 %v10804_v54, %s17495_s26  ;;  %4115 = vrot.lane.b32.xlu0 %v10808_v16, %s17495_s26 }
 0x78a   : > { %v10826_v13 = vpop.eup %10825 }
 0x78b   : > { %v10828_v6 = vpop.eup %10827 }
 0x78d   : > { %4091 = vrot.lane.b32.xlu1 %v10810_v42, %s17495_s26  ;;  %4117 = vrot.lane.b32.xlu0 %v10814_v7, %s17495_s26 }
 0x78e   : > { %v10830_v28 = vpop.eup %10829 }
 0x78f   : > { %v10832_v3 = vpop.eup %10831 }
 0x791   : > { %4111 = vrot.lane.b32.xlu1 %v10812_v61, %s17495_s26  ;;  %4093 = vrot.lane.b32.xlu0 %v10816_v53, %s17495_s26 }
 0x795   : > { %4095 = vrot.lane.b32.xlu1 %v10818_v10, %s17495_s26  ;;  %4097 = vrot.lane.b32.xlu0 %v10820_v15, %s17495_s26 }
 0x799   : > { %4101 = vrot.lane.b32.xlu1 %v10822_v37, %s17495_s26  ;;  %4099 = vrot.lane.b32.xlu0 %v10824_v63, %s17495_s26 }
 0x79d   : > { %4103 = vrot.lane.b32.xlu1 %v10826_v13, %s17495_s26  ;;  %4119 = vrot.lane.b32.xlu0 %v10828_v6, %s17495_s26 }
 0x7a1   : > { %4105 = vrot.lane.b32.xlu1 %v10830_v28, %s17495_s26  ;;  %3555 = vperm.xlu0 %10499, %v3552_v36  }
 0x7a5   : > { %4121 = vrot.lane.b32.xlu1 %v10832_v3, %s17495_s26 }
 0x7a9   : > { %3558 = vperm.xlu1 %10500, %v3553_v8  }
 0x7ef   : > { %v3527_v35 = vpop.permute.xlu0 %3526 }
 0x7f0   : > { %v14751_v27 = vadd.f32 %v3527_v35, %v3512_v31 }
 0x7f2   : > { %10833 = vtanh.f32 %v14751_v27 }
 0x7f3   : > { %v4110_v40 = vpop.permute.xlu0 %4109 }
 0x7f4   : > { %v4148_v42 = vmul.f32 %v14570_v57, %v4110_v40 }
 0x7f7   : > { %v3529_v44 = vpop.permute.xlu1 %3528  ;;  %v4114_v30 = vpop.permute.xlu0 %4113 }
 0x7f8   : > { %v14755_v1 = vadd.f32 %v3529_v44, %v3513_v56 }
 0x7fa   : > { %10835 = vtanh.f32 %v14755_v1 }
 0x7fb   : > { %v4108_v23 = vpop.permute.xlu1 %4107  ;;  %v4116_v11 = vpop.permute.xlu0 %4115 }
 0x7fc   : > { %v4147_v10 = vmul.f32 %v14560_v32, %v4108_v23 }
 0x7ff   : > { %v4092_v48 = vpop.permute.xlu1 %4091  ;;  %v10834_v49 = vpop.eup %10833 }
 0x800   : > { %v4118_v29 = vpop.permute.xlu0 %4117  ;;  %3538 = vrot.lane.b32.xlu0 %v10834_v49, %s17495_s26  ;;  %v4139_v63 = vmul.f32 %v14589_v59, %v4092_v48  ;;  %v4151_v59 = vmul.f32 %v14579_v14, %v4116_v11 }
 0x801   : > { %v4152_v31 = vmul.f32 %v14598_v41, %v4118_v29 }
 0x802   : > { %v4191_v23 = vrot.slane %v4151_v59, 4  ;;  %v11734_v59 = vld [vmem:[%s17455_s10 + $0x8] sm:$0xff] }
 0x803   : > { %v4112_v17 = vpop.permute.xlu1 %4111 }
 0x804   : > { %v4094_v0 = vpop.permute.xlu0 %4093  ;;  %v4149_v16 = vmul.f32 %v14592_v58, %v4112_v17 }
 0x805   : > { %v4140_v54 = vmul.f32 %v14606_v46, %v4094_v0  ;;  %v4185_v46 = vrot.slane %v4148_v42, 7 }
 0x806   : > { %v4187_v13 = vrot.slane %v4149_v16, 6 }
 0x807   : > { %v10836_v20 = vpop.eup %10835  ;;  %v4096_v38 = vpop.permute.xlu1 %4095  ;;  %v4171_v61 = vrot.slane %v4140_v54, 7  ;;  %v4186_v36 = vsel %vm3305_vm9, %v4185_v46, %v4147_v10 }
 0x808   : > { %v4141_v50 = vmul.f32 %v14623_v39, %v4096_v38  ;;  %3540 = vrot.lane.b32.xlu0 %v10836_v20, %s17495_s26  ;;  %v4098_v7 = vpop.permute.xlu0 %4097  ;;  %v4150_v39 = vmul.f32 %v14575_v34, %v4114_v30  ;;  %v4188_v3 = vsel %vm3308_vm12, %v4187_v13, %v4186_v36  ;;  %v4193_v20 = vrot.slane %v4152_v31, 3  ;;  %v11728_v13 = vld [vmem:[%s17455_s10 + $0x38] sm:$0xff]  ;;  %v11729_v36 = vld [vmem:[%s17455_s10 + $0x30] sm:$0xff] }
 0x809   : > { %v4142_v15 = vmul.f32 %v14595_v45, %v4098_v7  ;;  %v4172_v58 = vsel %vm3305_vm9, %v4171_v61, %v4139_v63  ;;  %v11726_v63 = vld [vmem:[%s17453_s8 + $0x8] sm:$0xff] }
 0x80a   : > { %v4173_v37 = vrot.slane %v4141_v50, 6  ;;  %v4189_v34 = vrot.slane %v4150_v39, 5 }
 0x80b   : > { %v4102_v53 = vpop.permute.xlu1 %4101  ;;  %v4175_v21 = vrot.slane %v4142_v15, 5 }
 0x80c   : > { %v4144_v6 = vmul.f32 %v14632_v2, %v4102_v53  ;;  %v4100_v57 = vpop.permute.xlu0 %4099  ;;  %v4174_v32 = vsel %vm3308_vm12, %v4173_v37, %v4172_v58  ;;  %v4190_v30 = vsel %vm3311_vm13, %v4189_v34, %v4188_v3  ;;  %v11724_v37 = vld [vmem:[%s17453_s8 + $0x18] sm:$0xff]  ;;  %v11735_v3 = vld [vmem:[%s17455_s10] sm:$0xff] }
 0x80d   : > { %v4143_v45 = vmul.f32 %v14604_v12, %v4100_v57  ;;  %v4176_v35 = vsel %vm3311_vm13, %v4175_v21, %v4174_v32  ;;  %v4192_v29 = vsel %vm3314_vm11, %v4191_v23, %v4190_v30  ;;  %v11731_v32 = vld [vmem:[%s17455_s10 + $0x20] sm:$0xff] }
 0x80e   : > { %v4179_v2 = vrot.slane %v4144_v6, 3 }
 0x80f   : > { %v4104_v28 = vpop.permute.xlu1 %4103  ;;  %v4177_v8 = vrot.slane %v4143_v45, 4  ;;  %v11732_v45 = vld [vmem:[%s17455_s10 + $0x18] sm:$0xff] }
 0x810   : > { %v4145_v47 = vmul.f32 %v14638_v24, %v4104_v28  ;;  %v4120_v56 = vpop.permute.xlu0 %4119 }
 0x811   : > { %v4178_v12 = vsel %vm3314_vm11, %v4177_v8, %v4176_v35  ;;  %v4153_v24 = vmul.f32 %v14635_v5, %v4120_v56  ;;  %v4422_v8 = vld [vmem:[#allocation2 + $0x42] sm:$0x1]  ;;  %v4423_v35 = vld [vmem:[#allocation2 + $0x4a] sm:$0x1] }
 0x812   : > { %v4181_v40 = vrot.slane %v4145_v47, 2  ;;  %v4180_v11 = vsel %vm3317_vm8, %v4179_v2, %v4178_v12  ;;  %v11733_v47 = vld [vmem:[%s17455_s10 + $0x10] sm:$0xff] }
 0x813   : > { %v4106_v44 = vpop.permute.xlu1 %4105  ;;  %v4195_v49 = vrot.slane %v4153_v24, 2  ;;  %v4426_v24 = vld [vmem:[#allocation2 + $0x62] sm:$0x1] }
 0x814   : > { %v4146_v14 = vmul.f32 %v14645_v19, %v4106_v44  ;;  %v4182_v41 = vsel %vm3320_vm10, %v4181_v40, %v4180_v11  ;;  %v4194_v19 = vsel %vm3317_vm8, %v4193_v20, %v4192_v29  ;;  %v4425_v44 = vld [vmem:[#allocation2 + $0x5a] sm:$0x1] }
 0x815   : > { %v4196_v54 = vsel %vm3320_vm10, %v4195_v49, %v4194_v19  ;;  %v4414_v19 = vld [vmem:[#allocation2 + $0x2] sm:$0x1] }
 0x816   : > { %v4183_v48 = vrot.slane %v4146_v14, 1 }
 0x817   : > { %v4122_v17 = vpop.permute.xlu1 %4121 }
 0x818   : > { %v4154_v0 = vmul.f32 %v14617_v33, %v4122_v17  ;;  %v4184_v38 = vsel %vm3323_vm7, %v4183_v48, %v4182_v41  ;;  %v4427_v48 = vld [vmem:[#allocation2 + $0x6a] sm:$0x1]  ;;  %v4428_v41 = vld [vmem:[#allocation2 + $0x72] sm:$0x1] }
 0x819   : > { %4199 = vrot.lane.b32.xlu1 %v4184_v38, %s17497_s28 }
 0x81a   : > { %v4197_v5 = vrot.slane %v4154_v0, 1 }
 0x81c   : > { %v4198_v50 = vsel %vm3323_vm7, %v4197_v5, %v4196_v54  ;;  %v14792_v16 = vpop.permute.xlu0 %3555 }
 0x81d   : > { %4201 = vrot.lane.b32.xlu1 %v4198_v50, %s17497_s28  ;;  %vm3560_vm5 = vcmp.eq.s32.totalorder %v14792_v16, 1  ;;  %v4415_v50 = vld [vmem:[#allocation2 + $0xa] sm:$0x1] }
 0x872   : > { %v3539_v42 = vpop.permute.xlu0 %3538 }
 0x873   : > { %v3544_v61 = vmul.f32 %v14707_v22, %v3539_v42  ;;  %v14812_v22 = vpop.permute.xlu1 %3558 }
 0x874   : > { %vm3561_vm14 = vcmp.eq.s32.totalorder %v14812_v22, 1 }
 0x875   : > { %v14797_v33 = vsel %vm2755_vm2, %v3544_v61, 0.0 }
 0x876   : > { %4261 = vrot.lane.b32.xlu0 %v14797_v33, %s17495_s26 }
 0x87a   : > { %v3541_v7 = vpop.permute.xlu0 %3540  ;;  %4251 = vrot.lane.b32.xlu0 %v14725_v25, %s17493_s17 }
 0x87b   : > { %v3545_v53 = vmul.f32 %v14719_v4, %v3541_v7 }
 0x87d   : > { %v14804_v10 = vsel %vm2756_vm4, %v3545_v53, 0.0 }
 0x87e   : > { %4263 = vrot.lane.b32.xlu1 %v14804_v10, %s17495_s26  ;;  %s9954_s26 = sshll.u32 %s11985_s5, 8 }
 0x882   : > { %4253 = vrot.lane.b32.xlu1 %v14716_v51, %s17493_s17 }
 0x88b   : > { %v4200_v15 = vpop.permute.xlu1 %4199 }
 0x88c   : > { %v14818_v4 = vsel %vm3560_vm5, %v4200_v15, %v14405_v18  ;;  %v11725_v18 = vld [vmem:[%s17453_s8 + $0x10] sm:$0xff] }
 0x88d   : > { %10201 = vmatprep.mubr.msk.f32.mxu1 %vm2777_vm1, %v14818_v4  ;;  %v4424_v15 = vld [vmem:[#allocation2 + $0x52] sm:$0x1] }
 0x88f   : > { %v4202_v25 = vpop.permute.xlu1 %4201 }
 0x890   : > { %v14826_v51 = vsel %vm3561_vm14, %v4202_v25, %v14415_v62  ;;  %v11727_v62 = vld [vmem:[%s17453_s8] sm:$0xff] }
 0x891   : > { %10202 = vmatmul.mubr.msk.f32.vlgmr.msra.gmra.mxu1 %vm2777_vm1, %v14826_v51 }
 0x892   : > { %10224 = vmatpush3.msra.mxu1 %v11724_v37 }
 0x893   : > { %10225 = vmatprep.subr.mxu1 %v11725_v18 }
 0x894   : > { %10226 = vmatpush3.msra.mxu1 %v11725_v18  ;;  %v4417_v18 = vld [vmem:[#allocation2 + $0x1a] sm:$0x1] }
 0x895   : > { %10227 = vmatprep.subr.mxu1 %v11726_v63 }
 0x896   : > { %10228 = vmatpush3.msra.mxu1 %v11726_v63 }
 0x897   : > { %10229 = vmatprep.subr.mxu1 %v11727_v62 }
 0x898   : > { %10230 = vmatpush3.msra.mxu1 %v11727_v62 }
 0x899   : > { %10234 = vmatprep.subr.mxu1 %v11728_v13 }
 0x8e8   : > { %v4262_v46 = vpop.permute.xlu0 %4261 }
 0x8e9   : > { %v4267_v39 = vsel %vm2777_vm1, %v14818_v4, %v4262_v46  ;;  %v4429_v46 = vld [vmem:[#allocation2 + $0x7a] sm:$0x1] }
 0x8ea   : > { %10190 = vmatprep.mubr.msk.f32.mxu0 %vm3416_vm0, %v4267_v39 }
 0x8ec   : > { %v4252_v6 = vpop.permute.xlu0 %4251 }
 0x8ed   : > { %v14851_v21 = vsel %vm3560_vm5, %v4252_v6, %v14507_v55  ;;  %v11730_v55 = vld [vmem:[%s17455_s10 + $0x28] sm:$0xff]  ;;  %v4418_v6 = vld [vmem:[#allocation2 + $0x22] sm:$0x1] }
 0x8ee   : > { %v4673_v28 = vrot.slane %v14851_v21, 1 }
 0x8f0   : > { %v4264_v58 = vpop.permute.xlu1 %4263  ;;  %4689 = vrot.lane.b32.xlu0 %v4673_v28, %s17497_s28 }
 0x8f1   : > { %v4268_v57 = vsel %vm2777_vm1, %v14826_v51, %v4264_v58 }
 0x8f2   : > { %10191 = vmatmul.mubr.msk.f32.vlgmr.msra.gmra.mxu0 %vm3416_vm0, %v4268_v57 }
 0x8f3   : > { %10205 = vmatpush3.msra.mxu0 %v11728_v13 }
 0x8f4   : > { %10206 = vmatprep.subr.mxu0 %v11729_v36 }
 0x8f5   : > { %10207 = vmatpush3.msra.mxu0 %v11729_v36 }
 0x8f6   : > { %10208 = vmatprep.subr.mxu0 %v11730_v55 }
 0x8f7   : > { %10209 = vmatpush3.msra.mxu0 %v11730_v55 }
 0x8f8   : > { %10210 = vmatprep.subr.mxu0 %v11731_v32 }
 0x8f9   : > { %10211 = vmatpush3.msra.mxu0 %v11731_v32 }
 0x8fa   : > { %10212 = vmatprep.subr.mxu0 %v11732_v45 }
 0x8fb   : > { %10213 = vmatpush3.msra.mxu0 %v11732_v45 }
 0x8fc   : > { %10214 = vmatprep.subr.mxu0 %v11733_v47 }
 0x8fd   : > { %10215 = vmatpush3.msra.mxu0 %v11733_v47 }
 0x8fe   : > { %10216 = vmatprep.subr.mxu0 %v11734_v59 }
 0x8ff   : > { %10217 = vmatpush3.msra.mxu0 %v11734_v59  ;;  %v4674_v59 = vrot.slane %v14851_v21, 2 }
 0x900   : > { %10218 = vmatprep.subr.mxu0 %v11735_v3 }
 0x901   : > { %10219 = vmatpush3.msra.mxu0 %v11735_v3 }
 0x902   : > { %10253 = vmatprep.subr.mxu0 %v11724_v37 }
 0x951   : > { %v10203_v34 = vpop.f32.mrf.mxu1 }
 0x952   : > { %v14879_v2 = vadd.f32 %v10203_v34, %v4422_v8  ;;  %v4520_v31 = vrot.slane %v10203_v34, 1  ;;  %v4522_v56 = vrot.slane %v10203_v34, 3  ;;  %v4523_v30 = vrot.slane %v10203_v34, 4 }
 0x953   : > { %v4524_v23 = vrot.slane %v10203_v34, 5  ;;  %v4525_v49 = vrot.slane %v10203_v34, 6  ;;  %v14897_v0 = vpop.f32.mrf.mxu1  ;;  %v4521_v54 = vrot.slane %v10203_v34, 2  ;;  %v4526_v25 = vrot.slane %v10203_v34, 7 }
 0x954   : > { %10837 = vtanh.f32 %v14879_v2  ;;  %v14882_v40 = vadd.f32 %v4520_v31, %v4423_v35  ;;  %v14884_v12 = vadd.f32 %v4522_v56, %v4425_v44  ;;  %v14887_v11 = vadd.f32 %v4523_v30, %v4426_v24  ;;  %v4416_v44 = vld [vmem:[#allocation2 + $0x12] sm:$0x1] }
 0x955   : > { %v14891_v17 = vadd.f32 %v4524_v23, %v4427_v48  ;;  %v14894_v29 = vadd.f32 %v4525_v49, %v4428_v41  ;;  %v4513_v5 = vrot.slane %v14897_v0, 1  ;;  %v14904_v42 = vadd.f32 %v14897_v0, %v4414_v19  ;;  %v4420_v49 = vld [vmem:[#allocation2 + $0x32] sm:$0x1] }
 0x956   : > { %10839 = vtanh.f32 %v14882_v40  ;;  %v4515_v7 = vrot.slane %v14897_v0, 3  ;;  %v14910_v37 = vadd.f32 %v4521_v54, %v4424_v15  ;;  %v4516_v62 = vrot.slane %v14897_v0, 4  ;;  %v4254_v54 = vpop.permute.xlu1 %4253 }
 0x957   : > { %10841 = vtanh.f32 %v14884_v12  ;;  %v14907_v53 = vadd.f32 %v4513_v5, %v4415_v50  ;;  %v14918_v39 = vadd.f32 %v4526_v25, %v4429_v46  ;;  %v4514_v8 = vrot.slane %v14897_v0, 2 }
 0x958   : > { %10843 = vtanh.f32 %v14887_v11  ;;  %v14914_v13 = vadd.f32 %v4515_v7, %v4417_v18  ;;  %v14921_v57 = vadd.f32 %v4516_v62, %v4418_v6  ;;  %v9825_v56 = vmul.f32 -1.442695, %v14879_v2 }
 0x959   : > { %10845 = vtanh.f32 %v14891_v17  ;;  %v4517_v30 = vrot.slane %v14897_v0, 5  ;;  %v14945_v24 = vadd.f32 %v4514_v8, %v4416_v44  ;;  %v4518_v23 = vrot.slane %v14897_v0, 6 }
 0x95a   : > { %10847 = vtanh.f32 %v14894_v29  ;;  %v4675_v19 = vrot.slane %v14851_v21, 3  ;;  %v4677_v25 = vrot.slane %v14851_v21, 5  ;;  %v9817_v62 = vmul.f32 -1.442695, %v14904_v42 }
 0x95b   : > { %10849 = vtanh.f32 %v14904_v42  ;;  %v14953_v41 = vadd.f32 %v4518_v23, %v4420_v49  ;;  %v9827_v6 = vmul.f32 -1.442695, %v14910_v37  ;;  %v9829_v42 = vmul.f32 -1.442695, %v14887_v11 }
 0x95c   : > { %10851 = vtanh.f32 %v14907_v53  ;;  %v9820_v11 = vmul.f32 -1.442695, %v14914_v13  ;;  %v9821_v8 = vmul.f32 -1.442695, %v14921_v57 }
 0x95d   : > { %10853 = vtanh.f32 %v14910_v37 }
 0x95e   : > { %10855 = vtanh.f32 %v14914_v13 }
 0x95f   : > { %10857 = vtanh.f32 %v14918_v39 }
 0x960   : > { %10859 = vtanh.f32 %v14921_v57 }
 0x961   : > { %v10838_v14 = vpop.eup %10837 }
 0x962   : > { %4783 = vrot.lane.b32.xlu1 %v10838_v14, %s17572_s25  ;;  %v4419_v14 = vld [vmem:[#allocation2 + $0x2a] sm:$0x1] }
 0x963   : > { %v10840_v20 = vpop.eup %10839  ;;  %v14949_v48 = vadd.f32 %v4517_v30, %v4419_v14 }
 0x964   : > { %4785 = vrot.lane.b32.xlu0 %v10840_v20, %s17572_s25  ;;  %v10842_v38 = vpop.eup %10841  ;;  %v4421_v20 = vld [vmem:[#allocation2 + $0x3a] sm:$0x1] }
 0x965   : > { %v10844_v61 = vpop.eup %10843 }
 0x966   : > { %v10846_v63 = vpop.eup %10845 }
 0x967   : > { %v10848_v58 = vpop.eup %10847 }
 0x968   : > { %4789 = vrot.lane.b32.xlu0 %v10842_v38, %s17572_s25  ;;  %v10850_v28 = vpop.eup %10849 }
 0x969   : > { %v10852_v36 = vpop.eup %10851  ;;  %4767 = vrot.lane.b32.xlu1 %v10850_v28, %s17572_s25  ;;  %v9828_v28 = vmul.f32 -1.442695, %v14884_v12 }
 0x96a   : > { %v10854_v55 = vpop.eup %10853 }
 0x96b   : > { %v10856_v32 = vpop.eup %10855 }
 0x96c   : > { %4791 = vrot.lane.b32.xlu0 %v10844_v61, %s17572_s25  ;;  %v10858_v45 = vpop.eup %10857  ;;  %v14967_v61 = vsel %vm3561_vm14, %v4254_v54, %v14517_v26 }
 0x96d   : > { %4787 = vrot.lane.b32.xlu1 %v10854_v55, %s17572_s25  ;;  %v10860_v47 = vpop.eup %10859  ;;  %v4684_v26 = vrot.slane %v14967_v61, 5  ;;  %v9830_v55 = vmul.f32 -1.442695, %v14891_v17  ;;  %v4682_v49 = vrot.slane %v14967_v61, 3 }
 0x970   : > { %4793 = vrot.lane.b32.xlu0 %v10846_v63, %s17572_s25  ;;  %v9826_v63 = vmul.f32 -1.442695, %v14882_v40  ;;  %v4680_v40 = vrot.slane %v14967_v61, 1 }
 0x971   : > { %4797 = vrot.lane.b32.xlu1 %v10858_v45, %s17572_s25  ;;  %v9818_v45 = vmul.f32 -1.442695, %v14907_v53 }
 0x974   : > { %4795 = vrot.lane.b32.xlu0 %v10848_v58, %s17572_s25  ;;  %v4679_v58 = vrot.slane %v14851_v21, 7 }
 0x978   : > { %4769 = vrot.lane.b32.xlu0 %v10852_v36, %s17572_s25  ;;  %v4686_v36 = vrot.slane %v14967_v61, 7 }
 0x97c   : > { %4773 = vrot.lane.b32.xlu0 %v10856_v32, %s17572_s25  ;;  %v14990_v32 = vpop.permute.xlu0 %4689 }
 0x980   : > { %4775 = vrot.lane.b32.xlu0 %v10860_v47, %s17572_s25 }
 0x984   : > { %4691 = vrot.lane.b32.xlu0 %v4674_v59, %s17497_s28  ;;  %v4681_v59 = vrot.slane %v14967_v61, 2 }
 0x9b2   : > { %v10192_v3 = vpop.f32.mrf.mxu0 }
 0x9b3   : > { %v14936_v34 = vadd.f32 %v10192_v3, %v14614_v43 }
 0x9b4   : > { %v4341_v31 = vpop.f32.mrf.mxu0 }
 0x9b5   : > { %10861 = vtanh.f32 %v14936_v34  ;;  %v14941_v35 = vadd.f32 %v14614_v43, %v4341_v31  ;;  %v4519_v43 = vrot.slane %v14897_v0, 7 }
 0x9b7   : > { %10863 = vtanh.f32 %v14941_v35  ;;  %v14957_v38 = vadd.f32 %v4519_v43, %v4421_v20 }
 0x9b8   : > { %10865 = vpow2.f32 %v9825_v56  ;;  %v4676_v56 = vrot.slane %v14851_v21, 4 }
 0x9b9   : > { %10867 = vtanh.f32 %v14945_v24 }
 0x9ba   : > { %10869 = vtanh.f32 %v14949_v48 }
 0x9bb   : > { %10871 = vtanh.f32 %v14953_v41 }
 0x9bc   : > { %10873 = vtanh.f32 %v14957_v38 }
 0x9c2   : > { %v10862_v2 = vpop.eup %10861 }
 0x9c3   : > { %4370 = vrot.lane.b32.xlu0 %v10862_v2, %s17572_s25 }
 0x9c4   : > { %v10864_v5 = vpop.eup %10863 }
 0x9c5   : > { %4368 = vrot.lane.b32.xlu1 %v10864_v5, %s17572_s25  ;;  %v10866_v0 = vpop.eup %10865  ;;  %v4683_v5 = vrot.slane %v14967_v61, 4 }
 0x9c6   : > { %v10868_v50 = vpop.eup %10867  ;;  %v4615_v7 = vadd.f32 1.0, %v10866_v0 }
 0x9c7   : > { %4693 = vrot.lane.b32.xlu0 %v4675_v19, %s17497_s28  ;;  %v10870_v15 = vpop.eup %10869 }
 0x9c8   : > { %10875 = vrcp.f32 %v4615_v7  ;;  %v10872_v18 = vpop.eup %10871 }
 0x9c9   : > { %4771 = vrot.lane.b32.xlu1 %v10868_v50, %s17572_s25  ;;  %v10874_v46 = vpop.eup %10873  ;;  %10877 = vpow2.f32 %v9826_v63 }
 0x9ca   : > { %10879 = vpow2.f32 %v9817_v62  ;;  %v4685_v62 = vrot.slane %v14967_v61, 6 }
 0x9cb   : > { %4703 = vrot.lane.b32.xlu0 %v14967_v61, %s17497_s28  ;;  %10881 = vpow2.f32 %v9827_v6 }
 0x9cc   : > { %10883 = vpow2.f32 %v9828_v28 }
 0x9cd   : > { %4777 = vrot.lane.b32.xlu1 %v10870_v15, %s17572_s25  ;;  %10885 = vpow2.f32 %v9829_v42  ;;  %v4678_v15 = vrot.slane %v14851_v21, 6 }
 0x9ce   : > { %10887 = vpow2.f32 %v9830_v55 }
 0x9cf   : > { %4697 = vrot.lane.b32.xlu0 %v4677_v25, %s17497_s28  ;;  %10889 = vpow2.f32 %v9818_v45 }
 0x9d0   : > { %10891 = vpow2.f32 %v9820_v11 }
 0x9d1   : > { %4779 = vrot.lane.b32.xlu1 %v10872_v18, %s17572_s25  ;;  %10893 = vpow2.f32 %v9821_v8 }
 0x9d3   : > { %4713 = vrot.lane.b32.xlu0 %v4684_v26, %s17497_s28 }
 0x9d4   : > { %v4784_v37 = vpop.permute.xlu1 %4783 }
 0x9d5   : > { %4781 = vrot.lane.b32.xlu1 %v10874_v46, %s17572_s25  ;;  %v14993_v12 = vpop.eup %10875 }
 0x9d6   : > { %v4823_v47 = vmul.f32 %v14993_v12, %v4784_v37  ;;  %v4786_v17 = vpop.permute.xlu0 %4785  ;;  %v10878_v3 = vpop.eup %10877 }
 0x9d7   : > { %4701 = vrot.lane.b32.xlu0 %v4679_v58, %s17497_s28  ;;  %v10880_v53 = vpop.eup %10879  ;;  %v4616_v13 = vadd.f32 1.0, %v10878_v3 }
 0x9d8   : > { %v10882_v44 = vpop.eup %10881  ;;  %v4607_v30 = vadd.f32 1.0, %v10880_v53 }
 0x9d9   : > { %4705 = vrot.lane.b32.xlu1 %v4680_v40, %s17497_s28  ;;  %v10884_v14 = vpop.eup %10883  ;;  %v4617_v43 = vadd.f32 1.0, %v10882_v44  ;;  %10895 = vrcp.f32 %v4616_v13 }
 0x9da   : > { %v4790_v31 = vpop.permute.xlu0 %4789  ;;  %v10886_v2 = vpop.eup %10885  ;;  %v4618_v57 = vadd.f32 1.0, %v10884_v14  ;;  %10897 = vrcp.f32 %v4607_v30 }
 0x9db   : > { %4717 = vrot.lane.b32.xlu0 %v4686_v36, %s17497_s28  ;;  %v10888_v20 = vpop.eup %10887  ;;  %v4619_v19 = vadd.f32 1.0, %v10886_v2  ;;  %10899 = vrcp.f32 %v4617_v43  ;;  %v4768_v28 = vpop.permute.xlu1 %4767  ;;  %v9822_v43 = vmul.f32 -1.442695, %v14949_v48  ;;  %v9831_v2 = vmul.f32 -1.442695, %v14894_v29 }
 0x9dc   : > { %v10890_v0 = vpop.eup %10889  ;;  %v4620_v50 = vadd.f32 1.0, %v10888_v20  ;;  %10901 = vrcp.f32 %v4618_v57  ;;  %v9823_v57 = vmul.f32 -1.442695, %v14953_v41  ;;  %v9824_v20 = vmul.f32 -1.442695, %v14957_v38 }
 0x9dd   : > { %4687 = vrot.lane.b32.xlu1 %v14851_v21, %s17497_s28  ;;  %v10892_v7 = vpop.eup %10891  ;;  %10903 = vrcp.f32 %v4619_v19  ;;  %v4608_v25 = vadd.f32 1.0, %v10890_v0  ;;  %v9814_v48 = vmul.f32 -1.442695, %v14936_v34 }
 0x9de   : > { %v4792_v23 = vpop.permute.xlu0 %4791  ;;  %10905 = vrcp.f32 %v4620_v50  ;;  %v4610_v18 = vadd.f32 1.0, %v10892_v7  ;;  %v10894_v63 = vpop.eup %10893 }
 0x9df   : > { %4863 = vrot.lane.b32.xlu0 %v4823_v47, %s17497_s28  ;;  %10907 = vrcp.f32 %v4608_v25  ;;  %v4611_v6 = vadd.f32 1.0, %v10894_v63  ;;  %v4788_v45 = vpop.permute.xlu1 %4787 }
 0x9e0   : > { %10909 = vrcp.f32 %v4610_v18 }
 0x9e1   : > { %4707 = vrot.lane.b32.xlu1 %v4681_v59, %s17497_s28  ;;  %10911 = vrcp.f32 %v4611_v6 }
 0x9e2   : > { %v4794_v54 = vpop.permute.xlu0 %4793 }
 0x9e3   : > { %v4798_v18 = vpop.permute.xlu1 %4797 }
 0x9e5   : > { %4695 = vrot.lane.b32.xlu1 %v4676_v56, %s17497_s28 }
 0x9e6   : > { %v15012_v26 = vpop.permute.xlu0 %4795  ;;  %v15015_v46 = vpop.eup %10895 }
 0x9e7   : > { %v15018_v58 = vpop.eup %10897  ;;  %v4824_v40 = vmul.f32 %v15015_v46, %v4786_v17 }
 0x9e8   : > { %v4815_v42 = vmul.f32 %v15018_v58, %v4768_v28  ;;  %v15022_v55 = vpop.eup %10899 }
 0x9e9   : > { %4709 = vrot.lane.b32.xlu1 %v4682_v49, %s17497_s28  ;;  %v15026_v37 = vpop.eup %10901  ;;  %v4825_v11 = vmul.f32 %v15022_v55, %v4788_v45  ;;  %v9819_v49 = vmul.f32 -1.442695, %v14945_v24 }
 0x9ea   : > { %v4770_v36 = vpop.permute.xlu0 %4769  ;;  %4847 = vrot.lane.b32.xlu0 %v4815_v42, %s17497_s28  ;;  %v4826_v47 = vmul.f32 %v15026_v37, %v4790_v31  ;;  %v15030_v59 = vpop.eup %10903 }
 0x9eb   : > { %v15034_v17 = vpop.eup %10905  ;;  %v4827_v8 = vmul.f32 %v15030_v59, %v4792_v23  ;;  %10913 = vpow2.f32 %v9819_v49 }
 0x9ec   : > { %v4828_v53 = vmul.f32 %v15034_v17, %v4794_v54  ;;  %v15038_v56 = vpop.eup %10907  ;;  %10915 = vpow2.f32 %v9822_v43  ;;  %v9832_v54 = vmul.f32 -1.442695, %v14918_v39 }
 0x9ed   : > { %4711 = vrot.lane.b32.xlu1 %v4683_v5, %s17497_s28  ;;  %v15042_v31 = vpop.eup %10909  ;;  %v4816_v13 = vmul.f32 %v15038_v56, %v4770_v36  ;;  %10917 = vpow2.f32 %v9831_v2  ;;  %v9813_v5 = vmul.f32 -1.442695, %v14941_v35 }
 0x9ee   : > { %4867 = vrot.lane.b32.xlu0 %v4825_v11, %s17497_s28  ;;  %v4774_v3 = vpop.permute.xlu0 %4773  ;;  %v15048_v14 = vpop.eup %10911  ;;  %10919 = vpow2.f32 %v9823_v57 }
 0x9ef   : > { %v4818_v44 = vmul.f32 %v15042_v31, %v4774_v3  ;;  %10921 = vpow2.f32 %v9824_v20 }
 0x9f0   : > { %10923 = vpow2.f32 %v9813_v5 }
 0x9f1   : > { %4699 = vrot.lane.b32.xlu1 %v4678_v15, %s17497_s28  ;;  %10925 = vpow2.f32 %v9832_v54 }
 0x9f2   : > { %4873 = vrot.lane.b32.xlu0 %v4828_v53, %s17497_s28  ;;  %v4776_v30 = vpop.permute.xlu0 %4775 }
 0x9f3   : > { %v4819_v23 = vmul.f32 %v15048_v14, %v4776_v30 }
 0x9f5   : > { %4715 = vrot.lane.b32.xlu1 %v4685_v62, %s17497_s28 }
 0x9f6   : > { %4849 = vrot.lane.b32.xlu0 %v4816_v13, %s17497_s28  ;;  %v15060_v7 = vpop.permute.xlu0 %4691 }
 0x9f8   : > { %v10914_v19 = vpop.eup %10913 }
 0x9f9   : > { %4865 = vrot.lane.b32.xlu1 %v4824_v40, %s17497_s28  ;;  %v4609_v24 = vadd.f32 1.0, %v10914_v19  ;;  %v10916_v0 = vpop.eup %10915 }
 0x9fa   : > { %v10918_v29 = vpop.eup %10917  ;;  %v4612_v50 = vadd.f32 1.0, %v10916_v0 }
 0x9fb   : > { %10927 = vrcp.f32 %v4609_v24  ;;  %v10920_v41 = vpop.eup %10919  ;;  %v4621_v38 = vadd.f32 1.0, %v10918_v29 }
 0x9fc   : > { %10929 = vpow2.f32 %v9814_v48  ;;  %v10922_v15 = vpop.eup %10921  ;;  %v4613_v35 = vadd.f32 1.0, %v10920_v41 }
 0x9fd   : > { %4869 = vrot.lane.b32.xlu1 %v4826_v47, %s17497_s28  ;;  %10931 = vrcp.f32 %v4612_v50  ;;  %v10924_v25 = vpop.eup %10923  ;;  %v4614_v63 = vadd.f32 1.0, %v10922_v15 }
 0x9fe   : > { %10933 = vrcp.f32 %v4621_v38  ;;  %v4356_v62 = vadd.f32 1.0, %v10924_v25  ;;  %v10926_v34 = vpop.eup %10925 }
 0x9ff   : > { %10935 = vrcp.f32 %v4613_v35  ;;  %v4622_v42 = vadd.f32 1.0, %v10926_v34 }
 0xa00   : > { %10937 = vrcp.f32 %v4614_v63 }
 0xa01   : > { %4871 = vrot.lane.b32.xlu1 %v4827_v8, %s17497_s28  ;;  %10939 = vrcp.f32 %v4356_v62 }
 0xa02   : > { %10941 = vrcp.f32 %v4622_v42 }
 0xa05   : > { %4853 = vrot.lane.b32.xlu1 %v4818_v44, %s17497_s28 }
 0xa08   : > { %v15064_v40 = vpop.eup %10927 }
 0xa09   : > { %4855 = vrot.lane.b32.xlu1 %v4819_v23, %s17497_s28  ;;  %v10930_v36 = vpop.eup %10929 }
 0xa0a   : > { %v4357_v3 = vadd.f32 1.0, %v10930_v36  ;;  %v15068_v8 = vpop.eup %10931 }
 0xa0b   : > { %v15073_v30 = vpop.eup %10933 }
 0xa0c   : > { %10943 = vrcp.f32 %v4357_v3  ;;  %v15076_v23 = vpop.eup %10935  ;;  %v4829_v43 = vmul.f32 %v15073_v30, %v15012_v26 }
 0xa0d   : > { %v15081_v20 = vpop.eup %10937 }
 0xa0e   : > { %v15085_v5 = vpop.eup %10939 }
 0xa0f   : > { %v15093_v26 = vpop.eup %10941 }
 0xa10   : > { %v4830_v29 = vmul.f32 %v15093_v26, %v4798_v18 }
 0xa19   : > { %v15099_v41 = vpop.eup %10943 }
 0xa35   : > { %v4371_v39 = vpop.permute.xlu0 %4370 }
 0xa36   : > { %v4375_v35 = vmul.f32 %v15099_v41, %v4371_v39 }
 0xa37   : > { %v4369_v6 = vpop.permute.xlu1 %4368 }
 0xa38   : > { %v4374_v54 = vmul.f32 %v15085_v5, %v4369_v6 }
 0xa39   : > { %v15062_v28 = vpop.permute.xlu0 %4693 }
 0xa3b   : > { %v4772_v45 = vpop.permute.xlu1 %4771 }
 0xa3c   : > { %v4817_v47 = vmul.f32 %v15064_v40, %v4772_v45 }
 0xa3d   : > { %v4704_v11 = vpop.permute.xlu0 %4703 }
 0xa3e   : > { %4851 = vrot.lane.b32.xlu0 %v4817_v47, %s17497_s28  ;;  %v4743_v38 = vmul.f32 %v14993_v12, %v4704_v11 }
 0xa3f   : > { %v4778_v53 = vpop.permute.xlu1 %4777 }
 0xa40   : > { %v4820_v13 = vmul.f32 %v15068_v8, %v4778_v53 }
 0xa41   : > { %v15071_v44 = vpop.permute.xlu0 %4697 }
 0xa42   : > { %4857 = vrot.lane.b32.xlu0 %v4820_v13, %s17497_s28 }
 0xa43   : > { %v4780_v49 = vpop.permute.xlu1 %4779 }
 0xa44   : > { %v4821_v2 = vmul.f32 %v15076_v23, %v4780_v49 }
 0xa45   : > { %v4714_v57 = vpop.permute.xlu0 %4713 }
 0xa46   : > { %4875 = vrot.lane.b32.xlu0 %v4829_v43, %s17497_s28  ;;  %4859 = vrot.lane.b32.xlu1 %v4821_v2, %s17497_s28 }
 0xa47   : > { %v4782_v19 = vpop.permute.xlu1 %4781 }
 0xa48   : > { %v4822_v24 = vmul.f32 %v15081_v20, %v4782_v19 }
 0xa49   : > { %v15089_v48 = vpop.permute.xlu0 %4701 }
 0xa4a   : > { %4378 = vrot.lane.b32.xlu0 %v4374_v54, %s17497_s28  ;;  %4861 = vrot.lane.b32.xlu1 %v4822_v24, %s17497_s28 }
 0xa4b   : > { %v4706_v0 = vpop.permute.xlu1 %4705 }
 0xa4c   : > { %v4744_v47 = vmul.f32 %v15015_v46, %v4706_v0  ;;  %v4748_v0 = vmul.f32 %v15034_v17, %v4714_v57 }
 0xa4d   : > { %v15096_v50 = vpop.permute.xlu0 %4717 }
 0xa4e   : > { %4877 = vrot.lane.b32.xlu1 %v4830_v29, %s17497_s28 }
 0xa4f   : > { %v4688_v15 = vpop.permute.xlu1 %4687 }
 0xa50   : > { %v4735_v39 = vmul.f32 %v15018_v58, %v4688_v15 }
 0xa51   : > { %v4864_v25 = vpop.permute.xlu0 %4863 }
 0xa52   : > { %v4903_v63 = vadd.f32 %v4864_v25, %v4743_v38  ;;  %4380 = vrot.lane.b32.xlu1 %v4375_v35, %s17497_s28 }
 0xa53   : > { %v4708_v62 = vpop.permute.xlu1 %4707 }
 0xa54   : > { %10945 = vtanh.f32 %v4903_v63  ;;  %v4745_v49 = vmul.f32 %v15022_v55, %v4708_v62 }
 0xa57   : > { %v4696_v34 = vpop.permute.xlu1 %4695 }
 0xa5b   : > { %v4710_v6 = vpop.permute.xlu1 %4709 }
 0xa5c   : > { %v4848_v11 = vpop.permute.xlu0 %4847  ;;  %v4746_v43 = vmul.f32 %v15026_v37, %v4710_v6 }
 0xa5d   : > { %v4895_v53 = vadd.f32 %v4848_v11, %v4735_v39 }
 0xa5f   : > { %v4712_v18 = vpop.permute.xlu1 %4711  ;;  %10947 = vtanh.f32 %v4895_v53 }
 0xa60   : > { %v4868_v19 = vpop.permute.xlu0 %4867  ;;  %v4747_v35 = vmul.f32 %v15030_v59, %v4712_v18 }
 0xa61   : > { %v10946_v42 = vpop.eup %10945  ;;  %v4905_v24 = vadd.f32 %v4868_v19, %v4745_v49 }
 0xa62   : > { %4959 = vrot.lane.b32.xlu1 %v10946_v42, %s17572_s25 }
 0xa63   : > { %v15105_v36 = vpop.permute.xlu1 %4699  ;;  %v5091_v15 = vrot.slane %v4905_v24, 6 }
 0xa64   : > { %v4874_v42 = vpop.permute.xlu0 %4873 }
 0xa67   : > { %v15107_v45 = vpop.permute.xlu1 %4715 }
 0xa68   : > { %v4850_v57 = vpop.permute.xlu0 %4849 }
 0xa6b   : > { %v4866_v3 = vpop.permute.xlu1 %4865 }
 0xa6c   : > { %v4904_v13 = vadd.f32 %v4866_v3, %v4744_v47  ;;  %v4908_v47 = vadd.f32 %v4874_v42, %v4748_v0 }
 0xa6e   : > { %v5089_v2 = vrot.slane %v4904_v13, 7  ;;  %10949 = vtanh.f32 %v4904_v13  ;;  %v5097_v13 = vrot.slane %v4908_v47, 3 }
 0xa6f   : > { %v4870_v54 = vpop.permute.xlu1 %4869  ;;  %10951 = vtanh.f32 %v4905_v24 }
 0xa70   : > { %v5090_v29 = vsel %vm3305_vm9, %v5089_v2, %v4903_v63  ;;  %v4906_v38 = vadd.f32 %v4870_v54, %v4746_v43  ;;  %v4736_v63 = vmul.f32 %v15038_v56, %v14990_v32  ;;  %v10948_v54 = vpop.eup %10947  ;;  %v4738_v32 = vmul.f32 %v15042_v31, %v15062_v28 }
 0xa71   : > { %v5092_v6 = vsel %vm3308_vm12, %v5091_v15, %v5090_v29  ;;  %4943 = vrot.lane.b32.xlu1 %v10948_v54, %s17572_s25 }
 0xa72   : > { %v5093_v25 = vrot.slane %v4906_v38, 5  ;;  %10953 = vtanh.f32 %v4906_v38  ;;  %v4896_v49 = vadd.f32 %v4850_v57, %v4736_v63  ;;  %v4740_v63 = vmul.f32 %v15068_v8, %v15071_v44 }
 0xa73   : > { %v4872_v62 = vpop.permute.xlu1 %4871 }
 0xa74   : > { %v4907_v39 = vadd.f32 %v4872_v62, %v4747_v35  ;;  %v5094_v11 = vsel %vm3311_vm13, %v5093_v25, %v5092_v6  ;;  %v5075_v2 = vrot.slane %v4896_v49, 7  ;;  %v4739_v25 = vmul.f32 %v15048_v14, %v4696_v34 }
 0xa75   : > { %v4737_v34 = vmul.f32 %v15064_v40, %v15060_v7  ;;  %v4749_v7 = vmul.f32 %v15073_v30, %v15107_v45  ;;  %v4742_v45 = vmul.f32 %v15081_v20, %v15089_v48 }
 0xa76   : > { %v5095_v3 = vrot.slane %v4907_v39, 4  ;;  %10955 = vtanh.f32 %v4907_v39  ;;  %v5076_v29 = vsel %vm3305_vm9, %v5075_v2, %v4895_v53 }
 0xa77   : > { %v4854_v19 = vpop.permute.xlu1 %4853  ;;  %10957 = vtanh.f32 %v4908_v47 }
 0xa78   : > { %v5096_v18 = vsel %vm3314_vm11, %v5095_v3, %v5094_v11  ;;  %10959 = vtanh.f32 %v4896_v49  ;;  %v4898_v0 = vadd.f32 %v4854_v19, %v4738_v32  ;;  %v4741_v19 = vmul.f32 %v15076_v23, %v15105_v36 }
 0xa79   : > { %v15122_v43 = vsel %vm3317_vm8, %v5097_v13, %v5096_v18 }
 0xa7a   : > { %10961 = vtanh.f32 %v4898_v0  ;;  %v5079_v13 = vrot.slane %v4898_v0, 5  ;;  %v15151_v0 = vsel %vm2755_vm2, %v14751_v27, 0.0 }
 0xa7b   : > { %v10950_v24 = vpop.eup %10949  ;;  %v4856_v35 = vpop.permute.xlu1 %4855 }
 0xa7c   : > { %4961 = vrot.lane.b32.xlu0 %v10950_v24, %s17572_s25  ;;  %v10952_v38 = vpop.eup %10951  ;;  %v4899_v53 = vadd.f32 %v4856_v35, %v4739_v25  ;;  %v4364_v35 = vmul.f32 %v15085_v5, %v15151_v0 }
 0xa7d   : > { %4963 = vrot.lane.b32.xlu1 %v10952_v38, %s17572_s25 }
 0xa7e   : > { %10963 = vtanh.f32 %v4899_v53  ;;  %v5081_v49 = vrot.slane %v4899_v53, 4 }
 0xa7f   : > { %v10954_v15 = vpop.eup %10953 }
 0xa80   : > { %4965 = vrot.lane.b32.xlu0 %v10954_v15, %s17572_s25 }
 0xa83   : > { %v10956_v42 = vpop.eup %10955 }
 0xa84   : > { %4967 = vrot.lane.b32.xlu0 %v10956_v42, %s17572_s25  ;;  %v10958_v28 = vpop.eup %10957 }
 0xa85   : > { %v10960_v62 = vpop.eup %10959 }
 0xa87   : > { %v10962_v47 = vpop.eup %10961 }
 0xa88   : > { %4969 = vrot.lane.b32.xlu0 %v10958_v28, %s17572_s25 }
 0xa8b   : > { %v10964_v6 = vpop.eup %10963 }
 0xa8c   : > { %4945 = vrot.lane.b32.xlu0 %v10960_v62, %s17572_s25 }
 0xa90   : > { %4949 = vrot.lane.b32.xlu0 %v10962_v47, %s17572_s25 }
 0xa94   : > { %4951 = vrot.lane.b32.xlu0 %v10964_v6, %s17572_s25  ;;  %v4750_v6 = vmul.f32 %v15093_v26, %v15096_v50 }
 0xab0   : > { %v4852_v39 = vpop.permute.xlu0 %4851 }
 0xab1   : > { %v4897_v11 = vadd.f32 %v4852_v39, %v4737_v34 }
 0xab3   : > { %10965 = vtanh.f32 %v4897_v11  ;;  %v5077_v3 = vrot.slane %v4897_v11, 6 }
 0xab4   : > { %v4858_v57 = vpop.permute.xlu0 %4857 }
 0xab5   : > { %v5078_v18 = vsel %vm3308_vm12, %v5077_v3, %v5076_v29  ;;  %v4900_v2 = vadd.f32 %v4858_v57, %v4740_v63 }
 0xab6   : > { %v5080_v54 = vsel %vm3311_vm13, %v5079_v13, %v5078_v18 }
 0xab7   : > { %10967 = vtanh.f32 %v4900_v2  ;;  %v5083_v24 = vrot.slane %v4900_v2, 3  ;;  %v5082_v44 = vsel %vm3314_vm11, %v5081_v49, %v5080_v54  ;;  %v11736_v2 = vld [vmem:[%s14316_s18] sm:$0xff] }
 0xab8   : > { %v4876_v32 = vpop.permute.xlu0 %4875  ;;  %v4860_v38 = vpop.permute.xlu1 %4859  ;;  %vm4402_vm15 = vcmp.gt.s32.totalorder %v11736_v2, 2 }
 0xab9   : > { %v4909_v29 = vadd.f32 %v4876_v32, %v4749_v7  ;;  %v4901_v15 = vadd.f32 %v4860_v38, %v4741_v19  ;;  %v5084_v36 = vsel %vm3317_vm8, %v5083_v24, %v5082_v44  ;;  %v4404_v7 = vsel %vm4402_vm15, 1, %v17571_v60  ;;  %v11737_v32 = vld [vmem:[%s14316_s18 + $0x8] sm:$0xff] }
 0xaba   : > { %vm4403_vm2 = vcmp.gt.s32.totalorder %v11737_v32, 2 }
 0xabb   : > { %10969 = vtanh.f32 %v4909_v29  ;;  %v5099_v25 = vrot.slane %v4909_v29, 2  ;;  %v5085_v53 = vrot.slane %v4901_v15, 2  ;;  %v4405_v38 = vsel %vm4403_vm2, 1, %v17571_v60 }
 0xabc   : > { %10971 = vtanh.f32 %v4901_v15  ;;  %v4379_v42 = vpop.permute.xlu0 %4378  ;;  %v4862_v28 = vpop.permute.xlu1 %4861 }
 0xabd   : > { %v15158_v62 = vadd.f32 %v4379_v42, %v4364_v35  ;;  %v4902_v52 = vadd.f32 %v4862_v28, %v4742_v45  ;;  %v5086_v27 = vsel %vm3320_vm10, %v5085_v53, %v5084_v36  ;;  %v5100_v47 = vsel %vm3320_vm10, %v5099_v25, %v15122_v43 }
 0xabe   : > { %v15173_v43 = vsel %vm2756_vm4, %v14755_v1, 0.0 }
 0xabf   : > { %10973 = vtanh.f32 %v15158_v62  ;;  %v5087_v48 = vrot.slane %v4902_v52, 1  ;;  %v4365_v3 = vmul.f32 %v15099_v41, %v15173_v43 }
 0xac0   : > { %v10966_v34 = vpop.eup %10965  ;;  %10975 = vtanh.f32 %v4902_v52  ;;  %v4878_v39 = vpop.permute.xlu1 %4877 }
 0xac1   : > { %v4910_v11 = vadd.f32 %v4878_v39, %v4750_v6  ;;  %4947 = vrot.lane.b32.xlu1 %v10966_v34, %s17572_s25  ;;  %v15168_v63 = vsel %vm3323_vm7, %v5087_v48, %v5086_v27 }
 0xac3   : > { %10977 = vtanh.f32 %v4910_v11  ;;  %v5101_v50 = vrot.slane %v4910_v11, 1 }
 0xac4   : > { %v10968_v13 = vpop.eup %10967  ;;  %v4381_v57 = vpop.permute.xlu1 %4380 }
 0xac5   : > { %v15177_v49 = vadd.f32 %v4381_v57, %v4365_v3  ;;  %4953 = vrot.lane.b32.xlu1 %v10968_v13, %s17572_s25  ;;  %v15181_v18 = vsel %vm3323_vm7, %v5101_v50, %v5100_v47 }
 0xac7   : > { %10979 = vtanh.f32 %v15177_v49 }
 0xac8   : > { %v10970_v9 = vpop.eup %10969 }
 0xac9   : > { %v10972_v1 = vpop.eup %10971  ;;  %4971 = vrot.lane.b32.xlu0 %v10970_v9, %s17572_s25 }
 0xaca   : > { %4955 = vrot.lane.b32.xlu1 %v10972_v1, %s17572_s25 }
 0xacc   : > { %v10974_v19 = vpop.eup %10973 }
 0xacd   : > { %v10976_v54 = vpop.eup %10975  ;;  %4390 = vrot.lane.b32.xlu0 %v10974_v19, %s17572_s25 }
 0xace   : > { %4957 = vrot.lane.b32.xlu1 %v10976_v54, %s17572_s25 }
 0xad0   : > { %v10978_v24 = vpop.eup %10977 }
 0xad1   : > { %4407 = vperm.xlu0 %10499, %v4404_v7  }
 0xad2   : > { %4973 = vrot.lane.b32.xlu1 %v10978_v24, %s17572_s25 }
 0xad4   : > { %v10980_v44 = vpop.eup %10979  ;;  %v4960_v35 = vpop.permute.xlu1 %4959 }
 0xad6   : > { %4392 = vrot.lane.b32.xlu1 %v10980_v44, %s17572_s25 }
 0xada   : > { %4410 = vperm.xlu1 %10500, %v4405_v38  }
 0xae3   : > { %v4944_v25 = vpop.permute.xlu1 %4943 }
 0xae4   : > { %v4991_v34 = vmul.f32 %v15018_v58, %v4944_v25 }
 0xaee   : > { %v4962_v29 = vpop.permute.xlu0 %4961 }
 0xaef   : > { %v4964_v42 = vpop.permute.xlu1 %4963  ;;  %v5000_v3 = vmul.f32 %v15015_v46, %v4962_v29 }
 0xaf0   : > { %v5001_v46 = vmul.f32 %v15022_v55, %v4964_v42 }
 0xaf1   : > { %v5037_v19 = vrot.slane %v5000_v3, 7 }
 0xaf2   : > { %v4966_v15 = vpop.permute.xlu0 %4965  ;;  %v5039_v55 = vrot.slane %v5001_v46, 6  ;;  %v11747_v46 = vld [vmem:[%s17453_s8] sm:$0xff] }
 0xaf3   : > { %v5002_v58 = vmul.f32 %v15026_v37, %v4966_v15 }
 0xaf5   : > { %v5041_v25 = vrot.slane %v5002_v58, 5  ;;  %v11744_v58 = vld [vmem:[%s17455_s10 + $0x18] sm:$0xff] }
 0xaf6   : > { %v4968_v36 = vpop.permute.xlu0 %4967 }
 0xaf7   : > { %v5003_v7 = vmul.f32 %v15030_v59, %v4968_v36 }
 0xafa   : > { %v4970_v45 = vpop.permute.xlu0 %4969 }
 0xafb   : > { %v5004_v44 = vmul.f32 %v15034_v17, %v4970_v45 }
 0xafd   : > { %v5045_v36 = vrot.slane %v5004_v44, 3  ;;  %v5274_v44 = vld [vmem:[#allocation2 + $0x43] sm:$0x1] }
 0xafe   : > { %v4946_v53 = vpop.permute.xlu0 %4945 }
 0xaff   : > { %v4992_v28 = vmul.f32 %v15038_v56, %v4946_v53  ;;  %v5043_v53 = vrot.slane %v5003_v7, 4  ;;  %v11748_v7 = vld [vmem:[%s17455_s10 + $0x8] sm:$0xff] }
 0xb01   : > { %v5023_v6 = vrot.slane %v4992_v28, 7 }
 0xb02   : > { %v4950_v52 = vpop.permute.xlu0 %4949 }
 0xb03   : > { %v4994_v39 = vmul.f32 %v15042_v31, %v4950_v52  ;;  %v5024_v13 = vsel %vm3305_vm9, %v5023_v6, %v4991_v34 }
 0xb05   : > { %v5027_v9 = vrot.slane %v4994_v39, 5 }
 0xb06   : > { %v4952_v11 = vpop.permute.xlu0 %4951 }
 0xb07   : > { %v4995_v57 = vmul.f32 %v15048_v14, %v4952_v11  ;;  %v4999_v14 = vmul.f32 %v14993_v12, %v4960_v35 }
 0xb09   : > { %v5029_v24 = vrot.slane %v4995_v57, 4  ;;  %v5038_v15 = vsel %vm3305_vm9, %v5037_v19, %v4999_v14  ;;  %v11743_v19 = vld [vmem:[%s17453_s8 + $0x10] sm:$0xff] }
 0xb0a   : > { %v5040_v17 = vsel %vm3308_vm12, %v5039_v55, %v5038_v15  ;;  %v5277_v15 = vld [vmem:[#allocation2 + $0x5b] sm:$0x1]  ;;  %v5278_v55 = vld [vmem:[#allocation2 + $0x63] sm:$0x1] }
 0xb0b   : > { %v5042_v28 = vsel %vm3311_vm13, %v5041_v25, %v5040_v17 }
 0xb33   : > { %v4948_v27 = vpop.permute.xlu1 %4947 }
 0xb34   : > { %v4993_v47 = vmul.f32 %v15064_v40, %v4948_v27 }
 0xb36   : > { %v5025_v48 = vrot.slane %v4993_v47, 6  ;;  %v5044_v47 = vsel %vm3314_vm11, %v5043_v53, %v5042_v28 }
 0xb37   : > { %v4954_v50 = vpop.permute.xlu1 %4953  ;;  %v5046_v6 = vsel %vm3317_vm8, %v5045_v36, %v5044_v47 }
 0xb38   : > { %v5026_v56 = vsel %vm3308_vm12, %v5025_v48, %v5024_v13  ;;  %v4996_v1 = vmul.f32 %v15068_v8, %v4954_v50 }
 0xb39   : > { %v5028_v31 = vsel %vm3311_vm13, %v5027_v9, %v5026_v56  ;;  %v11739_v9 = vld [vmem:[%s17455_s10 + $0x30] sm:$0xff] }
 0xb3a   : > { %v5031_v32 = vrot.slane %v4996_v1, 3  ;;  %v5030_v8 = vsel %vm3314_vm11, %v5029_v24, %v5028_v31  ;;  %v11740_v1 = vld [vmem:[%s17455_s10 + $0x28] sm:$0xff]  ;;  %v11749_v24 = vld [vmem:[%s17455_s10] sm:$0xff] }
 0xb3b   : > { %v4972_v40 = vpop.permute.xlu0 %4971  ;;  %v11745_v31 = vld [vmem:[%s17453_s8 + $0x8] sm:$0xff] }
 0xb3c   : > { %v4956_v2 = vpop.permute.xlu1 %4955  ;;  %v5005_v38 = vmul.f32 %v15073_v30, %v4972_v40  ;;  %v5032_v12 = vsel %vm3317_vm8, %v5031_v32, %v5030_v8  ;;  %v11741_v40 = vld [vmem:[%s17453_s8 + $0x18] sm:$0xff] }
 0xb3d   : > { %v4997_v54 = vmul.f32 %v15076_v23, %v4956_v2  ;;  %v11742_v2 = vld [vmem:[%s17455_s10 + $0x20] sm:$0xff] }
 0xb3e   : > { %v5047_v45 = vrot.slane %v5005_v38, 2  ;;  %v5275_v38 = vld [vmem:[#allocation2 + $0x4b] sm:$0x1] }
 0xb3f   : > { %v5033_v29 = vrot.slane %v4997_v54, 2  ;;  %v4391_v59 = vpop.permute.xlu0 %4390  ;;  %v11746_v54 = vld [vmem:[%s17455_s10 + $0x10] sm:$0xff] }
 0xb40   : > { %v4958_v37 = vpop.permute.xlu1 %4957  ;;  %v4396_v52 = vmul.f32 %v15085_v5, %v4391_v59  ;;  %v5048_v39 = vsel %vm3320_vm10, %v5047_v45, %v5046_v6  ;;  %v5280_v45 = vld [vmem:[#allocation2 + $0x73] sm:$0x1] }
 0xb41   : > { %v4998_v23 = vmul.f32 %v15081_v20, %v4958_v37  ;;  %v5034_v30 = vsel %vm3320_vm10, %v5033_v29, %v5032_v12  ;;  %v5279_v12 = vld [vmem:[#allocation2 + $0x6b] sm:$0x1] }
 0xb42   : > { %v15229_v5 = vsel %vm3560_vm5, %v4396_v52, %v14797_v33 }
 0xb43   : > { %v5035_v35 = vrot.slane %v4998_v23, 1 }
 0xb44   : > { %v4974_v42 = vpop.permute.xlu1 %4973 }
 0xb45   : > { %v5006_v27 = vmul.f32 %v15093_v26, %v4974_v42  ;;  %v5036_v20 = vsel %vm3323_vm7, %v5035_v35, %v5034_v30 }
 0xb46   : > { %5051 = vrot.lane.b32.xlu0 %v5036_v20, %s17497_s28 }
 0xb47   : > { %v5049_v48 = vrot.slane %v5006_v27, 1 }
 0xb48   : > { %v4393_v34 = vpop.permute.xlu1 %4392 }
 0xb49   : > { %v4397_v11 = vmul.f32 %v15099_v41, %v4393_v34  ;;  %v5050_v26 = vsel %vm3323_vm7, %v5049_v48, %v5048_v39  ;;  %v11750_v34 = vld [vmem:[%s17456_s11] ss:$0 sm:$0xff] }
 0xb4a   : > { %5113 = vrot.lane.b32.xlu0 %v15229_v5, %s17572_s25  ;;  %5053 = vrot.lane.b32.xlu1 %v5050_v26, %s17497_s28  ;;  %s11813_s28 = sshll.u32 %s11885_s6, 4  ;;  %s11814_s28 = int_to_ptr.vmem [resolvable:$false] %s11813_s28 }
 0xb4b   : > { %v15238_v50 = vsel %vm3561_vm14, %v4397_v11, %v14804_v10 }
 0xb4c   : > { %v15246_v33 = vpop.permute.xlu0 %4407 }
 0xb4d   : > { %vm4412_vm4 = vcmp.eq.s32.totalorder %v15246_v33, 1 }
 0xb4e   : > { %5103 = vrot.lane.b32.xlu0 %v15168_v63, %s17573_s27  ;;  %5115 = vrot.lane.b32.xlu1 %v15238_v50, %s17572_s25 }
 0xb52   : > { %5105 = vrot.lane.b32.xlu1 %v15181_v18, %s17573_s27 }
 0xb55   : > { %v15249_v41 = vpop.permute.xlu1 %4410 }
 0xb56   : > { %vm4413_vm3 = vcmp.eq.s32.totalorder %v15249_v41, 1 }
 0xbb8   : > { %v5052_v3 = vpop.permute.xlu0 %5051 }
 0xbb9   : > { %v15254_v10 = vsel %vm4412_vm4, %v5052_v3, %v14818_v4  ;;  %v11738_v4 = vld [vmem:[%s17455_s10 + $0x38] sm:$0xff]  ;;  %v5266_v3 = vld [vmem:[#allocation2 + $0x3] sm:$0x1] }
 0xbba   : > { %10231 = vmatprep.mubr.msk.f32.mxu1 %vm2777_vm1, %v15254_v10 }
 0xbbc   : > { %v5114_v63 = vpop.permute.xlu0 %5113  ;;  %v5054_v13 = vpop.permute.xlu1 %5053 }
 0xbbd   : > { %v5119_v18 = vsel %vm2777_vm1, %v15254_v10, %v5114_v63  ;;  %v15264_v57 = vsel %vm4413_vm3, %v5054_v13, %v14826_v51 }
 0xbbe   : > { %10220 = vmatprep.mubr.msk.f32.mxu0 %vm3416_vm0, %v5119_v18  ;;  %10232 = vmatmul.mubr.msk.f32.vlgmr.msra.gmra.mxu1 %vm2777_vm1, %v15264_v57  ;;  %v5267_v18 = vld [vmem:[#allocation2 + $0xb] sm:$0x1] }
 0xbbf   : > { %10235 = vmatpush3.msra.mxu1 %v11738_v4 }
 0xbc0   : > { %v5116_v56 = vpop.permute.xlu1 %5115  ;;  %10236 = vmatprep.subr.mxu1 %v11739_v9 }
 0xbc1   : > { %v5120_v51 = vsel %vm2777_vm1, %v15264_v57, %v5116_v56  ;;  %10237 = vmatpush3.msra.mxu1 %v11739_v9  ;;  %v5276_v9 = vld [vmem:[#allocation2 + $0x53] sm:$0x1] }
 0xbc2   : > { %10221 = vmatmul.mubr.msk.f32.vlgmr.msra.gmra.mxu0 %vm3416_vm0, %v5120_v51  ;;  %10238 = vmatprep.subr.mxu1 %v11740_v1 }
 0xbc3   : > { %10239 = vmatpush3.msra.mxu1 %v11740_v1  ;;  %10254 = vmatpush3.msra.mxu0 %v11741_v40 }
 0xbc4   : > { %10240 = vmatprep.subr.mxu1 %v11742_v2  ;;  %10255 = vmatprep.subr.mxu0 %v11743_v19 }
 0xbc5   : > { %10241 = vmatpush3.msra.mxu1 %v11742_v2  ;;  %10256 = vmatpush3.msra.mxu0 %v11743_v19 }
 0xbc6   : > { %10242 = vmatprep.subr.mxu1 %v11744_v58  ;;  %10257 = vmatprep.subr.mxu0 %v11745_v31 }
 0xbc7   : > { %10243 = vmatpush3.msra.mxu1 %v11744_v58  ;;  %10258 = vmatpush3.msra.mxu0 %v11745_v31  ;;  %v5281_v58 = vld [vmem:[#allocation2 + $0x7b] sm:$0x1] }
 0xbc8   : > { %10244 = vmatprep.subr.mxu1 %v11746_v54  ;;  %10259 = vmatprep.subr.mxu0 %v11747_v46 }
 0xbc9   : > { %10245 = vmatpush3.msra.mxu1 %v11746_v54  ;;  %10260 = vmatpush3.msra.mxu0 %v11747_v46  ;;  %v5270_v46 = vld [vmem:[#allocation2 + $0x23] sm:$0x1] }
 0xbca   : > { %10246 = vmatprep.subr.mxu1 %v11748_v7  ;;  %10264 = vmatprep.subr.mxu0 %v11738_v4 }
 0xbcb   : > { %10247 = vmatpush3.msra.mxu1 %v11748_v7 }
 0xbcc   : > { %10248 = vmatprep.subr.mxu1 %v11749_v24 }
 0xbcd   : > { %10249 = vmatpush3.msra.mxu1 %v11749_v24  ;;  %v5268_v24 = vld [vmem:[#allocation2 + $0x13] sm:$0x1] }
 0xbce   : > { %10283 = vmatprep.subr.mxu1 %v11741_v40  ;;  %v5269_v40 = vld [vmem:[#allocation2 + $0x1b] sm:$0x1] }
 0xc7e   : > { %v10233_v14 = vpop.f32.mrf.mxu1 }
 0xc7f   : > { %v15308_v32 = vadd.f32 %v10233_v14, %v5274_v44  ;;  %v5372_v8 = vrot.slane %v10233_v14, 1  ;;  %v5374_v29 = vrot.slane %v10233_v14, 3  ;;  %v5375_v25 = vrot.slane %v10233_v14, 4 }
 0xc80   : > { %v5376_v59 = vrot.slane %v10233_v14, 5  ;;  %v5377_v35 = vrot.slane %v10233_v14, 6  ;;  %v5354_v6 = vpop.f32.mrf.mxu1  ;;  %v5373_v63 = vrot.slane %v10233_v14, 2  ;;  %v5378_v51 = vrot.slane %v10233_v14, 7 }
 0xc81   : > { %10981 = vtanh.f32 %v15308_v32  ;;  %v15311_v37 = vadd.f32 %v5372_v8, %v5275_v38  ;;  %v15313_v23 = vadd.f32 %v5374_v29, %v5277_v15  ;;  %v15316_v36 = vadd.f32 %v5375_v25, %v5278_v55  ;;  %v5271_v29 = vld [vmem:[#allocation2 + $0x2b] sm:$0x1] }
 0xc82   : > { %v15320_v17 = vadd.f32 %v5376_v59, %v5279_v12  ;;  %v15323_v42 = vadd.f32 %v5377_v35, %v5280_v45  ;;  %v10222_v47 = vpop.f32.mrf.mxu0  ;;  %v5365_v11 = vrot.slane %v5354_v6, 1  ;;  %v15339_v13 = vadd.f32 %v5354_v6, %v5266_v3  ;;  %v5272_v59 = vld [vmem:[#allocation2 + $0x33] sm:$0x1] }
 0xc83   : > { %10983 = vtanh.f32 %v15311_v37  ;;  %v15335_v39 = vadd.f32 %v11750_v34, %v10222_v47  ;;  %v5367_v4 = vrot.slane %v5354_v6, 3  ;;  %v15345_v1 = vadd.f32 %v5373_v63, %v5276_v9 }
 0xc84   : > { %10985 = vtanh.f32 %v15313_v23  ;;  %v5193_v48 = vpop.f32.mrf.mxu0  ;;  %v15342_v56 = vadd.f32 %v5365_v11, %v5267_v18  ;;  %v5368_v2 = vrot.slane %v5354_v6, 4  ;;  %v15351_v31 = vadd.f32 %v5378_v51, %v5281_v58 }
 0xc85   : > { %10987 = vtanh.f32 %v15316_v36  ;;  %v15337_v26 = vadd.f32 %v11750_v34, %v5193_v48  ;;  %v15348_v19 = vadd.f32 %v5367_v4, %v5269_v40  ;;  %v5366_v54 = vrot.slane %v5354_v6, 2  ;;  %v5106_v48 = vpop.permute.xlu1 %5105 }
 0xc86   : > { %10989 = vtanh.f32 %v15320_v17  ;;  %v15354_v7 = vadd.f32 %v5368_v2, %v5270_v46  ;;  %v5369_v14 = vrot.slane %v5354_v6, 5  ;;  %v5370_v15 = vrot.slane %v5354_v6, 6 }
 0xc87   : > { %10991 = vtanh.f32 %v15323_v42  ;;  %v15358_v44 = vadd.f32 %v5366_v54, %v5268_v24  ;;  %v5371_v12 = vrot.slane %v5354_v6, 7  ;;  %v15389_v3 = vsel %vm4413_vm3, %v5106_v48, %v14967_v61 }
 0xc88   : > { %10993 = vtanh.f32 %v15335_v39  ;;  %v15362_v25 = vadd.f32 %v5369_v14, %v5271_v29  ;;  %v15367_v35 = vadd.f32 %v5370_v15, %v5272_v59  ;;  %v9847_v61 = vmul.f32 -1.442695, %v15308_v32 }
 0xc89   : > { %10995 = vtanh.f32 %v15337_v26  ;;  %v5536_v2 = vrot.slane %v15389_v3, 5  ;;  %v9848_v32 = vmul.f32 -1.442695, %v15311_v37  ;;  %v5533_v58 = vrot.slane %v15389_v3, 2 }
 0xc8a   : > { %10997 = vtanh.f32 %v15339_v13  ;;  %v9850_v46 = vmul.f32 -1.442695, %v15313_v23  ;;  %v5538_v14 = vrot.slane %v15389_v3, 7  ;;  %v5535_v23 = vrot.slane %v15389_v3, 4 }
 0xc8b   : > { %10999 = vtanh.f32 %v15342_v56  ;;  %v5537_v59 = vrot.slane %v15389_v3, 6 }
 0xc8c   : > { %11001 = vtanh.f32 %v15345_v1 }
 0xc8d   : > { %11003 = vtanh.f32 %v15348_v19 }
 0xc8e   : > { %v10982_v53 = vpop.eup %10981  ;;  %11005 = vtanh.f32 %v15351_v31 }
 0xc8f   : > { %5635 = vrot.lane.b32.xlu1 %v10982_v53, %s17572_s25  ;;  %11007 = vtanh.f32 %v15354_v7 }
 0xc90   : > { %v10984_v30 = vpop.eup %10983  ;;  %11009 = vtanh.f32 %v15358_v44 }
 0xc91   : > { %5637 = vrot.lane.b32.xlu0 %v10984_v30, %s17572_s25  ;;  %v10986_v28 = vpop.eup %10985  ;;  %11011 = vtanh.f32 %v15362_v25 }
 0xc92   : > { %v10988_v52 = vpop.eup %10987  ;;  %11013 = vtanh.f32 %v15367_v35 }
 0xc93   : > { %v10990_v27 = vpop.eup %10989 }
 0xc94   : > { %v10992_v20 = vpop.eup %10991 }
 0xc95   : > { %5641 = vrot.lane.b32.xlu0 %v10986_v28, %s17572_s25  ;;  %v10994_v8 = vpop.eup %10993  ;;  %v5273_v28 = vld [vmem:[#allocation2 + $0x3b] sm:$0x1] }
 0xc96   : > { %5222 = vrot.lane.b32.xlu1 %v10994_v8, %s17572_s25  ;;  %v10996_v38 = vpop.eup %10995  ;;  %v9851_v8 = vmul.f32 -1.442695, %v15316_v36 }
 0xc97   : > { %v10998_v55 = vpop.eup %10997 }
 0xc98   : > { %v11000_v53 = vpop.eup %10999 }
 0xc99   : > { %5643 = vrot.lane.b32.xlu0 %v10988_v52, %s17572_s25  ;;  %v11002_v45 = vpop.eup %11001  ;;  %v5104_v52 = vpop.permute.xlu0 %5103 }
 0xc9a   : > { %5619 = vrot.lane.b32.xlu1 %v10998_v55, %s17572_s25  ;;  %v11004_v30 = vpop.eup %11003  ;;  %v15380_v6 = vsel %vm4412_vm4, %v5104_v52, %v14851_v21  ;;  %v5532_v21 = vrot.slane %v15389_v3, 1 }
 0xc9b   : > { %v5525_v11 = vrot.slane %v15380_v6, 1  ;;  %v5527_v4 = vrot.slane %v15380_v6, 3  ;;  %v5526_v51 = vrot.slane %v15380_v6, 2  ;;  %v5529_v40 = vrot.slane %v15380_v6, 5 }
 0xc9c   : > { %v5531_v54 = vrot.slane %v15380_v6, 7  ;;  %v5528_v24 = vrot.slane %v15380_v6, 4  ;;  %v5530_v55 = vrot.slane %v15380_v6, 6 }
 0xc9d   : > { %5645 = vrot.lane.b32.xlu0 %v10990_v27, %s17572_s25  ;;  %v15372_v27 = vadd.f32 %v5371_v12, %v5273_v28 }
 0xc9e   : > { %5639 = vrot.lane.b32.xlu1 %v11002_v45, %s17572_s25 }
 0xc9f   : > { %11015 = vtanh.f32 %v15372_v27 }
 0xca0   : > { %11017 = vpow2.f32 %v9847_v61 }
 0xca1   : > { %5647 = vrot.lane.b32.xlu0 %v10992_v20, %s17572_s25  ;;  %v11006_v20 = vpop.eup %11005  ;;  %11019 = vpow2.f32 %v9848_v32  ;;  %v9840_v32 = vmul.f32 -1.442695, %v15342_v56 }
 0xca2   : > { %5649 = vrot.lane.b32.xlu1 %v11006_v20, %s17572_s25  ;;  %v11008_v47 = vpop.eup %11007  ;;  %11021 = vpow2.f32 %v9850_v46  ;;  %v9845_v46 = vmul.f32 -1.442695, %v15367_v35 }
 0xca3   : > { %v11010_v34 = vpop.eup %11009  ;;  %11023 = vpow2.f32 %v9851_v8  ;;  %v9846_v8 = vmul.f32 -1.442695, %v15372_v27  ;;  %v9836_v27 = vmul.f32 -1.442695, %v15335_v39 }
 0xca4   : > { %v11012_v63 = vpop.eup %11011 }
 0xca5   : > { %5220 = vrot.lane.b32.xlu0 %v10996_v38, %s17572_s25  ;;  %v11014_v18 = vpop.eup %11013  ;;  %v5534_v38 = vrot.slane %v15389_v3, 3 }
 0xca6   : > { %5623 = vrot.lane.b32.xlu1 %v11010_v34, %s17572_s25 }
 0xca9   : > { %5621 = vrot.lane.b32.xlu0 %v11000_v53, %s17572_s25 }
 0xcaa   : > { %5629 = vrot.lane.b32.xlu1 %v11012_v63, %s17572_s25 }
 0xcac   : > { %v11016_v9 = vpop.eup %11015 }
 0xcad   : > { %5625 = vrot.lane.b32.xlu0 %v11004_v30, %s17572_s25  ;;  %v11018_v37 = vpop.eup %11017 }
 0xcae   : > { %5631 = vrot.lane.b32.xlu1 %v11014_v18, %s17572_s25  ;;  %v5467_v29 = vadd.f32 1.0, %v11018_v37  ;;  %v11020_v15 = vpop.eup %11019  ;;  %v9839_v18 = vmul.f32 -1.442695, %v15339_v13  ;;  %v9843_v13 = vmul.f32 -1.442695, %v15354_v7 }
 0xcaf   : > { %v5468_v53 = vadd.f32 1.0, %v11020_v15  ;;  %v11022_v36 = vpop.eup %11021 }
 0xcb0   : > { %11025 = vrcp.f32 %v5467_v29  ;;  %v5470_v12 = vadd.f32 1.0, %v11022_v36  ;;  %v11024_v45 = vpop.eup %11023 }
 0xcb1   : > { %5627 = vrot.lane.b32.xlu0 %v11008_v47, %s17572_s25  ;;  %11027 = vrcp.f32 %v5468_v53  ;;  %v5471_v28 = vadd.f32 1.0, %v11024_v45 }
 0xcb2   : > { %5633 = vrot.lane.b32.xlu1 %v11016_v9, %s17572_s25  ;;  %11029 = vrcp.f32 %v5470_v12 }
 0xcb3   : > { %11031 = vrcp.f32 %v5471_v28 }
 0xcb4   : > { %11033 = vpow2.f32 %v9839_v18 }
 0xcb5   : > { %5541 = vrot.lane.b32.xlu0 %v5525_v11, %s17574_s0 }
 0xcb6   : > { %5543 = vrot.lane.b32.xlu1 %v5526_v51, %s17574_s0  ;;  %v9849_v51 = vmul.f32 -1.442695, %v15345_v1  ;;  %v9844_v1 = vmul.f32 -1.442695, %v15362_v25 }
 0xcb8   : > { %11035 = vpow2.f32 %v9849_v51 }
 0xcb9   : > { %5557 = vrot.lane.b32.xlu0 %v5532_v21, %s17574_s0 }
 0xcba   : > { %5539 = vrot.lane.b32.xlu1 %v15380_v6, %s17574_s0 }
 0xcbd   : > { %5545 = vrot.lane.b32.xlu0 %v5527_v4, %s17574_s0  ;;  %v15429_v30 = vpop.eup %11025 }
 0xcbe   : > { %5559 = vrot.lane.b32.xlu1 %v5533_v58, %s17574_s0  ;;  %v15433_v47 = vpop.eup %11027  ;;  %v9841_v58 = vmul.f32 -1.442695, %v15358_v44  ;;  %v9854_v44 = vmul.f32 -1.442695, %v15351_v31 }
 0xcbf   : > { %v15437_v11 = vpop.eup %11029 }
 0xcc0   : > { %v15442_v4 = vpop.eup %11031 }
 0xcc1   : > { %5555 = vrot.lane.b32.xlu0 %v15389_v3, %s17574_s0 }
 0xcc2   : > { %5547 = vrot.lane.b32.xlu1 %v5528_v24, %s17574_s0 }
 0xcc5   : > { %5549 = vrot.lane.b32.xlu0 %v5529_v40, %s17574_s0  ;;  %v9842_v40 = vmul.f32 -1.442695, %v15348_v19 }
 0xcc6   : > { %5561 = vrot.lane.b32.xlu1 %v5534_v38, %s17574_s0 }
 0xcc7   : > { %11037 = vpow2.f32 %v9842_v40 }
 0xcc9   : > { %5565 = vrot.lane.b32.xlu0 %v5536_v2, %s17574_s0  ;;  %v9852_v2 = vmul.f32 -1.442695, %v15320_v17  ;;  %v9853_v17 = vmul.f32 -1.442695, %v15323_v42  ;;  %v9835_v42 = vmul.f32 -1.442695, %v15337_v26 }
 0xcca   : > { %5563 = vrot.lane.b32.xlu1 %v5535_v23, %s17574_s0 }
 0xccb   : > { %11039 = vpow2.f32 %v9852_v2 }
 0xccc   : > { %11041 = vpow2.f32 %v9840_v32 }
 0xccd   : > { %5553 = vrot.lane.b32.xlu0 %v5531_v54, %s17574_s0  ;;  %11043 = vpow2.f32 %v9843_v13  ;;  %v11034_v54 = vpop.eup %11033 }
 0xcce   : > { %5551 = vrot.lane.b32.xlu1 %v5530_v55, %s17574_s0  ;;  %v11036_v24 = vpop.eup %11035  ;;  %11045 = vpow2.f32 %v9841_v58  ;;  %v5459_v19 = vadd.f32 1.0, %v11034_v54 }
 0xccf   : > { %11047 = vpow2.f32 %v9844_v1 }
 0xcd0   : > { %11049 = vpow2.f32 %v9845_v46 }
 0xcd1   : > { %5569 = vrot.lane.b32.xlu0 %v5538_v14, %s17574_s0  ;;  %v5469_v14 = vadd.f32 1.0, %v11036_v24  ;;  %11051 = vrcp.f32 %v5459_v19 }
 0xcd2   : > { %5567 = vrot.lane.b32.xlu1 %v5537_v59, %s17574_s0  ;;  %11053 = vpow2.f32 %v9853_v17 }
 0xcd3   : > { %11055 = vrcp.f32 %v5469_v14 }
 0xcd4   : > { %v11038_v56 = vpop.eup %11037  ;;  %11057 = vpow2.f32 %v9846_v8 }
 0xcd5   : > { %v5462_v25 = vadd.f32 1.0, %v11038_v56  ;;  %11059 = vpow2.f32 %v9854_v44 }
 0xcd7   : > { %11061 = vrcp.f32 %v5462_v25 }
 0xcd8   : > { %v11040_v37 = vpop.eup %11039 }
 0xcd9   : > { %v11042_v38 = vpop.eup %11041  ;;  %v5472_v29 = vadd.f32 1.0, %v11040_v37 }
 0xcda   : > { %v11044_v35 = vpop.eup %11043  ;;  %v5460_v23 = vadd.f32 1.0, %v11042_v38 }
 0xcdb   : > { %v5463_v55 = vadd.f32 1.0, %v11044_v35  ;;  %11063 = vrcp.f32 %v5472_v29  ;;  %v11046_v31 = vpop.eup %11045 }
 0xcdc   : > { %11065 = vpow2.f32 %v9835_v42  ;;  %v11048_v36 = vpop.eup %11047  ;;  %v5461_v26 = vadd.f32 1.0, %v11046_v31 }
 0xcdd   : > { %11067 = vrcp.f32 %v5460_v23  ;;  %v11050_v12 = vpop.eup %11049 }
 0xcde   : > { %11069 = vrcp.f32 %v5463_v55  ;;  %v15465_v45 = vpop.eup %11051 }
 0xcdf   : > { %11071 = vpow2.f32 %v9836_v27 }
 0xce0   : > { %11073 = vrcp.f32 %v5461_v26 }
 0xd01   : > { %v5636_v52 = vpop.permute.xlu1 %5635 }
 0xd02   : > { %v5675_v20 = vmul.f32 %v15429_v30, %v5636_v52 }
 0xd03   : > { %v5638_v48 = vpop.permute.xlu0 %5637 }
 0xd04   : > { %5715 = vrot.lane.b32.xlu0 %v5675_v20, %s17574_s0  ;;  %v5676_v34 = vmul.f32 %v15433_v47, %v5638_v48  ;;  %v11054_v20 = vpop.eup %11053  ;;  %v5464_v48 = vadd.f32 1.0, %v11048_v36 }
 0xd05   : > { %v5473_v40 = vadd.f32 1.0, %v11054_v20 }
 0xd06   : > { %5717 = vrot.lane.b32.xlu1 %v5676_v34, %s17574_s0  ;;  %v15468_v34 = vpop.eup %11055  ;;  %11075 = vrcp.f32 %v5464_v48 }
 0xd07   : > { %v5642_v63 = vpop.permute.xlu0 %5641 }
 0xd08   : > { %v5678_v21 = vmul.f32 %v15437_v11, %v5642_v63  ;;  %v15461_v53 = vpop.permute.xlu1 %5222  ;;  %v5465_v63 = vadd.f32 1.0, %v11050_v12 }
 0xd0a   : > { %5721 = vrot.lane.b32.xlu1 %v5678_v21, %s17574_s0  ;;  %v11058_v21 = vpop.eup %11057  ;;  %11077 = vrcp.f32 %v5465_v63 }
 0xd0b   : > { %v5644_v9 = vpop.permute.xlu0 %5643  ;;  %v5466_v13 = vadd.f32 1.0, %v11058_v21  ;;  %11079 = vrcp.f32 %v5473_v40 }
 0xd0c   : > { %v5679_v61 = vmul.f32 %v15442_v4, %v5644_v9  ;;  %v5620_v28 = vpop.permute.xlu1 %5619  ;;  %v11060_v9 = vpop.eup %11059 }
 0xd0d   : > { %v5667_v52 = vmul.f32 %v15465_v45, %v5620_v28  ;;  %v15472_v51 = vpop.eup %11061  ;;  %v5474_v17 = vadd.f32 1.0, %v11060_v9  ;;  %11081 = vrcp.f32 %v5466_v13 }
 0xd0e   : > { %5723 = vrot.lane.b32.xlu1 %v5679_v61, %s17574_s0  ;;  %v15474_v32 = vpop.eup %11063 }
 0xd0f   : > { %v5646_v7 = vpop.permute.xlu0 %5645  ;;  %5699 = vrot.lane.b32.xlu0 %v5667_v52, %s17574_s0  ;;  %v11066_v54 = vpop.eup %11065  ;;  %11083 = vrcp.f32 %v5474_v17 }
 0xd10   : > { %v5640_v18 = vpop.permute.xlu1 %5639  ;;  %v15478_v46 = vpop.eup %11067  ;;  %v5680_v24 = vmul.f32 %v15474_v32, %v5646_v7  ;;  %v5208_v14 = vadd.f32 1.0, %v11066_v54 }
 0xd11   : > { %v5677_v61 = vmul.f32 %v15468_v34, %v5640_v18  ;;  %v15482_v19 = vpop.eup %11069 }
 0xd12   : > { %v11072_v44 = vpop.eup %11071  ;;  %11085 = vrcp.f32 %v5208_v14 }
 0xd13   : > { %v15458_v15 = vpop.permute.xlu0 %5647  ;;  %5719 = vrot.lane.b32.xlu0 %v5677_v61, %s17574_s0  ;;  %v5209_v7 = vadd.f32 1.0, %v11072_v44  ;;  %v15489_v25 = vpop.eup %11073 }
 0xd14   : > { %v5650_v1 = vpop.permute.xlu1 %5649  ;;  %v15494_v23 = vpop.eup %11075 }
 0xd15   : > { %11087 = vrcp.f32 %v5209_v7 }
 0xd17   : > { %v15463_v59 = vpop.permute.xlu0 %5220  ;;  %5725 = vrot.lane.b32.xlu0 %v5680_v24, %s17574_s0  ;;  %v15497_v55 = vpop.eup %11077 }
 0xd18   : > { %v5624_v38 = vpop.permute.xlu1 %5623  ;;  %v15501_v12 = vpop.eup %11079 }
 0xd19   : > { %v5669_v29 = vmul.f32 %v15489_v25, %v5624_v38  ;;  %v5681_v20 = vmul.f32 %v15501_v12, %v15458_v15 }
 0xd1a   : > { %v15505_v26 = vpop.eup %11081 }
 0xd1b   : > { %v5622_v39 = vpop.permute.xlu0 %5621 }
 0xd1c   : > { %v5668_v37 = vmul.f32 %v15478_v46, %v5622_v39  ;;  %v5630_v35 = vpop.permute.xlu1 %5629  ;;  %v15510_v39 = vpop.eup %11083 }
 0xd1d   : > { %v5672_v31 = vmul.f32 %v15494_v23, %v5630_v35  ;;  %v5682_v18 = vmul.f32 %v15510_v39, %v5650_v1 }
 0xd1e   : > { %5701 = vrot.lane.b32.xlu0 %v5668_v37, %s17574_s0 }
 0xd1f   : > { %v5626_v2 = vpop.permute.xlu0 %5625  ;;  %v15514_v63 = vpop.eup %11085 }
 0xd20   : > { %v5670_v58 = vmul.f32 %v15472_v51, %v5626_v2  ;;  %v5632_v27 = vpop.permute.xlu1 %5631  ;;  %v5226_v9 = vmul.f32 %v15514_v63, %v15463_v59 }
 0xd21   : > { %v5673_v36 = vmul.f32 %v15497_v55, %v5632_v27 }
 0xd22   : > { %5705 = vrot.lane.b32.xlu1 %v5670_v58, %s17574_s0  ;;  %5703 = vrot.lane.b32.xlu0 %v5669_v29, %s17574_s0  ;;  %v15525_v15 = vpop.eup %11087 }
 0xd23   : > { %v5628_v56 = vpop.permute.xlu0 %5627  ;;  %v5227_v40 = vmul.f32 %v15525_v15, %v15461_v53 }
 0xd24   : > { %v5671_v8 = vmul.f32 %v15482_v19, %v5628_v56  ;;  %v5634_v28 = vpop.permute.xlu1 %5633 }
 0xd25   : > { %v5674_v48 = vmul.f32 %v15505_v26, %v5634_v28 }
 0xd26   : > { %5707 = vrot.lane.b32.xlu1 %v5671_v8, %s17574_s0  ;;  %5709 = vrot.lane.b32.xlu0 %v5672_v31, %s17574_s0 }
 0xd27   : > { %v15492_v42 = vpop.permute.xlu0 %5541 }
 0xd28   : > { %v15516_v21 = vpop.permute.xlu1 %5543 }
 0xd2a   : > { %5711 = vrot.lane.b32.xlu1 %v5673_v36, %s17574_s0  ;;  %5727 = vrot.lane.b32.xlu0 %v5681_v20, %s17574_s0 }
 0xd2b   : > { %v5558_v52 = vpop.permute.xlu0 %5557 }
 0xd2c   : > { %v5540_v2 = vpop.permute.xlu1 %5539  ;;  %v5596_v7 = vmul.f32 %v15433_v47, %v5558_v52 }
 0xd2e   : > { %5713 = vrot.lane.b32.xlu1 %v5674_v48, %s17574_s0  ;;  %5230 = vrot.lane.b32.xlu0 %v5226_v9, %s17574_s0 }
 0xd2f   : > { %v15521_v61 = vpop.permute.xlu0 %5545 }
 0xd30   : > { %v5560_v58 = vpop.permute.xlu1 %5559 }
 0xd32   : > { %5729 = vrot.lane.b32.xlu1 %v5682_v18, %s17574_s0 }
 0xd33   : > { %v5556_v13 = vpop.permute.xlu0 %5555 }
 0xd34   : > { %v5548_v1 = vpop.permute.xlu1 %5547  ;;  %v5595_v37 = vmul.f32 %v15429_v30, %v5556_v13 }
 0xd36   : > { %5232 = vrot.lane.b32.xlu1 %v5227_v40, %s17574_s0 }
 0xd37   : > { %v15530_v54 = vpop.permute.xlu0 %5549 }
 0xd38   : > { %v5562_v24 = vpop.permute.xlu1 %5561 }
 0xd39   : > { %v5598_v27 = vmul.f32 %v15437_v11, %v5562_v24 }
 0xd3b   : > { %v5566_v59 = vpop.permute.xlu0 %5565 }
 0xd3c   : > { %v5564_v56 = vpop.permute.xlu1 %5563 }
 0xd3d   : > { %v5599_v18 = vmul.f32 %v15442_v4, %v5564_v56  ;;  %v5597_v56 = vmul.f32 %v15468_v34, %v5560_v58  ;;  %v5590_v58 = vmul.f32 %v15472_v51, %v15521_v61 }
 0xd3f   : > { %v15532_v17 = vpop.permute.xlu0 %5553 }
 0xd40   : > { %v15537_v8 = vpop.permute.xlu1 %5551 }
 0xd43   : > { %v15534_v14 = vpop.permute.xlu0 %5569 }
 0xd44   : > { %v15539_v38 = vpop.permute.xlu1 %5567 }
 0xd76   : > { %v5716_v53 = vpop.permute.xlu0 %5715 }
 0xd77   : > { %v5755_v44 = vadd.f32 %v5716_v53, %v5595_v37  ;;  %v5587_v37 = vmul.f32 %v15465_v45, %v5540_v2  ;;  %v5588_v2 = vmul.f32 %v15478_v46, %v15492_v42  ;;  %v5589_v42 = vmul.f32 %v15489_v25, %v15516_v21 }
 0xd78   : > { %v5718_v35 = vpop.permute.xlu1 %5717 }
 0xd79   : > { %11089 = vtanh.f32 %v5755_v44  ;;  %v5756_v29 = vadd.f32 %v5718_v35, %v5596_v7 }
 0xd7b   : > { %11091 = vtanh.f32 %v5756_v29  ;;  %v5941_v31 = vrot.slane %v5756_v29, 7 }
 0xd7c   : > { %v5722_v36 = vpop.permute.xlu1 %5721 }
 0xd7d   : > { %v5942_v28 = vsel %vm3305_vm9, %v5941_v31, %v5755_v44  ;;  %v5758_v20 = vadd.f32 %v5722_v36, %v5598_v27  ;;  %v5600_v27 = vmul.f32 %v15474_v32, %v5566_v59 }
 0xd7f   : > { %11093 = vtanh.f32 %v5758_v20  ;;  %v5945_v36 = vrot.slane %v5758_v20, 5  ;;  %v5591_v20 = vmul.f32 %v15482_v19, %v5548_v1  ;;  %v5592_v1 = vmul.f32 %v15494_v23, %v15530_v54 }
 0xd80   : > { %v5724_v9 = vpop.permute.xlu1 %5723  ;;  %v5594_v54 = vmul.f32 %v15505_v26, %v15532_v17 }
 0xd81   : > { %v5759_v40 = vadd.f32 %v5724_v9, %v5599_v18  ;;  %v5700_v53 = vpop.permute.xlu0 %5699 }
 0xd82   : > { %v5747_v44 = vadd.f32 %v5700_v53, %v5587_v37 }
 0xd83   : > { %11095 = vtanh.f32 %v5759_v40  ;;  %v5947_v18 = vrot.slane %v5759_v40, 4 }
 0xd84   : > { %11097 = vtanh.f32 %v5747_v44 }
 0xd85   : > { %v5720_v7 = vpop.permute.xlu0 %5719 }
 0xd86   : > { %v11090_v48 = vpop.eup %11089  ;;  %v5757_v35 = vadd.f32 %v5720_v7, %v5597_v56 }
 0xd87   : > { %5811 = vrot.lane.b32.xlu1 %v11090_v48, %s17572_s25 }
 0xd88   : > { %v11092_v52 = vpop.eup %11091  ;;  %11099 = vtanh.f32 %v5757_v35  ;;  %v5943_v31 = vrot.slane %v5757_v35, 6 }
 0xd89   : > { %5813 = vrot.lane.b32.xlu0 %v11092_v52, %s17572_s25  ;;  %v5726_v48 = vpop.permute.xlu0 %5725 }
 0xd8a   : > { %v5944_v9 = vsel %vm3308_vm12, %v5943_v31, %v5942_v28  ;;  %v5760_v52 = vadd.f32 %v5726_v48, %v5600_v27  ;;  %v5593_v48 = vmul.f32 %v15497_v55, %v15537_v8 }
 0xd8c   : > { %v11094_v13 = vpop.eup %11093  ;;  %11101 = vtanh.f32 %v5760_v52 }
 0xd8d   : > { %5817 = vrot.lane.b32.xlu0 %v11094_v13, %s17572_s25  ;;  %v5946_v13 = vsel %vm3311_vm13, %v5945_v36, %v5944_v9 }
 0xd8e   : > { %v5948_v59 = vsel %vm3314_vm11, %v5947_v18, %v5946_v13 }
 0xd90   : > { %v11096_v24 = vpop.eup %11095  ;;  %v5702_v37 = vpop.permute.xlu0 %5701 }
 0xd91   : > { %5819 = vrot.lane.b32.xlu0 %v11096_v24, %s17572_s25  ;;  %v5949_v24 = vrot.slane %v5760_v52, 3  ;;  %v5748_v40 = vadd.f32 %v5702_v37, %v5588_v2  ;;  %v11098_v27 = vpop.eup %11097 }
 0xd92   : > { %5795 = vrot.lane.b32.xlu1 %v11098_v27, %s17572_s25 }
 0xd93   : > { %v5950_v28 = vsel %vm3317_vm8, %v5949_v24, %v5948_v59  ;;  %11103 = vtanh.f32 %v5748_v40  ;;  %v5927_v7 = vrot.slane %v5748_v40, 7  ;;  %v5601_v24 = vmul.f32 %v15501_v12, %v15539_v38 }
 0xd94   : > { %v5706_v29 = vpop.permute.xlu1 %5705  ;;  %v5704_v61 = vpop.permute.xlu0 %5703 }
 0xd95   : > { %v5750_v56 = vadd.f32 %v5706_v29, %v5590_v58  ;;  %v5928_v31 = vsel %vm3305_vm9, %v5927_v7, %v5747_v44  ;;  %v5749_v36 = vadd.f32 %v5704_v61, %v5589_v42  ;;  %v11100_v9 = vpop.eup %11099  ;;  %v5602_v61 = vmul.f32 %v15510_v39, %v15534_v14 }
 0xd96   : > { %5815 = vrot.lane.b32.xlu1 %v11100_v9, %s17572_s25  ;;  %v15601_v14 = vsel %vm3561_vm14, %v15177_v49, %v15173_v43 }
 0xd97   : > { %11105 = vtanh.f32 %v5750_v56  ;;  %v5931_v29 = vrot.slane %v5750_v56, 5  ;;  %v5929_v21 = vrot.slane %v5749_v36, 6  ;;  %v15581_v56 = vsel %vm3560_vm5, %v15158_v62, %v15151_v0 }
 0xd98   : > { %v5708_v53 = vpop.permute.xlu1 %5707  ;;  %11107 = vtanh.f32 %v5749_v36  ;;  %v5710_v52 = vpop.permute.xlu0 %5709 }
 0xd99   : > { %v5751_v35 = vadd.f32 %v5708_v53, %v5591_v20  ;;  %v5930_v13 = vsel %vm3308_vm12, %v5929_v21, %v5928_v31  ;;  %v5752_v44 = vadd.f32 %v5710_v52, %v5592_v1  ;;  %v11102_v20 = vpop.eup %11101  ;;  %v5217_v52 = vmul.f32 %v15525_v15, %v15601_v14 }
 0xd9a   : > { %v5932_v8 = vsel %vm3311_vm13, %v5931_v29, %v5930_v13  ;;  %5821 = vrot.lane.b32.xlu0 %v11102_v20, %s17572_s25  ;;  %v11752_v20 = vld [vmem:[%s14316_s18 + $0x8] sm:$0xff] }
 0xd9b   : > { %v5933_v18 = vrot.slane %v5751_v35, 4  ;;  %11109 = vtanh.f32 %v5751_v35  ;;  %v5935_v59 = vrot.slane %v5752_v44, 3  ;;  %v5216_v35 = vmul.f32 %v15514_v63, %v15581_v56 }
 0xd9c   : > { %v5712_v2 = vpop.permute.xlu1 %5711  ;;  %11111 = vtanh.f32 %v5752_v44  ;;  %v5728_v40 = vpop.permute.xlu0 %5727  ;;  %vm5255_vm5 = vcmp.gt.s32.totalorder %v11752_v20, 3 }
 0xd9d   : > { %v5753_v58 = vadd.f32 %v5712_v2, %v5593_v48  ;;  %v5934_v37 = vsel %vm3314_vm11, %v5933_v18, %v5932_v8  ;;  %v5761_v17 = vadd.f32 %v5728_v40, %v5601_v24  ;;  %v11751_v24 = vld [vmem:[%s14316_s18] sm:$0xff]  ;;  %v5257_v40 = vsel %vm5255_vm5, 1, %v17571_v60 }
 0xd9e   : > { %v5936_v7 = vsel %vm3317_vm8, %v5935_v59, %v5934_v37  ;;  %vm5254_vm6 = vcmp.gt.s32.totalorder %v11751_v24, 3 }
 0xd9f   : > { %v5937_v53 = vrot.slane %v5753_v58, 2  ;;  %11113 = vtanh.f32 %v5753_v58  ;;  %v5951_v16 = vrot.slane %v5761_v17, 2  ;;  %v5256_v37 = vsel %vm5254_vm6, 1, %v17571_v60 }
 0xda0   : > { %v5714_v42 = vpop.permute.xlu1 %5713  ;;  %11115 = vtanh.f32 %v5761_v17  ;;  %v11104_v62 = vpop.eup %11103 }
 0xda1   : > { %v5754_v38 = vadd.f32 %v5714_v42, %v5594_v54  ;;  %v5938_v27 = vsel %vm3320_vm10, %v5937_v53, %v5936_v7  ;;  %v5231_v31 = vpop.permute.xlu0 %5230  ;;  %5797 = vrot.lane.b32.xlu0 %v11104_v62, %s17572_s25  ;;  %v5952_v21 = vsel %vm3320_vm10, %v5951_v16, %v5950_v28 }
 0xda2   : > { %v15590_v1 = vadd.f32 %v5231_v31, %v5216_v35 }
 0xda3   : > { %v5939_v0 = vrot.slane %v5754_v38, 1  ;;  %11117 = vtanh.f32 %v5754_v38 }
 0xda4   : > { %v5730_v36 = vpop.permute.xlu1 %5729  ;;  %v11106_v18 = vpop.eup %11105  ;;  %11119 = vtanh.f32 %v15590_v1 }
 0xda5   : > { %v5762_v29 = vadd.f32 %v5730_v36, %v5602_v61  ;;  %v15594_v48 = vsel %vm3323_vm7, %v5939_v0, %v5938_v27  ;;  %v11108_v2 = vpop.eup %11107  ;;  %5801 = vrot.lane.b32.xlu0 %v11106_v18, %s17572_s25 }
 0xda6   : > { %5799 = vrot.lane.b32.xlu1 %v11108_v2, %s17572_s25 }
 0xda7   : > { %v5953_v9 = vrot.slane %v5762_v29, 1  ;;  %11121 = vtanh.f32 %v5762_v29 }
 0xda8   : > { %v5233_v13 = vpop.permute.xlu1 %5232  ;;  %v11110_v43 = vpop.eup %11109 }
 0xda9   : > { %v15608_v28 = vadd.f32 %v5233_v13, %v5217_v52  ;;  %v15611_v22 = vsel %vm3323_vm7, %v5953_v9, %v5952_v21  ;;  %v11112_v49 = vpop.eup %11111  ;;  %5803 = vrot.lane.b32.xlu0 %v11110_v43, %s17572_s25 }
 0xdaa   : > { %5805 = vrot.lane.b32.xlu1 %v11112_v49, %s17572_s25 }
 0xdab   : > { %11123 = vtanh.f32 %v15608_v28 }
 0xdac   : > { %v11114_v44 = vpop.eup %11113 }
 0xdad   : > { %v11116_v58 = vpop.eup %11115 }
 0xdae   : > { %5823 = vrot.lane.b32.xlu0 %v11116_v58, %s17572_s25  ;;  %5807 = vrot.lane.b32.xlu1 %v11114_v44, %s17572_s25 }
 0xdb0   : > { %v11118_v54 = vpop.eup %11117 }
 0xdb1   : > { %v11120_v8 = vpop.eup %11119 }
 0xdb2   : > { %5242 = vrot.lane.b32.xlu0 %v11120_v8, %s17572_s25  ;;  %5809 = vrot.lane.b32.xlu1 %v11118_v54, %s17572_s25 }
 0xdb4   : > { %v11122_v59 = vpop.eup %11121 }
 0xdb6   : > { %5259 = vperm.xlu0 %10499, %v5256_v37   ;;  %5825 = vrot.lane.b32.xlu1 %v11122_v59, %s17572_s25 }
 0xdb8   : > { %v11124_v53 = vpop.eup %11123 }
 0xdba   : > { %5244 = vrot.lane.b32.xlu1 %v11124_v53, %s17572_s25 }
 0xdbe   : > { %5262 = vperm.xlu1 %10500, %v5257_v40  }
 0xdf9   : > { %v5812_v38 = vpop.permute.xlu1 %5811 }
 0xdfb   : > { %v5814_v42 = vpop.permute.xlu0 %5813 }
 0xdfc   : > { %v5852_v36 = vmul.f32 %v15433_v47, %v5814_v42 }
 0xdfe   : > { %v5889_v43 = vrot.slane %v5852_v36, 7 }
 0xdff   : > { %v5818_v17 = vpop.permute.xlu0 %5817 }
 0xe00   : > { %v5854_v47 = vmul.f32 %v15437_v11, %v5818_v17 }
 0xe02   : > { %v5893_v53 = vrot.slane %v5854_v47, 5  ;;  %v11756_v47 = vld [vmem:[%s17453_s8 + $0x18] sm:$0xff] }
 0xe03   : > { %v5820_v7 = vpop.permute.xlu0 %5819 }
 0xe04   : > { %v5796_v35 = vpop.permute.xlu1 %5795 }
 0xe05   : > { %v5843_v49 = vmul.f32 %v15465_v45, %v5796_v35 }
 0xe08   : > { %v5816_v61 = vpop.permute.xlu1 %5815 }
 0xe09   : > { %v5853_v21 = vmul.f32 %v15468_v34, %v5816_v61 }
 0xe0b   : > { %v5891_v58 = vrot.slane %v5853_v21, 6 }
 0xe0c   : > { %v5822_v27 = vpop.permute.xlu0 %5821 }
 0xe0d   : > { %v5856_v11 = vmul.f32 %v15474_v32, %v5822_v27 }
 0xe13   : > { %v5798_v16 = vpop.permute.xlu0 %5797 }
 0xe14   : > { %v5844_v0 = vmul.f32 %v15478_v46, %v5798_v16  ;;  %v5851_v46 = vmul.f32 %v15429_v30, %v5812_v38 }
 0xe16   : > { %v5875_v18 = vrot.slane %v5844_v0, 7  ;;  %v5890_v37 = vsel %vm3305_vm9, %v5889_v43, %v5851_v46  ;;  %v11754_v46 = vld [vmem:[%s17455_s10 + $0x30] sm:$0xff] }
 0xe17   : > { %v5802_v62 = vpop.permute.xlu0 %5801  ;;  %v5892_v30 = vsel %vm3308_vm12, %v5891_v58, %v5890_v37  ;;  %v11755_v58 = vld [vmem:[%s17455_s10 + $0x28] sm:$0xff]  ;;  %v11764_v37 = vld [vmem:[%s17455_s10] sm:$0xff] }
 0xe18   : > { %v5800_v31 = vpop.permute.xlu1 %5799  ;;  %v5846_v9 = vmul.f32 %v15472_v51, %v5802_v62  ;;  %v5894_v35 = vsel %vm3311_vm13, %v5893_v53, %v5892_v30 }
 0xe19   : > { %v5845_v29 = vmul.f32 %v15489_v25, %v5800_v31  ;;  %v5876_v25 = vsel %vm3305_vm9, %v5875_v18, %v5843_v49 }
 0xe1a   : > { %v5879_v54 = vrot.slane %v5846_v9, 5 }
 0xe1b   : > { %v5877_v52 = vrot.slane %v5845_v29, 6  ;;  %v5804_v2 = vpop.permute.xlu0 %5803 }
 0xe1c   : > { %v5806_v13 = vpop.permute.xlu1 %5805  ;;  %v5847_v44 = vmul.f32 %v15482_v19, %v5804_v2  ;;  %v5855_v19 = vmul.f32 %v15442_v4, %v5820_v7  ;;  %v5897_v7 = vrot.slane %v5856_v11, 3  ;;  %v6127_v11 = vld [vmem:[#allocation2 + $0x4c] sm:$0x1] }
 0xe1d   : > { %v5848_v34 = vmul.f32 %v15494_v23, %v5806_v13  ;;  %v5878_v51 = vsel %vm3308_vm12, %v5877_v52, %v5876_v25  ;;  %v11757_v25 = vld [vmem:[%s17455_s10 + $0x20] sm:$0xff] }
 0xe1e   : > { %v5881_v24 = vrot.slane %v5847_v44, 4  ;;  %v5880_v20 = vsel %vm3311_vm13, %v5879_v54, %v5878_v51  ;;  %v5895_v61 = vrot.slane %v5855_v19, 4  ;;  %v11758_v54 = vld [vmem:[%s17453_s8 + $0x10] sm:$0xff]  ;;  %v11760_v51 = vld [vmem:[%s17453_s8 + $0x8] sm:$0xff]  ;;  %v6126_v19 = vld [vmem:[#allocation2 + $0x44] sm:$0x1] }
 0xe1f   : > { %v5883_v40 = vrot.slane %v5848_v34, 3  ;;  %v11759_v34 = vld [vmem:[%s17455_s10 + $0x18] sm:$0xff] }
 0xe20   : > { %v5824_v8 = vpop.permute.xlu0 %5823  ;;  %v5808_v59 = vpop.permute.xlu1 %5807  ;;  %v5882_v23 = vsel %vm3314_vm11, %v5881_v24, %v5880_v20  ;;  %v5896_v32 = vsel %vm3314_vm11, %v5895_v61, %v5894_v35  ;;  %v11761_v24 = vld [vmem:[%s17455_s10 + $0x10] sm:$0xff] }
 0xe21   : > { %v5849_v45 = vmul.f32 %v15497_v55, %v5808_v59  ;;  %v5857_v42 = vmul.f32 %v15501_v12, %v5824_v8  ;;  %v5884_v16 = vsel %vm3317_vm8, %v5883_v40, %v5882_v23  ;;  %v11762_v8 = vld [vmem:[%s17453_s8] sm:$0xff]  ;;  %v11763_v59 = vld [vmem:[%s17455_s10 + $0x8] sm:$0xff]  ;;  %v6129_v23 = vld [vmem:[#allocation2 + $0x5c] sm:$0x1] }
 0xe23   : > { %v5885_v17 = vrot.slane %v5849_v45, 2  ;;  %v5899_v27 = vrot.slane %v5857_v42, 2 }
 0xe24   : > { %v5810_v38 = vpop.permute.xlu1 %5809  ;;  %v5243_v4 = vpop.permute.xlu0 %5242 }
 0xe25   : > { %v5850_v55 = vmul.f32 %v15505_v26, %v5810_v38  ;;  %v5886_v31 = vsel %vm3320_vm10, %v5885_v17, %v5884_v16  ;;  %v5248_v12 = vmul.f32 %v15514_v63, %v5243_v4  ;;  %v5898_v26 = vsel %vm3317_vm8, %v5897_v7, %v5896_v32  ;;  %v6130_v38 = vld [vmem:[#allocation2 + $0x64] sm:$0x1]  ;;  %v6131_v4 = vld [vmem:[#allocation2 + $0x6c] sm:$0x1] }
 0xe26   : > { %v5900_v9 = vsel %vm3320_vm10, %v5899_v27, %v5898_v26 }
 0xe27   : > { %v5887_v0 = vrot.slane %v5850_v55, 1  ;;  %v15661_v2 = vsel %vm4412_vm4, %v5248_v12, %v15229_v5 }
 0xe28   : > { %v5826_v62 = vpop.permute.xlu1 %5825 }
 0xe29   : > { %v5858_v36 = vmul.f32 %v15510_v39, %v5826_v62  ;;  %v5888_v29 = vsel %vm3323_vm7, %v5887_v0, %v5886_v31  ;;  %v6132_v0 = vld [vmem:[#allocation2 + $0x74] sm:$0x1] }
 0xe2a   : > { %5903 = vrot.lane.b32.xlu0 %v5888_v29, %s17574_s0 }
 0xe2b   : > { %v5901_v21 = vrot.slane %v5858_v36, 1 }
 0xe2c   : > { %v5245_v18 = vpop.permute.xlu1 %5244 }
 0xe2d   : > { %v5249_v52 = vmul.f32 %v15525_v15, %v5245_v18  ;;  %v5902_v63 = vsel %vm3323_vm7, %v5901_v21, %v5900_v9  ;;  %v11765_v18 = vld [vmem:[%s17456_s11] ss:$0 sm:$0xff] }
 0xe2e   : > { %5965 = vrot.lane.b32.xlu0 %v15661_v2, %s17572_s25  ;;  %5905 = vrot.lane.b32.xlu1 %v5902_v63, %s17574_s0 }
 0xe2f   : > { %v15670_v39 = vsel %vm4413_vm3, %v5249_v52, %v15238_v50 }
 0xe31   : > { %v15678_v5 = vpop.permute.xlu0 %5259 }
 0xe32   : > { %5955 = vrot.lane.b32.xlu0 %v15594_v48, %s17573_s27  ;;  %5967 = vrot.lane.b32.xlu1 %v15670_v39, %s17572_s25  ;;  %vm5264_vm14 = vcmp.eq.s32.totalorder %v15678_v5, 1 }
 0xe36   : > { %5957 = vrot.lane.b32.xlu1 %v15611_v22, %s17573_s27 }
 0xe39   : > { %v15681_v15 = vpop.permute.xlu1 %5262 }
 0xe3a   : > { %vm5265_vm15 = vcmp.eq.s32.totalorder %v15681_v15, 1 }
 0xe9c   : > { %v5904_v13 = vpop.permute.xlu0 %5903 }
 0xe9d   : > { %v15686_v50 = vsel %vm5264_vm14, %v5904_v13, %v15254_v10  ;;  %v11753_v10 = vld [vmem:[%s17455_s10 + $0x38] sm:$0xff]  ;;  %v6118_v13 = vld [vmem:[#allocation2 + $0x4] sm:$0x1] }
 0xe9e   : > { %10261 = vmatprep.mubr.msk.f32.mxu0 %vm2777_vm1, %v15686_v50 }
 0xea0   : > { %v5966_v48 = vpop.permute.xlu0 %5965  ;;  %v5906_v43 = vpop.permute.xlu1 %5905 }
 0xea1   : > { %v5971_v22 = vsel %vm2777_vm1, %v15686_v50, %v5966_v48  ;;  %v15696_v49 = vsel %vm5265_vm15, %v5906_v43, %v15264_v57 }
 0xea2   : > { %10250 = vmatprep.mubr.msk.f32.mxu1 %vm3416_vm0, %v5971_v22  ;;  %10262 = vmatmul.mubr.msk.f32.vlgmr.msra.gmra.mxu0 %vm2777_vm1, %v15696_v49  ;;  %v6119_v22 = vld [vmem:[#allocation2 + $0xc] sm:$0x1] }
 0xea3   : > { %10265 = vmatpush3.msra.mxu0 %v11753_v10 }
 0xea4   : > { %v5968_v44 = vpop.permute.xlu1 %5967  ;;  %10266 = vmatprep.subr.mxu0 %v11754_v46 }
 0xea5   : > { %v5972_v57 = vsel %vm2777_vm1, %v15696_v49, %v5968_v44  ;;  %10267 = vmatpush3.msra.mxu0 %v11754_v46  ;;  %v6128_v46 = vld [vmem:[#allocation2 + $0x54] sm:$0x1] }
 0xea6   : > { %10251 = vmatmul.mubr.msk.f32.vlgmr.msra.gmra.mxu1 %vm3416_vm0, %v5972_v57  ;;  %10268 = vmatprep.subr.mxu0 %v11755_v58 }
 0xea7   : > { %10269 = vmatpush3.msra.mxu0 %v11755_v58  ;;  %10284 = vmatpush3.msra.mxu1 %v11756_v47 }
 0xea8   : > { %10270 = vmatprep.subr.mxu0 %v11757_v25  ;;  %10285 = vmatprep.subr.mxu1 %v11758_v54 }
 0xea9   : > { %10271 = vmatpush3.msra.mxu0 %v11757_v25  ;;  %10286 = vmatpush3.msra.mxu1 %v11758_v54 }
 0xeaa   : > { %10272 = vmatprep.subr.mxu0 %v11759_v34  ;;  %10287 = vmatprep.subr.mxu1 %v11760_v51 }
 0xeab   : > { %10273 = vmatpush3.msra.mxu0 %v11759_v34  ;;  %10288 = vmatpush3.msra.mxu1 %v11760_v51  ;;  %v6133_v34 = vld [vmem:[#allocation2 + $0x7c] sm:$0x1] }
 0xeac   : > { %10274 = vmatprep.subr.mxu0 %v11761_v24  ;;  %10289 = vmatprep.subr.mxu1 %v11762_v8 }
 0xead   : > { %10275 = vmatpush3.msra.mxu0 %v11761_v24  ;;  %10290 = vmatpush3.msra.mxu1 %v11762_v8  ;;  %v6122_v8 = vld [vmem:[#allocation2 + $0x24] sm:$0x1] }
 0xeae   : > { %10276 = vmatprep.subr.mxu0 %v11763_v59  ;;  %10294 = vmatprep.subr.mxu1 %v11753_v10 }
 0xeaf   : > { %10277 = vmatpush3.msra.mxu0 %v11763_v59 }
 0xeb0   : > { %10278 = vmatprep.subr.mxu0 %v11764_v37 }
 0xeb1   : > { %10279 = vmatpush3.msra.mxu0 %v11764_v37  ;;  %v6120_v37 = vld [vmem:[#allocation2 + $0x14] sm:$0x1] }
 0xeb2   : > { %10313 = vmatprep.subr.mxu0 %v11756_v47  ;;  %v6121_v47 = vld [vmem:[#allocation2 + $0x1c] sm:$0x1] }
 0xf62   : > { %v10263_v45 = vpop.f32.mrf.mxu0 }
 0xf63   : > { %v15740_v30 = vadd.f32 %v10263_v45, %v6126_v19  ;;  %v6224_v53 = vrot.slane %v10263_v45, 1  ;;  %v6226_v20 = vrot.slane %v10263_v45, 3  ;;  %v6227_v42 = vrot.slane %v10263_v45, 4 }
 0xf64   : > { %v6228_v55 = vrot.slane %v10263_v45, 5  ;;  %v6229_v7 = vrot.slane %v10263_v45, 6  ;;  %v6206_v26 = vpop.f32.mrf.mxu0  ;;  %v6225_v48 = vrot.slane %v10263_v45, 2  ;;  %v6230_v57 = vrot.slane %v10263_v45, 7 }
 0xf65   : > { %11125 = vtanh.f32 %v15740_v30  ;;  %v15743_v40 = vadd.f32 %v6224_v53, %v6127_v11  ;;  %v15745_v17 = vadd.f32 %v6226_v20, %v6129_v23  ;;  %v15748_v61 = vadd.f32 %v6227_v42, %v6130_v38  ;;  %v6123_v20 = vld [vmem:[#allocation2 + $0x2c] sm:$0x1] }
 0xf66   : > { %v15752_v16 = vadd.f32 %v6228_v55, %v6131_v4  ;;  %v15755_v32 = vadd.f32 %v6229_v7, %v6132_v0  ;;  %v10252_v29 = vpop.f32.mrf.mxu1  ;;  %v6217_v52 = vrot.slane %v6206_v26, 1  ;;  %v15771_v43 = vadd.f32 %v6206_v26, %v6118_v13  ;;  %v6124_v55 = vld [vmem:[#allocation2 + $0x34] sm:$0x1] }
 0xf67   : > { %11127 = vtanh.f32 %v15743_v40  ;;  %v15767_v9 = vadd.f32 %v11765_v18, %v10252_v29  ;;  %v6219_v10 = vrot.slane %v6206_v26, 3  ;;  %v15777_v58 = vadd.f32 %v6225_v48, %v6128_v46 }
 0xf68   : > { %11129 = vtanh.f32 %v15745_v17  ;;  %v6045_v21 = vpop.f32.mrf.mxu1  ;;  %v15774_v44 = vadd.f32 %v6217_v52, %v6119_v22  ;;  %v6220_v25 = vrot.slane %v6206_v26, 4  ;;  %v15783_v51 = vadd.f32 %v6230_v57, %v6133_v34 }
 0xf69   : > { %11131 = vtanh.f32 %v15748_v61  ;;  %v15769_v63 = vadd.f32 %v11765_v18, %v6045_v21  ;;  %v15780_v54 = vadd.f32 %v6219_v10, %v6121_v47  ;;  %v6218_v24 = vrot.slane %v6206_v26, 2  ;;  %v5958_v21 = vpop.permute.xlu1 %5957 }
 0xf6a   : > { %11133 = vtanh.f32 %v15752_v16  ;;  %v15786_v59 = vadd.f32 %v6220_v25, %v6122_v8  ;;  %v6221_v45 = vrot.slane %v6206_v26, 5  ;;  %v6222_v23 = vrot.slane %v6206_v26, 6 }
 0xf6b   : > { %11135 = vtanh.f32 %v15755_v32  ;;  %v15790_v19 = vadd.f32 %v6218_v24, %v6120_v37  ;;  %v6223_v4 = vrot.slane %v6206_v26, 7  ;;  %v15821_v13 = vsel %vm5265_vm15, %v5958_v21, %v15389_v3 }
 0xf6c   : > { %11137 = vtanh.f32 %v15767_v9  ;;  %v15794_v42 = vadd.f32 %v6221_v45, %v6123_v20  ;;  %v15799_v7 = vadd.f32 %v6222_v23, %v6124_v55  ;;  %v9869_v3 = vmul.f32 -1.442695, %v15740_v30 }
 0xf6d   : > { %11139 = vtanh.f32 %v15769_v63  ;;  %v6388_v25 = vrot.slane %v15821_v13, 5  ;;  %v9870_v30 = vmul.f32 -1.442695, %v15743_v40  ;;  %v6385_v34 = vrot.slane %v15821_v13, 2 }
 0xf6e   : > { %11141 = vtanh.f32 %v15771_v43  ;;  %v9872_v8 = vmul.f32 -1.442695, %v15745_v17  ;;  %v6390_v45 = vrot.slane %v15821_v13, 7  ;;  %v6387_v17 = vrot.slane %v15821_v13, 4 }
 0xf6f   : > { %11143 = vtanh.f32 %v15774_v44  ;;  %v6389_v55 = vrot.slane %v15821_v13, 6 }
 0xf70   : > { %11145 = vtanh.f32 %v15777_v58 }
 0xf71   : > { %11147 = vtanh.f32 %v15780_v54 }
 0xf72   : > { %v11126_v35 = vpop.eup %11125  ;;  %11149 = vtanh.f32 %v15783_v51 }
 0xf73   : > { %6487 = vrot.lane.b32.xlu1 %v11126_v35, %s17572_s25  ;;  %11151 = vtanh.f32 %v15786_v59 }
 0xf74   : > { %v11128_v27 = vpop.eup %11127  ;;  %11153 = vtanh.f32 %v15790_v19 }
 0xf75   : > { %6489 = vrot.lane.b32.xlu0 %v11128_v27, %s17572_s25  ;;  %v11130_v62 = vpop.eup %11129  ;;  %11155 = vtanh.f32 %v15794_v42 }
 0xf76   : > { %v11132_v31 = vpop.eup %11131  ;;  %11157 = vtanh.f32 %v15799_v7 }
 0xf77   : > { %v11134_v12 = vpop.eup %11133 }
 0xf78   : > { %v11136_v36 = vpop.eup %11135 }
 0xf79   : > { %6493 = vrot.lane.b32.xlu0 %v11130_v62, %s17572_s25  ;;  %v11138_v53 = vpop.eup %11137  ;;  %v6125_v62 = vld [vmem:[#allocation2 + $0x3c] sm:$0x1] }
 0xf7a   : > { %6074 = vrot.lane.b32.xlu1 %v11138_v53, %s17572_s25  ;;  %v11140_v11 = vpop.eup %11139  ;;  %v9873_v53 = vmul.f32 -1.442695, %v15748_v61 }
 0xf7b   : > { %v11142_v38 = vpop.eup %11141 }
 0xf7c   : > { %v11144_v35 = vpop.eup %11143 }
 0xf7d   : > { %6495 = vrot.lane.b32.xlu0 %v11132_v31, %s17572_s25  ;;  %v11146_v0 = vpop.eup %11145  ;;  %v5956_v31 = vpop.permute.xlu0 %5955 }
 0xf7e   : > { %6471 = vrot.lane.b32.xlu1 %v11142_v38, %s17572_s25  ;;  %v11148_v27 = vpop.eup %11147  ;;  %v15812_v26 = vsel %vm5264_vm14, %v5956_v31, %v15380_v6  ;;  %v6384_v6 = vrot.slane %v15821_v13, 1 }
 0xf7f   : > { %v6377_v52 = vrot.slane %v15812_v26, 1  ;;  %v6379_v10 = vrot.slane %v15812_v26, 3  ;;  %v6378_v57 = vrot.slane %v15812_v26, 2  ;;  %v6381_v47 = vrot.slane %v15812_v26, 5 }
 0xf80   : > { %v6383_v24 = vrot.slane %v15812_v26, 7  ;;  %v6380_v37 = vrot.slane %v15812_v26, 4  ;;  %v6382_v38 = vrot.slane %v15812_v26, 6 }
 0xf81   : > { %6497 = vrot.lane.b32.xlu0 %v11134_v12, %s17572_s25  ;;  %v15804_v12 = vadd.f32 %v6223_v4, %v6125_v62 }
 0xf82   : > { %6491 = vrot.lane.b32.xlu1 %v11146_v0, %s17572_s25 }
 0xf83   : > { %11159 = vtanh.f32 %v15804_v12 }
 0xf84   : > { %11161 = vpow2.f32 %v9869_v3 }
 0xf85   : > { %6499 = vrot.lane.b32.xlu0 %v11136_v36, %s17572_s25  ;;  %v11150_v36 = vpop.eup %11149  ;;  %11163 = vpow2.f32 %v9870_v30  ;;  %v9862_v30 = vmul.f32 -1.442695, %v15774_v44 }
 0xf86   : > { %6501 = vrot.lane.b32.xlu1 %v11150_v36, %s17572_s25  ;;  %v11152_v29 = vpop.eup %11151  ;;  %11165 = vpow2.f32 %v9872_v8  ;;  %v9867_v8 = vmul.f32 -1.442695, %v15799_v7 }
 0xf87   : > { %v11154_v18 = vpop.eup %11153  ;;  %11167 = vpow2.f32 %v9873_v53  ;;  %v9868_v53 = vmul.f32 -1.442695, %v15804_v12  ;;  %v9858_v12 = vmul.f32 -1.442695, %v15767_v9 }
 0xf88   : > { %v11156_v48 = vpop.eup %11155 }
 0xf89   : > { %6072 = vrot.lane.b32.xlu0 %v11140_v11, %s17572_s25  ;;  %v11158_v22 = vpop.eup %11157  ;;  %v6386_v11 = vrot.slane %v15821_v13, 3 }
 0xf8a   : > { %6475 = vrot.lane.b32.xlu1 %v11154_v18, %s17572_s25 }
 0xf8d   : > { %6473 = vrot.lane.b32.xlu0 %v11144_v35, %s17572_s25 }
 0xf8e   : > { %6481 = vrot.lane.b32.xlu1 %v11156_v48, %s17572_s25 }
 0xf90   : > { %v11160_v46 = vpop.eup %11159 }
 0xf91   : > { %6477 = vrot.lane.b32.xlu0 %v11148_v27, %s17572_s25  ;;  %v11162_v40 = vpop.eup %11161 }
 0xf92   : > { %6483 = vrot.lane.b32.xlu1 %v11158_v22, %s17572_s25  ;;  %v6319_v20 = vadd.f32 1.0, %v11162_v40  ;;  %v11164_v23 = vpop.eup %11163  ;;  %v9861_v22 = vmul.f32 -1.442695, %v15771_v43  ;;  %v9865_v43 = vmul.f32 -1.442695, %v15786_v59 }
 0xf93   : > { %v6320_v35 = vadd.f32 1.0, %v11164_v23  ;;  %v11166_v61 = vpop.eup %11165 }
 0xf94   : > { %11169 = vrcp.f32 %v6319_v20  ;;  %v6322_v4 = vadd.f32 1.0, %v11166_v61  ;;  %v11168_v0 = vpop.eup %11167 }
 0xf95   : > { %6479 = vrot.lane.b32.xlu0 %v11152_v29, %s17572_s25  ;;  %11171 = vrcp.f32 %v6320_v35  ;;  %v6323_v62 = vadd.f32 1.0, %v11168_v0 }
 0xf96   : > { %6485 = vrot.lane.b32.xlu1 %v11160_v46, %s17572_s25  ;;  %11173 = vrcp.f32 %v6322_v4 }
 0xf97   : > { %11175 = vrcp.f32 %v6323_v62 }
 0xf98   : > { %11177 = vpow2.f32 %v9861_v22 }
 0xf99   : > { %6393 = vrot.lane.b32.xlu0 %v6377_v52, %s17574_s0 }
 0xf9a   : > { %6395 = vrot.lane.b32.xlu1 %v6378_v57, %s17574_s0  ;;  %v9871_v57 = vmul.f32 -1.442695, %v15777_v58  ;;  %v9866_v58 = vmul.f32 -1.442695, %v15794_v42 }
 0xf9c   : > { %11179 = vpow2.f32 %v9871_v57 }
 0xf9d   : > { %6409 = vrot.lane.b32.xlu0 %v6384_v6, %s17574_s0 }
 0xf9e   : > { %6391 = vrot.lane.b32.xlu1 %v15812_v26, %s17574_s0 }
 0xfa1   : > { %6397 = vrot.lane.b32.xlu0 %v6379_v10, %s17574_s0  ;;  %v15861_v27 = vpop.eup %11169 }
 0xfa2   : > { %6411 = vrot.lane.b32.xlu1 %v6385_v34, %s17574_s0  ;;  %v15865_v29 = vpop.eup %11171  ;;  %v9863_v34 = vmul.f32 -1.442695, %v15790_v19  ;;  %v9876_v19 = vmul.f32 -1.442695, %v15783_v51 }
 0xfa3   : > { %v15869_v52 = vpop.eup %11173 }
 0xfa4   : > { %v15874_v10 = vpop.eup %11175 }
 0xfa5   : > { %6407 = vrot.lane.b32.xlu0 %v15821_v13, %s17574_s0 }
 0xfa6   : > { %6399 = vrot.lane.b32.xlu1 %v6380_v37, %s17574_s0 }
 0xfa9   : > { %6401 = vrot.lane.b32.xlu0 %v6381_v47, %s17574_s0  ;;  %v9864_v47 = vmul.f32 -1.442695, %v15780_v54 }
 0xfaa   : > { %6413 = vrot.lane.b32.xlu1 %v6386_v11, %s17574_s0 }
 0xfab   : > { %11181 = vpow2.f32 %v9864_v47 }
 0xfad   : > { %6417 = vrot.lane.b32.xlu0 %v6388_v25, %s17574_s0  ;;  %v9874_v25 = vmul.f32 -1.442695, %v15752_v16  ;;  %v9875_v16 = vmul.f32 -1.442695, %v15755_v32  ;;  %v9857_v32 = vmul.f32 -1.442695, %v15769_v63 }
 0xfae   : > { %6415 = vrot.lane.b32.xlu1 %v6387_v17, %s17574_s0 }
 0xfaf   : > { %11183 = vpow2.f32 %v9874_v25 }
 0xfb0   : > { %11185 = vpow2.f32 %v9862_v30 }
 0xfb1   : > { %6405 = vrot.lane.b32.xlu0 %v6383_v24, %s17574_s0  ;;  %11187 = vpow2.f32 %v9865_v43  ;;  %v11178_v24 = vpop.eup %11177 }
 0xfb2   : > { %6403 = vrot.lane.b32.xlu1 %v6382_v38, %s17574_s0  ;;  %v11180_v37 = vpop.eup %11179  ;;  %11189 = vpow2.f32 %v9863_v34  ;;  %v6311_v54 = vadd.f32 1.0, %v11178_v24 }
 0xfb3   : > { %11191 = vpow2.f32 %v9866_v58 }
 0xfb4   : > { %11193 = vpow2.f32 %v9867_v8 }
 0xfb5   : > { %6421 = vrot.lane.b32.xlu0 %v6390_v45, %s17574_s0  ;;  %v6321_v45 = vadd.f32 1.0, %v11180_v37  ;;  %11195 = vrcp.f32 %v6311_v54 }
 0xfb6   : > { %6419 = vrot.lane.b32.xlu1 %v6389_v55, %s17574_s0  ;;  %11197 = vpow2.f32 %v9875_v16 }
 0xfb7   : > { %11199 = vrcp.f32 %v6321_v45 }
 0xfb8   : > { %v11182_v44 = vpop.eup %11181  ;;  %11201 = vpow2.f32 %v9868_v53 }
 0xfb9   : > { %v6314_v42 = vadd.f32 1.0, %v11182_v44  ;;  %11203 = vpow2.f32 %v9876_v19 }
 0xfbb   : > { %11205 = vrcp.f32 %v6314_v42 }
 0xfbc   : > { %v11184_v40 = vpop.eup %11183 }
 0xfbd   : > { %v11186_v11 = vpop.eup %11185  ;;  %v6324_v20 = vadd.f32 1.0, %v11184_v40 }
 0xfbe   : > { %v11188_v7 = vpop.eup %11187  ;;  %v6312_v17 = vadd.f32 1.0, %v11186_v11 }
 0xfbf   : > { %v6315_v38 = vadd.f32 1.0, %v11188_v7  ;;  %11207 = vrcp.f32 %v6324_v20  ;;  %v11190_v51 = vpop.eup %11189 }
 0xfc0   : > { %11209 = vpow2.f32 %v9857_v32  ;;  %v11192_v61 = vpop.eup %11191  ;;  %v6313_v63 = vadd.f32 1.0, %v11190_v51 }
 0xfc1   : > { %11211 = vrcp.f32 %v6312_v17  ;;  %v11194_v4 = vpop.eup %11193 }
 0xfc2   : > { %11213 = vrcp.f32 %v6315_v38  ;;  %v15897_v0 = vpop.eup %11195 }
 0xfc3   : > { %11215 = vpow2.f32 %v9858_v12 }
 0xfc4   : > { %11217 = vrcp.f32 %v6313_v63 }
 0xfe5   : > { %v6488_v31 = vpop.permute.xlu1 %6487 }
 0xfe6   : > { %v6527_v36 = vmul.f32 %v15861_v27, %v6488_v31 }
 0xfe7   : > { %v6490_v21 = vpop.permute.xlu0 %6489 }
 0xfe8   : > { %6567 = vrot.lane.b32.xlu0 %v6527_v36, %s17574_s0  ;;  %v6528_v18 = vmul.f32 %v15865_v29, %v6490_v21  ;;  %v11198_v36 = vpop.eup %11197  ;;  %v6316_v21 = vadd.f32 1.0, %v11192_v61 }
 0xfe9   : > { %v6325_v47 = vadd.f32 1.0, %v11198_v36 }
 0xfea   : > { %6569 = vrot.lane.b32.xlu1 %v6528_v18, %s17574_s0  ;;  %v15900_v18 = vpop.eup %11199  ;;  %11219 = vrcp.f32 %v6316_v21 }
 0xfeb   : > { %v6494_v48 = vpop.permute.xlu0 %6493 }
 0xfec   : > { %v6530_v6 = vmul.f32 %v15869_v52, %v6494_v48  ;;  %v15893_v35 = vpop.permute.xlu1 %6074  ;;  %v6317_v48 = vadd.f32 1.0, %v11194_v4 }
 0xfee   : > { %6573 = vrot.lane.b32.xlu1 %v6530_v6, %s17574_s0  ;;  %v11202_v6 = vpop.eup %11201  ;;  %11221 = vrcp.f32 %v6317_v48 }
 0xfef   : > { %v6496_v46 = vpop.permute.xlu0 %6495  ;;  %v6318_v43 = vadd.f32 1.0, %v11202_v6  ;;  %11223 = vrcp.f32 %v6325_v47 }
 0xff0   : > { %v6531_v3 = vmul.f32 %v15874_v10, %v6496_v46  ;;  %v6472_v62 = vpop.permute.xlu1 %6471  ;;  %v11204_v46 = vpop.eup %11203 }
 0xff1   : > { %v6519_v31 = vmul.f32 %v15897_v0, %v6472_v62  ;;  %v15904_v57 = vpop.eup %11205  ;;  %v6326_v16 = vadd.f32 1.0, %v11204_v46  ;;  %11225 = vrcp.f32 %v6318_v43 }
 0xff2   : > { %6575 = vrot.lane.b32.xlu1 %v6531_v3, %s17574_s0  ;;  %v15906_v30 = vpop.eup %11207 }
 0xff3   : > { %v6498_v59 = vpop.permute.xlu0 %6497  ;;  %6551 = vrot.lane.b32.xlu0 %v6519_v31, %s17574_s0  ;;  %v11210_v24 = vpop.eup %11209  ;;  %11227 = vrcp.f32 %v6326_v16 }
 0xff4   : > { %v6492_v22 = vpop.permute.xlu1 %6491  ;;  %v15910_v8 = vpop.eup %11211  ;;  %v6532_v37 = vmul.f32 %v15906_v30, %v6498_v59  ;;  %v6060_v45 = vadd.f32 1.0, %v11210_v24 }
 0xff5   : > { %v6529_v3 = vmul.f32 %v15900_v18, %v6492_v22  ;;  %v15914_v54 = vpop.eup %11213 }
 0xff6   : > { %v11216_v19 = vpop.eup %11215  ;;  %11229 = vrcp.f32 %v6060_v45 }
 0xff7   : > { %v15890_v23 = vpop.permute.xlu0 %6499  ;;  %6571 = vrot.lane.b32.xlu0 %v6529_v3, %s17574_s0  ;;  %v6061_v59 = vadd.f32 1.0, %v11216_v19  ;;  %v15921_v42 = vpop.eup %11217 }
 0xff8   : > { %v6502_v58 = vpop.permute.xlu1 %6501  ;;  %v15926_v17 = vpop.eup %11219 }
 0xff9   : > { %11231 = vrcp.f32 %v6061_v59 }
 0xffb   : > { %v15895_v55 = vpop.permute.xlu0 %6072  ;;  %6577 = vrot.lane.b32.xlu0 %v6532_v37, %s17574_s0  ;;  %v15929_v38 = vpop.eup %11221 }
 0xffc   : > { %v6476_v11 = vpop.permute.xlu1 %6475  ;;  %v15933_v4 = vpop.eup %11223 }
 0xffd   : > { %v6521_v20 = vmul.f32 %v15921_v42, %v6476_v11  ;;  %v6533_v36 = vmul.f32 %v15933_v4, %v15890_v23 }
 0xffe   : > { %v15937_v63 = vpop.eup %11225 }
 0xfff   : > { %v6474_v9 = vpop.permute.xlu0 %6473 }
0x1000   : > { %v6520_v40 = vmul.f32 %v15910_v8, %v6474_v9  ;;  %v6482_v7 = vpop.permute.xlu1 %6481  ;;  %v15942_v9 = vpop.eup %11227 }
0x1001   : > { %v6524_v51 = vmul.f32 %v15926_v17, %v6482_v7  ;;  %v6534_v22 = vmul.f32 %v15942_v9, %v6502_v58 }
0x1002   : > { %6553 = vrot.lane.b32.xlu0 %v6520_v40, %s17574_s0 }
0x1003   : > { %v6478_v25 = vpop.permute.xlu0 %6477  ;;  %v15946_v48 = vpop.eup %11229 }
0x1004   : > { %v6522_v34 = vmul.f32 %v15904_v57, %v6478_v25  ;;  %v6484_v12 = vpop.permute.xlu1 %6483  ;;  %v6078_v46 = vmul.f32 %v15946_v48, %v15895_v55 }
0x1005   : > { %v6525_v61 = vmul.f32 %v15929_v38, %v6484_v12 }
0x1006   : > { %6557 = vrot.lane.b32.xlu1 %v6522_v34, %s17574_s0  ;;  %6555 = vrot.lane.b32.xlu0 %v6521_v20, %s17574_s0  ;;  %v15957_v23 = vpop.eup %11231 }
0x1007   : > { %v6480_v44 = vpop.permute.xlu0 %6479  ;;  %v6079_v47 = vmul.f32 %v15957_v23, %v15893_v35 }
0x1008   : > { %v6523_v53 = vmul.f32 %v15914_v54, %v6480_v44  ;;  %v6486_v62 = vpop.permute.xlu1 %6485 }
0x1009   : > { %v6526_v21 = vmul.f32 %v15937_v63, %v6486_v62 }
0x100a   : > { %6559 = vrot.lane.b32.xlu1 %v6523_v53, %s17574_s0  ;;  %6561 = vrot.lane.b32.xlu0 %v6524_v51, %s17574_s0 }
0x100b   : > { %v15924_v32 = vpop.permute.xlu0 %6393 }
0x100c   : > { %v15948_v6 = vpop.permute.xlu1 %6395 }
0x100e   : > { %6563 = vrot.lane.b32.xlu1 %v6525_v61, %s17574_s0  ;;  %6579 = vrot.lane.b32.xlu0 %v6533_v36, %s17574_s0 }
0x100f   : > { %v6410_v31 = vpop.permute.xlu0 %6409 }
0x1010   : > { %v6392_v25 = vpop.permute.xlu1 %6391  ;;  %v6448_v59 = vmul.f32 %v15865_v29, %v6410_v31 }
0x1012   : > { %6565 = vrot.lane.b32.xlu1 %v6526_v21, %s17574_s0  ;;  %6082 = vrot.lane.b32.xlu0 %v6078_v46, %s17574_s0 }
0x1013   : > { %v15953_v3 = vpop.permute.xlu0 %6397 }
0x1014   : > { %v6412_v34 = vpop.permute.xlu1 %6411 }
0x1016   : > { %6581 = vrot.lane.b32.xlu1 %v6534_v22, %s17574_s0 }
0x1017   : > { %v6408_v43 = vpop.permute.xlu0 %6407 }
0x1018   : > { %v6400_v58 = vpop.permute.xlu1 %6399  ;;  %v6447_v40 = vmul.f32 %v15861_v27, %v6408_v43 }
0x101a   : > { %6084 = vrot.lane.b32.xlu1 %v6079_v47, %s17574_s0 }
0x101b   : > { %v15962_v24 = vpop.permute.xlu0 %6401 }
0x101c   : > { %v6414_v37 = vpop.permute.xlu1 %6413 }
0x101d   : > { %v6450_v12 = vmul.f32 %v15869_v52, %v6414_v37 }
0x101f   : > { %v6418_v55 = vpop.permute.xlu0 %6417 }
0x1020   : > { %v6416_v44 = vpop.permute.xlu1 %6415 }
0x1021   : > { %v6451_v22 = vmul.f32 %v15874_v10, %v6416_v44  ;;  %v6449_v44 = vmul.f32 %v15900_v18, %v6412_v34  ;;  %v6442_v34 = vmul.f32 %v15904_v57, %v15953_v3 }
0x1023   : > { %v15964_v16 = vpop.permute.xlu0 %6405 }
0x1024   : > { %v15969_v53 = vpop.permute.xlu1 %6403 }
0x1027   : > { %v15966_v45 = vpop.permute.xlu0 %6421 }
0x1028   : > { %v15971_v11 = vpop.permute.xlu1 %6419 }
0x105a   : > { %v6568_v35 = vpop.permute.xlu0 %6567 }
0x105b   : > { %v6607_v19 = vadd.f32 %v6568_v35, %v6447_v40  ;;  %v6439_v40 = vmul.f32 %v15897_v0, %v6392_v25  ;;  %v6440_v25 = vmul.f32 %v15910_v8, %v15924_v32  ;;  %v6441_v32 = vmul.f32 %v15921_v42, %v15948_v6 }
0x105c   : > { %v6570_v7 = vpop.permute.xlu1 %6569 }
0x105d   : > { %11233 = vtanh.f32 %v6607_v19  ;;  %v6608_v20 = vadd.f32 %v6570_v7, %v6448_v59 }
0x105f   : > { %11235 = vtanh.f32 %v6608_v20  ;;  %v6793_v51 = vrot.slane %v6608_v20, 7 }
0x1060   : > { %v6574_v61 = vpop.permute.xlu1 %6573 }
0x1061   : > { %v6794_v62 = vsel %vm3305_vm9, %v6793_v51, %v6607_v19  ;;  %v6610_v36 = vadd.f32 %v6574_v61, %v6450_v12  ;;  %v6452_v12 = vmul.f32 %v15906_v30, %v6418_v55 }
0x1063   : > { %11237 = vtanh.f32 %v6610_v36  ;;  %v6797_v61 = vrot.slane %v6610_v36, 5  ;;  %v6443_v36 = vmul.f32 %v15914_v54, %v6400_v58  ;;  %v6444_v58 = vmul.f32 %v15926_v17, %v15962_v24 }
0x1064   : > { %v6576_v46 = vpop.permute.xlu1 %6575  ;;  %v6446_v24 = vmul.f32 %v15937_v63, %v15964_v16 }
0x1065   : > { %v6611_v47 = vadd.f32 %v6576_v46, %v6451_v22  ;;  %v6552_v35 = vpop.permute.xlu0 %6551 }
0x1066   : > { %v6599_v19 = vadd.f32 %v6552_v35, %v6439_v40 }
0x1067   : > { %11239 = vtanh.f32 %v6611_v47  ;;  %v6799_v22 = vrot.slane %v6611_v47, 4 }
0x1068   : > { %11241 = vtanh.f32 %v6599_v19 }
0x1069   : > { %v6572_v59 = vpop.permute.xlu0 %6571 }
0x106a   : > { %v11234_v21 = vpop.eup %11233  ;;  %v6609_v7 = vadd.f32 %v6572_v59, %v6449_v44 }
0x106b   : > { %6663 = vrot.lane.b32.xlu1 %v11234_v21, %s17572_s25 }
0x106c   : > { %v11236_v31 = vpop.eup %11235  ;;  %11243 = vtanh.f32 %v6609_v7  ;;  %v6795_v51 = vrot.slane %v6609_v7, 6 }
0x106d   : > { %6665 = vrot.lane.b32.xlu0 %v11236_v31, %s17572_s25  ;;  %v6578_v21 = vpop.permute.xlu0 %6577 }
0x106e   : > { %v6796_v46 = vsel %vm3308_vm12, %v6795_v51, %v6794_v62  ;;  %v6612_v31 = vadd.f32 %v6578_v21, %v6452_v12  ;;  %v6445_v21 = vmul.f32 %v15929_v38, %v15969_v53 }
0x1070   : > { %v11238_v43 = vpop.eup %11237  ;;  %11245 = vtanh.f32 %v6612_v31 }
0x1071   : > { %6669 = vrot.lane.b32.xlu0 %v11238_v43, %s17572_s25  ;;  %v6798_v43 = vsel %vm3311_vm13, %v6797_v61, %v6796_v46 }
0x1072   : > { %v6800_v55 = vsel %vm3314_vm11, %v6799_v22, %v6798_v43 }
0x1074   : > { %v11240_v37 = vpop.eup %11239  ;;  %v6554_v40 = vpop.permute.xlu0 %6553 }
0x1075   : > { %6671 = vrot.lane.b32.xlu0 %v11240_v37, %s17572_s25  ;;  %v6801_v37 = vrot.slane %v6612_v31, 3  ;;  %v6600_v47 = vadd.f32 %v6554_v40, %v6440_v25  ;;  %v11242_v12 = vpop.eup %11241 }
0x1076   : > { %6647 = vrot.lane.b32.xlu1 %v11242_v12, %s17572_s25 }
0x1077   : > { %v6802_v62 = vsel %vm3317_vm8, %v6801_v37, %v6800_v55  ;;  %11247 = vtanh.f32 %v6600_v47  ;;  %v6779_v59 = vrot.slane %v6600_v47, 7  ;;  %v6453_v37 = vmul.f32 %v15933_v4, %v15971_v11 }
0x1078   : > { %v6558_v20 = vpop.permute.xlu1 %6557  ;;  %v6556_v3 = vpop.permute.xlu0 %6555 }
0x1079   : > { %v6602_v44 = vadd.f32 %v6558_v20, %v6442_v34  ;;  %v6780_v51 = vsel %vm3305_vm9, %v6779_v59, %v6599_v19  ;;  %v6601_v61 = vadd.f32 %v6556_v3, %v6441_v32  ;;  %v11244_v46 = vpop.eup %11243  ;;  %v6454_v3 = vmul.f32 %v15942_v9, %v15966_v45 }
0x107a   : > { %6667 = vrot.lane.b32.xlu1 %v11244_v46, %s17572_s25  ;;  %v16033_v45 = vsel %vm4413_vm3, %v15608_v28, %v15601_v14 }
0x107b   : > { %11249 = vtanh.f32 %v6602_v44  ;;  %v6783_v20 = vrot.slane %v6602_v44, 5  ;;  %v6781_v6 = vrot.slane %v6601_v61, 6  ;;  %v16013_v44 = vsel %vm4412_vm4, %v15590_v1, %v15581_v56 }
0x107c   : > { %v6560_v35 = vpop.permute.xlu1 %6559  ;;  %11251 = vtanh.f32 %v6601_v61  ;;  %v6562_v31 = vpop.permute.xlu0 %6561 }
0x107d   : > { %v6603_v7 = vadd.f32 %v6560_v35, %v6443_v36  ;;  %v6782_v43 = vsel %vm3308_vm12, %v6781_v6, %v6780_v51  ;;  %v6604_v19 = vadd.f32 %v6562_v31, %v6444_v58  ;;  %v11246_v36 = vpop.eup %11245  ;;  %v6069_v31 = vmul.f32 %v15957_v23, %v16033_v45 }
0x107e   : > { %v6784_v53 = vsel %vm3311_vm13, %v6783_v20, %v6782_v43  ;;  %6673 = vrot.lane.b32.xlu0 %v11246_v36, %s17572_s25  ;;  %v11767_v36 = vld [vmem:[%s14316_s18 + $0x8] sm:$0xff] }
0x107f   : > { %v6785_v22 = vrot.slane %v6603_v7, 4  ;;  %11253 = vtanh.f32 %v6603_v7  ;;  %v6787_v55 = vrot.slane %v6604_v19, 3  ;;  %v6068_v7 = vmul.f32 %v15946_v48, %v16013_v44 }
0x1080   : > { %v6564_v25 = vpop.permute.xlu1 %6563  ;;  %11255 = vtanh.f32 %v6604_v19  ;;  %v6580_v47 = vpop.permute.xlu0 %6579  ;;  %vm6107_vm4 = vcmp.gt.s32.totalorder %v11767_v36, 4 }
0x1081   : > { %v6605_v34 = vadd.f32 %v6564_v25, %v6445_v21  ;;  %v6786_v40 = vsel %vm3314_vm11, %v6785_v22, %v6784_v53  ;;  %v6613_v16 = vadd.f32 %v6580_v47, %v6453_v37  ;;  %v11766_v37 = vld [vmem:[%s14316_s18] sm:$0xff]  ;;  %v6109_v47 = vsel %vm6107_vm4, 1, %v17571_v60 }
0x1082   : > { %v6788_v59 = vsel %vm3317_vm8, %v6787_v55, %v6786_v40  ;;  %vm6106_vm2 = vcmp.gt.s32.totalorder %v11766_v37, 4 }
0x1083   : > { %v6789_v35 = vrot.slane %v6605_v34, 2  ;;  %11257 = vtanh.f32 %v6605_v34  ;;  %v6803_v33 = vrot.slane %v6613_v16, 2  ;;  %v6108_v40 = vsel %vm6106_vm2, 1, %v17571_v60 }
0x1084   : > { %v6566_v32 = vpop.permute.xlu1 %6565  ;;  %11259 = vtanh.f32 %v6613_v16  ;;  %v11248_v1 = vpop.eup %11247 }
0x1085   : > { %v6606_v11 = vadd.f32 %v6566_v32, %v6446_v24  ;;  %v6790_v12 = vsel %vm3320_vm10, %v6789_v35, %v6788_v59  ;;  %v6083_v51 = vpop.permute.xlu0 %6082  ;;  %6649 = vrot.lane.b32.xlu0 %v11248_v1, %s17572_s25  ;;  %v6804_v6 = vsel %vm3320_vm10, %v6803_v33, %v6802_v62 }
0x1086   : > { %v16022_v58 = vadd.f32 %v6083_v51, %v6068_v7 }
0x1087   : > { %v6791_v56 = vrot.slane %v6606_v11, 1  ;;  %11261 = vtanh.f32 %v6606_v11 }
0x1088   : > { %v6582_v61 = vpop.permute.xlu1 %6581  ;;  %v11250_v22 = vpop.eup %11249  ;;  %11263 = vtanh.f32 %v16022_v58 }
0x1089   : > { %v6614_v20 = vadd.f32 %v6582_v61, %v6454_v3  ;;  %v16026_v21 = vsel %vm3323_vm7, %v6791_v56, %v6790_v12  ;;  %v11252_v25 = vpop.eup %11251  ;;  %6653 = vrot.lane.b32.xlu0 %v11250_v22, %s17572_s25 }
0x108a   : > { %6651 = vrot.lane.b32.xlu1 %v11252_v25, %s17572_s25 }
0x108b   : > { %v6805_v46 = vrot.slane %v6614_v20, 1  ;;  %11265 = vtanh.f32 %v6614_v20 }
0x108c   : > { %v6085_v43 = vpop.permute.xlu1 %6084  ;;  %v11254_v14 = vpop.eup %11253 }
0x108d   : > { %v16040_v62 = vadd.f32 %v6085_v43, %v6069_v31  ;;  %v16043_v41 = vsel %vm3323_vm7, %v6805_v46, %v6804_v6  ;;  %v11256_v28 = vpop.eup %11255  ;;  %6655 = vrot.lane.b32.xlu0 %v11254_v14, %s17572_s25 }
0x108e   : > { %6657 = vrot.lane.b32.xlu1 %v11256_v28, %s17572_s25 }
0x108f   : > { %11267 = vtanh.f32 %v16040_v62 }
0x1090   : > { %v11258_v19 = vpop.eup %11257 }
0x1091   : > { %v11260_v34 = vpop.eup %11259 }
0x1092   : > { %6675 = vrot.lane.b32.xlu0 %v11260_v34, %s17572_s25  ;;  %6659 = vrot.lane.b32.xlu1 %v11258_v19, %s17572_s25 }
0x1094   : > { %v11262_v24 = vpop.eup %11261 }
0x1095   : > { %v11264_v53 = vpop.eup %11263 }
0x1096   : > { %6094 = vrot.lane.b32.xlu0 %v11264_v53, %s17572_s25  ;;  %6661 = vrot.lane.b32.xlu1 %v11262_v24, %s17572_s25 }
0x1098   : > { %v11266_v55 = vpop.eup %11265 }
0x109a   : > { %6111 = vperm.xlu0 %10499, %v6108_v40   ;;  %6677 = vrot.lane.b32.xlu1 %v11266_v55, %s17572_s25 }
0x109c   : > { %v11268_v35 = vpop.eup %11267 }
0x109e   : > { %6096 = vrot.lane.b32.xlu1 %v11268_v35, %s17572_s25 }
0x10a2   : > { %6114 = vperm.xlu1 %10500, %v6109_v47  }
0x10dd   : > { %v6664_v11 = vpop.permute.xlu1 %6663 }
0x10df   : > { %v6666_v32 = vpop.permute.xlu0 %6665 }
0x10e0   : > { %v6704_v61 = vmul.f32 %v15865_v29, %v6666_v32 }
0x10e2   : > { %v6741_v14 = vrot.slane %v6704_v61, 7 }
0x10e3   : > { %v6670_v16 = vpop.permute.xlu0 %6669 }
0x10e4   : > { %v6706_v29 = vmul.f32 %v15869_v52, %v6670_v16 }
0x10e6   : > { %v6745_v35 = vrot.slane %v6706_v29, 5  ;;  %v11771_v29 = vld [vmem:[%s17453_s8 + $0x18] sm:$0xff] }
0x10e7   : > { %v6672_v59 = vpop.permute.xlu0 %6671 }
0x10e8   : > { %v6648_v7 = vpop.permute.xlu1 %6647 }
0x10e9   : > { %v6695_v28 = vmul.f32 %v15897_v0, %v6648_v7 }
0x10ec   : > { %v6668_v3 = vpop.permute.xlu1 %6667 }
0x10ed   : > { %v6705_v6 = vmul.f32 %v15900_v18, %v6668_v3 }
0x10ef   : > { %v6743_v34 = vrot.slane %v6705_v6, 6 }
0x10f0   : > { %v6674_v12 = vpop.permute.xlu0 %6673 }
0x10f1   : > { %v6708_v52 = vmul.f32 %v15906_v30, %v6674_v12 }
0x10f7   : > { %v6650_v33 = vpop.permute.xlu0 %6649 }
0x10f8   : > { %v6696_v56 = vmul.f32 %v15910_v8, %v6650_v33  ;;  %v6703_v8 = vmul.f32 %v15861_v27, %v6664_v11 }
0x10fa   : > { %v6727_v22 = vrot.slane %v6696_v56, 7  ;;  %v6742_v40 = vsel %vm3305_vm9, %v6741_v14, %v6703_v8  ;;  %v11769_v8 = vld [vmem:[%s17455_s10 + $0x30] sm:$0xff] }
0x10fb   : > { %v6654_v1 = vpop.permute.xlu0 %6653  ;;  %v6744_v27 = vsel %vm3308_vm12, %v6743_v34, %v6742_v40  ;;  %v11770_v34 = vld [vmem:[%s17455_s10 + $0x28] sm:$0xff]  ;;  %v11779_v40 = vld [vmem:[%s17455_s10] sm:$0xff] }
0x10fc   : > { %v6652_v51 = vpop.permute.xlu1 %6651  ;;  %v6698_v46 = vmul.f32 %v15904_v57, %v6654_v1  ;;  %v6746_v7 = vsel %vm3311_vm13, %v6745_v35, %v6744_v27 }
0x10fd   : > { %v6697_v20 = vmul.f32 %v15921_v42, %v6652_v51  ;;  %v6728_v42 = vsel %vm3305_vm9, %v6727_v22, %v6695_v28 }
0x10fe   : > { %v6731_v24 = vrot.slane %v6698_v46, 5 }
0x10ff   : > { %v6729_v31 = vrot.slane %v6697_v20, 6  ;;  %v6656_v25 = vpop.permute.xlu0 %6655 }
0x1100   : > { %v6658_v43 = vpop.permute.xlu1 %6657  ;;  %v6699_v19 = vmul.f32 %v15914_v54, %v6656_v25  ;;  %v6707_v54 = vmul.f32 %v15874_v10, %v6672_v59  ;;  %v6749_v59 = vrot.slane %v6708_v52, 3  ;;  %v6979_v52 = vld [vmem:[#allocation2 + $0x4d] sm:$0x1] }
0x1101   : > { %v6700_v18 = vmul.f32 %v15926_v17, %v6658_v43  ;;  %v6730_v57 = vsel %vm3308_vm12, %v6729_v31, %v6728_v42  ;;  %v11772_v42 = vld [vmem:[%s17455_s10 + $0x20] sm:$0xff] }
0x1102   : > { %v6733_v37 = vrot.slane %v6699_v19, 4  ;;  %v6732_v36 = vsel %vm3311_vm13, %v6731_v24, %v6730_v57  ;;  %v6747_v3 = vrot.slane %v6707_v54, 4  ;;  %v11773_v24 = vld [vmem:[%s17453_s8 + $0x10] sm:$0xff]  ;;  %v11775_v57 = vld [vmem:[%s17453_s8 + $0x8] sm:$0xff]  ;;  %v6978_v54 = vld [vmem:[#allocation2 + $0x45] sm:$0x1] }
0x1103   : > { %v6735_v47 = vrot.slane %v6700_v18, 3  ;;  %v11774_v18 = vld [vmem:[%s17455_s10 + $0x18] sm:$0xff] }
0x1104   : > { %v6676_v53 = vpop.permute.xlu0 %6675  ;;  %v6660_v55 = vpop.permute.xlu1 %6659  ;;  %v6734_v17 = vsel %vm3314_vm11, %v6733_v37, %v6732_v36  ;;  %v6748_v30 = vsel %vm3314_vm11, %v6747_v3, %v6746_v7  ;;  %v11776_v37 = vld [vmem:[%s17455_s10 + $0x10] sm:$0xff] }
0x1105   : > { %v6701_v0 = vmul.f32 %v15929_v38, %v6660_v55  ;;  %v6709_v32 = vmul.f32 %v15933_v4, %v6676_v53  ;;  %v6736_v33 = vsel %vm3317_vm8, %v6735_v47, %v6734_v17  ;;  %v11777_v53 = vld [vmem:[%s17453_s8] sm:$0xff]  ;;  %v11778_v55 = vld [vmem:[%s17455_s10 + $0x8] sm:$0xff]  ;;  %v6981_v17 = vld [vmem:[#allocation2 + $0x5d] sm:$0x1] }
0x1107   : > { %v6737_v16 = vrot.slane %v6701_v0, 2  ;;  %v6751_v12 = vrot.slane %v6709_v32, 2 }
0x1108   : > { %v6662_v11 = vpop.permute.xlu1 %6661  ;;  %v6095_v10 = vpop.permute.xlu0 %6094 }
0x1109   : > { %v6702_v38 = vmul.f32 %v15937_v63, %v6662_v11  ;;  %v6738_v51 = vsel %vm3320_vm10, %v6737_v16, %v6736_v33  ;;  %v6100_v4 = vmul.f32 %v15946_v48, %v6095_v10  ;;  %v6750_v63 = vsel %vm3317_vm8, %v6749_v59, %v6748_v30  ;;  %v6982_v11 = vld [vmem:[#allocation2 + $0x65] sm:$0x1]  ;;  %v6983_v10 = vld [vmem:[#allocation2 + $0x6d] sm:$0x1] }
0x110a   : > { %v6752_v46 = vsel %vm3320_vm10, %v6751_v12, %v6750_v63 }
0x110b   : > { %v6739_v56 = vrot.slane %v6702_v38, 1  ;;  %v16093_v25 = vsel %vm5264_vm14, %v6100_v4, %v15661_v2 }
0x110c   : > { %v6678_v1 = vpop.permute.xlu1 %6677 }
0x110d   : > { %v6710_v61 = vmul.f32 %v15942_v9, %v6678_v1  ;;  %v6740_v20 = vsel %vm3323_vm7, %v6739_v56, %v6738_v51  ;;  %v6984_v56 = vld [vmem:[#allocation2 + $0x75] sm:$0x1] }
0x110e   : > { %6755 = vrot.lane.b32.xlu0 %v6740_v20, %s17574_s0 }
0x110f   : > { %v6753_v6 = vrot.slane %v6710_v61, 1 }
0x1110   : > { %v6097_v22 = vpop.permute.xlu1 %6096 }
0x1111   : > { %v6101_v31 = vmul.f32 %v15957_v23, %v6097_v22  ;;  %v6754_v48 = vsel %vm3323_vm7, %v6753_v6, %v6752_v46  ;;  %v11780_v22 = vld [vmem:[%s17456_s11] ss:$0 sm:$0xff] }
0x1112   : > { %6817 = vrot.lane.b32.xlu0 %v16093_v25, %s17572_s25  ;;  %6757 = vrot.lane.b32.xlu1 %v6754_v48, %s17574_s0 }
0x1113   : > { %v16102_v9 = vsel %vm5265_vm15, %v6101_v31, %v15670_v39 }
0x1115   : > { %v16110_v2 = vpop.permute.xlu0 %6111 }
0x1116   : > { %6807 = vrot.lane.b32.xlu0 %v16026_v21, %s17573_s27  ;;  %6819 = vrot.lane.b32.xlu1 %v16102_v9, %s17572_s25  ;;  %vm6116_vm3 = vcmp.eq.s32.totalorder %v16110_v2, 1 }
0x111a   : > { %6809 = vrot.lane.b32.xlu1 %v16043_v41, %s17573_s27 }
0x111d   : > { %v16113_v23 = vpop.permute.xlu1 %6114 }
0x111e   : > { %vm6117_vm6 = vcmp.eq.s32.totalorder %v16113_v23, 1 }
0x1180   : > { %v6756_v43 = vpop.permute.xlu0 %6755 }
0x1181   : > { %v16118_v39 = vsel %vm6116_vm3, %v6756_v43, %v15686_v50  ;;  %v11768_v50 = vld [vmem:[%s17455_s10 + $0x38] sm:$0xff]  ;;  %v6970_v43 = vld [vmem:[#allocation2 + $0x5] sm:$0x1] }
0x1182   : > { %10291 = vmatprep.mubr.msk.f32.mxu1 %vm2777_vm1, %v16118_v39 }
0x1184   : > { %v6818_v21 = vpop.permute.xlu0 %6817  ;;  %v6758_v14 = vpop.permute.xlu1 %6757 }
0x1185   : > { %v6823_v41 = vsel %vm2777_vm1, %v16118_v39, %v6818_v21  ;;  %v16128_v28 = vsel %vm6117_vm6, %v6758_v14, %v15696_v49 }
0x1186   : > { %10280 = vmatprep.mubr.msk.f32.mxu0 %vm3416_vm0, %v6823_v41  ;;  %10292 = vmatmul.mubr.msk.f32.vlgmr.msra.gmra.mxu1 %vm2777_vm1, %v16128_v28  ;;  %v6971_v41 = vld [vmem:[#allocation2 + $0xd] sm:$0x1] }
0x1187   : > { %10295 = vmatpush3.msra.mxu1 %v11768_v50 }
0x1188   : > { %v6820_v19 = vpop.permute.xlu1 %6819  ;;  %10296 = vmatprep.subr.mxu1 %v11769_v8 }
0x1189   : > { %v6824_v49 = vsel %vm2777_vm1, %v16128_v28, %v6820_v19  ;;  %10297 = vmatpush3.msra.mxu1 %v11769_v8  ;;  %v6980_v8 = vld [vmem:[#allocation2 + $0x55] sm:$0x1] }
0x118a   : > { %10281 = vmatmul.mubr.msk.f32.vlgmr.msra.gmra.mxu0 %vm3416_vm0, %v6824_v49  ;;  %10298 = vmatprep.subr.mxu1 %v11770_v34 }
0x118b   : > { %10299 = vmatpush3.msra.mxu1 %v11770_v34  ;;  %10314 = vmatpush3.msra.mxu0 %v11771_v29 }
0x118c   : > { %10300 = vmatprep.subr.mxu1 %v11772_v42  ;;  %10315 = vmatprep.subr.mxu0 %v11773_v24 }
0x118d   : > { %10301 = vmatpush3.msra.mxu1 %v11772_v42  ;;  %10316 = vmatpush3.msra.mxu0 %v11773_v24 }
0x118e   : > { %10302 = vmatprep.subr.mxu1 %v11774_v18  ;;  %10317 = vmatprep.subr.mxu0 %v11775_v57 }
0x118f   : > { %10303 = vmatpush3.msra.mxu1 %v11774_v18  ;;  %10318 = vmatpush3.msra.mxu0 %v11775_v57  ;;  %v6985_v18 = vld [vmem:[#allocation2 + $0x7d] sm:$0x1] }
0x1190   : > { %10304 = vmatprep.subr.mxu1 %v11776_v37  ;;  %10319 = vmatprep.subr.mxu0 %v11777_v53 }
0x1191   : > { %10305 = vmatpush3.msra.mxu1 %v11776_v37  ;;  %10320 = vmatpush3.msra.mxu0 %v11777_v53  ;;  %v6974_v53 = vld [vmem:[#allocation2 + $0x25] sm:$0x1] }
0x1192   : > { %10306 = vmatprep.subr.mxu1 %v11778_v55  ;;  %10324 = vmatprep.subr.mxu0 %v11768_v50 }
0x1193   : > { %10307 = vmatpush3.msra.mxu1 %v11778_v55 }
0x1194   : > { %10308 = vmatprep.subr.mxu1 %v11779_v40 }
0x1195   : > { %10309 = vmatpush3.msra.mxu1 %v11779_v40  ;;  %v6972_v40 = vld [vmem:[#allocation2 + $0x15] sm:$0x1] }
0x1196   : > { %10343 = vmatprep.subr.mxu1 %v11771_v29  ;;  %v6973_v29 = vld [vmem:[#allocation2 + $0x1d] sm:$0x1] }
0x1246   : > { %v10293_v0 = vpop.f32.mrf.mxu1 }
0x1247   : > { %v16172_v27 = vadd.f32 %v10293_v0, %v6978_v54  ;;  %v7076_v35 = vrot.slane %v10293_v0, 1  ;;  %v7078_v36 = vrot.slane %v10293_v0, 3  ;;  %v7079_v32 = vrot.slane %v10293_v0, 4 }
0x1248   : > { %v7080_v38 = vrot.slane %v10293_v0, 5  ;;  %v7081_v59 = vrot.slane %v10293_v0, 6  ;;  %v7058_v63 = vpop.f32.mrf.mxu1  ;;  %v7077_v21 = vrot.slane %v10293_v0, 2  ;;  %v7082_v49 = vrot.slane %v10293_v0, 7 }
0x1249   : > { %11269 = vtanh.f32 %v16172_v27  ;;  %v16175_v47 = vadd.f32 %v7076_v35, %v6979_v52  ;;  %v16177_v16 = vadd.f32 %v7078_v36, %v6981_v17  ;;  %v16180_v3 = vadd.f32 %v7079_v32, %v6982_v11  ;;  %v6975_v36 = vld [vmem:[#allocation2 + $0x2d] sm:$0x1] }
0x124a   : > { %v16184_v33 = vadd.f32 %v7080_v38, %v6983_v10  ;;  %v16187_v30 = vadd.f32 %v7081_v59, %v6984_v56  ;;  %v10282_v20 = vpop.f32.mrf.mxu0  ;;  %v7069_v31 = vrot.slane %v7058_v63, 1  ;;  %v16203_v14 = vadd.f32 %v7058_v63, %v6970_v43  ;;  %v6976_v38 = vld [vmem:[#allocation2 + $0x35] sm:$0x1] }
0x124b   : > { %11271 = vtanh.f32 %v16175_v47  ;;  %v16199_v46 = vadd.f32 %v11780_v22, %v10282_v20  ;;  %v7071_v50 = vrot.slane %v7058_v63, 3  ;;  %v16209_v34 = vadd.f32 %v7077_v21, %v6980_v8 }
0x124c   : > { %11273 = vtanh.f32 %v16177_v16  ;;  %v6897_v6 = vpop.f32.mrf.mxu0  ;;  %v16206_v19 = vadd.f32 %v7069_v31, %v6971_v41  ;;  %v7072_v42 = vrot.slane %v7058_v63, 4  ;;  %v16215_v57 = vadd.f32 %v7082_v49, %v6985_v18 }
0x124d   : > { %11275 = vtanh.f32 %v16180_v3  ;;  %v16201_v48 = vadd.f32 %v11780_v22, %v6897_v6  ;;  %v16212_v24 = vadd.f32 %v7071_v50, %v6973_v29  ;;  %v7070_v37 = vrot.slane %v7058_v63, 2  ;;  %v6810_v6 = vpop.permute.xlu1 %6809 }
0x124e   : > { %11277 = vtanh.f32 %v16184_v33  ;;  %v16218_v55 = vadd.f32 %v7072_v42, %v6974_v53  ;;  %v7073_v0 = vrot.slane %v7058_v63, 5  ;;  %v7074_v17 = vrot.slane %v7058_v63, 6 }
0x124f   : > { %11279 = vtanh.f32 %v16187_v30  ;;  %v16222_v54 = vadd.f32 %v7070_v37, %v6972_v40  ;;  %v7075_v10 = vrot.slane %v7058_v63, 7  ;;  %v16253_v43 = vsel %vm6117_vm6, %v6810_v6, %v15821_v13 }
0x1250   : > { %11281 = vtanh.f32 %v16199_v46  ;;  %v16226_v32 = vadd.f32 %v7073_v0, %v6975_v36  ;;  %v16231_v59 = vadd.f32 %v7074_v17, %v6976_v38  ;;  %v9891_v13 = vmul.f32 -1.442695, %v16172_v27 }
0x1251   : > { %11283 = vtanh.f32 %v16201_v48  ;;  %v7240_v42 = vrot.slane %v16253_v43, 5  ;;  %v9892_v27 = vmul.f32 -1.442695, %v16175_v47  ;;  %v7237_v18 = vrot.slane %v16253_v43, 2 }
0x1252   : > { %11285 = vtanh.f32 %v16203_v14  ;;  %v9894_v53 = vmul.f32 -1.442695, %v16177_v16  ;;  %v7242_v0 = vrot.slane %v16253_v43, 7  ;;  %v7239_v16 = vrot.slane %v16253_v43, 4 }
0x1253   : > { %11287 = vtanh.f32 %v16206_v19  ;;  %v7241_v38 = vrot.slane %v16253_v43, 6 }
0x1254   : > { %11289 = vtanh.f32 %v16209_v34 }
0x1255   : > { %11291 = vtanh.f32 %v16212_v24 }
0x1256   : > { %v11270_v7 = vpop.eup %11269  ;;  %11293 = vtanh.f32 %v16215_v57 }
0x1257   : > { %7339 = vrot.lane.b32.xlu1 %v11270_v7, %s17572_s25  ;;  %11295 = vtanh.f32 %v16218_v55 }
0x1258   : > { %v11272_v12 = vpop.eup %11271  ;;  %11297 = vtanh.f32 %v16222_v54 }
0x1259   : > { %7341 = vrot.lane.b32.xlu0 %v11272_v12, %s17572_s25  ;;  %v11274_v1 = vpop.eup %11273  ;;  %11299 = vtanh.f32 %v16226_v32 }
0x125a   : > { %v11276_v51 = vpop.eup %11275  ;;  %11301 = vtanh.f32 %v16231_v59 }
0x125b   : > { %v11278_v4 = vpop.eup %11277 }
0x125c   : > { %v11280_v61 = vpop.eup %11279 }
0x125d   : > { %7345 = vrot.lane.b32.xlu0 %v11274_v1, %s17572_s25  ;;  %v11282_v35 = vpop.eup %11281  ;;  %v6977_v1 = vld [vmem:[#allocation2 + $0x3d] sm:$0x1] }
0x125e   : > { %6926 = vrot.lane.b32.xlu1 %v11282_v35, %s17572_s25  ;;  %v11284_v52 = vpop.eup %11283  ;;  %v9895_v35 = vmul.f32 -1.442695, %v16180_v3 }
0x125f   : > { %v11286_v11 = vpop.eup %11285 }
0x1260   : > { %v11288_v7 = vpop.eup %11287 }
0x1261   : > { %7347 = vrot.lane.b32.xlu0 %v11276_v51, %s17572_s25  ;;  %v11290_v56 = vpop.eup %11289  ;;  %v6808_v51 = vpop.permute.xlu0 %6807 }
0x1262   : > { %7323 = vrot.lane.b32.xlu1 %v11286_v11, %s17572_s25  ;;  %v11292_v12 = vpop.eup %11291  ;;  %v16244_v63 = vsel %vm6116_vm3, %v6808_v51, %v15812_v26  ;;  %v7236_v26 = vrot.slane %v16253_v43, 1 }
0x1263   : > { %v7229_v31 = vrot.slane %v16244_v63, 1  ;;  %v7231_v50 = vrot.slane %v16244_v63, 3  ;;  %v7230_v49 = vrot.slane %v16244_v63, 2  ;;  %v7233_v29 = vrot.slane %v16244_v63, 5 }
0x1264   : > { %v7235_v37 = vrot.slane %v16244_v63, 7  ;;  %v7232_v40 = vrot.slane %v16244_v63, 4  ;;  %v7234_v11 = vrot.slane %v16244_v63, 6 }
0x1265   : > { %7349 = vrot.lane.b32.xlu0 %v11278_v4, %s17572_s25  ;;  %v16236_v4 = vadd.f32 %v7075_v10, %v6977_v1 }
0x1266   : > { %7343 = vrot.lane.b32.xlu1 %v11290_v56, %s17572_s25 }
0x1267   : > { %11303 = vtanh.f32 %v16236_v4 }
0x1268   : > { %11305 = vpow2.f32 %v9891_v13 }
0x1269   : > { %7351 = vrot.lane.b32.xlu0 %v11280_v61, %s17572_s25  ;;  %v11294_v61 = vpop.eup %11293  ;;  %11307 = vpow2.f32 %v9892_v27  ;;  %v9884_v27 = vmul.f32 -1.442695, %v16206_v19 }
0x126a   : > { %7353 = vrot.lane.b32.xlu1 %v11294_v61, %s17572_s25  ;;  %v11296_v20 = vpop.eup %11295  ;;  %11309 = vpow2.f32 %v9894_v53  ;;  %v9889_v53 = vmul.f32 -1.442695, %v16231_v59 }
0x126b   : > { %v11298_v22 = vpop.eup %11297  ;;  %11311 = vpow2.f32 %v9895_v35  ;;  %v9890_v35 = vmul.f32 -1.442695, %v16236_v4  ;;  %v9880_v4 = vmul.f32 -1.442695, %v16199_v46 }
0x126c   : > { %v11300_v21 = vpop.eup %11299 }
0x126d   : > { %6924 = vrot.lane.b32.xlu0 %v11284_v52, %s17572_s25  ;;  %v11302_v41 = vpop.eup %11301  ;;  %v7238_v52 = vrot.slane %v16253_v43, 3 }
0x126e   : > { %7327 = vrot.lane.b32.xlu1 %v11298_v22, %s17572_s25 }
0x1271   : > { %7325 = vrot.lane.b32.xlu0 %v11288_v7, %s17572_s25 }
0x1272   : > { %7333 = vrot.lane.b32.xlu1 %v11300_v21, %s17572_s25 }
0x1274   : > { %v11304_v8 = vpop.eup %11303 }
0x1275   : > { %7329 = vrot.lane.b32.xlu0 %v11292_v12, %s17572_s25  ;;  %v11306_v47 = vpop.eup %11305 }
0x1276   : > { %7335 = vrot.lane.b32.xlu1 %v11302_v41, %s17572_s25  ;;  %v7171_v36 = vadd.f32 1.0, %v11306_v47  ;;  %v11308_v17 = vpop.eup %11307  ;;  %v9883_v41 = vmul.f32 -1.442695, %v16203_v14  ;;  %v9887_v14 = vmul.f32 -1.442695, %v16218_v55 }
0x1277   : > { %v7172_v7 = vadd.f32 1.0, %v11308_v17  ;;  %v11310_v3 = vpop.eup %11309 }
0x1278   : > { %11313 = vrcp.f32 %v7171_v36  ;;  %v7174_v10 = vadd.f32 1.0, %v11310_v3  ;;  %v11312_v56 = vpop.eup %11311 }
0x1279   : > { %7331 = vrot.lane.b32.xlu0 %v11296_v20, %s17572_s25  ;;  %11315 = vrcp.f32 %v7172_v7  ;;  %v7175_v1 = vadd.f32 1.0, %v11312_v56 }
0x127a   : > { %7337 = vrot.lane.b32.xlu1 %v11304_v8, %s17572_s25  ;;  %11317 = vrcp.f32 %v7174_v10 }
0x127b   : > { %11319 = vrcp.f32 %v7175_v1 }
0x127c   : > { %11321 = vpow2.f32 %v9883_v41 }
0x127d   : > { %7245 = vrot.lane.b32.xlu0 %v7229_v31, %s17574_s0 }
0x127e   : > { %7247 = vrot.lane.b32.xlu1 %v7230_v49, %s17574_s0  ;;  %v9893_v49 = vmul.f32 -1.442695, %v16209_v34  ;;  %v9888_v34 = vmul.f32 -1.442695, %v16226_v32 }
0x1280   : > { %11323 = vpow2.f32 %v9893_v49 }
0x1281   : > { %7261 = vrot.lane.b32.xlu0 %v7236_v26, %s17574_s0 }
0x1282   : > { %7243 = vrot.lane.b32.xlu1 %v16244_v63, %s17574_s0 }
0x1285   : > { %7249 = vrot.lane.b32.xlu0 %v7231_v50, %s17574_s0  ;;  %v16293_v12 = vpop.eup %11313 }
0x1286   : > { %7263 = vrot.lane.b32.xlu1 %v7237_v18, %s17574_s0  ;;  %v16297_v20 = vpop.eup %11315  ;;  %v9885_v18 = vmul.f32 -1.442695, %v16222_v54  ;;  %v9898_v54 = vmul.f32 -1.442695, %v16215_v57 }
0x1287   : > { %v16301_v31 = vpop.eup %11317 }
0x1288   : > { %v16306_v50 = vpop.eup %11319 }
0x1289   : > { %7259 = vrot.lane.b32.xlu0 %v16253_v43, %s17574_s0 }
0x128a   : > { %7251 = vrot.lane.b32.xlu1 %v7232_v40, %s17574_s0 }
0x128d   : > { %7253 = vrot.lane.b32.xlu0 %v7233_v29, %s17574_s0  ;;  %v9886_v29 = vmul.f32 -1.442695, %v16212_v24 }
0x128e   : > { %7265 = vrot.lane.b32.xlu1 %v7238_v52, %s17574_s0 }
0x128f   : > { %11325 = vpow2.f32 %v9886_v29 }
0x1291   : > { %7269 = vrot.lane.b32.xlu0 %v7240_v42, %s17574_s0  ;;  %v9896_v42 = vmul.f32 -1.442695, %v16184_v33  ;;  %v9897_v33 = vmul.f32 -1.442695, %v16187_v30  ;;  %v9879_v30 = vmul.f32 -1.442695, %v16201_v48 }
0x1292   : > { %7267 = vrot.lane.b32.xlu1 %v7239_v16, %s17574_s0 }
0x1293   : > { %11327 = vpow2.f32 %v9896_v42 }
0x1294   : > { %11329 = vpow2.f32 %v9884_v27 }
0x1295   : > { %7257 = vrot.lane.b32.xlu0 %v7235_v37, %s17574_s0  ;;  %11331 = vpow2.f32 %v9887_v14  ;;  %v11322_v37 = vpop.eup %11321 }
0x1296   : > { %7255 = vrot.lane.b32.xlu1 %v7234_v11, %s17574_s0  ;;  %v11324_v40 = vpop.eup %11323  ;;  %11333 = vpow2.f32 %v9885_v18  ;;  %v7163_v24 = vadd.f32 1.0, %v11322_v37 }
0x1297   : > { %11335 = vpow2.f32 %v9888_v34 }
0x1298   : > { %11337 = vpow2.f32 %v9889_v53 }
0x1299   : > { %7273 = vrot.lane.b32.xlu0 %v7242_v0, %s17574_s0  ;;  %v7173_v0 = vadd.f32 1.0, %v11324_v40  ;;  %11339 = vrcp.f32 %v7163_v24 }
0x129a   : > { %7271 = vrot.lane.b32.xlu1 %v7241_v38, %s17574_s0  ;;  %11341 = vpow2.f32 %v9897_v33 }
0x129b   : > { %11343 = vrcp.f32 %v7173_v0 }
0x129c   : > { %v11326_v19 = vpop.eup %11325  ;;  %11345 = vpow2.f32 %v9890_v35 }
0x129d   : > { %v7166_v32 = vadd.f32 1.0, %v11326_v19  ;;  %11347 = vpow2.f32 %v9898_v54 }
0x129f   : > { %11349 = vrcp.f32 %v7166_v32 }
0x12a0   : > { %v11328_v47 = vpop.eup %11327 }
0x12a1   : > { %v11330_v52 = vpop.eup %11329  ;;  %v7176_v36 = vadd.f32 1.0, %v11328_v47 }
0x12a2   : > { %v11332_v59 = vpop.eup %11331  ;;  %v7164_v16 = vadd.f32 1.0, %v11330_v52 }
0x12a3   : > { %v7167_v11 = vadd.f32 1.0, %v11332_v59  ;;  %11351 = vrcp.f32 %v7176_v36  ;;  %v11334_v57 = vpop.eup %11333 }
0x12a4   : > { %11353 = vpow2.f32 %v9879_v30  ;;  %v11336_v3 = vpop.eup %11335  ;;  %v7165_v48 = vadd.f32 1.0, %v11334_v57 }
0x12a5   : > { %11355 = vrcp.f32 %v7164_v16  ;;  %v11338_v10 = vpop.eup %11337 }
0x12a6   : > { %11357 = vrcp.f32 %v7167_v11  ;;  %v16329_v56 = vpop.eup %11339 }
0x12a7   : > { %11359 = vpow2.f32 %v9880_v4 }
0x12a8   : > { %11361 = vrcp.f32 %v7165_v48 }
0x12c9   : > { %v7340_v51 = vpop.permute.xlu1 %7339 }
0x12ca   : > { %v7379_v61 = vmul.f32 %v16293_v12, %v7340_v51 }
0x12cb   : > { %v7342_v6 = vpop.permute.xlu0 %7341 }
0x12cc   : > { %7419 = vrot.lane.b32.xlu0 %v7379_v61, %s17574_s0  ;;  %v7380_v22 = vmul.f32 %v16297_v20, %v7342_v6  ;;  %v11342_v61 = vpop.eup %11341  ;;  %v7168_v6 = vadd.f32 1.0, %v11336_v3 }
0x12cd   : > { %v7177_v29 = vadd.f32 1.0, %v11342_v61 }
0x12ce   : > { %7421 = vrot.lane.b32.xlu1 %v7380_v22, %s17574_s0  ;;  %v16332_v22 = vpop.eup %11343  ;;  %11363 = vrcp.f32 %v7168_v6 }
0x12cf   : > { %v7346_v21 = vpop.permute.xlu0 %7345 }
0x12d0   : > { %v7382_v26 = vmul.f32 %v16301_v31, %v7346_v21  ;;  %v16325_v7 = vpop.permute.xlu1 %6926  ;;  %v7169_v21 = vadd.f32 1.0, %v11338_v10 }
0x12d2   : > { %7425 = vrot.lane.b32.xlu1 %v7382_v26, %s17574_s0  ;;  %v11346_v26 = vpop.eup %11345  ;;  %11365 = vrcp.f32 %v7169_v21 }
0x12d3   : > { %v7348_v8 = vpop.permute.xlu0 %7347  ;;  %v7170_v14 = vadd.f32 1.0, %v11346_v26  ;;  %11367 = vrcp.f32 %v7177_v29 }
0x12d4   : > { %v7383_v13 = vmul.f32 %v16306_v50, %v7348_v8  ;;  %v7324_v1 = vpop.permute.xlu1 %7323  ;;  %v11348_v8 = vpop.eup %11347 }
0x12d5   : > { %v7371_v51 = vmul.f32 %v16329_v56, %v7324_v1  ;;  %v16336_v49 = vpop.eup %11349  ;;  %v7178_v33 = vadd.f32 1.0, %v11348_v8  ;;  %11369 = vrcp.f32 %v7170_v14 }
0x12d6   : > { %7427 = vrot.lane.b32.xlu1 %v7383_v13, %s17574_s0  ;;  %v16338_v27 = vpop.eup %11351 }
0x12d7   : > { %v7350_v55 = vpop.permute.xlu0 %7349  ;;  %7403 = vrot.lane.b32.xlu0 %v7371_v51, %s17574_s0  ;;  %v11354_v37 = vpop.eup %11353  ;;  %11371 = vrcp.f32 %v7178_v33 }
0x12d8   : > { %v7344_v41 = vpop.permute.xlu1 %7343  ;;  %v16342_v53 = vpop.eup %11355  ;;  %v7384_v40 = vmul.f32 %v16338_v27, %v7350_v55  ;;  %v6912_v0 = vadd.f32 1.0, %v11354_v37 }
0x12d9   : > { %v7381_v13 = vmul.f32 %v16332_v22, %v7344_v41  ;;  %v16346_v24 = vpop.eup %11357 }
0x12da   : > { %v11360_v54 = vpop.eup %11359  ;;  %11373 = vrcp.f32 %v6912_v0 }
0x12db   : > { %v16322_v17 = vpop.permute.xlu0 %7351  ;;  %7423 = vrot.lane.b32.xlu0 %v7381_v13, %s17574_s0  ;;  %v6913_v55 = vadd.f32 1.0, %v11360_v54  ;;  %v16353_v32 = vpop.eup %11361 }
0x12dc   : > { %v7354_v34 = vpop.permute.xlu1 %7353  ;;  %v16358_v16 = vpop.eup %11363 }
0x12dd   : > { %11375 = vrcp.f32 %v6913_v55 }
0x12df   : > { %v16327_v38 = vpop.permute.xlu0 %6924  ;;  %7429 = vrot.lane.b32.xlu0 %v7384_v40, %s17574_s0  ;;  %v16361_v11 = vpop.eup %11365 }
0x12e0   : > { %v7328_v52 = vpop.permute.xlu1 %7327  ;;  %v16365_v10 = vpop.eup %11367 }
0x12e1   : > { %v7373_v36 = vmul.f32 %v16353_v32, %v7328_v52  ;;  %v7385_v61 = vmul.f32 %v16365_v10, %v16322_v17 }
0x12e2   : > { %v16369_v48 = vpop.eup %11369 }
0x12e3   : > { %v7326_v46 = vpop.permute.xlu0 %7325 }
0x12e4   : > { %v7372_v47 = vmul.f32 %v16342_v53, %v7326_v46  ;;  %v7334_v59 = vpop.permute.xlu1 %7333  ;;  %v16374_v46 = vpop.eup %11371 }
0x12e5   : > { %v7376_v57 = vmul.f32 %v16358_v16, %v7334_v59  ;;  %v7386_v41 = vmul.f32 %v16374_v46, %v7354_v34 }
0x12e6   : > { %7405 = vrot.lane.b32.xlu0 %v7372_v47, %s17574_s0 }
0x12e7   : > { %v7330_v42 = vpop.permute.xlu0 %7329  ;;  %v16378_v21 = vpop.eup %11373 }
0x12e8   : > { %v7374_v18 = vmul.f32 %v16336_v49, %v7330_v42  ;;  %v7336_v4 = vpop.permute.xlu1 %7335  ;;  %v6930_v8 = vmul.f32 %v16378_v21, %v16327_v38 }
0x12e9   : > { %v7377_v3 = vmul.f32 %v16361_v11, %v7336_v4 }
0x12ea   : > { %7409 = vrot.lane.b32.xlu1 %v7374_v18, %s17574_s0  ;;  %7407 = vrot.lane.b32.xlu0 %v7373_v36, %s17574_s0  ;;  %v16389_v17 = vpop.eup %11375 }
0x12eb   : > { %v7332_v19 = vpop.permute.xlu0 %7331  ;;  %v6931_v29 = vmul.f32 %v16389_v17, %v16325_v7 }
0x12ec   : > { %v7375_v35 = vmul.f32 %v16346_v24, %v7332_v19  ;;  %v7338_v1 = vpop.permute.xlu1 %7337 }
0x12ed   : > { %v7378_v6 = vmul.f32 %v16369_v48, %v7338_v1 }
0x12ee   : > { %7411 = vrot.lane.b32.xlu1 %v7375_v35, %s17574_s0  ;;  %7413 = vrot.lane.b32.xlu0 %v7376_v57, %s17574_s0 }
0x12ef   : > { %v16356_v30 = vpop.permute.xlu0 %7245 }
0x12f0   : > { %v16380_v26 = vpop.permute.xlu1 %7247 }
0x12f2   : > { %7415 = vrot.lane.b32.xlu1 %v7377_v3, %s17574_s0  ;;  %7431 = vrot.lane.b32.xlu0 %v7385_v61, %s17574_s0 }
0x12f3   : > { %v7262_v51 = vpop.permute.xlu0 %7261 }
0x12f4   : > { %v7244_v42 = vpop.permute.xlu1 %7243  ;;  %v7300_v55 = vmul.f32 %v16297_v20, %v7262_v51 }
0x12f6   : > { %7417 = vrot.lane.b32.xlu1 %v7378_v6, %s17574_s0  ;;  %6934 = vrot.lane.b32.xlu0 %v6930_v8, %s17574_s0 }
0x12f7   : > { %v16385_v13 = vpop.permute.xlu0 %7249 }
0x12f8   : > { %v7264_v18 = vpop.permute.xlu1 %7263 }
0x12fa   : > { %7433 = vrot.lane.b32.xlu1 %v7386_v41, %s17574_s0 }
0x12fb   : > { %v7260_v14 = vpop.permute.xlu0 %7259 }
0x12fc   : > { %v7252_v34 = vpop.permute.xlu1 %7251  ;;  %v7299_v47 = vmul.f32 %v16293_v12, %v7260_v14 }
0x12fe   : > { %6936 = vrot.lane.b32.xlu1 %v6931_v29, %s17574_s0 }
0x12ff   : > { %v16394_v37 = vpop.permute.xlu0 %7253 }
0x1300   : > { %v7266_v40 = vpop.permute.xlu1 %7265 }
0x1301   : > { %v7302_v4 = vmul.f32 %v16301_v31, %v7266_v40 }
0x1303   : > { %v7270_v38 = vpop.permute.xlu0 %7269 }
0x1304   : > { %v7268_v19 = vpop.permute.xlu1 %7267 }
0x1305   : > { %v7303_v41 = vmul.f32 %v16306_v50, %v7268_v19  ;;  %v7301_v19 = vmul.f32 %v16332_v22, %v7264_v18  ;;  %v7294_v18 = vmul.f32 %v16336_v49, %v16385_v13 }
0x1307   : > { %v16396_v33 = vpop.permute.xlu0 %7257 }
0x1308   : > { %v16401_v35 = vpop.permute.xlu1 %7255 }
0x130b   : > { %v16398_v0 = vpop.permute.xlu0 %7273 }
0x130c   : > { %v16403_v52 = vpop.permute.xlu1 %7271 }
0x133e   : > { %v7420_v7 = vpop.permute.xlu0 %7419 }
0x133f   : > { %v7459_v54 = vadd.f32 %v7420_v7, %v7299_v47  ;;  %v7291_v47 = vmul.f32 %v16329_v56, %v7244_v42  ;;  %v7292_v42 = vmul.f32 %v16342_v53, %v16356_v30  ;;  %v7293_v30 = vmul.f32 %v16353_v32, %v16380_v26 }
0x1340   : > { %v7422_v59 = vpop.permute.xlu1 %7421 }
0x1341   : > { %11377 = vtanh.f32 %v7459_v54  ;;  %v7460_v36 = vadd.f32 %v7422_v59, %v7300_v55 }
0x1343   : > { %11379 = vtanh.f32 %v7460_v36  ;;  %v7645_v57 = vrot.slane %v7460_v36, 7 }
0x1344   : > { %v7426_v3 = vpop.permute.xlu1 %7425 }
0x1345   : > { %v7646_v1 = vsel %vm3305_vm9, %v7645_v57, %v7459_v54  ;;  %v7462_v61 = vadd.f32 %v7426_v3, %v7302_v4  ;;  %v7304_v4 = vmul.f32 %v16338_v27, %v7270_v38 }
0x1347   : > { %11381 = vtanh.f32 %v7462_v61  ;;  %v7649_v3 = vrot.slane %v7462_v61, 5  ;;  %v7295_v61 = vmul.f32 %v16346_v24, %v7252_v34  ;;  %v7296_v34 = vmul.f32 %v16358_v16, %v16394_v37 }
0x1348   : > { %v7428_v8 = vpop.permute.xlu1 %7427  ;;  %v7298_v37 = vmul.f32 %v16369_v48, %v16396_v33 }
0x1349   : > { %v7463_v29 = vadd.f32 %v7428_v8, %v7303_v41  ;;  %v7404_v7 = vpop.permute.xlu0 %7403 }
0x134a   : > { %v7451_v54 = vadd.f32 %v7404_v7, %v7291_v47 }
0x134b   : > { %11383 = vtanh.f32 %v7463_v29  ;;  %v7651_v41 = vrot.slane %v7463_v29, 4 }
0x134c   : > { %11385 = vtanh.f32 %v7451_v54 }
0x134d   : > { %v7424_v55 = vpop.permute.xlu0 %7423 }
0x134e   : > { %v11378_v6 = vpop.eup %11377  ;;  %v7461_v59 = vadd.f32 %v7424_v55, %v7301_v19 }
0x134f   : > { %7515 = vrot.lane.b32.xlu1 %v11378_v6, %s17572_s25 }
0x1350   : > { %v11380_v51 = vpop.eup %11379  ;;  %11387 = vtanh.f32 %v7461_v59  ;;  %v7647_v57 = vrot.slane %v7461_v59, 6 }
0x1351   : > { %7517 = vrot.lane.b32.xlu0 %v11380_v51, %s17572_s25  ;;  %v7430_v6 = vpop.permute.xlu0 %7429 }
0x1352   : > { %v7648_v8 = vsel %vm3308_vm12, %v7647_v57, %v7646_v1  ;;  %v7464_v51 = vadd.f32 %v7430_v6, %v7304_v4  ;;  %v7297_v6 = vmul.f32 %v16361_v11, %v16401_v35 }
0x1354   : > { %v11382_v14 = vpop.eup %11381  ;;  %11389 = vtanh.f32 %v7464_v51 }
0x1355   : > { %7521 = vrot.lane.b32.xlu0 %v11382_v14, %s17572_s25  ;;  %v7650_v14 = vsel %vm3311_vm13, %v7649_v3, %v7648_v8 }
0x1356   : > { %v7652_v38 = vsel %vm3314_vm11, %v7651_v41, %v7650_v14 }
0x1358   : > { %v11384_v40 = vpop.eup %11383  ;;  %v7406_v47 = vpop.permute.xlu0 %7405 }
0x1359   : > { %7523 = vrot.lane.b32.xlu0 %v11384_v40, %s17572_s25  ;;  %v7653_v40 = vrot.slane %v7464_v51, 3  ;;  %v7452_v29 = vadd.f32 %v7406_v47, %v7292_v42  ;;  %v11386_v4 = vpop.eup %11385 }
0x135a   : > { %7499 = vrot.lane.b32.xlu1 %v11386_v4, %s17572_s25 }
0x135b   : > { %v7654_v1 = vsel %vm3317_vm8, %v7653_v40, %v7652_v38  ;;  %11391 = vtanh.f32 %v7452_v29  ;;  %v7631_v55 = vrot.slane %v7452_v29, 7  ;;  %v7305_v40 = vmul.f32 %v16365_v10, %v16403_v52 }
0x135c   : > { %v7410_v36 = vpop.permute.xlu1 %7409  ;;  %v7408_v13 = vpop.permute.xlu0 %7407 }
0x135d   : > { %v7454_v19 = vadd.f32 %v7410_v36, %v7294_v18  ;;  %v7632_v57 = vsel %vm3305_vm9, %v7631_v55, %v7451_v54  ;;  %v7453_v3 = vadd.f32 %v7408_v13, %v7293_v30  ;;  %v11388_v8 = vpop.eup %11387  ;;  %v7306_v13 = vmul.f32 %v16374_v46, %v16398_v0 }
0x135e   : > { %7519 = vrot.lane.b32.xlu1 %v11388_v8, %s17572_s25  ;;  %v16465_v0 = vsel %vm5265_vm15, %v16040_v62, %v16033_v45 }
0x135f   : > { %11393 = vtanh.f32 %v7454_v19  ;;  %v7635_v36 = vrot.slane %v7454_v19, 5  ;;  %v7633_v26 = vrot.slane %v7453_v3, 6  ;;  %v16445_v19 = vsel %vm5264_vm14, %v16022_v58, %v16013_v44 }
0x1360   : > { %v7412_v7 = vpop.permute.xlu1 %7411  ;;  %11395 = vtanh.f32 %v7453_v3  ;;  %v7414_v51 = vpop.permute.xlu0 %7413 }
0x1361   : > { %v7455_v59 = vadd.f32 %v7412_v7, %v7295_v61  ;;  %v7634_v14 = vsel %vm3308_vm12, %v7633_v26, %v7632_v57  ;;  %v7456_v54 = vadd.f32 %v7414_v51, %v7296_v34  ;;  %v11390_v61 = vpop.eup %11389  ;;  %v6921_v51 = vmul.f32 %v16389_v17, %v16465_v0 }
0x1362   : > { %v7636_v35 = vsel %vm3311_vm13, %v7635_v36, %v7634_v14  ;;  %7525 = vrot.lane.b32.xlu0 %v11390_v61, %s17572_s25  ;;  %v11782_v61 = vld [vmem:[%s14316_s18 + $0x8] sm:$0xff] }
0x1363   : > { %v7637_v41 = vrot.slane %v7455_v59, 4  ;;  %11397 = vtanh.f32 %v7455_v59  ;;  %v7639_v38 = vrot.slane %v7456_v54, 3  ;;  %v6920_v59 = vmul.f32 %v16378_v21, %v16445_v19 }
0x1364   : > { %v7416_v42 = vpop.permute.xlu1 %7415  ;;  %11399 = vtanh.f32 %v7456_v54  ;;  %v7432_v29 = vpop.permute.xlu0 %7431  ;;  %vm6959_vm14 = vcmp.gt.s32.totalorder %v11782_v61, 5 }
0x1365   : > { %v7457_v18 = vadd.f32 %v7416_v42, %v7297_v6  ;;  %v7638_v47 = vsel %vm3314_vm11, %v7637_v41, %v7636_v35  ;;  %v7465_v33 = vadd.f32 %v7432_v29, %v7305_v40  ;;  %v11781_v40 = vld [vmem:[%s14316_s18] sm:$0xff]  ;;  %v6961_v29 = vsel %vm6959_vm14, 1, %v17571_v60 }
0x1366   : > { %v7640_v55 = vsel %vm3317_vm8, %v7639_v38, %v7638_v47  ;;  %vm6958_vm5 = vcmp.gt.s32.totalorder %v11781_v40, 5 }
0x1367   : > { %v7641_v7 = vrot.slane %v7457_v18, 2  ;;  %11401 = vtanh.f32 %v7457_v18  ;;  %v7655_v5 = vrot.slane %v7465_v33, 2  ;;  %v6960_v47 = vsel %vm6958_vm5, 1, %v17571_v60 }
0x1368   : > { %v7418_v30 = vpop.permute.xlu1 %7417  ;;  %11403 = vtanh.f32 %v7465_v33  ;;  %v11392_v58 = vpop.eup %11391 }
0x1369   : > { %v7458_v52 = vadd.f32 %v7418_v30, %v7298_v37  ;;  %v7642_v4 = vsel %vm3320_vm10, %v7641_v7, %v7640_v55  ;;  %v6935_v57 = vpop.permute.xlu0 %6934  ;;  %7501 = vrot.lane.b32.xlu0 %v11392_v58, %s17572_s25  ;;  %v7656_v26 = vsel %vm3320_vm10, %v7655_v5, %v7654_v1 }
0x136a   : > { %v16454_v34 = vadd.f32 %v6935_v57, %v6920_v59 }
0x136b   : > { %v7643_v44 = vrot.slane %v7458_v52, 1  ;;  %11405 = vtanh.f32 %v7458_v52 }
0x136c   : > { %v7434_v3 = vpop.permute.xlu1 %7433  ;;  %v11394_v41 = vpop.eup %11393  ;;  %11407 = vtanh.f32 %v16454_v34 }
0x136d   : > { %v7466_v36 = vadd.f32 %v7434_v3, %v7306_v13  ;;  %v16458_v6 = vsel %vm3323_vm7, %v7643_v44, %v7642_v4  ;;  %v11396_v42 = vpop.eup %11395  ;;  %7505 = vrot.lane.b32.xlu0 %v11394_v41, %s17572_s25 }
0x136e   : > { %7503 = vrot.lane.b32.xlu1 %v11396_v42, %s17572_s25 }
0x136f   : > { %v7657_v8 = vrot.slane %v7466_v36, 1  ;;  %11409 = vtanh.f32 %v7466_v36 }
0x1370   : > { %v6937_v14 = vpop.permute.xlu1 %6936  ;;  %v11398_v45 = vpop.eup %11397 }
0x1371   : > { %v16472_v1 = vadd.f32 %v6937_v14, %v6921_v51  ;;  %v16475_v15 = vsel %vm3323_vm7, %v7657_v8, %v7656_v26  ;;  %v11400_v62 = vpop.eup %11399  ;;  %7507 = vrot.lane.b32.xlu0 %v11398_v45, %s17572_s25 }
0x1372   : > { %7509 = vrot.lane.b32.xlu1 %v11400_v62, %s17572_s25 }
0x1373   : > { %11411 = vtanh.f32 %v16472_v1 }
0x1374   : > { %v11402_v54 = vpop.eup %11401 }
0x1375   : > { %v11404_v18 = vpop.eup %11403 }
0x1376   : > { %7527 = vrot.lane.b32.xlu0 %v11404_v18, %s17572_s25  ;;  %7511 = vrot.lane.b32.xlu1 %v11402_v54, %s17572_s25 }
0x1378   : > { %v11406_v37 = vpop.eup %11405 }
0x1379   : > { %v11408_v35 = vpop.eup %11407 }
0x137a   : > { %6946 = vrot.lane.b32.xlu0 %v11408_v35, %s17572_s25  ;;  %7513 = vrot.lane.b32.xlu1 %v11406_v37, %s17572_s25 }
0x137c   : > { %v11410_v38 = vpop.eup %11409 }
0x137e   : > { %6963 = vperm.xlu0 %10499, %v6960_v47   ;;  %7529 = vrot.lane.b32.xlu1 %v11410_v38, %s17572_s25 }
0x1380   : > { %v11412_v7 = vpop.eup %11411 }
0x1382   : > { %6948 = vrot.lane.b32.xlu1 %v11412_v7, %s17572_s25 }
0x1386   : > { %6966 = vperm.xlu1 %10500, %v6961_v29  }
0x13c1   : > { %v7516_v52 = vpop.permute.xlu1 %7515 }
0x13c3   : > { %v7518_v30 = vpop.permute.xlu0 %7517 }
0x13c4   : > { %v7556_v3 = vmul.f32 %v16297_v20, %v7518_v30 }
0x13c6   : > { %v7593_v45 = vrot.slane %v7556_v3, 7 }
0x13c7   : > { %v7522_v33 = vpop.permute.xlu0 %7521 }
0x13c8   : > { %v7558_v20 = vmul.f32 %v16301_v31, %v7522_v33 }
0x13ca   : > { %v7597_v7 = vrot.slane %v7558_v20, 5  ;;  %v11786_v20 = vld [vmem:[%s17453_s8 + $0x18] sm:$0xff] }
0x13cb   : > { %v7524_v55 = vpop.permute.xlu0 %7523 }
0x13cc   : > { %v7500_v59 = vpop.permute.xlu1 %7499 }
0x13cd   : > { %v7547_v62 = vmul.f32 %v16329_v56, %v7500_v59 }
0x13d0   : > { %v7520_v13 = vpop.permute.xlu1 %7519 }
0x13d1   : > { %v7557_v26 = vmul.f32 %v16332_v22, %v7520_v13 }
0x13d3   : > { %v7595_v18 = vrot.slane %v7557_v26, 6 }
0x13d4   : > { %v7526_v4 = vpop.permute.xlu0 %7525 }
0x13d5   : > { %v7560_v31 = vmul.f32 %v16338_v27, %v7526_v4 }
0x13db   : > { %v7502_v5 = vpop.permute.xlu0 %7501 }
0x13dc   : > { %v7548_v44 = vmul.f32 %v16342_v53, %v7502_v5  ;;  %v7555_v53 = vmul.f32 %v16293_v12, %v7516_v52 }
0x13de   : > { %v7579_v41 = vrot.slane %v7548_v44, 7  ;;  %v7594_v47 = vsel %vm3305_vm9, %v7593_v45, %v7555_v53  ;;  %v11784_v53 = vld [vmem:[%s17455_s10 + $0x30] sm:$0xff] }
0x13df   : > { %v7506_v58 = vpop.permute.xlu0 %7505  ;;  %v7596_v12 = vsel %vm3308_vm12, %v7595_v18, %v7594_v47  ;;  %v11785_v18 = vld [vmem:[%s17455_s10 + $0x28] sm:$0xff]  ;;  %v11794_v47 = vld [vmem:[%s17455_s10] sm:$0xff] }
0x13e0   : > { %v7504_v57 = vpop.permute.xlu1 %7503  ;;  %v7550_v8 = vmul.f32 %v16336_v49, %v7506_v58  ;;  %v7598_v59 = vsel %vm3311_vm13, %v7597_v7, %v7596_v12 }
0x13e1   : > { %v7549_v36 = vmul.f32 %v16353_v32, %v7504_v57  ;;  %v7580_v32 = vsel %vm3305_vm9, %v7579_v41, %v7547_v62 }
0x13e2   : > { %v7583_v37 = vrot.slane %v7550_v8, 5 }
0x13e3   : > { %v7581_v51 = vrot.slane %v7549_v36, 6  ;;  %v7508_v42 = vpop.permute.xlu0 %7507 }
0x13e4   : > { %v7510_v14 = vpop.permute.xlu1 %7509  ;;  %v7551_v54 = vmul.f32 %v16346_v24, %v7508_v42  ;;  %v7559_v24 = vmul.f32 %v16306_v50, %v7524_v55  ;;  %v7601_v55 = vrot.slane %v7560_v31, 3  ;;  %v7831_v31 = vld [vmem:[#allocation2 + $0x4e] sm:$0x1] }
0x13e5   : > { %v7552_v22 = vmul.f32 %v16358_v16, %v7510_v14  ;;  %v7582_v49 = vsel %vm3308_vm12, %v7581_v51, %v7580_v32  ;;  %v11787_v32 = vld [vmem:[%s17455_s10 + $0x20] sm:$0xff] }
0x13e6   : > { %v7585_v40 = vrot.slane %v7551_v54, 4  ;;  %v7584_v61 = vsel %vm3311_vm13, %v7583_v37, %v7582_v49  ;;  %v7599_v13 = vrot.slane %v7559_v24, 4  ;;  %v11788_v37 = vld [vmem:[%s17453_s8 + $0x10] sm:$0xff]  ;;  %v11790_v49 = vld [vmem:[%s17453_s8 + $0x8] sm:$0xff]  ;;  %v7830_v24 = vld [vmem:[#allocation2 + $0x46] sm:$0x1] }
0x13e7   : > { %v7587_v29 = vrot.slane %v7552_v22, 3  ;;  %v11789_v22 = vld [vmem:[%s17455_s10 + $0x18] sm:$0xff] }
0x13e8   : > { %v7528_v35 = vpop.permute.xlu0 %7527  ;;  %v7512_v38 = vpop.permute.xlu1 %7511  ;;  %v7586_v16 = vsel %vm3314_vm11, %v7585_v40, %v7584_v61  ;;  %v7600_v27 = vsel %vm3314_vm11, %v7599_v13, %v7598_v59  ;;  %v11791_v40 = vld [vmem:[%s17455_s10 + $0x10] sm:$0xff] }
0x13e9   : > { %v7553_v56 = vmul.f32 %v16361_v11, %v7512_v38  ;;  %v7561_v30 = vmul.f32 %v16365_v10, %v7528_v35  ;;  %v7588_v5 = vsel %vm3317_vm8, %v7587_v29, %v7586_v16  ;;  %v11792_v35 = vld [vmem:[%s17453_s8] sm:$0xff]  ;;  %v11793_v38 = vld [vmem:[%s17455_s10 + $0x8] sm:$0xff]  ;;  %v7833_v16 = vld [vmem:[#allocation2 + $0x5e] sm:$0x1] }
0x13eb   : > { %v7589_v33 = vrot.slane %v7553_v56, 2  ;;  %v7603_v4 = vrot.slane %v7561_v30, 2 }
0x13ec   : > { %v7514_v52 = vpop.permute.xlu1 %7513  ;;  %v6947_v50 = vpop.permute.xlu0 %6946 }
0x13ed   : > { %v7554_v11 = vmul.f32 %v16369_v48, %v7514_v52  ;;  %v7590_v57 = vsel %vm3320_vm10, %v7589_v33, %v7588_v5  ;;  %v6952_v10 = vmul.f32 %v16378_v21, %v6947_v50  ;;  %v7602_v48 = vsel %vm3317_vm8, %v7601_v55, %v7600_v27  ;;  %v7834_v52 = vld [vmem:[#allocation2 + $0x66] sm:$0x1]  ;;  %v7835_v50 = vld [vmem:[#allocation2 + $0x6e] sm:$0x1] }
0x13ee   : > { %v7604_v8 = vsel %vm3320_vm10, %v7603_v4, %v7602_v48 }
0x13ef   : > { %v7591_v44 = vrot.slane %v7554_v11, 1  ;;  %v16525_v42 = vsel %vm6116_vm3, %v6952_v10, %v16093_v25 }
0x13f0   : > { %v7530_v58 = vpop.permute.xlu1 %7529 }
0x13f1   : > { %v7562_v3 = vmul.f32 %v16374_v46, %v7530_v58  ;;  %v7592_v36 = vsel %vm3323_vm7, %v7591_v44, %v7590_v57  ;;  %v7836_v44 = vld [vmem:[#allocation2 + $0x76] sm:$0x1] }
0x13f2   : > { %7607 = vrot.lane.b32.xlu0 %v7592_v36, %s17574_s0 }
0x13f3   : > { %v7605_v26 = vrot.slane %v7562_v3, 1 }
0x13f4   : > { %v6949_v41 = vpop.permute.xlu1 %6948 }
0x13f5   : > { %v6953_v51 = vmul.f32 %v16389_v17, %v6949_v41  ;;  %v7606_v21 = vsel %vm3323_vm7, %v7605_v26, %v7604_v8  ;;  %v11795_v41 = vld [vmem:[%s17456_s11] ss:$0 sm:$0xff] }
0x13f6   : > { %7669 = vrot.lane.b32.xlu0 %v16525_v42, %s17572_s25  ;;  %7609 = vrot.lane.b32.xlu1 %v7606_v21, %s17574_s0 }
0x13f7   : > { %v16534_v46 = vsel %vm6117_vm6, %v6953_v51, %v16102_v9 }
0x13f9   : > { %v16542_v25 = vpop.permute.xlu0 %6963 }
0x13fa   : > { %7659 = vrot.lane.b32.xlu0 %v16458_v6, %s17573_s27  ;;  %7671 = vrot.lane.b32.xlu1 %v16534_v46, %s17572_s25  ;;  %vm6968_vm15 = vcmp.eq.s32.totalorder %v16542_v25, 1 }
0x13fe   : > { %7661 = vrot.lane.b32.xlu1 %v16475_v15, %s17573_s27 }
0x1401   : > { %v16545_v17 = vpop.permute.xlu1 %6966 }
0x1402   : > { %vm6969_vm2 = vcmp.eq.s32.totalorder %v16545_v17, 1 }
0x1464   : > { %v7608_v14 = vpop.permute.xlu0 %7607 }
0x1465   : > { %v16550_v9 = vsel %vm6968_vm15, %v7608_v14, %v16118_v39  ;;  %v11783_v39 = vld [vmem:[%s17455_s10 + $0x38] sm:$0xff]  ;;  %v7822_v14 = vld [vmem:[#allocation2 + $0x6] sm:$0x1] }
0x1466   : > { %10321 = vmatprep.mubr.msk.f32.mxu0 %vm2777_vm1, %v16550_v9 }
0x1468   : > { %v7670_v6 = vpop.permute.xlu0 %7669  ;;  %v7610_v45 = vpop.permute.xlu1 %7609 }
0x1469   : > { %v7675_v15 = vsel %vm2777_vm1, %v16550_v9, %v7670_v6  ;;  %v16560_v62 = vsel %vm6969_vm2, %v7610_v45, %v16128_v28 }
0x146a   : > { %10310 = vmatprep.mubr.msk.f32.mxu1 %vm3416_vm0, %v7675_v15  ;;  %10322 = vmatmul.mubr.msk.f32.vlgmr.msra.gmra.mxu0 %vm2777_vm1, %v16560_v62  ;;  %v7823_v15 = vld [vmem:[#allocation2 + $0xe] sm:$0x1] }
0x146b   : > { %10325 = vmatpush3.msra.mxu0 %v11783_v39 }
0x146c   : > { %v7672_v54 = vpop.permute.xlu1 %7671  ;;  %10326 = vmatprep.subr.mxu0 %v11784_v53 }
0x146d   : > { %v7676_v28 = vsel %vm2777_vm1, %v16560_v62, %v7672_v54  ;;  %10327 = vmatpush3.msra.mxu0 %v11784_v53  ;;  %v7832_v53 = vld [vmem:[#allocation2 + $0x56] sm:$0x1] }
0x146e   : > { %10311 = vmatmul.mubr.msk.f32.vlgmr.msra.gmra.mxu1 %vm3416_vm0, %v7676_v28  ;;  %10328 = vmatprep.subr.mxu0 %v11785_v18 }
0x146f   : > { %10329 = vmatpush3.msra.mxu0 %v11785_v18  ;;  %10344 = vmatpush3.msra.mxu1 %v11786_v20  ;;  %v7825_v20 = vld [vmem:[#allocation2 + $0x1e] sm:$0x1] }
0x1470   : > { %10330 = vmatprep.subr.mxu0 %v11787_v32  ;;  %10345 = vmatprep.subr.mxu1 %v11788_v37 }
0x1471   : > { %10331 = vmatpush3.msra.mxu0 %v11787_v32  ;;  %10346 = vmatpush3.msra.mxu1 %v11788_v37 }
0x1472   : > { %10332 = vmatprep.subr.mxu0 %v11789_v22  ;;  %10347 = vmatprep.subr.mxu1 %v11790_v49 }
0x1473   : > { %10333 = vmatpush3.msra.mxu0 %v11789_v22  ;;  %10348 = vmatpush3.msra.mxu1 %v11790_v49  ;;  %v7837_v22 = vld [vmem:[#allocation2 + $0x7e] sm:$0x1] }
0x1474   : > { %10334 = vmatprep.subr.mxu0 %v11791_v40  ;;  %10349 = vmatprep.subr.mxu1 %v11792_v35 }
0x1475   : > { %10335 = vmatpush3.msra.mxu0 %v11791_v40  ;;  %10350 = vmatpush3.msra.mxu1 %v11792_v35  ;;  %v7826_v35 = vld [vmem:[#allocation2 + $0x26] sm:$0x1] }
0x1476   : > { %10336 = vmatprep.subr.mxu0 %v11793_v38  ;;  %10354 = vmatprep.subr.mxu1 %v11783_v39 }
0x1477   : > { %10337 = vmatpush3.msra.mxu0 %v11793_v38 }
0x1478   : > { %10338 = vmatprep.subr.mxu0 %v11794_v47 }
0x1479   : > { %10339 = vmatpush3.msra.mxu0 %v11794_v47  ;;  %v7824_v47 = vld [vmem:[#allocation2 + $0x16] sm:$0x1] }
0x152a   : > { %v10323_v56 = vpop.f32.mrf.mxu0 }
0x152b   : > { %v16604_v12 = vadd.f32 %v10323_v56, %v7830_v24  ;;  %v7928_v7 = vrot.slane %v10323_v56, 1  ;;  %v7930_v61 = vrot.slane %v10323_v56, 3  ;;  %v7931_v30 = vrot.slane %v10323_v56, 4 }
0x152c   : > { %v7932_v11 = vrot.slane %v10323_v56, 5  ;;  %v7933_v55 = vrot.slane %v10323_v56, 6  ;;  %v7910_v48 = vpop.f32.mrf.mxu0  ;;  %v7929_v6 = vrot.slane %v10323_v56, 2  ;;  %v7934_v28 = vrot.slane %v10323_v56, 7 }
0x152d   : > { %11413 = vtanh.f32 %v16604_v12  ;;  %v16607_v29 = vadd.f32 %v7928_v7, %v7831_v31  ;;  %v16609_v33 = vadd.f32 %v7930_v61, %v7833_v16  ;;  %v16612_v13 = vadd.f32 %v7931_v30, %v7834_v52  ;;  %v7827_v61 = vld [vmem:[#allocation2 + $0x2e] sm:$0x1] }
0x152e   : > { %v16616_v5 = vadd.f32 %v7932_v11, %v7835_v50  ;;  %v16619_v27 = vadd.f32 %v7933_v55, %v7836_v44  ;;  %v10312_v36 = vpop.f32.mrf.mxu1  ;;  %v7921_v51 = vrot.slane %v7910_v48, 1  ;;  %v16635_v45 = vadd.f32 %v7910_v48, %v7822_v14  ;;  %v7828_v11 = vld [vmem:[#allocation2 + $0x36] sm:$0x1] }
0x152f   : > { %11415 = vtanh.f32 %v16607_v29  ;;  %v16631_v8 = vadd.f32 %v11795_v41, %v10312_v36  ;;  %v7923_v39 = vrot.slane %v7910_v48, 3  ;;  %v16641_v18 = vadd.f32 %v7929_v6, %v7832_v53 }
0x1530   : > { %11417 = vtanh.f32 %v16609_v33  ;;  %v7749_v26 = vpop.f32.mrf.mxu1  ;;  %v16638_v54 = vadd.f32 %v7921_v51, %v7823_v15  ;;  %v7924_v32 = vrot.slane %v7910_v48, 4  ;;  %v16647_v49 = vadd.f32 %v7934_v28, %v7837_v22 }
0x1531   : > { %11419 = vtanh.f32 %v16612_v13  ;;  %v16633_v21 = vadd.f32 %v11795_v41, %v7749_v26  ;;  %v16644_v37 = vadd.f32 %v7923_v39, %v7825_v20  ;;  %v7922_v40 = vrot.slane %v7910_v48, 2  ;;  %v7662_v26 = vpop.permute.xlu1 %7661 }
0x1532   : > { %11421 = vtanh.f32 %v16616_v5  ;;  %v16650_v38 = vadd.f32 %v7924_v32, %v7826_v35  ;;  %v7925_v56 = vrot.slane %v7910_v48, 5  ;;  %v7926_v16 = vrot.slane %v7910_v48, 6 }
0x1533   : > { %11423 = vtanh.f32 %v16619_v27  ;;  %v16654_v24 = vadd.f32 %v7922_v40, %v7824_v47  ;;  %v7927_v50 = vrot.slane %v7910_v48, 7  ;;  %v16685_v14 = vsel %vm6969_vm2, %v7662_v26, %v16253_v43 }
0x1534   : > { %11425 = vtanh.f32 %v16631_v8  ;;  %v16658_v30 = vadd.f32 %v7925_v56, %v7827_v61  ;;  %v16663_v55 = vadd.f32 %v7926_v16, %v7828_v11  ;;  %v9913_v43 = vmul.f32 -1.442695, %v16604_v12 }
0x1535   : > { %11427 = vtanh.f32 %v16633_v21  ;;  %v8092_v32 = vrot.slane %v16685_v14, 5  ;;  %v9914_v12 = vmul.f32 -1.442695, %v16607_v29  ;;  %v8089_v22 = vrot.slane %v16685_v14, 2 }
0x1536   : > { %11429 = vtanh.f32 %v16635_v45  ;;  %v9916_v35 = vmul.f32 -1.442695, %v16609_v33  ;;  %v8094_v56 = vrot.slane %v16685_v14, 7  ;;  %v8091_v33 = vrot.slane %v16685_v14, 4 }
0x1537   : > { %11431 = vtanh.f32 %v16638_v54  ;;  %v8093_v11 = vrot.slane %v16685_v14, 6 }
0x1538   : > { %11433 = vtanh.f32 %v16641_v18 }
0x1539   : > { %11435 = vtanh.f32 %v16644_v37 }
0x153a   : > { %v11414_v59 = vpop.eup %11413  ;;  %11437 = vtanh.f32 %v16647_v49 }
0x153b   : > { %8191 = vrot.lane.b32.xlu1 %v11414_v59, %s17572_s25  ;;  %11439 = vtanh.f32 %v16650_v38 }
0x153c   : > { %v11416_v4 = vpop.eup %11415  ;;  %11441 = vtanh.f32 %v16654_v24 }
0x153d   : > { %8193 = vrot.lane.b32.xlu0 %v11416_v4, %s17572_s25  ;;  %v11418_v58 = vpop.eup %11417  ;;  %11443 = vtanh.f32 %v16658_v30 }
0x153e   : > { %v11420_v57 = vpop.eup %11419  ;;  %11445 = vtanh.f32 %v16663_v55 }
0x153f   : > { %v11422_v10 = vpop.eup %11421 }
0x1540   : > { %v11424_v3 = vpop.eup %11423 }
0x1541   : > { %8197 = vrot.lane.b32.xlu0 %v11418_v58, %s17572_s25  ;;  %v11426_v7 = vpop.eup %11425  ;;  %v7829_v58 = vld [vmem:[#allocation2 + $0x3e] sm:$0x1] }
0x1542   : > { %7778 = vrot.lane.b32.xlu1 %v11426_v7, %s17572_s25  ;;  %v11428_v31 = vpop.eup %11427  ;;  %v9917_v7 = vmul.f32 -1.442695, %v16612_v13 }
0x1543   : > { %v11430_v52 = vpop.eup %11429 }
0x1544   : > { %v11432_v59 = vpop.eup %11431 }
0x1545   : > { %8199 = vrot.lane.b32.xlu0 %v11420_v57, %s17572_s25  ;;  %v11434_v44 = vpop.eup %11433  ;;  %v7660_v57 = vpop.permute.xlu0 %7659 }
0x1546   : > { %8175 = vrot.lane.b32.xlu1 %v11430_v52, %s17572_s25  ;;  %v11436_v4 = vpop.eup %11435  ;;  %v16676_v48 = vsel %vm6968_vm15, %v7660_v57, %v16244_v63  ;;  %v8088_v63 = vrot.slane %v16685_v14, 1 }
0x1547   : > { %v8081_v51 = vrot.slane %v16676_v48, 1  ;;  %v8083_v39 = vrot.slane %v16676_v48, 3  ;;  %v8082_v28 = vrot.slane %v16676_v48, 2  ;;  %v8085_v20 = vrot.slane %v16676_v48, 5 }
0x1548   : > { %v8087_v40 = vrot.slane %v16676_v48, 7  ;;  %v8084_v47 = vrot.slane %v16676_v48, 4  ;;  %v8086_v52 = vrot.slane %v16676_v48, 6 }
0x1549   : > { %8201 = vrot.lane.b32.xlu0 %v11422_v10, %s17572_s25  ;;  %v16668_v10 = vadd.f32 %v7927_v50, %v7829_v58 }
0x154a   : > { %8195 = vrot.lane.b32.xlu1 %v11434_v44, %s17572_s25 }
0x154b   : > { %11447 = vtanh.f32 %v16668_v10 }
0x154c   : > { %11449 = vpow2.f32 %v9913_v43 }
0x154d   : > { %8203 = vrot.lane.b32.xlu0 %v11424_v3, %s17572_s25  ;;  %v11438_v3 = vpop.eup %11437  ;;  %11451 = vpow2.f32 %v9914_v12  ;;  %v9906_v12 = vmul.f32 -1.442695, %v16638_v54 }
0x154e   : > { %8205 = vrot.lane.b32.xlu1 %v11438_v3, %s17572_s25  ;;  %v11440_v36 = vpop.eup %11439  ;;  %11453 = vpow2.f32 %v9916_v35  ;;  %v9911_v35 = vmul.f32 -1.442695, %v16663_v55 }
0x154f   : > { %v11442_v41 = vpop.eup %11441  ;;  %11455 = vpow2.f32 %v9917_v7  ;;  %v9912_v7 = vmul.f32 -1.442695, %v16668_v10  ;;  %v9902_v10 = vmul.f32 -1.442695, %v16631_v8 }
0x1550   : > { %v11444_v6 = vpop.eup %11443 }
0x1551   : > { %7776 = vrot.lane.b32.xlu0 %v11428_v31, %s17572_s25  ;;  %v11446_v15 = vpop.eup %11445  ;;  %v8090_v31 = vrot.slane %v16685_v14, 3 }
0x1552   : > { %8179 = vrot.lane.b32.xlu1 %v11442_v41, %s17572_s25 }
0x1555   : > { %8177 = vrot.lane.b32.xlu0 %v11432_v59, %s17572_s25 }
0x1556   : > { %8185 = vrot.lane.b32.xlu1 %v11444_v6, %s17572_s25 }
0x1558   : > { %v11448_v53 = vpop.eup %11447 }
0x1559   : > { %8181 = vrot.lane.b32.xlu0 %v11436_v4, %s17572_s25  ;;  %v11450_v29 = vpop.eup %11449 }
0x155a   : > { %8187 = vrot.lane.b32.xlu1 %v11446_v15, %s17572_s25  ;;  %v8023_v61 = vadd.f32 1.0, %v11450_v29  ;;  %v11452_v16 = vpop.eup %11451  ;;  %v9905_v15 = vmul.f32 -1.442695, %v16635_v45  ;;  %v9909_v45 = vmul.f32 -1.442695, %v16650_v38 }
0x155b   : > { %v8024_v59 = vadd.f32 1.0, %v11452_v16  ;;  %v11454_v13 = vpop.eup %11453 }
0x155c   : > { %11457 = vrcp.f32 %v8023_v61  ;;  %v8026_v50 = vadd.f32 1.0, %v11454_v13  ;;  %v11456_v44 = vpop.eup %11455 }
0x155d   : > { %8183 = vrot.lane.b32.xlu0 %v11440_v36, %s17572_s25  ;;  %11459 = vrcp.f32 %v8024_v59  ;;  %v8027_v58 = vadd.f32 1.0, %v11456_v44 }
0x155e   : > { %8189 = vrot.lane.b32.xlu1 %v11448_v53, %s17572_s25  ;;  %11461 = vrcp.f32 %v8026_v50 }
0x155f   : > { %11463 = vrcp.f32 %v8027_v58 }
0x1560   : > { %11465 = vpow2.f32 %v9905_v15 }
0x1561   : > { %8097 = vrot.lane.b32.xlu0 %v8081_v51, %s17574_s0 }
0x1562   : > { %8099 = vrot.lane.b32.xlu1 %v8082_v28, %s17574_s0  ;;  %v9915_v28 = vmul.f32 -1.442695, %v16641_v18  ;;  %v9910_v18 = vmul.f32 -1.442695, %v16658_v30 }
0x1564   : > { %11467 = vpow2.f32 %v9915_v28 }
0x1565   : > { %8113 = vrot.lane.b32.xlu0 %v8088_v63, %s17574_s0 }
0x1566   : > { %8095 = vrot.lane.b32.xlu1 %v16676_v48, %s17574_s0 }
0x1569   : > { %8101 = vrot.lane.b32.xlu0 %v8083_v39, %s17574_s0  ;;  %v16725_v4 = vpop.eup %11457 }
0x156a   : > { %8115 = vrot.lane.b32.xlu1 %v8089_v22, %s17574_s0  ;;  %v16729_v36 = vpop.eup %11459  ;;  %v9907_v22 = vmul.f32 -1.442695, %v16654_v24  ;;  %v9920_v24 = vmul.f32 -1.442695, %v16647_v49 }
0x156b   : > { %v16733_v51 = vpop.eup %11461 }
0x156c   : > { %v16738_v39 = vpop.eup %11463 }
0x156d   : > { %8111 = vrot.lane.b32.xlu0 %v16685_v14, %s17574_s0 }
0x156e   : > { %8103 = vrot.lane.b32.xlu1 %v8084_v47, %s17574_s0 }
0x1571   : > { %8105 = vrot.lane.b32.xlu0 %v8085_v20, %s17574_s0  ;;  %v9908_v20 = vmul.f32 -1.442695, %v16644_v37 }
0x1572   : > { %8117 = vrot.lane.b32.xlu1 %v8090_v31, %s17574_s0 }
0x1573   : > { %11469 = vpow2.f32 %v9908_v20 }
0x1575   : > { %8121 = vrot.lane.b32.xlu0 %v8092_v32, %s17574_s0  ;;  %v9918_v32 = vmul.f32 -1.442695, %v16616_v5  ;;  %v9919_v5 = vmul.f32 -1.442695, %v16619_v27  ;;  %v9901_v27 = vmul.f32 -1.442695, %v16633_v21 }
0x1576   : > { %8119 = vrot.lane.b32.xlu1 %v8091_v33, %s17574_s0 }
0x1577   : > { %11471 = vpow2.f32 %v9918_v32 }
0x1578   : > { %11473 = vpow2.f32 %v9906_v12 }
0x1579   : > { %8109 = vrot.lane.b32.xlu0 %v8087_v40, %s17574_s0  ;;  %11475 = vpow2.f32 %v9909_v45  ;;  %v11466_v40 = vpop.eup %11465 }
0x157a   : > { %8107 = vrot.lane.b32.xlu1 %v8086_v52, %s17574_s0  ;;  %v11468_v47 = vpop.eup %11467  ;;  %11477 = vpow2.f32 %v9907_v22  ;;  %v8015_v37 = vadd.f32 1.0, %v11466_v40 }
0x157b   : > { %11479 = vpow2.f32 %v9910_v18 }
0x157c   : > { %11481 = vpow2.f32 %v9911_v35 }
0x157d   : > { %8125 = vrot.lane.b32.xlu0 %v8094_v56, %s17574_s0  ;;  %v8025_v56 = vadd.f32 1.0, %v11468_v47  ;;  %11483 = vrcp.f32 %v8015_v37 }
0x157e   : > { %8123 = vrot.lane.b32.xlu1 %v8093_v11, %s17574_s0  ;;  %11485 = vpow2.f32 %v9919_v5 }
0x157f   : > { %11487 = vrcp.f32 %v8025_v56 }
0x1580   : > { %v11470_v54 = vpop.eup %11469  ;;  %11489 = vpow2.f32 %v9912_v7 }
0x1581   : > { %v8018_v30 = vadd.f32 1.0, %v11470_v54  ;;  %11491 = vpow2.f32 %v9920_v24 }
0x1583   : > { %11493 = vrcp.f32 %v8018_v30 }
0x1584   : > { %v11472_v29 = vpop.eup %11471 }
0x1585   : > { %v11474_v31 = vpop.eup %11473  ;;  %v8028_v61 = vadd.f32 1.0, %v11472_v29 }
0x1586   : > { %v11476_v55 = vpop.eup %11475  ;;  %v8016_v33 = vadd.f32 1.0, %v11474_v31 }
0x1587   : > { %v8019_v52 = vadd.f32 1.0, %v11476_v55  ;;  %11495 = vrcp.f32 %v8028_v61  ;;  %v11478_v49 = vpop.eup %11477 }
0x1588   : > { %11497 = vpow2.f32 %v9901_v27  ;;  %v11480_v13 = vpop.eup %11479  ;;  %v8017_v21 = vadd.f32 1.0, %v11478_v49 }
0x1589   : > { %11499 = vrcp.f32 %v8016_v33  ;;  %v11482_v50 = vpop.eup %11481 }
0x158a   : > { %11501 = vrcp.f32 %v8019_v52  ;;  %v16761_v44 = vpop.eup %11483 }
0x158b   : > { %11503 = vpow2.f32 %v9902_v10 }
0x158c   : > { %11505 = vrcp.f32 %v8017_v21 }
0x15ad   : > { %v8192_v57 = vpop.permute.xlu1 %8191 }
0x15ae   : > { %v8231_v3 = vmul.f32 %v16725_v4, %v8192_v57 }
0x15af   : > { %v8194_v26 = vpop.permute.xlu0 %8193 }
0x15b0   : > { %8271 = vrot.lane.b32.xlu0 %v8231_v3, %s17574_s0  ;;  %v8232_v41 = vmul.f32 %v16729_v36, %v8194_v26  ;;  %v11486_v3 = vpop.eup %11485  ;;  %v8020_v26 = vadd.f32 1.0, %v11480_v13 }
0x15b1   : > { %v8029_v20 = vadd.f32 1.0, %v11486_v3 }
0x15b2   : > { %8273 = vrot.lane.b32.xlu1 %v8232_v41, %s17574_s0  ;;  %v16764_v41 = vpop.eup %11487  ;;  %11507 = vrcp.f32 %v8020_v26 }
0x15b3   : > { %v8198_v6 = vpop.permute.xlu0 %8197 }
0x15b4   : > { %v8234_v63 = vmul.f32 %v16733_v51, %v8198_v6  ;;  %v16757_v59 = vpop.permute.xlu1 %7778  ;;  %v8021_v6 = vadd.f32 1.0, %v11482_v50 }
0x15b6   : > { %8277 = vrot.lane.b32.xlu1 %v8234_v63, %s17574_s0  ;;  %v11490_v63 = vpop.eup %11489  ;;  %11509 = vrcp.f32 %v8021_v6 }
0x15b7   : > { %v8200_v53 = vpop.permute.xlu0 %8199  ;;  %v8022_v45 = vadd.f32 1.0, %v11490_v63  ;;  %11511 = vrcp.f32 %v8029_v20 }
0x15b8   : > { %v8235_v43 = vmul.f32 %v16738_v39, %v8200_v53  ;;  %v8176_v58 = vpop.permute.xlu1 %8175  ;;  %v11492_v53 = vpop.eup %11491 }
0x15b9   : > { %v8223_v57 = vmul.f32 %v16761_v44, %v8176_v58  ;;  %v16768_v28 = vpop.eup %11493  ;;  %v8030_v5 = vadd.f32 1.0, %v11492_v53  ;;  %11513 = vrcp.f32 %v8022_v45 }
0x15ba   : > { %8279 = vrot.lane.b32.xlu1 %v8235_v43, %s17574_s0  ;;  %v16770_v12 = vpop.eup %11495 }
0x15bb   : > { %v8202_v38 = vpop.permute.xlu0 %8201  ;;  %8255 = vrot.lane.b32.xlu0 %v8223_v57, %s17574_s0  ;;  %v11498_v40 = vpop.eup %11497  ;;  %11515 = vrcp.f32 %v8030_v5 }
0x15bc   : > { %v8196_v15 = vpop.permute.xlu1 %8195  ;;  %v16774_v35 = vpop.eup %11499  ;;  %v8236_v47 = vmul.f32 %v16770_v12, %v8202_v38  ;;  %v7764_v56 = vadd.f32 1.0, %v11498_v40 }
0x15bd   : > { %v8233_v43 = vmul.f32 %v16764_v41, %v8196_v15  ;;  %v16778_v37 = vpop.eup %11501 }
0x15be   : > { %v11504_v24 = vpop.eup %11503  ;;  %11517 = vrcp.f32 %v7764_v56 }
0x15bf   : > { %v16754_v16 = vpop.permute.xlu0 %8203  ;;  %8275 = vrot.lane.b32.xlu0 %v8233_v43, %s17574_s0  ;;  %v7765_v38 = vadd.f32 1.0, %v11504_v24  ;;  %v16785_v30 = vpop.eup %11505 }
0x15c0   : > { %v8206_v18 = vpop.permute.xlu1 %8205  ;;  %v16790_v33 = vpop.eup %11507 }
0x15c1   : > { %11519 = vrcp.f32 %v7765_v38 }
0x15c3   : > { %v16759_v11 = vpop.permute.xlu0 %7776  ;;  %8281 = vrot.lane.b32.xlu0 %v8236_v47, %s17574_s0  ;;  %v16793_v52 = vpop.eup %11509 }
0x15c4   : > { %v8180_v31 = vpop.permute.xlu1 %8179  ;;  %v16797_v50 = vpop.eup %11511 }
0x15c5   : > { %v8225_v61 = vmul.f32 %v16785_v30, %v8180_v31  ;;  %v8237_v3 = vmul.f32 %v16797_v50, %v16754_v16 }
0x15c6   : > { %v16801_v21 = vpop.eup %11513 }
0x15c7   : > { %v8178_v8 = vpop.permute.xlu0 %8177 }
0x15c8   : > { %v8224_v29 = vmul.f32 %v16774_v35, %v8178_v8  ;;  %v8186_v55 = vpop.permute.xlu1 %8185  ;;  %v16806_v8 = vpop.eup %11515 }
0x15c9   : > { %v8228_v49 = vmul.f32 %v16790_v33, %v8186_v55  ;;  %v8238_v15 = vmul.f32 %v16806_v8, %v8206_v18 }
0x15ca   : > { %8257 = vrot.lane.b32.xlu0 %v8224_v29, %s17574_s0 }
0x15cb   : > { %v8182_v32 = vpop.permute.xlu0 %8181  ;;  %v16810_v6 = vpop.eup %11517 }
0x15cc   : > { %v8226_v22 = vmul.f32 %v16768_v28, %v8182_v32  ;;  %v8188_v10 = vpop.permute.xlu1 %8187  ;;  %v7782_v53 = vmul.f32 %v16810_v6, %v16759_v11 }
0x15cd   : > { %v8229_v13 = vmul.f32 %v16793_v52, %v8188_v10 }
0x15ce   : > { %8261 = vrot.lane.b32.xlu1 %v8226_v22, %s17574_s0  ;;  %8259 = vrot.lane.b32.xlu0 %v8225_v61, %s17574_s0  ;;  %v16821_v16 = vpop.eup %11519 }
0x15cf   : > { %v8184_v54 = vpop.permute.xlu0 %8183  ;;  %v7783_v20 = vmul.f32 %v16821_v16, %v16757_v59 }
0x15d0   : > { %v8227_v7 = vmul.f32 %v16778_v37, %v8184_v54  ;;  %v8190_v58 = vpop.permute.xlu1 %8189 }
0x15d1   : > { %v8230_v26 = vmul.f32 %v16801_v21, %v8190_v58 }
0x15d2   : > { %8263 = vrot.lane.b32.xlu1 %v8227_v7, %s17574_s0  ;;  %8265 = vrot.lane.b32.xlu0 %v8228_v49, %s17574_s0 }
0x15d3   : > { %v16788_v27 = vpop.permute.xlu0 %8097 }
0x15d4   : > { %v16812_v63 = vpop.permute.xlu1 %8099 }
0x15d6   : > { %8267 = vrot.lane.b32.xlu1 %v8229_v13, %s17574_s0  ;;  %8283 = vrot.lane.b32.xlu0 %v8237_v3, %s17574_s0 }
0x15d7   : > { %v8114_v57 = vpop.permute.xlu0 %8113 }
0x15d8   : > { %v8096_v32 = vpop.permute.xlu1 %8095  ;;  %v8152_v38 = vmul.f32 %v16729_v36, %v8114_v57 }
0x15da   : > { %8269 = vrot.lane.b32.xlu1 %v8230_v26, %s17574_s0  ;;  %7786 = vrot.lane.b32.xlu0 %v7782_v53, %s17574_s0 }
0x15db   : > { %v16817_v43 = vpop.permute.xlu0 %8101 }
0x15dc   : > { %v8116_v22 = vpop.permute.xlu1 %8115 }
0x15de   : > { %8285 = vrot.lane.b32.xlu1 %v8238_v15, %s17574_s0 }
0x15df   : > { %v8112_v45 = vpop.permute.xlu0 %8111 }
0x15e0   : > { %v8104_v18 = vpop.permute.xlu1 %8103  ;;  %v8151_v29 = vmul.f32 %v16725_v4, %v8112_v45 }
0x15e2   : > { %7788 = vrot.lane.b32.xlu1 %v7783_v20, %s17574_s0 }
0x15e3   : > { %v16826_v40 = vpop.permute.xlu0 %8105 }
0x15e4   : > { %v8118_v47 = vpop.permute.xlu1 %8117 }
0x15e5   : > { %v8154_v10 = vmul.f32 %v16733_v51, %v8118_v47 }
0x15e7   : > { %v8122_v11 = vpop.permute.xlu0 %8121 }
0x15e8   : > { %v8120_v54 = vpop.permute.xlu1 %8119 }
0x15e9   : > { %v8155_v15 = vmul.f32 %v16738_v39, %v8120_v54  ;;  %v8153_v54 = vmul.f32 %v16764_v41, %v8116_v22  ;;  %v8146_v22 = vmul.f32 %v16768_v28, %v16817_v43 }
0x15eb   : > { %v16828_v5 = vpop.permute.xlu0 %8109 }
0x15ec   : > { %v16833_v7 = vpop.permute.xlu1 %8107 }
0x15ef   : > { %v16830_v56 = vpop.permute.xlu0 %8125 }
0x15f0   : > { %v16835_v31 = vpop.permute.xlu1 %8123 }
0x1622   : > { %v8272_v59 = vpop.permute.xlu0 %8271 }
0x1623   : > { %v8311_v24 = vadd.f32 %v8272_v59, %v8151_v29  ;;  %v8143_v29 = vmul.f32 %v16761_v44, %v8096_v32  ;;  %v8144_v32 = vmul.f32 %v16774_v35, %v16788_v27  ;;  %v8145_v27 = vmul.f32 %v16785_v30, %v16812_v63 }
0x1624   : > { %v8274_v55 = vpop.permute.xlu1 %8273 }
0x1625   : > { %11521 = vtanh.f32 %v8311_v24  ;;  %v8312_v61 = vadd.f32 %v8274_v55, %v8152_v38 }
0x1627   : > { %11523 = vtanh.f32 %v8312_v61  ;;  %v8497_v49 = vrot.slane %v8312_v61, 7 }
0x1628   : > { %v8278_v13 = vpop.permute.xlu1 %8277 }
0x1629   : > { %v8498_v58 = vsel %vm3305_vm9, %v8497_v49, %v8311_v24  ;;  %v8314_v3 = vadd.f32 %v8278_v13, %v8154_v10  ;;  %v8156_v10 = vmul.f32 %v16770_v12, %v8122_v11 }
0x162b   : > { %11525 = vtanh.f32 %v8314_v3  ;;  %v8501_v13 = vrot.slane %v8314_v3, 5  ;;  %v8147_v3 = vmul.f32 %v16778_v37, %v8104_v18  ;;  %v8148_v18 = vmul.f32 %v16790_v33, %v16826_v40 }
0x162c   : > { %v8280_v53 = vpop.permute.xlu1 %8279  ;;  %v8150_v40 = vmul.f32 %v16801_v21, %v16828_v5 }
0x162d   : > { %v8315_v20 = vadd.f32 %v8280_v53, %v8155_v15  ;;  %v8256_v59 = vpop.permute.xlu0 %8255 }
0x162e   : > { %v8303_v24 = vadd.f32 %v8256_v59, %v8143_v29 }
0x162f   : > { %11527 = vtanh.f32 %v8315_v20  ;;  %v8503_v15 = vrot.slane %v8315_v20, 4 }
0x1630   : > { %11529 = vtanh.f32 %v8303_v24 }
0x1631   : > { %v8276_v38 = vpop.permute.xlu0 %8275 }
0x1632   : > { %v11522_v26 = vpop.eup %11521  ;;  %v8313_v55 = vadd.f32 %v8276_v38, %v8153_v54 }
0x1633   : > { %8367 = vrot.lane.b32.xlu1 %v11522_v26, %s17572_s25 }
0x1634   : > { %v11524_v57 = vpop.eup %11523  ;;  %11531 = vtanh.f32 %v8313_v55  ;;  %v8499_v49 = vrot.slane %v8313_v55, 6 }
0x1635   : > { %8369 = vrot.lane.b32.xlu0 %v11524_v57, %s17572_s25  ;;  %v8282_v26 = vpop.permute.xlu0 %8281 }
0x1636   : > { %v8500_v53 = vsel %vm3308_vm12, %v8499_v49, %v8498_v58  ;;  %v8316_v57 = vadd.f32 %v8282_v26, %v8156_v10  ;;  %v8149_v26 = vmul.f32 %v16793_v52, %v16833_v7 }
0x1638   : > { %v11526_v45 = vpop.eup %11525  ;;  %11533 = vtanh.f32 %v8316_v57 }
0x1639   : > { %8373 = vrot.lane.b32.xlu0 %v11526_v45, %s17572_s25  ;;  %v8502_v45 = vsel %vm3311_vm13, %v8501_v13, %v8500_v53 }
0x163a   : > { %v8504_v11 = vsel %vm3314_vm11, %v8503_v15, %v8502_v45 }
0x163c   : > { %v11528_v47 = vpop.eup %11527  ;;  %v8258_v29 = vpop.permute.xlu0 %8257 }
0x163d   : > { %8375 = vrot.lane.b32.xlu0 %v11528_v47, %s17572_s25  ;;  %v8505_v47 = vrot.slane %v8316_v57, 3  ;;  %v8304_v20 = vadd.f32 %v8258_v29, %v8144_v32  ;;  %v11530_v10 = vpop.eup %11529 }
0x163e   : > { %8351 = vrot.lane.b32.xlu1 %v11530_v10, %s17572_s25 }
0x163f   : > { %v8506_v58 = vsel %vm3317_vm8, %v8505_v47, %v8504_v11  ;;  %11535 = vtanh.f32 %v8304_v20  ;;  %v8483_v38 = vrot.slane %v8304_v20, 7  ;;  %v8157_v47 = vmul.f32 %v16797_v50, %v16835_v31 }
0x1640   : > { %v8262_v61 = vpop.permute.xlu1 %8261  ;;  %v8260_v43 = vpop.permute.xlu0 %8259 }
0x1641   : > { %v8306_v54 = vadd.f32 %v8262_v61, %v8146_v22  ;;  %v8484_v49 = vsel %vm3305_vm9, %v8483_v38, %v8303_v24  ;;  %v8305_v13 = vadd.f32 %v8260_v43, %v8145_v27  ;;  %v11532_v53 = vpop.eup %11531  ;;  %v8158_v43 = vmul.f32 %v16806_v8, %v16830_v56 }
0x1642   : > { %8371 = vrot.lane.b32.xlu1 %v11532_v53, %s17572_s25  ;;  %v16897_v56 = vsel %vm6117_vm6, %v16472_v1, %v16465_v0 }
0x1643   : > { %11537 = vtanh.f32 %v8306_v54  ;;  %v8487_v61 = vrot.slane %v8306_v54, 5  ;;  %v8485_v63 = vrot.slane %v8305_v13, 6  ;;  %v16877_v54 = vsel %vm6116_vm3, %v16454_v34, %v16445_v19 }
0x1644   : > { %v8264_v59 = vpop.permute.xlu1 %8263  ;;  %11539 = vtanh.f32 %v8305_v13  ;;  %v8266_v57 = vpop.permute.xlu0 %8265 }
0x1645   : > { %v8307_v55 = vadd.f32 %v8264_v59, %v8147_v3  ;;  %v8486_v45 = vsel %vm3308_vm12, %v8485_v63, %v8484_v49  ;;  %v8308_v24 = vadd.f32 %v8266_v57, %v8148_v18  ;;  %v11534_v3 = vpop.eup %11533  ;;  %v7773_v57 = vmul.f32 %v16821_v16, %v16897_v56 }
0x1646   : > { %v8488_v7 = vsel %vm3311_vm13, %v8487_v61, %v8486_v45  ;;  %8377 = vrot.lane.b32.xlu0 %v11534_v3, %s17572_s25  ;;  %v11797_v3 = vld [vmem:[%s14316_s18 + $0x8] sm:$0xff] }
0x1647   : > { %v8489_v15 = vrot.slane %v8307_v55, 4  ;;  %11541 = vtanh.f32 %v8307_v55  ;;  %v8491_v11 = vrot.slane %v8308_v24, 3  ;;  %v7772_v55 = vmul.f32 %v16810_v6, %v16877_v54 }
0x1648   : > { %v8268_v32 = vpop.permute.xlu1 %8267  ;;  %11543 = vtanh.f32 %v8308_v24  ;;  %v8284_v20 = vpop.permute.xlu0 %8283  ;;  %vm7811_vm3 = vcmp.gt.s32.totalorder %v11797_v3, 6 }
0x1649   : > { %v8309_v22 = vadd.f32 %v8268_v32, %v8149_v26  ;;  %v8490_v29 = vsel %vm3314_vm11, %v8489_v15, %v8488_v7  ;;  %v8317_v5 = vadd.f32 %v8284_v20, %v8157_v47  ;;  %v11796_v47 = vld [vmem:[%s14316_s18] sm:$0xff]  ;;  %v7813_v20 = vsel %vm7811_vm3, 1, %v17571_v60 }
0x164a   : > { %v8492_v38 = vsel %vm3317_vm8, %v8491_v11, %v8490_v29  ;;  %vm7810_vm4 = vcmp.gt.s32.totalorder %v11796_v47, 6 }
0x164b   : > { %v8493_v59 = vrot.slane %v8309_v22, 2  ;;  %11545 = vtanh.f32 %v8309_v22  ;;  %v8507_v2 = vrot.slane %v8317_v5, 2  ;;  %v7812_v29 = vsel %vm7810_vm4, 1, %v17571_v60 }
0x164c   : > { %v8270_v27 = vpop.permute.xlu1 %8269  ;;  %11547 = vtanh.f32 %v8317_v5  ;;  %v11536_v34 = vpop.eup %11535 }
0x164d   : > { %v8310_v31 = vadd.f32 %v8270_v27, %v8150_v40  ;;  %v8494_v10 = vsel %vm3320_vm10, %v8493_v59, %v8492_v38  ;;  %v7787_v49 = vpop.permute.xlu0 %7786  ;;  %8353 = vrot.lane.b32.xlu0 %v11536_v34, %s17572_s25  ;;  %v8508_v63 = vsel %vm3320_vm10, %v8507_v2, %v8506_v58 }
0x164e   : > { %v16886_v18 = vadd.f32 %v7787_v49, %v7772_v55 }
0x164f   : > { %v8495_v19 = vrot.slane %v8310_v31, 1  ;;  %11549 = vtanh.f32 %v8310_v31 }
0x1650   : > { %v8286_v13 = vpop.permute.xlu1 %8285  ;;  %v11538_v15 = vpop.eup %11537  ;;  %11551 = vtanh.f32 %v16886_v18 }
0x1651   : > { %v8318_v61 = vadd.f32 %v8286_v13, %v8158_v43  ;;  %v16890_v26 = vsel %vm3323_vm7, %v8495_v19, %v8494_v10  ;;  %v11540_v32 = vpop.eup %11539  ;;  %8357 = vrot.lane.b32.xlu0 %v11538_v15, %s17572_s25 }
0x1652   : > { %8355 = vrot.lane.b32.xlu1 %v11540_v32, %s17572_s25 }
0x1653   : > { %v8509_v53 = vrot.slane %v8318_v61, 1  ;;  %11553 = vtanh.f32 %v8318_v61 }
0x1654   : > { %v7789_v45 = vpop.permute.xlu1 %7788  ;;  %v11542_v0 = vpop.eup %11541 }
0x1655   : > { %v16904_v58 = vadd.f32 %v7789_v45, %v7773_v57  ;;  %v16907_v23 = vsel %vm3323_vm7, %v8509_v53, %v8508_v63  ;;  %v11544_v1 = vpop.eup %11543  ;;  %8359 = vrot.lane.b32.xlu0 %v11542_v0, %s17572_s25 }
0x1656   : > { %8361 = vrot.lane.b32.xlu1 %v11544_v1, %s17572_s25 }
0x1657   : > { %11555 = vtanh.f32 %v16904_v58 }
0x1658   : > { %v11546_v24 = vpop.eup %11545 }
0x1659   : > { %v11548_v22 = vpop.eup %11547 }
0x165a   : > { %8379 = vrot.lane.b32.xlu0 %v11548_v22, %s17572_s25  ;;  %8363 = vrot.lane.b32.xlu1 %v11546_v24, %s17572_s25 }
0x165c   : > { %v11550_v40 = vpop.eup %11549 }
0x165d   : > { %v11552_v7 = vpop.eup %11551 }
0x165e   : > { %7798 = vrot.lane.b32.xlu0 %v11552_v7, %s17572_s25  ;;  %8365 = vrot.lane.b32.xlu1 %v11550_v40, %s17572_s25 }
0x1660   : > { %v11554_v11 = vpop.eup %11553 }
0x1662   : > { %7815 = vperm.xlu0 %10499, %v7812_v29   ;;  %8381 = vrot.lane.b32.xlu1 %v11554_v11, %s17572_s25 }
0x1664   : > { %v11556_v59 = vpop.eup %11555 }
0x1666   : > { %7800 = vrot.lane.b32.xlu1 %v11556_v59, %s17572_s25 }
0x166a   : > { %7818 = vperm.xlu1 %10500, %v7813_v20  }
0x16a5   : > { %v8368_v31 = vpop.permute.xlu1 %8367 }
0x16a7   : > { %v8370_v27 = vpop.permute.xlu0 %8369 }
0x16a8   : > { %v8408_v13 = vmul.f32 %v16729_v36, %v8370_v27 }
0x16aa   : > { %v8445_v0 = vrot.slane %v8408_v13, 7 }
0x16ab   : > { %v8374_v5 = vpop.permute.xlu0 %8373 }
0x16ac   : > { %v8410_v36 = vmul.f32 %v16733_v51, %v8374_v5 }
0x16ae   : > { %v8449_v59 = vrot.slane %v8410_v36, 5  ;;  %v11801_v36 = vld [vmem:[%s17455_s10 + $0x20] sm:$0xff] }
0x16af   : > { %v8376_v38 = vpop.permute.xlu0 %8375 }
0x16b0   : > { %v8352_v55 = vpop.permute.xlu1 %8351 }
0x16b1   : > { %v8399_v1 = vmul.f32 %v16761_v44, %v8352_v55 }
0x16b4   : > { %v8372_v43 = vpop.permute.xlu1 %8371 }
0x16b5   : > { %v8409_v63 = vmul.f32 %v16764_v41, %v8372_v43 }
0x16b7   : > { %v8447_v22 = vrot.slane %v8409_v63, 6 }
0x16b8   : > { %v8378_v10 = vpop.permute.xlu0 %8377 }
0x16b9   : > { %v8412_v51 = vmul.f32 %v16770_v12, %v8378_v10 }
0x16bf   : > { %v8354_v2 = vpop.permute.xlu0 %8353 }
0x16c0   : > { %v8400_v19 = vmul.f32 %v16774_v35, %v8354_v2  ;;  %v8407_v35 = vmul.f32 %v16725_v4, %v8368_v31 }
0x16c2   : > { %v8431_v15 = vrot.slane %v8400_v19, 7  ;;  %v8446_v29 = vsel %vm3305_vm9, %v8445_v0, %v8407_v35  ;;  %v11799_v35 = vld [vmem:[%s17455_s10 + $0x30] sm:$0xff] }
0x16c3   : > { %v8358_v34 = vpop.permute.xlu0 %8357  ;;  %v8448_v4 = vsel %vm3308_vm12, %v8447_v22, %v8446_v29  ;;  %v11800_v22 = vld [vmem:[%s17455_s10 + $0x28] sm:$0xff] }
0x16c4   : > { %v8356_v49 = vpop.permute.xlu1 %8355  ;;  %v8402_v53 = vmul.f32 %v16768_v28, %v8358_v34  ;;  %v8450_v55 = vsel %vm3311_vm13, %v8449_v59, %v8448_v4  ;;  %v8685_v59 = vld [vmem:[#allocation2 + $0x5f] sm:$0x1] }
0x16c5   : > { %v8401_v61 = vmul.f32 %v16785_v30, %v8356_v49  ;;  %v8432_v30 = vsel %vm3305_vm9, %v8431_v15, %v8399_v1 }
0x16c6   : > { %v8435_v40 = vrot.slane %v8402_v53, 5 }
0x16c7   : > { %v8433_v57 = vrot.slane %v8401_v61, 6  ;;  %v8360_v32 = vpop.permute.xlu0 %8359 }
0x16c8   : > { %v8362_v45 = vpop.permute.xlu1 %8361  ;;  %v8403_v24 = vmul.f32 %v16778_v37, %v8360_v32  ;;  %v8411_v37 = vmul.f32 %v16738_v39, %v8376_v38  ;;  %v8453_v38 = vrot.slane %v8412_v51, 3 }
0x16c9   : > { %v8404_v41 = vmul.f32 %v16790_v33, %v8362_v45  ;;  %v8434_v28 = vsel %vm3308_vm12, %v8433_v57, %v8432_v30  ;;  %v11802_v30 = vld [vmem:[%s17455_s10 + $0x18] sm:$0xff] }
0x16ca   : > { %v8437_v47 = vrot.slane %v8403_v24, 4  ;;  %v8436_v3 = vsel %vm3311_vm13, %v8435_v40, %v8434_v28  ;;  %v8451_v43 = vrot.slane %v8411_v37, 4  ;;  %v11803_v40 = vld [vmem:[%s17455_s10 + $0x10] sm:$0xff]  ;;  %v11805_v28 = vld [vmem:[%s17455_s10] sm:$0xff] }
0x16cb   : > { %v8439_v20 = vrot.slane %v8404_v41, 3  ;;  %v11804_v41 = vld [vmem:[%s17455_s10 + $0x8] sm:$0xff] }
0x16cc   : > { %v8380_v7 = vpop.permute.xlu0 %8379  ;;  %v8364_v11 = vpop.permute.xlu1 %8363  ;;  %v8438_v33 = vsel %vm3314_vm11, %v8437_v47, %v8436_v3  ;;  %v8452_v12 = vsel %vm3314_vm11, %v8451_v43, %v8450_v55  ;;  %v8688_v43 = vld [vmem:[#allocation2 + $0x77] sm:$0x1] }
0x16cd   : > { %v8405_v44 = vmul.f32 %v16793_v52, %v8364_v11  ;;  %v8413_v27 = vmul.f32 %v16797_v50, %v8380_v7  ;;  %v8440_v2 = vsel %vm3317_vm8, %v8439_v20, %v8438_v33  ;;  %v8682_v7 = vld [vmem:[#allocation2 + $0x47] sm:$0x1] }
0x16ce   : > { %v8686_v20 = vld [vmem:[#allocation2 + $0x67] sm:$0x1] }
0x16cf   : > { %v8441_v5 = vrot.slane %v8405_v44, 2  ;;  %v8455_v10 = vrot.slane %v8413_v27, 2  ;;  %v8683_v44 = vld [vmem:[#allocation2 + $0x4f] sm:$0x1] }
0x16d0   : > { %v8366_v31 = vpop.permute.xlu1 %8365  ;;  %v7799_v39 = vpop.permute.xlu0 %7798 }
0x16d1   : > { %v8406_v52 = vmul.f32 %v16801_v21, %v8366_v31  ;;  %v8442_v49 = vsel %vm3320_vm10, %v8441_v5, %v8440_v2  ;;  %v7804_v50 = vmul.f32 %v16810_v6, %v7799_v39  ;;  %v8454_v21 = vsel %vm3317_vm8, %v8453_v38, %v8452_v12  ;;  %v8687_v31 = vld [vmem:[#allocation2 + $0x6f] sm:$0x1] }
0x16d2   : > { %v8456_v53 = vsel %vm3320_vm10, %v8455_v10, %v8454_v21 }
0x16d3   : > { %v8443_v19 = vrot.slane %v8406_v52, 1  ;;  %v16957_v32 = vsel %vm6968_vm15, %v7804_v50, %v16525_v42 }
0x16d4   : > { %v8382_v34 = vpop.permute.xlu1 %8381 }
0x16d5   : > { %v8414_v13 = vmul.f32 %v16806_v8, %v8382_v34  ;;  %v8444_v61 = vsel %vm3323_vm7, %v8443_v19, %v8442_v49 }
0x16d6   : > { %8459 = vrot.lane.b32.xlu0 %v8444_v61, %s17574_s0 }
0x16d7   : > { %v8457_v63 = vrot.slane %v8414_v13, 1  ;;  %v17051_v13 = vld [vmem:[%s17456_s11] ss:$0 sm:$0xff] }
0x16d8   : > { %v7801_v15 = vpop.permute.xlu1 %7800 }
0x16d9   : > { %v7805_v57 = vmul.f32 %v16821_v16, %v7801_v15  ;;  %v8458_v6 = vsel %vm3323_vm7, %v8457_v63, %v8456_v53  ;;  %v8674_v15 = vld [vmem:[#allocation2 + $0x7] sm:$0x1] }
0x16da   : > { %8521 = vrot.lane.b32.xlu0 %v16957_v32, %s17572_s25  ;;  %8461 = vrot.lane.b32.xlu1 %v8458_v6, %s17574_s0  ;;  %v8675_v6 = vld [vmem:[#allocation2 + $0xf] sm:$0x1] }
0x16db   : > { %v16966_v8 = vsel %vm6969_vm2, %v7805_v57, %v16534_v46 }
0x16dd   : > { %v16974_v42 = vpop.permute.xlu0 %7815 }
0x16de   : > { %8511 = vrot.lane.b32.xlu0 %v16890_v26, %s17573_s27  ;;  %8523 = vrot.lane.b32.xlu1 %v16966_v8, %s17572_s25  ;;  %vm7820_vm6 = vcmp.eq.s32.totalorder %v16974_v42, 1  ;;  %v9460_v42 = vld [vmem:[%s17457_s12] sm:$0xff] }
0x16e2   : > { %8513 = vrot.lane.b32.xlu1 %v16907_v23, %s17573_s27 }
0x16e5   : > { %v16977_v16 = vpop.permute.xlu1 %7818 }
0x16e6   : > { %vm7821_vm5 = vcmp.eq.s32.totalorder %v16977_v16, 1 }
0x1748   : > { %v8460_v45 = vpop.permute.xlu0 %8459 }
0x1749   : > { %v16982_v46 = vsel %vm7820_vm6, %v8460_v45, %v16550_v9  ;;  %v11798_v9 = vld [vmem:[%s17455_s10 + $0x38] sm:$0xff] }
0x174a   : > { %10351 = vmatprep.mubr.msk.f32.mxu1 %vm2777_vm1, %v16982_v46 }
0x174c   : > { %v8522_v26 = vpop.permute.xlu0 %8521  ;;  %v8462_v0 = vpop.permute.xlu1 %8461 }
0x174d   : > { %v8527_v23 = vsel %vm2777_vm1, %v16982_v46, %v8522_v26  ;;  %v16992_v1 = vsel %vm7821_vm5, %v8462_v0, %v16560_v62  ;;  %v8684_v0 = vld [vmem:[#allocation2 + $0x57] sm:$0x1] }
0x174e   : > { %10340 = vmatprep.mubr.msk.f32.mxu0 %vm3416_vm0, %v8527_v23  ;;  %10352 = vmatmul.mubr.msk.f32.vlgmr.msra.gmra.mxu1 %vm2777_vm1, %v16992_v1 }
0x174f   : > { %10355 = vmatpush3.msra.mxu1 %v11798_v9 }
0x1750   : > { %v8524_v24 = vpop.permute.xlu1 %8523  ;;  %10356 = vmatprep.subr.mxu1 %v11799_v35 }
0x1751   : > { %v8528_v62 = vsel %vm2777_vm1, %v16992_v1, %v8524_v24  ;;  %10357 = vmatpush3.msra.mxu1 %v11799_v35  ;;  %v8677_v24 = vld [vmem:[#allocation2 + $0x1f] sm:$0x1] }
0x1752   : > { %10341 = vmatmul.mubr.msk.f32.vlgmr.msra.gmra.mxu0 %vm3416_vm0, %v8528_v62  ;;  %10358 = vmatprep.subr.mxu1 %v11800_v22 }
0x1753   : > { %10359 = vmatpush3.msra.mxu1 %v11800_v22  ;;  %v8689_v22 = vld [vmem:[#allocation2 + $0x7f] sm:$0x1] }
0x1754   : > { %10360 = vmatprep.subr.mxu1 %v11801_v36 }
0x1755   : > { %10361 = vmatpush3.msra.mxu1 %v11801_v36 }
0x1756   : > { %10362 = vmatprep.subr.mxu1 %v11802_v30 }
0x1757   : > { %10363 = vmatpush3.msra.mxu1 %v11802_v30 }
0x1758   : > { %10364 = vmatprep.subr.mxu1 %v11803_v40 }
0x1759   : > { %10365 = vmatpush3.msra.mxu1 %v11803_v40  ;;  %v8678_v40 = vld [vmem:[#allocation2 + $0x27] sm:$0x1] }
0x175a   : > { %10366 = vmatprep.subr.mxu1 %v11804_v41 }
0x175b   : > { %10367 = vmatpush3.msra.mxu1 %v11804_v41 }
0x175c   : > { %10368 = vmatprep.subr.mxu1 %v11805_v28 }
0x175d   : > { %10369 = vmatpush3.msra.mxu1 %v11805_v28  ;;  %v8676_v28 = vld [vmem:[#allocation2 + $0x17] sm:$0x1] }
0x180e   : > { %v10353_v47 = vpop.f32.mrf.mxu1 }
0x180f   : > { %v17024_v11 = vadd.f32 %v10353_v47, %v8682_v7  ;;  %v8780_v29 = vrot.slane %v10353_v47, 1  ;;  %v8782_v37 = vrot.slane %v10353_v47, 3  ;;  %v8783_v51 = vrot.slane %v10353_v47, 4 }
0x1810   : > { %v8784_v27 = vrot.slane %v10353_v47, 5  ;;  %v8785_v55 = vrot.slane %v10353_v47, 6  ;;  %v8762_v49 = vpop.f32.mrf.mxu1  ;;  %v8781_v53 = vrot.slane %v10353_v47, 2  ;;  %v8786_v23 = vrot.slane %v10353_v47, 7 }
0x1811   : > { %11557 = vtanh.f32 %v17024_v11  ;;  %v17027_v4 = vadd.f32 %v8780_v29, %v8683_v44  ;;  %v17029_v3 = vadd.f32 %v8782_v37, %v8685_v59  ;;  %v17032_v5 = vadd.f32 %v8783_v51, %v8686_v20  ;;  %v8679_v51 = vld [vmem:[#allocation2 + $0x2f] sm:$0x1] }
0x1812   : > { %v17036_v52 = vadd.f32 %v8784_v27, %v8687_v31  ;;  %v17039_v39 = vadd.f32 %v8785_v55, %v8688_v43  ;;  %v10342_v34 = vpop.f32.mrf.mxu0  ;;  %v8773_v21 = vrot.slane %v8762_v49, 1  ;;  %v17059_v57 = vadd.f32 %v8762_v49, %v8674_v15  ;;  %v8680_v55 = vld [vmem:[#allocation2 + $0x37] sm:$0x1]  ;;  %v8512_v43 = vpop.permute.xlu0 %8511 }
0x1813   : > { %11559 = vtanh.f32 %v17027_v4  ;;  %v17054_v61 = vadd.f32 %v17051_v13, %v10342_v34  ;;  %v8775_v45 = vrot.slane %v8762_v49, 3  ;;  %v17065_v9 = vadd.f32 %v8781_v53, %v8684_v0  ;;  %v8681_v34 = vld [vmem:[#allocation2 + $0x3f] sm:$0x1] }
0x1814   : > { %11561 = vtanh.f32 %v17029_v3  ;;  %v8601_v50 = vpop.f32.mrf.mxu0  ;;  %v17062_v26 = vadd.f32 %v8773_v21, %v8675_v6  ;;  %v8776_v35 = vrot.slane %v8762_v49, 4  ;;  %v17071_v36 = vadd.f32 %v8786_v23, %v8689_v22 }
0x1815   : > { %11563 = vtanh.f32 %v17032_v5  ;;  %v17057_v63 = vadd.f32 %v17051_v13, %v8601_v50  ;;  %v17068_v62 = vadd.f32 %v8775_v45, %v8677_v24  ;;  %v8774_v30 = vrot.slane %v8762_v49, 2  ;;  %v8514_v50 = vpop.permute.xlu1 %8513 }
0x1816   : > { %11565 = vtanh.f32 %v17036_v52  ;;  %v17074_v41 = vadd.f32 %v8776_v35, %v8678_v40  ;;  %v8777_v44 = vrot.slane %v8762_v49, 5  ;;  %v8778_v20 = vrot.slane %v8762_v49, 6 }
0x1817   : > { %11567 = vtanh.f32 %v17039_v39  ;;  %v17078_v47 = vadd.f32 %v8774_v30, %v8676_v28  ;;  %v8518_v53 = vsel %vm7821_vm5, %v8514_v50, %v16685_v14  ;;  %v9935_v24 = vmul.f32 -1.442695, %v17024_v11 }
0x1818   : > { %11569 = vtanh.f32 %v17054_v61  ;;  %v8944_v22 = vrot.slane %v8518_v53, 5  ;;  %v9936_v30 = vmul.f32 -1.442695, %v17027_v4  ;;  %v8941_v40 = vrot.slane %v8518_v53, 2 }
0x1819   : > { %11571 = vtanh.f32 %v17057_v63  ;;  %v9938_v28 = vmul.f32 -1.442695, %v17029_v3  ;;  %v8942_v4 = vrot.slane %v8518_v53, 3 }
0x181a   : > { %11573 = vtanh.f32 %v17059_v57 }
0x181b   : > { %11575 = vtanh.f32 %v17062_v26 }
0x181c   : > { %11577 = vtanh.f32 %v17065_v9 }
0x181d   : > { %11579 = vtanh.f32 %v17068_v62 }
0x181e   : > { %v11558_v33 = vpop.eup %11557  ;;  %11581 = vtanh.f32 %v17071_v36 }
0x181f   : > { %9043 = vrot.lane.b32.xlu1 %v11558_v33, %s17572_s25  ;;  %11583 = vtanh.f32 %v17074_v41  ;;  %v17085_v33 = vadd.f32 %v8777_v44, %v8679_v51  ;;  %v8943_v51 = vrot.slane %v8518_v53, 4 }
0x1820   : > { %v11560_v38 = vpop.eup %11559  ;;  %11585 = vtanh.f32 %v17078_v47 }
0x1821   : > { %9045 = vrot.lane.b32.xlu0 %v11560_v38, %s17572_s25  ;;  %v11562_v2 = vpop.eup %11561  ;;  %v8779_v38 = vrot.slane %v8762_v49, 7  ;;  %11587 = vtanh.f32 %v17085_v33 }
0x1822   : > { %v11564_v19 = vpop.eup %11563 }
0x1823   : > { %v11566_v12 = vpop.eup %11565  ;;  %v17097_v21 = vadd.f32 %v8779_v38, %v8681_v34 }
0x1824   : > { %v11568_v10 = vpop.eup %11567 }
0x1825   : > { %9049 = vrot.lane.b32.xlu0 %v11562_v2, %s17572_s25  ;;  %v11570_v7 = vpop.eup %11569  ;;  %v17089_v2 = vadd.f32 %v8778_v20, %v8680_v55  ;;  %v8945_v55 = vrot.slane %v8518_v53, 6 }
0x1826   : > { %8630 = vrot.lane.b32.xlu1 %v11570_v7, %s17572_s25  ;;  %v11572_v29 = vpop.eup %11571 }
0x1827   : > { %v11574_v37 = vpop.eup %11573  ;;  %11589 = vtanh.f32 %v17089_v2 }
0x1828   : > { %v11576_v59 = vpop.eup %11575  ;;  %11591 = vtanh.f32 %v17097_v21 }
0x1829   : > { %9051 = vrot.lane.b32.xlu0 %v11564_v19, %s17572_s25  ;;  %v11578_v27 = vpop.eup %11577  ;;  %11593 = vpow2.f32 %v9935_v24  ;;  %v9937_v24 = vmul.f32 -1.442695, %v17065_v9  ;;  %v9929_v9 = vmul.f32 -1.442695, %v17078_v47 }
0x182a   : > { %9027 = vrot.lane.b32.xlu1 %v11574_v37, %s17572_s25  ;;  %v11580_v31 = vpop.eup %11579  ;;  %11595 = vpow2.f32 %v9936_v30  ;;  %v9939_v37 = vmul.f32 -1.442695, %v17032_v5  ;;  %v9942_v30 = vmul.f32 -1.442695, %v17071_v36 }
0x182b   : > { %v11582_v19 = vpop.eup %11581  ;;  %11597 = vpow2.f32 %v9938_v28 }
0x182c   : > { %11599 = vpow2.f32 %v9939_v37 }
0x182d   : > { %9053 = vrot.lane.b32.xlu0 %v11566_v12, %s17572_s25  ;;  %v11584_v12 = vpop.eup %11583 }
0x182e   : > { %9047 = vrot.lane.b32.xlu1 %v11578_v27, %s17572_s25  ;;  %v11586_v49 = vpop.eup %11585 }
0x182f   : > { %v11588_v45 = vpop.eup %11587 }
0x1831   : > { %9055 = vrot.lane.b32.xlu0 %v11568_v10, %s17572_s25  ;;  %v8517_v10 = vsel %vm7820_vm6, %v8512_v43, %v16676_v48  ;;  %v8940_v48 = vrot.slane %v8518_v53, 1 }
0x1832   : > { %9057 = vrot.lane.b32.xlu1 %v11582_v19, %s17572_s25  ;;  %v8933_v15 = vrot.slane %v8517_v10, 1  ;;  %v8934_v6 = vrot.slane %v8517_v10, 2  ;;  %v8935_v0 = vrot.slane %v8517_v10, 3  ;;  %v8937_v35 = vrot.slane %v8517_v10, 5 }
0x1833   : > { %v8939_v11 = vrot.slane %v8517_v10, 7  ;;  %v8936_v7 = vrot.slane %v8517_v10, 4  ;;  %v8938_v20 = vrot.slane %v8517_v10, 6 }
0x1834   : > { %v11590_v23 = vpop.eup %11589 }
0x1835   : > { %8628 = vrot.lane.b32.xlu0 %v11572_v29, %s17572_s25  ;;  %v11592_v14 = vpop.eup %11591  ;;  %v8946_v29 = vrot.slane %v8518_v53, 7 }
0x1836   : > { %9031 = vrot.lane.b32.xlu1 %v11586_v49, %s17572_s25  ;;  %v11594_v44 = vpop.eup %11593 }
0x1837   : > { %v11596_v3 = vpop.eup %11595 }
0x1838   : > { %v8876_v27 = vadd.f32 1.0, %v11596_v3 }
0x1839   : > { %9029 = vrot.lane.b32.xlu0 %v11576_v59, %s17572_s25  ;;  %v8875_v59 = vadd.f32 1.0, %v11594_v44  ;;  %v9933_v44 = vmul.f32 -1.442695, %v17089_v2  ;;  %v9924_v2 = vmul.f32 -1.442695, %v17054_v61 }
0x183a   : > { %8951 = vrot.lane.b32.xlu1 %v8934_v6, %s17574_s0 }
0x183b   : > { %11601 = vrcp.f32 %v8875_v59  ;;  %v9923_v59 = vmul.f32 -1.442695, %v17057_v63 }
0x183c   : > { %11603 = vrcp.f32 %v8876_v27 }
0x183d   : > { %9033 = vrot.lane.b32.xlu0 %v11580_v31, %s17572_s25  ;;  %v11598_v31 = vpop.eup %11597 }
0x183e   : > { %9037 = vrot.lane.b32.xlu1 %v11588_v45, %s17572_s25  ;;  %v8878_v5 = vadd.f32 1.0, %v11598_v31  ;;  %v11600_v43 = vpop.eup %11599 }
0x183f   : > { %v8879_v19 = vadd.f32 1.0, %v11600_v43 }
0x1840   : > { %11605 = vrcp.f32 %v8878_v5 }
0x1841   : > { %9035 = vrot.lane.b32.xlu0 %v11584_v12, %s17572_s25  ;;  %11607 = vrcp.f32 %v8879_v19 }
0x1842   : > { %9039 = vrot.lane.b32.xlu1 %v11590_v23, %s17572_s25 }
0x1845   : > { %8949 = vrot.lane.b32.xlu0 %v8933_v15, %s17574_s0 }
0x1846   : > { %9041 = vrot.lane.b32.xlu1 %v11592_v14, %s17572_s25  ;;  %v9940_v14 = vmul.f32 -1.442695, %v17036_v52 }
0x1848   : > { %v17129_v38 = vpop.eup %11601 }
0x1849   : > { %8965 = vrot.lane.b32.xlu0 %v8940_v48, %s17574_s0  ;;  %v9927_v48 = vmul.f32 -1.442695, %v17059_v57  ;;  %v9928_v57 = vmul.f32 -1.442695, %v17062_v26 }
0x184a   : > { %8947 = vrot.lane.b32.xlu1 %v8517_v10, %s17574_s0  ;;  %v17133_v10 = vpop.eup %11603 }
0x184b   : > { %11609 = vpow2.f32 %v9927_v48 }
0x184c   : > { %11611 = vpow2.f32 %v9937_v24 }
0x184d   : > { %8953 = vrot.lane.b32.xlu0 %v8935_v0, %s17574_s0  ;;  %v17137_v15 = vpop.eup %11605  ;;  %11613 = vpow2.f32 %v9940_v14 }
0x184e   : > { %8967 = vrot.lane.b32.xlu1 %v8941_v40, %s17574_s0  ;;  %v17142_v45 = vpop.eup %11607 }
0x1851   : > { %8963 = vrot.lane.b32.xlu0 %v8518_v53, %s17574_s0 }
0x1852   : > { %8955 = vrot.lane.b32.xlu1 %v8936_v7, %s17574_s0  ;;  %v9941_v7 = vmul.f32 -1.442695, %v17039_v39 }
0x1855   : > { %8957 = vrot.lane.b32.xlu0 %v8937_v35, %s17574_s0  ;;  %v9930_v35 = vmul.f32 -1.442695, %v17068_v62 }
0x1856   : > { %8969 = vrot.lane.b32.xlu1 %v8942_v4, %s17574_s0 }
0x1857   : > { %11615 = vpow2.f32 %v9930_v35 }
0x1858   : > { %11617 = vpow2.f32 %v9928_v57  ;;  %v11610_v40 = vpop.eup %11609 }
0x1859   : > { %8973 = vrot.lane.b32.xlu0 %v8944_v22, %s17574_s0  ;;  %v9931_v22 = vmul.f32 -1.442695, %v17074_v41  ;;  %v11612_v52 = vpop.eup %11611  ;;  %v8867_v62 = vadd.f32 1.0, %v11610_v40 }
0x185a   : > { %8971 = vrot.lane.b32.xlu1 %v8943_v51, %s17574_s0  ;;  %v11614_v28 = vpop.eup %11613 }
0x185b   : > { %11619 = vpow2.f32 %v9931_v22  ;;  %v8880_v36 = vadd.f32 1.0, %v11614_v28 }
0x185c   : > { %11621 = vpow2.f32 %v9942_v30 }
0x185d   : > { %8961 = vrot.lane.b32.xlu0 %v8939_v11, %s17574_s0  ;;  %v9932_v11 = vmul.f32 -1.442695, %v17085_v33  ;;  %11623 = vpow2.f32 %v9929_v9  ;;  %v9934_v33 = vmul.f32 -1.442695, %v17097_v21 }
0x185e   : > { %8959 = vrot.lane.b32.xlu1 %v8938_v20, %s17574_s0 }
0x185f   : > { %11625 = vpow2.f32 %v9932_v11 }
0x1860   : > { %11627 = vrcp.f32 %v8867_v62 }
0x1861   : > { %8977 = vrot.lane.b32.xlu0 %v8946_v29, %s17574_s0  ;;  %v8877_v29 = vadd.f32 1.0, %v11612_v52  ;;  %11629 = vpow2.f32 %v9941_v7 }
0x1862   : > { %8975 = vrot.lane.b32.xlu1 %v8945_v55, %s17574_s0 }
0x1863   : > { %11631 = vrcp.f32 %v8877_v29 }
0x1864   : > { %v11616_v26 = vpop.eup %11615  ;;  %11633 = vpow2.f32 %v9933_v44 }
0x1865   : > { %v11618_v37 = vpop.eup %11617  ;;  %v8870_v47 = vadd.f32 1.0, %v11616_v26  ;;  %11635 = vrcp.f32 %v8880_v36 }
0x1866   : > { %v8868_v39 = vadd.f32 1.0, %v11618_v37 }
0x1867   : > { %11637 = vrcp.f32 %v8870_v47 }
0x1868   : > { %v11620_v4 = vpop.eup %11619  ;;  %11639 = vpow2.f32 %v9934_v33 }
0x1869   : > { %v8871_v3 = vadd.f32 1.0, %v11620_v4  ;;  %v11622_v20 = vpop.eup %11621  ;;  %11641 = vpow2.f32 %v9923_v59 }
0x186a   : > { %v11624_v27 = vpop.eup %11623  ;;  %11643 = vrcp.f32 %v8868_v39  ;;  %v8882_v55 = vadd.f32 1.0, %v11622_v20 }
0x186b   : > { %11645 = vrcp.f32 %v8871_v3  ;;  %v8869_v5 = vadd.f32 1.0, %v11624_v27 }
0x186c   : > { %v11626_v63 = vpop.eup %11625  ;;  %11647 = vpow2.f32 %v9924_v2 }
0x186d   : > { %v17165_v43 = vpop.eup %11627  ;;  %11649 = vrcp.f32 %v8882_v55 }
0x186e   : > { %11651 = vrcp.f32 %v8869_v5 }
0x1891   : > { %v9044_v12 = vpop.permute.xlu1 %9043 }
0x1892   : > { %v9083_v34 = vmul.f32 %v17129_v38, %v9044_v12 }
0x1893   : > { %v9046_v50 = vpop.permute.xlu0 %9045 }
0x1894   : > { %9123 = vrot.lane.b32.xlu0 %v9083_v34, %s17574_s0  ;;  %v9084_v49 = vmul.f32 %v17133_v10, %v9046_v50  ;;  %v11630_v34 = vpop.eup %11629 }
0x1895   : > { %v17168_v50 = vpop.eup %11631  ;;  %v8881_v24 = vadd.f32 1.0, %v11630_v34 }
0x1896   : > { %9125 = vrot.lane.b32.xlu1 %v9084_v49, %s17574_s0  ;;  %v8872_v49 = vadd.f32 1.0, %v11626_v63 }
0x1897   : > { %v9050_v53 = vpop.permute.xlu0 %9049 }
0x1898   : > { %v9086_v6 = vmul.f32 %v17137_v15, %v9050_v53  ;;  %v17161_v31 = vpop.permute.xlu1 %8630  ;;  %v11634_v53 = vpop.eup %11633  ;;  %11653 = vrcp.f32 %v8872_v49 }
0x1899   : > { %v17171_v48 = vpop.eup %11635  ;;  %v8873_v57 = vadd.f32 1.0, %v11634_v53  ;;  %11655 = vrcp.f32 %v8881_v24 }
0x189a   : > { %9129 = vrot.lane.b32.xlu1 %v9086_v6, %s17574_s0 }
0x189b   : > { %v9052_v0 = vpop.permute.xlu0 %9051  ;;  %11657 = vrcp.f32 %v8873_v57 }
0x189c   : > { %v9087_v23 = vmul.f32 %v17142_v45, %v9052_v0  ;;  %v9028_v19 = vpop.permute.xlu1 %9027 }
0x189d   : > { %v9075_v12 = vmul.f32 %v17165_v43, %v9028_v19 }
0x189e   : > { %9131 = vrot.lane.b32.xlu1 %v9087_v23, %s17574_s0  ;;  %v17174_v23 = vpop.eup %11637 }
0x189f   : > { %v9054_v41 = vpop.permute.xlu0 %9053  ;;  %9107 = vrot.lane.b32.xlu0 %v9075_v12, %s17574_s0  ;;  %v11640_v35 = vpop.eup %11639 }
0x18a0   : > { %v9048_v6 = vpop.permute.xlu1 %9047  ;;  %v11642_v30 = vpop.eup %11641  ;;  %v9088_v11 = vmul.f32 %v17171_v48, %v9054_v41  ;;  %v8874_v62 = vadd.f32 1.0, %v11640_v35 }
0x18a1   : > { %v9085_v0 = vmul.f32 %v17168_v50, %v9048_v6  ;;  %v17178_v40 = vpop.eup %11643  ;;  %v8616_v7 = vadd.f32 1.0, %v11642_v30 }
0x18a2   : > { %v17182_v52 = vpop.eup %11645  ;;  %11659 = vrcp.f32 %v8874_v62 }
0x18a3   : > { %v17158_v51 = vpop.permute.xlu0 %9055  ;;  %9127 = vrot.lane.b32.xlu0 %v9085_v0, %s17574_s0  ;;  %v11648_v44 = vpop.eup %11647  ;;  %11661 = vrcp.f32 %v8616_v7 }
0x18a4   : > { %v9058_v9 = vpop.permute.xlu1 %9057  ;;  %v17188_v41 = vpop.eup %11649  ;;  %v8617_v37 = vadd.f32 1.0, %v11648_v44 }
0x18a5   : > { %v9090_v47 = vmul.f32 %v17188_v41, %v9058_v9  ;;  %v17192_v4 = vpop.eup %11651 }
0x18a6   : > { %11663 = vrcp.f32 %v8617_v37  ;;  %v17201_v3 = vpop.eup %11653 }
0x18a7   : > { %v17163_v21 = vpop.permute.xlu0 %8628  ;;  %9133 = vrot.lane.b32.xlu0 %v9088_v11, %s17574_s0  ;;  %v17204_v27 = vpop.eup %11655 }
0x18a8   : > { %v9032_v36 = vpop.permute.xlu1 %9031  ;;  %v17207_v55 = vpop.eup %11657  ;;  %v9089_v19 = vmul.f32 %v17204_v27, %v17158_v51 }
0x18a9   : > { %v9077_v59 = vmul.f32 %v17192_v4, %v9032_v36 }
0x18ab   : > { %v9030_v61 = vpop.permute.xlu0 %9029 }
0x18ac   : > { %v9076_v26 = vmul.f32 %v17178_v40, %v9030_v61  ;;  %v17194_v33 = vpop.permute.xlu1 %8951 }
0x18ae   : > { %9109 = vrot.lane.b32.xlu0 %v9076_v26, %s17574_s0 }
0x18af   : > { %v9034_v14 = vpop.permute.xlu0 %9033  ;;  %v17212_v34 = vpop.eup %11659 }
0x18b0   : > { %v9078_v22 = vmul.f32 %v17174_v23, %v9034_v14  ;;  %v9038_v20 = vpop.permute.xlu1 %9037  ;;  %v17216_v61 = vpop.eup %11661 }
0x18b1   : > { %v9080_v2 = vmul.f32 %v17201_v3, %v9038_v20  ;;  %v8634_v53 = vmul.f32 %v17216_v61, %v17163_v21 }
0x18b2   : > { %9113 = vrot.lane.b32.xlu1 %v9078_v22, %s17574_s0  ;;  %9111 = vrot.lane.b32.xlu0 %v9077_v59, %s17574_s0 }
0x18b3   : > { %v9036_v28 = vpop.permute.xlu0 %9035  ;;  %v17223_v51 = vpop.eup %11663 }
0x18b4   : > { %v9079_v29 = vmul.f32 %v17182_v52, %v9036_v28  ;;  %v9040_v63 = vpop.permute.xlu1 %9039  ;;  %v8635_v24 = vmul.f32 %v17223_v51, %v17161_v31 }
0x18b5   : > { %v9081_v12 = vmul.f32 %v17207_v55, %v9040_v63 }
0x18b6   : > { %9115 = vrot.lane.b32.xlu1 %v9079_v29, %s17574_s0  ;;  %9117 = vrot.lane.b32.xlu0 %v9080_v2, %s17574_s0 }
0x18b7   : > { %v17198_v39 = vpop.permute.xlu0 %8949 }
0x18b8   : > { %v9042_v49 = vpop.permute.xlu1 %9041 }
0x18b9   : > { %v9082_v6 = vmul.f32 %v17212_v34, %v9042_v49 }
0x18ba   : > { %9137 = vrot.lane.b32.xlu1 %v9090_v47, %s17574_s0  ;;  %9135 = vrot.lane.b32.xlu0 %v9089_v19, %s17574_s0 }
0x18bb   : > { %v8966_v5 = vpop.permute.xlu0 %8965 }
0x18bc   : > { %v8948_v14 = vpop.permute.xlu1 %8947  ;;  %v9004_v36 = vmul.f32 %v17133_v10, %v8966_v5 }
0x18be   : > { %9119 = vrot.lane.b32.xlu1 %v9081_v12, %s17574_s0  ;;  %8638 = vrot.lane.b32.xlu0 %v8634_v53, %s17574_s0 }
0x18bf   : > { %v8954_v0 = vpop.permute.xlu0 %8953 }
0x18c0   : > { %v8968_v57 = vpop.permute.xlu1 %8967 }
0x18c2   : > { %9121 = vrot.lane.b32.xlu1 %v9082_v6, %s17574_s0 }
0x18c3   : > { %v8964_v35 = vpop.permute.xlu0 %8963 }
0x18c4   : > { %v8956_v21 = vpop.permute.xlu1 %8955  ;;  %v9003_v7 = vmul.f32 %v17129_v38, %v8964_v35 }
0x18c6   : > { %8640 = vrot.lane.b32.xlu1 %v8635_v24, %s17574_s0  ;;  %v8995_v24 = vmul.f32 %v17165_v43, %v8948_v14 }
0x18c7   : > { %v17228_v22 = vpop.permute.xlu0 %8957 }
0x18c8   : > { %v8970_v9 = vpop.permute.xlu1 %8969 }
0x18c9   : > { %v9006_v59 = vmul.f32 %v17137_v15, %v8970_v9 }
0x18cb   : > { %v8974_v30 = vpop.permute.xlu0 %8973 }
0x18cc   : > { %v8972_v62 = vpop.permute.xlu1 %8971 }
0x18cd   : > { %v9007_v19 = vmul.f32 %v17142_v45, %v8972_v62  ;;  %v9005_v62 = vmul.f32 %v17168_v50, %v8968_v57  ;;  %v8999_v57 = vmul.f32 %v17182_v52, %v8956_v21  ;;  %v9000_v21 = vmul.f32 %v17201_v3, %v17228_v22 }
0x18ce   : > { %v17264_v22 = vsel %vm6968_vm15, %v16886_v18, %v16877_v54  ;;  %v17278_v18 = vsel %vm6969_vm2, %v16904_v58, %v16897_v56 }
0x18cf   : > { %v17230_v11 = vpop.permute.xlu0 %8961 }
0x18d0   : > { %v17233_v26 = vpop.permute.xlu1 %8959 }
0x18d3   : > { %v8978_v28 = vpop.permute.xlu0 %8977 }
0x18d4   : > { %v8976_v44 = vpop.permute.xlu1 %8975 }
0x1906   : > { %v9124_v29 = vpop.permute.xlu0 %9123 }
0x1907   : > { %v9163_v31 = vadd.f32 %v9124_v29, %v9003_v7 }
0x1908   : > { %v9126_v37 = vpop.permute.xlu1 %9125 }
0x1909   : > { %11665 = vtanh.f32 %v9163_v31  ;;  %v9164_v47 = vadd.f32 %v9126_v37, %v9004_v36  ;;  %v9008_v36 = vmul.f32 %v17171_v48, %v8974_v30  ;;  %v9010_v30 = vmul.f32 %v17188_v41, %v8978_v28 }
0x190a   : > { %v9009_v28 = vmul.f32 %v17204_v27, %v8976_v44  ;;  %v8624_v44 = vmul.f32 %v17216_v61, %v17264_v22 }
0x190b   : > { %11667 = vtanh.f32 %v9164_v47 }
0x190c   : > { %v9130_v20 = vpop.permute.xlu1 %9129 }
0x190d   : > { %v9166_v2 = vadd.f32 %v9130_v20, %v9006_v59  ;;  %v8996_v20 = vmul.f32 %v17178_v40, %v17198_v39 }
0x190f   : > { %11669 = vtanh.f32 %v9166_v2  ;;  %v8998_v2 = vmul.f32 %v17174_v23, %v8954_v0 }
0x1910   : > { %v9132_v12 = vpop.permute.xlu1 %9131 }
0x1911   : > { %v9167_v49 = vadd.f32 %v9132_v12, %v9007_v19  ;;  %v9108_v35 = vpop.permute.xlu0 %9107 }
0x1912   : > { %v9155_v9 = vadd.f32 %v9108_v35, %v8995_v24 }
0x1913   : > { %11671 = vtanh.f32 %v9167_v49  ;;  %v8997_v49 = vmul.f32 %v17192_v4, %v17194_v33 }
0x1914   : > { %11673 = vtanh.f32 %v9155_v9 }
0x1915   : > { %v9128_v7 = vpop.permute.xlu0 %9127 }
0x1916   : > { %v11666_v63 = vpop.eup %11665  ;;  %v9165_v29 = vadd.f32 %v9128_v7, %v9005_v62  ;;  %v9001_v62 = vmul.f32 %v17207_v55, %v17233_v26 }
0x1917   : > { %9219 = vrot.lane.b32.xlu1 %v11666_v63, %s17572_s25 }
0x1918   : > { %v11668_v53 = vpop.eup %11667  ;;  %11675 = vtanh.f32 %v9165_v29 }
0x1919   : > { %9221 = vrot.lane.b32.xlu0 %v11668_v53, %s17572_s25  ;;  %v9134_v37 = vpop.permute.xlu0 %9133 }
0x191a   : > { %v9168_v47 = vadd.f32 %v9134_v37, %v9008_v36 }
0x191c   : > { %v11670_v5 = vpop.eup %11669  ;;  %11677 = vtanh.f32 %v9168_v47 }
0x191d   : > { %9225 = vrot.lane.b32.xlu0 %v11670_v5, %s17572_s25 }
0x1920   : > { %v11672_v6 = vpop.eup %11671  ;;  %v9110_v14 = vpop.permute.xlu0 %9109 }
0x1921   : > { %9227 = vrot.lane.b32.xlu0 %v11672_v6, %s17572_s25  ;;  %v9156_v63 = vadd.f32 %v9110_v14, %v8996_v20  ;;  %v11674_v53 = vpop.eup %11673 }
0x1922   : > { %9203 = vrot.lane.b32.xlu1 %v11674_v53, %s17572_s25 }
0x1923   : > { %11679 = vtanh.f32 %v9156_v63 }
0x1924   : > { %v9114_v31 = vpop.permute.xlu1 %9113  ;;  %v9112_v5 = vpop.permute.xlu0 %9111 }
0x1925   : > { %v9158_v19 = vadd.f32 %v9114_v31, %v8998_v2  ;;  %v9157_v39 = vadd.f32 %v9112_v5, %v8997_v49  ;;  %v11676_v24 = vpop.eup %11675  ;;  %v11808_v5 = vld [vmem:[%s14316_s18 + $0x8] sm:$0xff] }
0x1926   : > { %9223 = vrot.lane.b32.xlu1 %v11676_v24, %s17572_s25  ;;  %vm8663_vm15 = vcmp.gt.s32.totalorder %v11808_v5, 7 }
0x1927   : > { %11681 = vtanh.f32 %v9158_v19 }
0x1928   : > { %v9116_v59 = vpop.permute.xlu1 %9115  ;;  %11683 = vtanh.f32 %v9157_v39  ;;  %v9118_v35 = vpop.permute.xlu0 %9117  ;;  %v8665_v39 = vsel %vm8663_vm15, 1, %v17571_v60 }
0x1929   : > { %v9159_v6 = vadd.f32 %v9116_v59, %v8999_v57  ;;  %v9160_v33 = vadd.f32 %v9118_v35, %v9000_v21  ;;  %v11678_v9 = vpop.eup %11677  ;;  %v9002_v59 = vmul.f32 %v17212_v34, %v17230_v11  ;;  %v8625_v11 = vmul.f32 %v17223_v51, %v17278_v18 }
0x192a   : > { %9229 = vrot.lane.b32.xlu0 %v11678_v9, %s17572_s25 }
0x192b   : > { %11685 = vtanh.f32 %v9159_v6 }
0x192c   : > { %v9138_v12 = vpop.permute.xlu1 %9137  ;;  %v9136_v7 = vpop.permute.xlu0 %9135 }
0x192d   : > { %v9170_v0 = vadd.f32 %v9138_v12, %v9010_v30  ;;  %v9169_v31 = vadd.f32 %v9136_v7, %v9009_v28  ;;  %v11807_v12 = vld [vmem:[%s14316_s18] sm:$0xff]  ;;  %s17404_s18 = scalar_lea.hbm %s17458_s13, %s9954_s26 }
0x192e   : > { %vm8662_vm14 = vcmp.gt.s32.totalorder %v11807_v12, 7 }
0x192f   : > { %11687 = vtanh.f32 %v9170_v0  ;;  %v8664_v30 = vsel %vm8662_vm14, 1, %v17571_v60 }
0x1930   : > { %v9120_v29 = vpop.permute.xlu1 %9119  ;;  %11689 = vtanh.f32 %v9160_v33  ;;  %v11680_v37 = vpop.eup %11679 }
0x1931   : > { %v9161_v36 = vadd.f32 %v9120_v29, %v9001_v62  ;;  %11691 = vtanh.f32 %v9169_v31  ;;  %v8639_v47 = vpop.permute.xlu0 %8638  ;;  %9205 = vrot.lane.b32.xlu0 %v11680_v37, %s17572_s25 }
0x1932   : > { %v17270_v20 = vadd.f32 %v8639_v47, %v8624_v44 }
0x1933   : > { %11693 = vtanh.f32 %v9161_v36 }
0x1934   : > { %v9122_v26 = vpop.permute.xlu1 %9121  ;;  %v11682_v2 = vpop.eup %11681  ;;  %11695 = vtanh.f32 %v17270_v20 }
0x1935   : > { %v9162_v25 = vadd.f32 %v9122_v26, %v9002_v59  ;;  %v11684_v54 = vpop.eup %11683  ;;  %9209 = vrot.lane.b32.xlu0 %v11682_v2, %s17572_s25 }
0x1936   : > { %9207 = vrot.lane.b32.xlu1 %v11684_v54, %s17572_s25 }
0x1937   : > { %11697 = vtanh.f32 %v9162_v25 }
0x1938   : > { %v8641_v14 = vpop.permute.xlu1 %8640  ;;  %v11686_v63 = vpop.eup %11685 }
0x1939   : > { %v17284_v57 = vadd.f32 %v8641_v14, %v8625_v11  ;;  %9211 = vrot.lane.b32.xlu0 %v11686_v63, %s17572_s25 }
0x193b   : > { %11699 = vtanh.f32 %v17284_v57 }
0x193c   : > { %v11688_v19 = vpop.eup %11687 }
0x193d   : > { %9233 = vrot.lane.b32.xlu1 %v11688_v19, %s17572_s25  ;;  %v11690_v17 = vpop.eup %11689 }
0x193e   : > { %v11692_v56 = vpop.eup %11691 }
0x193f   : > { %9231 = vrot.lane.b32.xlu0 %v11692_v56, %s17572_s25 }
0x1940   : > { %v11694_v58 = vpop.eup %11693 }
0x1941   : > { %9213 = vrot.lane.b32.xlu1 %v11690_v17, %s17572_s25  ;;  %v11696_v49 = vpop.eup %11695 }
0x1943   : > { %8650 = vrot.lane.b32.xlu0 %v11696_v49, %s17572_s25 }
0x1944   : > { %v11698_v53 = vpop.eup %11697 }
0x1945   : > { %9215 = vrot.lane.b32.xlu1 %v11694_v58, %s17572_s25 }
0x1947   : > { %8667 = vperm.xlu0 %10499, %v8664_v30  }
0x1948   : > { %v11700_v6 = vpop.eup %11699 }
0x1949   : > { %9217 = vrot.lane.b32.xlu1 %v11698_v53, %s17572_s25 }
0x194d   : > { %8652 = vrot.lane.b32.xlu1 %v11700_v6, %s17572_s25 }
0x1951   : > { %8670 = vperm.xlu1 %10500, %v8665_v39  }
0x1989   : > { %v9220_v24 = vpop.permute.xlu1 %9219 }
0x198a   : > { %v9259_v44 = vmul.f32 %v17129_v38, %v9220_v24 }
0x198b   : > { %v9222_v0 = vpop.permute.xlu0 %9221 }
0x198c   : > { %v9260_v62 = vmul.f32 %v17133_v10, %v9222_v0 }
0x198e   : > { %v9297_v31 = vrot.slane %v9260_v62, 7 }
0x198f   : > { %v9226_v21 = vpop.permute.xlu0 %9225 }
0x1990   : > { %v9262_v37 = vmul.f32 %v17137_v15, %v9226_v21  ;;  %v9298_v26 = vsel %vm3305_vm9, %v9297_v31, %v9259_v44 }
0x1992   : > { %v9301_v25 = vrot.slane %v9262_v37, 5 }
0x1993   : > { %v9228_v33 = vpop.permute.xlu0 %9227 }
0x1994   : > { %v9204_v35 = vpop.permute.xlu1 %9203  ;;  %v9263_v59 = vmul.f32 %v17142_v45, %v9228_v33 }
0x1995   : > { %v9251_v53 = vmul.f32 %v17165_v43, %v9204_v35 }
0x1996   : > { %v9303_v11 = vrot.slane %v9263_v59, 4 }
0x1998   : > { %v9224_v28 = vpop.permute.xlu1 %9223 }
0x1999   : > { %v9261_v7 = vmul.f32 %v17168_v50, %v9224_v28 }
0x199b   : > { %v9299_v36 = vrot.slane %v9261_v7, 6 }
0x199c   : > { %v9230_v9 = vpop.permute.xlu0 %9229 }
0x199d   : > { %v9300_v2 = vsel %vm3308_vm12, %v9299_v36, %v9298_v26  ;;  %v9264_v10 = vmul.f32 %v17171_v48, %v9230_v9 }
0x199e   : > { %v9302_v63 = vsel %vm3311_vm13, %v9301_v25, %v9300_v2 }
0x199f   : > { %v9305_v19 = vrot.slane %v9264_v10, 3  ;;  %v9304_v45 = vsel %vm3314_vm11, %v9303_v11, %v9302_v63 }
0x19a1   : > { %v9306_v5 = vsel %vm3317_vm8, %v9305_v19, %v9304_v45 }
0x19a3   : > { %v9206_v29 = vpop.permute.xlu0 %9205 }
0x19a4   : > { %v9252_v14 = vmul.f32 %v17178_v40, %v9206_v29 }
0x19a6   : > { %v9283_v58 = vrot.slane %v9252_v14, 7 }
0x19a7   : > { %v9210_v60 = vpop.permute.xlu0 %9209 }
0x19a8   : > { %v9208_v47 = vpop.permute.xlu1 %9207  ;;  %v9254_v12 = vmul.f32 %v17174_v23, %v9210_v60  ;;  %v9284_v39 = vsel %vm3305_vm9, %v9283_v58, %v9251_v53 }
0x19a9   : > { %v9253_v38 = vmul.f32 %v17192_v4, %v9208_v47 }
0x19aa   : > { %v9287_v0 = vrot.slane %v9254_v12, 5 }
0x19ab   : > { %v9212_v54 = vpop.permute.xlu0 %9211  ;;  %v9285_v49 = vrot.slane %v9253_v38, 6 }
0x19ac   : > { %v9255_v40 = vmul.f32 %v17182_v52, %v9212_v54 }
0x19ae   : > { %v9289_v21 = vrot.slane %v9255_v40, 4  ;;  %v8661_v40 = vsel %vm7821_vm5, %v17284_v57, %v17278_v18 }
0x19af   : > { %v9234_v50 = vpop.permute.xlu1 %9233 }
0x19b0   : > { %v9266_v15 = vmul.f32 %v17188_v41, %v9234_v50 }
0x19b1   : > { %v9232_v17 = vpop.permute.xlu0 %9231 }
0x19b2   : > { %v9265_v48 = vmul.f32 %v17204_v27, %v9232_v17  ;;  %v9309_v30 = vrot.slane %v9266_v15, 1  ;;  %v9286_v27 = vsel %vm3308_vm12, %v9285_v49, %v9284_v39 }
0x19b3   : > { %v9214_v56 = vpop.permute.xlu1 %9213  ;;  %v9288_v35 = vsel %vm3311_vm13, %v9287_v0, %v9286_v27  ;;  %v9461_v0 = vld [vmem:[%s17457_s12 + $0x8] sm:$0xff]  ;;  %vm9468_vm13 = vcmask 130048  }
0x19b4   : > { %v9307_v4 = vrot.slane %v9265_v48, 2  ;;  %v9256_v41 = vmul.f32 %v17201_v3, %v9214_v56  ;;  %v9290_v9 = vsel %vm3314_vm11, %v9289_v21, %v9288_v35  ;;  %10373 = vmatprep.subr.mxu0 %v9461_v0 }
0x19b5   : > { %v8651_v62 = vpop.permute.xlu0 %8650  ;;  %10374 = vmatpush3.msra.mxu0 %v9461_v0 }
0x19b6   : > { %v9308_v24 = vsel %vm3320_vm10, %v9307_v4, %v9306_v5  ;;  %v9291_v33 = vrot.slane %v9256_v41, 3  ;;  %v8656_v36 = vmul.f32 %v17216_v61, %v8651_v62  ;;  %v8660_v41 = vsel %vm7820_vm6, %v17270_v20, %v17264_v22  ;;  %10375 = vmatprep.subr.mxu0 %v9460_v42 }
0x19b7   : > { %v9216_v6 = vpop.permute.xlu1 %9215  ;;  %v9310_v52 = vsel %vm3323_vm7, %v9309_v30, %v9308_v24  ;;  %10376 = vmatpush3.msra.mxu0 %v9460_v42 }
0x19b8   : > { %v9257_v23 = vmul.f32 %v17207_v55, %v9216_v6  ;;  %9313 = vrot.lane.b32.xlu1 %v9310_v52, %s17574_s0  ;;  %v9292_v7 = vsel %vm3317_vm8, %v9291_v33, %v9290_v9  ;;  %v17343_v60 = vsel %vm7820_vm6, %v8656_v36, %v16957_v32 }
0x19ba   : > { %v9293_v43 = vrot.slane %v9257_v23, 2 }
0x19bb   : > { %v9218_v3 = vpop.permute.xlu1 %9217 }
0x19bc   : > { %v9258_v28 = vmul.f32 %v17212_v34, %v9218_v3  ;;  %v9294_v29 = vsel %vm3320_vm10, %v9293_v43, %v9292_v7  ;;  %vm9570_vm10 = vcmask 138240  }
0x19be   : > { %v9295_v55 = vrot.slane %v9258_v28, 1 }
0x19bf   : > { %v8653_v31 = vpop.permute.xlu1 %8652 }
0x19c0   : > { %v8657_v44 = vmul.f32 %v17223_v51, %v8653_v31  ;;  %v9296_v37 = vsel %vm3323_vm7, %v9295_v55, %v9294_v29 }
0x19c1   : > { %9311 = vrot.lane.b32.xlu0 %v9296_v37, %s17574_s0 }
0x19c2   : > { %v17336_v34 = vsel %vm7821_vm5, %v8657_v44, %v16966_v8  ;;  %v17349_v51 = vpop.permute.xlu0 %8667 }
0x19c3   : > { %9323 = vrot.lane.b32.xlu1 %v17336_v34, %s17572_s25  ;;  %vm8672_vm9 = vcmp.eq.s32.totalorder %v17349_v51, 1 }
0x19c5   : > { %9321 = vrot.lane.b32.xlu0 %v17343_v60, %s17572_s25 }
0x19cc   : > { %v17347_v61 = vpop.permute.xlu1 %8670 }
0x19cd   : > { %vm8673_vm12 = vcmp.eq.s32.totalorder %v17347_v61, 1 }
0x1a2a   : > { %v9314_v47 = vpop.permute.xlu1 %9313 }
0x1a2b   : > { %v9318_v2 = vsel %vm8673_vm12, %v9314_v47, %v16992_v1 }
0x1a33   : > { %v9312_v26 = vpop.permute.xlu0 %9311 }
0x1a34   : > { %v9317_v59 = vsel %vm8672_vm9, %v9312_v26, %v16982_v46 }
0x1a35   : > { %v9324_v8 = vpop.permute.xlu1 %9323 }
0x1a36   : > { %v9328_v10 = vsel %vm2777_vm1, %v9318_v2, %v9324_v8 }
0x1a37   : > { %v9322_v32 = vpop.permute.xlu0 %9321 }
0x1a38   : > { %v9327_v25 = vsel %vm2777_vm1, %v9317_v59, %v9322_v32 }
0x1a39   : > { %10370 = vmatprep.mubr.msk.f32.mxu1 %vm3416_vm0, %v9327_v25 }
0x1a3a   : > { %10371 = vmatmul.mubr.msk.f32.vlgmr.msra.gmra.mxu1 %vm3416_vm0, %v9328_v10 }
0x1afa   : > { %v10372_v54 = vpop.f32.mrf.mxu1 }
0x1afb   : > { %v9407_v50 = vadd.f32 %v17051_v13, %v10372_v54 }
0x1afc   : > { %v9401_v14 = vpop.f32.mrf.mxu1 }
0x1afd   : > { %11701 = vtanh.f32 %v9407_v50  ;;  %v9402_v46 = vadd.f32 %v17051_v13, %v9401_v14  ;;  %v9946_v38 = vmul.f32 -1.442695, %v9407_v50 }
0x1aff   : > { %11703 = vtanh.f32 %v9402_v46  ;;  %v9945_v15 = vmul.f32 -1.442695, %v9402_v46 }
0x1b00   : > { %11705 = vpow2.f32 %v9946_v38 }
0x1b01   : > { %11707 = vpow2.f32 %v9945_v15 }
0x1b0a   : > { %v11702_v63 = vpop.eup %11701 }
0x1b0b   : > { %9430 = vrot.lane.b32.xlu1 %v11702_v63, %s17572_s25 }
0x1b0c   : > { %v11704_v1 = vpop.eup %11703 }
0x1b0d   : > { %9428 = vrot.lane.b32.xlu0 %v11704_v1, %s17572_s25  ;;  %v11706_v11 = vpop.eup %11705 }
0x1b0e   : > { %v11708_v19 = vpop.eup %11707  ;;  %v9417_v17 = vadd.f32 1.0, %v11706_v11 }
0x1b0f   : > { %v9416_v56 = vadd.f32 1.0, %v11708_v19 }
0x1b10   : > { %11709 = vrcp.f32 %v9417_v17 }
0x1b11   : > { %11711 = vrcp.f32 %v9416_v56 }
0x1b1d   : > { %v11710_v45 = vpop.eup %11709 }
0x1b1e   : > { %v11712_v12 = vpop.eup %11711  ;;  %v9425_v30 = vmul.f32 %v11710_v45, %v8661_v40 }
0x1b1f   : > { %v9424_v5 = vmul.f32 %v11712_v12, %v8660_v41 }
0x1b7d   : > { %v9431_v58 = vpop.permute.xlu1 %9430 }
0x1b7e   : > { %v9435_v13 = vmul.f32 %v11710_v45, %v9431_v58 }
0x1b7f   : > { %v9429_v48 = vpop.permute.xlu0 %9428 }
0x1b80   : > { %9440 = vrot.lane.b32.xlu1 %v9435_v13, %s17574_s0  ;;  %v9434_v49 = vmul.f32 %v11712_v12, %v9429_v48 }
0x1b82   : > { %9438 = vrot.lane.b32.xlu0 %v9434_v49, %s17574_s0 }
0x1bf2   : > { %v9441_v53 = vpop.permute.xlu1 %9440 }
0x1bf3   : > { %v9445_v4 = vadd.f32 %v9441_v53, %v9425_v30 }
0x1bf4   : > { %v9439_v6 = vpop.permute.xlu0 %9438 }
0x1bf5   : > { %11713 = vtanh.f32 %v9445_v4  ;;  %v9444_v39 = vadd.f32 %v9439_v6, %v9424_v5 }
0x1bf7   : > { %11715 = vtanh.f32 %v9444_v39 }
0x1c02   : > { %v11714_v16 = vpop.eup %11713 }
0x1c03   : > { %9452 = vrot.lane.b32.xlu1 %v11714_v16, %s17572_s25 }
0x1c04   : > { %v11716_v18 = vpop.eup %11715 }
0x1c05   : > { %9450 = vrot.lane.b32.xlu0 %v11716_v18, %s17572_s25  ;;  %s468_s25 = sand.u32 1, %s11861_s30  }
0x1c06   : > { %s17406_s5 = scalar_lea.sflag [#allocation6], %s468_s25 }
0x1c75   : > { %v9453_v22 = vpop.permute.xlu1 %9452 }
0x1c76   : > { %v9457_v20 = vmul.f32 %v11710_v45, %v9453_v22 }
0x1c77   : > { %v9451_v57 = vpop.permute.xlu0 %9450 }
0x1c78   : > { %v9459_v24 = vsel %vm8673_vm12, %v9457_v20, %v17336_v34  ;;  %v9456_v23 = vmul.f32 %v11712_v12, %v9451_v57 }
0x1c79   : > { %9466 = vrot.lane.b32.xlu1 %v9459_v24, %s11884_s22 }
0x1c7a   : > { %v9458_v27 = vsel %vm8672_vm9, %v9456_v23, %v17343_v60 }
0x1c7b   : > { %9464 = vrot.lane.b32.xlu0 %v9458_v27, %s11884_s22 }
0x1c7d   : > { %9556 = vrot.lane.b32.xlu1 %v9459_v24, %s17574_s0 }
0x1c7f   : > { %9554 = vrot.lane.b32.xlu0 %v9458_v27, %s17574_s0  ;;  %s9679_s0 = sshll.u32 %s468_s25, 4 }
0x1c80   : > { %s470_s23 = scalar_lea.vmem [#allocation5], %s9679_s0 }
0x1c81   : > { %s9589_s1 = sshll.u32 %s470_s23, 4  ;;  %s17398_s1 = int_to_ptr.vmem [resolvable:$true] %s9589_s1 }
0x1c82   : > { %s11809_s27 = scalar_lea.vmem %s17398_s1, 256  ;;  %p11816_p1 = scmp.lt.s32.totalorder %s17398_s1, %s11814_s28 }
0x1c83   : > { %p11810_p12 = scmp.ne.s32.totalorder %s17398_s1, %s11809_s27 }
0x1c85   : > { %p11811_p13 = pnand %p11810_p12, %p12002_p5 }
0x1c87   : > { %p11812_p0 = pneg %p11811_p13 }
0x1ceb   : > { %v9467_v52 = vpop.permute.xlu1 %9466 }
0x1ced   : > { %v9465_v21 = vpop.permute.xlu0 %9464 }
0x1cee   : > { %10377 = vmatprep.mubr.msk.f32.mxu0 %vm9468_vm13, %v9465_v21 }
0x1cef   : > { %10378 = vmatmul.mubr.msk.f32.vlgmr.msra.gmra.mxu0 %vm9468_vm13, %v9467_v52  ;;  %v9557_v62 = vpop.permute.xlu1 %9556 }
0x1cf1   : > { %v9555_v7 = vpop.permute.xlu0 %9554 }
0x1daf   : > { %v10379_v33 = vpop.f32.mrf.mxu0 }
0x1db0   : > { %vm9549_vm11 = vcmp.ge.f32.partialorder %v10379_v33, 0.0  ;;  %v9551_v43 = vmul.f32 0.01, %v10379_v33 }
0x1db1   : > { %v9539_v3 = vpop.f32.mrf.mxu0 }
0x1db2   : > { %vm9548_vm8 = vcmp.ge.f32.partialorder %v9539_v3, 0.0  ;;  %v9550_v35 = vmul.f32 0.01, %v9539_v3  ;;  %v9553_v28 = vsel %vm9549_vm11, %v10379_v33, %v9551_v43 }
0x1db3   : > { %9564 = vrot.lane.b32.xlu1 %v9553_v28, %s11884_s22 }
0x1db4   : > { %v9552_v9 = vsel %vm9548_vm8, %v9539_v3, %v9550_v35 }
0x1db5   : > { %9562 = vrot.lane.b32.xlu0 %v9552_v9, %s11884_s22  ;;  %s11815_s22 = scalar_lea.vmem %s11814_s28, 512 }
0x1db6   : > { %p11817_p2 = scmp.lt.s32.totalorder %s11815_s22, %s11809_s27 }
0x1db8   : > { %p11818_p3 = por %p11817_p2, %p11816_p1 }
0x1dba   : > { %p11819_p4 = pnand %p11818_p3, %p11812_p0 }
0x1e25   : > { %v9565_v55 = vpop.permute.xlu1 %9564 }
0x1e26   : > { %v9569_v29 = vsel %vm9468_vm13, %v9557_v62, %v9565_v55 }
0x1e27   : > { %v9572_v31 = vsel %vm9570_vm10, %v9569_v29, 0.0  ;;  %v9563_v36 = vpop.permute.xlu0 %9562 }
0x1e28   : > { %9574 = vst [vmem:[%s470_s23 + $0x8] sm:$0xff] %v9572_v31  ;;  %v9568_v44 = vsel %vm9468_vm13, %v9555_v7, %v9563_v36 }
0x1e29   : > { %v9571_v37 = vsel %vm9570_vm10, %v9568_v44, 0.0 }
0x1e2a   : > { %9573 = vst [vmem:[%s470_s23] sm:$0xff] %v9571_v37 }
0x1e2b   : > { %11822 = shalt.err (!%p11819_p4)
}
0x1e2c   : > { %s11823_s25 = scalar_lea.hbm %s17404_s18, 256  ;;  %s11827_s26 = scalar_lea.hbm %s17458_s13, 512 }
0x1e2d   : > { %p11824_p7 = scmp.ne.s32.totalorder %s17404_s18, %s11823_s25  ;;  %p11828_p10 = scmp.lt.s32.totalorder %s17404_s18, %s17458_s13 }
0x1e2e   : > { %p11829_p11 = scmp.lt.s32.totalorder %s11827_s26, %s11823_s25 }
0x1e2f   : > { %p11825_p8 = pnand %p11824_p7, %p12002_p5 }
0x1e30   : > { %p11830_p12 = por %p11829_p11, %p11828_p10 }
0x1e31   : > { %p11826_p9 = pneg %p11825_p8 }
0x1e33   : > { %p11831_p13 = pnand %p11830_p12, %p11826_p9 }
0x1e35   : > { %11834 = shalt.err (!%p11831_p13)
}
0x1e36   : > { %s11886_s27 = smov 128   ;;  %s11887_s6 = smov 8  }
0x1e37   : > { %10444 = dma.vmem_to_hbm [thread:$0]  (%p12002_p5), %s17398_s1, 256, %s17404_s18, %s17406_s5, %s11886_s27, %s11886_s27, %s11887_s6  }
0x1e38 PF: > { %p10450_p0 = scmp.ge.s32.totalorder %s11869_s15, 2  ;;  %s9604_s28 = sand.u32 1, %s11857_s29  }
0x1e39   : > { %s9605_s22 = scalar_lea.sflag [#allocation6], %s9604_s28 }
0x1e3a   : > { %p10447_p1 = pnand %p10450_p0, %p12006_p6 }
0x1e3c   : > { %p10448_p2 = pneg %p10447_p1 }
0x1e3e   : > { %11852 = dma.done.wait (%p10448_p2), %s9605_s22, 256  }
0x1e3f   : > { %11854 = vsyncadd (%p10448_p2), %s9605_s22, 4294967040  ;;  %p27_p3 = scmp.ge.s32.totalorder %s11989_s16, 4   ;;  %s17575_s29 = smov %s11861_s30 }
0x1e40   : > { %s17576_s30 = smov %s11865_s14  ;;  %s17577_s14 = smov %s12000_s19 }
0x1e41   : > { %s17578_s15 = smov %s11989_s16  ;;  %29 = sbr.rel (!%p27_p3) target bundleno = 6 (0x6), region = 113 }
0x1e46   :  { %9610 = vsyncpa [#allocation6], 1 }
0x1e47   :  { %9612 = vsyncpa [#allocation6 + $0x1], 1 }

</bundles_post_ra>
